<compile_context>
chip_gen: v5e
topology: v5e:2x2
jax: 0.10.0
libtpu: 0.0.40
codegen_flags: <defaults>
</compile_context>

<pallas_src>
import functools
from typing import NamedTuple

import numpy as np
import jax
import jax.numpy as jnp
from jax.experimental import pallas as pl
from jax.experimental.pallas import tpu as pltpu


class PolicyCfg(NamedTuple):
    C: int
    H: int
    W: int
    conv_cfg: tuple          # ((KH, stride, OH), ...) for the 3 conv layers
    num_actions: int


_WEIGHT_ORDER = ("m1", "b1", "m2", "b2", "m3", "b3", "w4", "b4", "w5", "b5")


# ----------------------------------------------------------------------------
# The single fused kernel: conv1..conv3 + fc1 + fc2, all VMEM-resident.
# ----------------------------------------------------------------------------
def _policy_net_kernel(x_ref, m1_ref, b1_ref, m2_ref, b2_ref, m3_ref, b3_ref,
                       w4_ref, b4_ref, w5_ref, b5_ref, out_ref,
                       r1_ref, r2_ref, a1_ref, a2_ref, a3_ref, a4_ref,
                       *, conv_cfg, tile_b):
    f32 = jnp.float32
    (kh1, s1, oh1), (kh2, s2, oh2), (kh3, s3, oh3) = conv_cfg

    def acc_dot(acc_ref, first, lhs, rhs):
        d = jnp.dot(lhs, rhs, preferred_element_type=f32).reshape(acc_ref.shape)
        if first:
            acc_ref[...] = d
        else:
            acc_ref[...] += d

    def relu_bf16(v, b_ref):
        return jnp.maximum(v + b_ref[...], 0.0).astype(jnp.bfloat16)

    # --- conv1: one MXU dot per kernel row, M = OH1*tile_b.  The phase-split
    # input layout (s1, H/s1, tile_b, C*W) makes every row gather a contiguous
    # leading-dim slice (no strided loads).
    for i in range(kh1):
        rows = x_ref[i % s1, pl.ds(i // s1, oh1)].reshape(oh1 * tile_b, -1)
        acc_dot(a1_ref, i == 0, rows, m1_ref[i])
    # bias + ReLU + bf16, re-stored phase-split over conv2's stride.
    for oh in range(oh1):
        r1_ref[oh % s2, oh // s2] = relu_bf16(a1_ref[oh], b1_ref)

    # --- conv2: one dot per kernel row, contiguous reads from the phase-split
    # r1 scratch.
    for i in range(kh2):
        rows = r1_ref[i % s2, pl.ds(i // s2, oh2)].reshape(oh2 * tile_b, -1)
        acc_dot(a2_ref, i == 0, rows, m2_ref[i])
    r2_ref[...] = relu_bf16(a2_ref[...], b2_ref)

    # --- conv3 (stride 1 -> contiguous reads, no phase split).
    for i in range(kh3):
        rows = r2_ref[pl.ds(i, oh3)].reshape(oh3 * tile_b, -1)
        acc_dot(a3_ref, i == 0, rows, m3_ref[i])

    # --- fc1: torch's NCHW flatten is folded into w4's row permutation at
    # prep time, so the "flatten" is a sum of per-spatial-row matmuls.
    for oh in range(oh3):
        acc_dot(a4_ref, oh == 0, relu_bf16(a3_ref[oh], b3_ref), w4_ref[oh])

    # --- fc2 -> lane-dense (padded to 128) f32 logits: unmasked vreg stores.
    hidden = relu_bf16(a4_ref[...], b4_ref)
    out_ref[...] = jnp.dot(hidden, w5_ref[...],
                           preferred_element_type=f32) + b5_ref[...]


# ----------------------------------------------------------------------------
# One-time parameter preparation (hoisted out of the hot path).
# ----------------------------------------------------------------------------
def prepare_params(params, img_size):
    C, H, W = img_size

    def osz(s, k, st):
        return (s - k) // st + 1

    OH1, OW1 = osz(H, 8, 4), osz(W, 8, 4)
    OH2, OW2 = osz(OH1, 4, 2), osz(OW1, 4, 2)
    OH3, OW3 = osz(OH2, 3, 1), osz(OW2, 3, 1)
    assert min(OH1, OW1, OH2, OW2, OH3, OW3) >= 1, "image too small for conv stack"

    def pad128(n):
        return max(128, -(-n // 128) * 128)

    OC1 = int(params["conv1_w"].shape[0])
    OC2 = int(params["conv2_w"].shape[0])
    OC3 = int(params["conv3_w"].shape[0])
    F1, F2, F3 = OW1 * OC1, OW2 * OC2, OW3 * OC3
    F1p, F2p, F3p = pad128(F1), pad128(F2), pad128(F3)
    A = int(params["fc2_b"].shape[0])
    Ap = pad128(A)
    hid = int(params["fc1_b"].shape[0])

    def conv_mats(w, w_in, stride, ow_out, k_pad, n_pad, cw_input):
        # m[i, k, ow*OC + oc] encodes the strided 1-D conv along W for kernel
        # row i (sparse-as-dense; sizes are tiny so the zeros are free).
        # Input K layout: c*W_in + col ("cw", conv1 reads the staged image) or
        # col*C_in + c ("wc", conv2/3 read a previous conv's ow*OC+oc output).
        w = np.asarray(w, np.float32)
        OC, Cin, KH, KW = w.shape
        wt = np.transpose(w, (2, 3, 1, 0))                    # (KH, KW, Cin, OC)
        m = np.zeros((KH, k_pad, n_pad), np.float32)
        for ow in range(ow_out):
            for j in range(KW):
                col = ow * stride + j
                rows = (slice(col, Cin * w_in, w_in) if cw_input
                        else slice(col * Cin, (col + 1) * Cin))
                m[:, rows, ow * OC:(ow + 1) * OC] = wt[:, j]
        return jnp.asarray(m, jnp.bfloat16)

    def conv_bias(b, reps, n_pad):
        b = np.asarray(b, np.float32)
        out = np.zeros((1, n_pad), np.float32)
        out[0, :b.size * reps] = np.tile(b, reps)
        return jnp.asarray(out)

    # fc1: torch's NCHW flatten order (c*OH3*OW3 + oh*OW3 + ow) folded into
    # w4's row permutation; K dim padded to F3p with zero rows.
    fc1 = np.asarray(params["fc1_w"], np.float32)             # (hid, OC3*OH3*OW3)
    w4 = (fc1.reshape(hid, OC3, OH3, OW3).transpose(2, 3, 1, 0)
             .reshape(OH3, OW3 * OC3, hid))
    w4p = np.zeros((OH3, F3p, hid), np.float32)
    w4p[:, :F3, :] = w4

    fc2 = np.asarray(params["fc2_w"], np.float32)             # (A, hid)
    w5p = np.zeros((hid, Ap), np.float32)
    w5p[:, :A] = fc2.T
    b5p = np.zeros((1, Ap), np.float32)
    b5p[0, :A] = np.asarray(params["fc2_b"], np.float32)

    weights = {
        "m1": conv_mats(params["conv1_w"], W,   4, OW1, C * W, F1p, True),
        "b1": conv_bias(params["conv1_b"], OW1, F1p),
        "m2": conv_mats(params["conv2_w"], OW1, 2, OW2, F1p,   F2p, False),
        "b2": conv_bias(params["conv2_b"], OW2, F2p),
        "m3": conv_mats(params["conv3_w"], OW2, 1, OW3, F2p,   F3p, False),
        "b3": conv_bias(params["conv3_b"], OW3, F3p),
        "w4": jnp.asarray(w4p, jnp.bfloat16),
        "b4": jnp.asarray(np.asarray(params["fc1_b"], np.float32)[None, :]),
        "w5": jnp.asarray(w5p, jnp.bfloat16),
        "b5": jnp.asarray(b5p),
    }
    cfg = PolicyCfg(C=C, H=H, W=W,
                    conv_cfg=((8, 4, OH1), (4, 2, OH2), (3, 1, OH3)),
                    num_actions=A)
    return weights, cfg


def _replicated_spec(shape):
    nd = len(shape)
    return pl.BlockSpec(tuple(shape), lambda b, _nd=nd: (0,) * _nd)


def _tensorcores_per_chip():
    try:
        kind = jax.devices()[0].device_kind.lower()
    except Exception:
        return 1
    # v7x has 2 TensorCores per chip; v4/v5p megacore also shards "parallel"
    # grid axes across 2 cores.  Inference parts (v5e/v6e) have 1.
    return 2 if ("7" in kind or "v4" in kind or "v5p" in kind) else 1


def _pick_batch_tile(n, num_cores=1, cap=512):
    """Largest batch tile that divides n, is sublane-aligned (multiple of
    16/8, or the full batch), stays under the VMEM-derived cap, and leaves at
    least `num_cores` grid steps so both v7x TensorCores get work."""
    hi = min(n, cap)
    for align in (16, 8):
        for t in range(hi, align - 1, -1):
            if n % t == 0 and t % align == 0 and n // t >= num_cores:
                return t
    return n     # awkward batch: caller pads the batch if this exceeds the cap


# ----------------------------------------------------------------------------
# PolicyNet.forward
# ----------------------------------------------------------------------------
@functools.partial(jax.jit, static_argnames=("cfg",))
def policy_net_forward(weights, x, *, cfg):
    """x: (N, C, H, W) float32 -> logits (N, num_actions) float32."""
    N = x.shape[0]
    C, H, W = cfg.C, cfg.H, cfg.W
    (kh1, s1, oh1), (kh2, s2, oh2), (kh3, s3, oh3) = cfg.conv_cfg
    assert x.shape[1:] == (C, H, W)
    cw = C * W
    f1p = weights["m1"].shape[2]
    f2p = weights["m2"].shape[2]
    f3p = weights["m3"].shape[2]
    hid = weights["w4"].shape[2]
    a_pad = weights["w5"].shape[1]
    q1 = -(-oh1 // s2)
    hq = -(-H // s1)

    # VMEM budgeting (review: tile as big as possible but guard the cap; v7x
    # only has 64 MiB physical VMEM).
    per_elem = (2 * (s1 * hq * cw) * 2                          # x block, dbl-buffered bf16
                + (s2 * q1 * f1p + oh2 * f2p) * 2               # r1/r2 bf16 scratch
                + (oh1 * f1p + oh2 * f2p + oh3 * f3p + hid) * 4  # f32 accumulators
                + 2 * a_pad * 4)                                # out block, dbl-buffered
    weight_bytes = 2 * sum(int(np.prod(weights[k].shape)) * weights[k].dtype.itemsize
                           for k in _WEIGHT_ORDER)
    budget = 24 * 1024 * 1024
    cap = int(max(16, min(512, (budget - weight_bytes) // max(per_elem, 1))))

    tile_b = _pick_batch_tile(N, _tensorcores_per_chip(), cap)
    n_pad = N
    if tile_b > cap:          # non-factorable large batch: pad instead of one huge block
        tile_b = max(16, (cap // 16) * 16)
        n_pad = -(-N // tile_b) * tile_b
    pad_n, pad_h = n_pad - N, hq * s1 - H
    if pad_n or pad_h:
        x = jnp.pad(x, ((0, pad_n), (0, 0), (0, pad_h), (0, 0)))

    # Input staging: NCHW -> phase-split rows (s1, H/s1, N, C*W), bf16.  Only
    # major dims are permuted (W stays minormost) so this is a coarse copy,
    # not a lane relayout; the phase split makes every in-kernel conv1 row
    # gather a contiguous leading-dim slice.
    x_ph = (x.reshape(n_pad, C, hq, s1, W)
             .transpose(3, 2, 0, 1, 4)
             .reshape(s1, hq, n_pad, cw)
             .astype(jnp.bfloat16))

    kern = functools.partial(_policy_net_kernel, conv_cfg=cfg.conv_cfg,
                             tile_b=tile_b)
    out = pl.pallas_call(
        kern,
        out_shape=jax.ShapeDtypeStruct((n_pad, a_pad), jnp.float32),
        grid=(n_pad // tile_b,),
        in_specs=[pl.BlockSpec((s1, hq, tile_b, cw), lambda b: (0, 0, b, 0))]
                + [_replicated_spec(weights[k].shape) for k in _WEIGHT_ORDER],
        out_specs=pl.BlockSpec((tile_b, a_pad), lambda b: (b, 0)),
        scratch_shapes=[
            pltpu.VMEM((s2, q1, tile_b, f1p), jnp.bfloat16),   # r1 (phase-split)
            pltpu.VMEM((oh2, tile_b, f2p), jnp.bfloat16),      # r2
            pltpu.VMEM((oh1, tile_b, f1p), jnp.float32),       # conv1 f32 acc
            pltpu.VMEM((oh2, tile_b, f2p), jnp.float32),       # conv2 f32 acc
            pltpu.VMEM((oh3, tile_b, f3p), jnp.float32),       # conv3 f32 acc
            pltpu.VMEM((tile_b, hid), jnp.float32),            # fc1  f32 acc
        ],
        compiler_params=pltpu.CompilerParams(
            dimension_semantics=("parallel",),
            vmem_limit_bytes=32 * 1024 * 1024),
    )(x_ph, *[weights[k] for k in _WEIGHT_ORDER])

    return out[:N, :cfg.num_actions]


# ----------------------------------------------------------------------------
# Parameter init (deterministic orthogonal, zero bias, like the PyTorch module)
# ----------------------------------------------------------------------------
def orthogonal_init(key, shape, gain=1.0):
    rows = shape[0]
    cols = int(np.prod(shape[1:]))
    flat = jax.random.normal(key, (rows, cols), jnp.float32)
    if rows < cols:
        flat = flat.T
    q, r = jnp.linalg.qr(flat)
    d = jnp.diag(r)
    q = q * jnp.where(d >= 0, 1.0, -1.0)      # avoid sign(0) == 0 hazard
    if rows < cols:
        q = q.T
    return (gain * q).reshape(shape)


def conv_out_size(s):
    s = (s - 8) // 4 + 1
    s = (s - 4) // 2 + 1
    s = (s - 3) // 1 + 1
    return s


def init_params(key, img_size, num_actions):
    C, H, W = img_size
    feat_size = 64 * conv_out_size(H) * conv_out_size(W)
    k = jax.random.split(key, 5)
    return {
        "conv1_w": orthogonal_init(k[0], (32, C, 8, 8)),
        "conv1_b": jnp.zeros((32,), jnp.float32),
        "conv2_w": orthogonal_init(k[1], (64, 32, 4, 4)),
        "conv2_b": jnp.zeros((64,), jnp.float32),
        "conv3_w": orthogonal_init(k[2], (64, 64, 3, 3)),
        "conv3_b": jnp.zeros((64,), jnp.float32),
        "fc1_w": orthogonal_init(k[3], (512, feat_size)),
        "fc1_b": jnp.zeros((512,), jnp.float32),
        "fc2_w": orthogonal_init(k[4], (num_actions, 512)),
        "fc2_b": jnp.zeros((num_actions,), jnp.float32),
    }


# ----------------------------------------------------------------------------
# Pure-JAX reference with the same bf16 operand quantization (f32 accumulation)
# ----------------------------------------------------------------------------
def _reference_forward(params, x):
    hi = jax.lax.Precision.HIGHEST
    bf = lambda a: a.astype(jnp.bfloat16).astype(jnp.float32)

    def conv(h, w, b, s):
        y = jax.lax.conv_general_dilated(
            bf(h), bf(w), window_strides=(s, s), padding="VALID",
            dimension_numbers=("NCHW", "OIHW", "NCHW"), precision=hi)
        return jax.nn.relu(y + b[None, :, None, None])

    h = conv(x, params["conv1_w"], params["conv1_b"], 4)
    h = conv(h, params["conv2_w"], params["conv2_b"], 2)
    h = conv(h, params["conv3_w"], params["conv3_b"], 1)
    feat = h.reshape(x.shape[0], -1)                        # torch .view(N, -1)
    h = jax.nn.relu(jnp.dot(bf(feat), bf(params["fc1_w"]).T, precision=hi)
                    + params["fc1_b"])
    return jnp.dot(bf(h), bf(params["fc2_w"]).T, precision=hi) + params["fc2_b"]


if __name__ == "__main__":
    img_size = (4, 36, 36)   # (C, H, W): smallest clean size for the 8/4, 4/2, 3/1 stack
    num_actions = 6
    batch = 32               # full batch fits one tile on 1-TC parts, 2x16 on v7x

    key = jax.random.PRNGKey(0)
    k_param, k_x = jax.random.split(key)
    params = init_params(k_param, img_size, num_actions)
    x = jax.random.normal(k_x, (batch,) + img_size, jnp.float32)

    weights, cfg = prepare_params(params, img_size)   # one-time weight prep
    logits = policy_net_forward(weights, x, cfg=cfg)
    logits = jax.block_until_ready(logits)

    assert logits.shape == (batch, num_actions), logits.shape
    ref = _reference_forward(params, x)
    np.testing.assert_allclose(np.asarray(logits), np.asarray(ref),
                               rtol=1e-3, atol=1e-3)
    print("KERNEL_OK")
</pallas_src>

<mosaic_0001>
module attributes {stable_mosaic.version = 11 : i64} {
  func.func @_policy_net_kernel(%arg0: i32, %arg1: memref<4x9x32x144xbf16, #tpu.memory_space<vmem>>, %arg2: memref<8x144x256xbf16, #tpu.memory_space<vmem>>, %arg3: memref<1x256xf32, #tpu.memory_space<vmem>>, %arg4: memref<4x256x256xbf16, #tpu.memory_space<vmem>>, %arg5: memref<1x256xf32, #tpu.memory_space<vmem>>, %arg6: memref<3x256x128xbf16, #tpu.memory_space<vmem>>, %arg7: memref<1x128xf32, #tpu.memory_space<vmem>>, %arg8: memref<1x128x512xbf16, #tpu.memory_space<vmem>>, %arg9: memref<1x512xf32, #tpu.memory_space<vmem>>, %arg10: memref<512x128xbf16, #tpu.memory_space<vmem>>, %arg11: memref<1x128xf32, #tpu.memory_space<vmem>>, %arg12: memref<32x128xf32, #tpu.memory_space<vmem>>, %arg13: memref<2x4x32x256xbf16, #tpu.memory_space<vmem>>, %arg14: memref<3x32x256xbf16, #tpu.memory_space<vmem>>, %arg15: memref<8x32x256xf32, #tpu.memory_space<vmem>>, %arg16: memref<3x32x256xf32, #tpu.memory_space<vmem>>, %arg17: memref<1x32x128xf32, #tpu.memory_space<vmem>>, %arg18: memref<32x512xf32, #tpu.memory_space<vmem>>) attributes {dimension_semantics = [#tpu.dimension_semantics<parallel>], iteration_bounds = array<i64: 1>, scalar_prefetch = 0 : i64, scratch_operands = 6 : i64, tpu.core_type = #tpu.core_type<tc>, window_params = [{transform_indices = @transform_0, window_bounds = array<i64: 4, 9, 32, 144>}, {pipeline_mode = #tpu.pipeline_mode<synchronous>, transform_indices = @transform_1, window_bounds = array<i64: 8, 144, 256>}, {pipeline_mode = #tpu.pipeline_mode<synchronous>, transform_indices = @transform_2, window_bounds = array<i64: 1, 256>}, {pipeline_mode = #tpu.pipeline_mode<synchronous>, transform_indices = @transform_3, window_bounds = array<i64: 4, 256, 256>}, {pipeline_mode = #tpu.pipeline_mode<synchronous>, transform_indices = @transform_4, window_bounds = array<i64: 1, 256>}, {pipeline_mode = #tpu.pipeline_mode<synchronous>, transform_indices = @transform_5, window_bounds = array<i64: 3, 256, 128>}, {pipeline_mode = #tpu.pipeline_mode<synchronous>, transform_indices = @transform_6, window_bounds = array<i64: 1, 128>}, {pipeline_mode = #tpu.pipeline_mode<synchronous>, transform_indices = @transform_7, window_bounds = array<i64: 1, 128, 512>}, {pipeline_mode = #tpu.pipeline_mode<synchronous>, transform_indices = @transform_8, window_bounds = array<i64: 1, 512>}, {pipeline_mode = #tpu.pipeline_mode<synchronous>, transform_indices = @transform_9, window_bounds = array<i64: 512, 128>}, {pipeline_mode = #tpu.pipeline_mode<synchronous>, transform_indices = @transform_10, window_bounds = array<i64: 1, 128>}, {transform_indices = @transform_11, window_bounds = array<i64: 32, 128>}]} {
    %c0 = arith.constant 0 : index
    %c0_0 = arith.constant 0 : index
    %c0_1 = arith.constant 0 : index
    %c0_2 = arith.constant 0 : index
    %0 = vector.load %arg1[%c0, %c0_0, %c0_1, %c0_2] : memref<4x9x32x144xbf16, #tpu.memory_space<vmem>>, vector<1x8x32x144xbf16>
    %1 = vector.shape_cast %0 : vector<1x8x32x144xbf16> to vector<8x32x144xbf16>
    %2 = vector.shape_cast %1 : vector<8x32x144xbf16> to vector<256x144xbf16>
    %c0_3 = arith.constant 0 : index
    %c0_4 = arith.constant 0 : index
    %c0_5 = arith.constant 0 : index
    %3 = vector.load %arg2[%c0_3, %c0_4, %c0_5] : memref<8x144x256xbf16, #tpu.memory_space<vmem>>, vector<1x144x256xbf16>
    %4 = vector.shape_cast %3 : vector<1x144x256xbf16> to vector<144x256xbf16>
    %cst = arith.constant dense<0.000000e+00> : vector<256x256xf32>
    %5 = tpu.matmul %2, %4, %cst {dimension_numbers = #tpu.dot_dimension_numbers<[1], [0], [0], [1], [0, 0, 1, 1], [], []>} : vector<256x144xbf16>, vector<144x256xbf16>, vector<256x256xf32> -> vector<256x256xf32>
    %6 = vector.shape_cast %5 : vector<256x256xf32> to vector<8x32x256xf32>
    %c0_6 = arith.constant 0 : index
    %c0_7 = arith.constant 0 : index
    %c0_8 = arith.constant 0 : index
    %7 = vector.load %arg15[%c0_6, %c0_7, %c0_8] : memref<8x32x256xf32, #tpu.memory_space<vmem>>, vector<8x32x256xf32>
    tpu.vector_store %arg15[%c0_6, %c0_7, %c0_8], %6 {strides = array<i32>} : memref<8x32x256xf32, #tpu.memory_space<vmem>>, vector<8x32x256xf32>,
    %c1 = arith.constant 1 : index
    %c0_9 = arith.constant 0 : index
    %c0_10 = arith.constant 0 : index
    %c0_11 = arith.constant 0 : index
    %8 = vector.load %arg1[%c1, %c0_9, %c0_10, %c0_11] : memref<4x9x32x144xbf16, #tpu.memory_space<vmem>>, vector<1x8x32x144xbf16>
    %9 = vector.shape_cast %8 : vector<1x8x32x144xbf16> to vector<8x32x144xbf16>
    %10 = vector.shape_cast %9 : vector<8x32x144xbf16> to vector<256x144xbf16>
    %c1_12 = arith.constant 1 : index
    %c0_13 = arith.constant 0 : index
    %c0_14 = arith.constant 0 : index
    %11 = vector.load %arg2[%c1_12, %c0_13, %c0_14] : memref<8x144x256xbf16, #tpu.memory_space<vmem>>, vector<1x144x256xbf16>
    %12 = vector.shape_cast %11 : vector<1x144x256xbf16> to vector<144x256xbf16>
    %cst_15 = arith.constant dense<0.000000e+00> : vector<256x256xf32>
    %13 = tpu.matmul %10, %12, %cst_15 {dimension_numbers = #tpu.dot_dimension_numbers<[1], [0], [0], [1], [0, 0, 1, 1], [], []>} : vector<256x144xbf16>, vector<144x256xbf16>, vector<256x256xf32> -> vector<256x256xf32>
    %14 = vector.shape_cast %13 : vector<256x256xf32> to vector<8x32x256xf32>
    %c0_16 = arith.constant 0 : index
    %c0_17 = arith.constant 0 : index
    %c0_18 = arith.constant 0 : index
    %15 = vector.load %arg15[%c0_16, %c0_17, %c0_18] : memref<8x32x256xf32, #tpu.memory_space<vmem>>, vector<8x32x256xf32>
    %16 = arith.addf %15, %14 : vector<8x32x256xf32>
    %c0_19 = arith.constant 0 : index
    %c0_20 = arith.constant 0 : index
    %c0_21 = arith.constant 0 : index
    %17 = vector.load %arg15[%c0_19, %c0_20, %c0_21] : memref<8x32x256xf32, #tpu.memory_space<vmem>>, vector<8x32x256xf32>
    tpu.vector_store %arg15[%c0_19, %c0_20, %c0_21], %16 {strides = array<i32>} : memref<8x32x256xf32, #tpu.memory_space<vmem>>, vector<8x32x256xf32>,
    %c2 = arith.constant 2 : index
    %c0_22 = arith.constant 0 : index
    %c0_23 = arith.constant 0 : index
    %c0_24 = arith.constant 0 : index
    %18 = vector.load %arg1[%c2, %c0_22, %c0_23, %c0_24] : memref<4x9x32x144xbf16, #tpu.memory_space<vmem>>, vector<1x8x32x144xbf16>
    %19 = vector.shape_cast %18 : vector<1x8x32x144xbf16> to vector<8x32x144xbf16>
    %20 = vector.shape_cast %19 : vector<8x32x144xbf16> to vector<256x144xbf16>
    %c2_25 = arith.constant 2 : index
    %c0_26 = arith.constant 0 : index
    %c0_27 = arith.constant 0 : index
    %21 = vector.load %arg2[%c2_25, %c0_26, %c0_27] : memref<8x144x256xbf16, #tpu.memory_space<vmem>>, vector<1x144x256xbf16>
    %22 = vector.shape_cast %21 : vector<1x144x256xbf16> to vector<144x256xbf16>
    %cst_28 = arith.constant dense<0.000000e+00> : vector<256x256xf32>
    %23 = tpu.matmul %20, %22, %cst_28 {dimension_numbers = #tpu.dot_dimension_numbers<[1], [0], [0], [1], [0, 0, 1, 1], [], []>} : vector<256x144xbf16>, vector<144x256xbf16>, vector<256x256xf32> -> vector<256x256xf32>
    %24 = vector.shape_cast %23 : vector<256x256xf32> to vector<8x32x256xf32>
    %c0_29 = arith.constant 0 : index
    %c0_30 = arith.constant 0 : index
    %c0_31 = arith.constant 0 : index
    %25 = vector.load %arg15[%c0_29, %c0_30, %c0_31] : memref<8x32x256xf32, #tpu.memory_space<vmem>>, vector<8x32x256xf32>
    %26 = arith.addf %25, %24 : vector<8x32x256xf32>
    %c0_32 = arith.constant 0 : index
    %c0_33 = arith.constant 0 : index
    %c0_34 = arith.constant 0 : index
    %27 = vector.load %arg15[%c0_32, %c0_33, %c0_34] : memref<8x32x256xf32, #tpu.memory_space<vmem>>, vector<8x32x256xf32>
    tpu.vector_store %arg15[%c0_32, %c0_33, %c0_34], %26 {strides = array<i32>} : memref<8x32x256xf32, #tpu.memory_space<vmem>>, vector<8x32x256xf32>,
    %c3 = arith.constant 3 : index
    %c0_35 = arith.constant 0 : index
    %c0_36 = arith.constant 0 : index
    %c0_37 = arith.constant 0 : index
    %28 = vector.load %arg1[%c3, %c0_35, %c0_36, %c0_37] : memref<4x9x32x144xbf16, #tpu.memory_space<vmem>>, vector<1x8x32x144xbf16>
    %29 = vector.shape_cast %28 : vector<1x8x32x144xbf16> to vector<8x32x144xbf16>
    %30 = vector.shape_cast %29 : vector<8x32x144xbf16> to vector<256x144xbf16>
    %c3_38 = arith.constant 3 : index
    %c0_39 = arith.constant 0 : index
    %c0_40 = arith.constant 0 : index
    %31 = vector.load %arg2[%c3_38, %c0_39, %c0_40] : memref<8x144x256xbf16, #tpu.memory_space<vmem>>, vector<1x144x256xbf16>
    %32 = vector.shape_cast %31 : vector<1x144x256xbf16> to vector<144x256xbf16>
    %cst_41 = arith.constant dense<0.000000e+00> : vector<256x256xf32>
    %33 = tpu.matmul %30, %32, %cst_41 {dimension_numbers = #tpu.dot_dimension_numbers<[1], [0], [0], [1], [0, 0, 1, 1], [], []>} : vector<256x144xbf16>, vector<144x256xbf16>, vector<256x256xf32> -> vector<256x256xf32>
    %34 = vector.shape_cast %33 : vector<256x256xf32> to vector<8x32x256xf32>
    %c0_42 = arith.constant 0 : index
    %c0_43 = arith.constant 0 : index
    %c0_44 = arith.constant 0 : index
    %35 = vector.load %arg15[%c0_42, %c0_43, %c0_44] : memref<8x32x256xf32, #tpu.memory_space<vmem>>, vector<8x32x256xf32>
    %36 = arith.addf %35, %34 : vector<8x32x256xf32>
    %c0_45 = arith.constant 0 : index
    %c0_46 = arith.constant 0 : index
    %c0_47 = arith.constant 0 : index
    %37 = vector.load %arg15[%c0_45, %c0_46, %c0_47] : memref<8x32x256xf32, #tpu.memory_space<vmem>>, vector<8x32x256xf32>
    tpu.vector_store %arg15[%c0_45, %c0_46, %c0_47], %36 {strides = array<i32>} : memref<8x32x256xf32, #tpu.memory_space<vmem>>, vector<8x32x256xf32>,
    %c0_48 = arith.constant 0 : index
    %c1_49 = arith.constant 1 : index
    %c0_50 = arith.constant 0 : index
    %c0_51 = arith.constant 0 : index
    %38 = vector.load %arg1[%c0_48, %c1_49, %c0_50, %c0_51] : memref<4x9x32x144xbf16, #tpu.memory_space<vmem>>, vector<1x8x32x144xbf16>
    %39 = vector.shape_cast %38 : vector<1x8x32x144xbf16> to vector<8x32x144xbf16>
    %40 = vector.shape_cast %39 : vector<8x32x144xbf16> to vector<256x144xbf16>
    %c4 = arith.constant 4 : index
    %c0_52 = arith.constant 0 : index
    %c0_53 = arith.constant 0 : index
    %41 = vector.load %arg2[%c4, %c0_52, %c0_53] : memref<8x144x256xbf16, #tpu.memory_space<vmem>>, vector<1x144x256xbf16>
    %42 = vector.shape_cast %41 : vector<1x144x256xbf16> to vector<144x256xbf16>
    %cst_54 = arith.constant dense<0.000000e+00> : vector<256x256xf32>
    %43 = tpu.matmul %40, %42, %cst_54 {dimension_numbers = #tpu.dot_dimension_numbers<[1], [0], [0], [1], [0, 0, 1, 1], [], []>} : vector<256x144xbf16>, vector<144x256xbf16>, vector<256x256xf32> -> vector<256x256xf32>
    %44 = vector.shape_cast %43 : vector<256x256xf32> to vector<8x32x256xf32>
    %c0_55 = arith.constant 0 : index
    %c0_56 = arith.constant 0 : index
    %c0_57 = arith.constant 0 : index
    %45 = vector.load %arg15[%c0_55, %c0_56, %c0_57] : memref<8x32x256xf32, #tpu.memory_space<vmem>>, vector<8x32x256xf32>
    %46 = arith.addf %45, %44 : vector<8x32x256xf32>
    %c0_58 = arith.constant 0 : index
    %c0_59 = arith.constant 0 : index
    %c0_60 = arith.constant 0 : index
    %47 = vector.load %arg15[%c0_58, %c0_59, %c0_60] : memref<8x32x256xf32, #tpu.memory_space<vmem>>, vector<8x32x256xf32>
    tpu.vector_store %arg15[%c0_58, %c0_59, %c0_60], %46 {strides = array<i32>} : memref<8x32x256xf32, #tpu.memory_space<vmem>>, vector<8x32x256xf32>,
    %c1_61 = arith.constant 1 : index
    %c1_62 = arith.constant 1 : index
    %c0_63 = arith.constant 0 : index
    %c0_64 = arith.constant 0 : index
    %48 = vector.load %arg1[%c1_61, %c1_62, %c0_63, %c0_64] : memref<4x9x32x144xbf16, #tpu.memory_space<vmem>>, vector<1x8x32x144xbf16>
    %49 = vector.shape_cast %48 : vector<1x8x32x144xbf16> to vector<8x32x144xbf16>
    %50 = vector.shape_cast %49 : vector<8x32x144xbf16> to vector<256x144xbf16>
    %c5 = arith.constant 5 : index
    %c0_65 = arith.constant 0 : index
    %c0_66 = arith.constant 0 : index
    %51 = vector.load %arg2[%c5, %c0_65, %c0_66] : memref<8x144x256xbf16, #tpu.memory_space<vmem>>, vector<1x144x256xbf16>
    %52 = vector.shape_cast %51 : vector<1x144x256xbf16> to vector<144x256xbf16>
    %cst_67 = arith.constant dense<0.000000e+00> : vector<256x256xf32>
    %53 = tpu.matmul %50, %52, %cst_67 {dimension_numbers = #tpu.dot_dimension_numbers<[1], [0], [0], [1], [0, 0, 1, 1], [], []>} : vector<256x144xbf16>, vector<144x256xbf16>, vector<256x256xf32> -> vector<256x256xf32>
    %54 = vector.shape_cast %53 : vector<256x256xf32> to vector<8x32x256xf32>
    %c0_68 = arith.constant 0 : index
    %c0_69 = arith.constant 0 : index
    %c0_70 = arith.constant 0 : index
    %55 = vector.load %arg15[%c0_68, %c0_69, %c0_70] : memref<8x32x256xf32, #tpu.memory_space<vmem>>, vector<8x32x256xf32>
    %56 = arith.addf %55, %54 : vector<8x32x256xf32>
    %c0_71 = arith.constant 0 : index
    %c0_72 = arith.constant 0 : index
    %c0_73 = arith.constant 0 : index
    %57 = vector.load %arg15[%c0_71, %c0_72, %c0_73] : memref<8x32x256xf32, #tpu.memory_space<vmem>>, vector<8x32x256xf32>
    tpu.vector_store %arg15[%c0_71, %c0_72, %c0_73], %56 {strides = array<i32>} : memref<8x32x256xf32, #tpu.memory_space<vmem>>, vector<8x32x256xf32>,
    %c2_74 = arith.constant 2 : index
    %c1_75 = arith.constant 1 : index
    %c0_76 = arith.constant 0 : index
    %c0_77 = arith.constant 0 : index
    %58 = vector.load %arg1[%c2_74, %c1_75, %c0_76, %c0_77] : memref<4x9x32x144xbf16, #tpu.memory_space<vmem>>, vector<1x8x32x144xbf16>
    %59 = vector.shape_cast %58 : vector<1x8x32x144xbf16> to vector<8x32x144xbf16>
    %60 = vector.shape_cast %59 : vector<8x32x144xbf16> to vector<256x144xbf16>
    %c6 = arith.constant 6 : index
    %c0_78 = arith.constant 0 : index
    %c0_79 = arith.constant 0 : index
    %61 = vector.load %arg2[%c6, %c0_78, %c0_79] : memref<8x144x256xbf16, #tpu.memory_space<vmem>>, vector<1x144x256xbf16>
    %62 = vector.shape_cast %61 : vector<1x144x256xbf16> to vector<144x256xbf16>
    %cst_80 = arith.constant dense<0.000000e+00> : vector<256x256xf32>
    %63 = tpu.matmul %60, %62, %cst_80 {dimension_numbers = #tpu.dot_dimension_numbers<[1], [0], [0], [1], [0, 0, 1, 1], [], []>} : vector<256x144xbf16>, vector<144x256xbf16>, vector<256x256xf32> -> vector<256x256xf32>
    %64 = vector.shape_cast %63 : vector<256x256xf32> to vector<8x32x256xf32>
    %c0_81 = arith.constant 0 : index
    %c0_82 = arith.constant 0 : index
    %c0_83 = arith.constant 0 : index
    %65 = vector.load %arg15[%c0_81, %c0_82, %c0_83] : memref<8x32x256xf32, #tpu.memory_space<vmem>>, vector<8x32x256xf32>
    %66 = arith.addf %65, %64 : vector<8x32x256xf32>
    %c0_84 = arith.constant 0 : index
    %c0_85 = arith.constant 0 : index
    %c0_86 = arith.constant 0 : index
    %67 = vector.load %arg15[%c0_84, %c0_85, %c0_86] : memref<8x32x256xf32, #tpu.memory_space<vmem>>, vector<8x32x256xf32>
    tpu.vector_store %arg15[%c0_84, %c0_85, %c0_86], %66 {strides = array<i32>} : memref<8x32x256xf32, #tpu.memory_space<vmem>>, vector<8x32x256xf32>,
    %c3_87 = arith.constant 3 : index
    %c1_88 = arith.constant 1 : index
    %c0_89 = arith.constant 0 : index
    %c0_90 = arith.constant 0 : index
    %68 = vector.load %arg1[%c3_87, %c1_88, %c0_89, %c0_90] : memref<4x9x32x144xbf16, #tpu.memory_space<vmem>>, vector<1x8x32x144xbf16>
    %69 = vector.shape_cast %68 : vector<1x8x32x144xbf16> to vector<8x32x144xbf16>
    %70 = vector.shape_cast %69 : vector<8x32x144xbf16> to vector<256x144xbf16>
    %c7 = arith.constant 7 : index
    %c0_91 = arith.constant 0 : index
    %c0_92 = arith.constant 0 : index
    %71 = vector.load %arg2[%c7, %c0_91, %c0_92] : memref<8x144x256xbf16, #tpu.memory_space<vmem>>, vector<1x144x256xbf16>
    %72 = vector.shape_cast %71 : vector<1x144x256xbf16> to vector<144x256xbf16>
    %cst_93 = arith.constant dense<0.000000e+00> : vector<256x256xf32>
    %73 = tpu.matmul %70, %72, %cst_93 {dimension_numbers = #tpu.dot_dimension_numbers<[1], [0], [0], [1], [0, 0, 1, 1], [], []>} : vector<256x144xbf16>, vector<144x256xbf16>, vector<256x256xf32> -> vector<256x256xf32>
    %74 = vector.shape_cast %73 : vector<256x256xf32> to vector<8x32x256xf32>
    %c0_94 = arith.constant 0 : index
    %c0_95 = arith.constant 0 : index
    %c0_96 = arith.constant 0 : index
    %75 = vector.load %arg15[%c0_94, %c0_95, %c0_96] : memref<8x32x256xf32, #tpu.memory_space<vmem>>, vector<8x32x256xf32>
    %76 = arith.addf %75, %74 : vector<8x32x256xf32>
    %c0_97 = arith.constant 0 : index
    %c0_98 = arith.constant 0 : index
    %c0_99 = arith.constant 0 : index
    %77 = vector.load %arg15[%c0_97, %c0_98, %c0_99] : memref<8x32x256xf32, #tpu.memory_space<vmem>>, vector<8x32x256xf32>
    tpu.vector_store %arg15[%c0_97, %c0_98, %c0_99], %76 {strides = array<i32>} : memref<8x32x256xf32, #tpu.memory_space<vmem>>, vector<8x32x256xf32>,
    %c0_100 = arith.constant 0 : index
    %c0_101 = arith.constant 0 : index
    %c0_102 = arith.constant 0 : index
    %78 = vector.load %arg15[%c0_100, %c0_101, %c0_102] : memref<8x32x256xf32, #tpu.memory_space<vmem>>, vector<1x32x256xf32>
    %79 = vector.shape_cast %78 : vector<1x32x256xf32> to vector<32x256xf32>
    %c0_103 = arith.constant 0 : index
    %c0_104 = arith.constant 0 : index
    %80 = vector.load %arg3[%c0_103, %c0_104] : memref<1x256xf32, #tpu.memory_space<vmem>>, vector<1x256xf32>
    %81 = vector.broadcast %80 : vector<1x256xf32> to vector<32x256xf32>
    %82 = arith.addf %79, %81 : vector<32x256xf32>
    %cst_105 = arith.constant 0.000000e+00 : f32
    %83 = vector.broadcast %cst_105 : f32 to vector<32x256xf32>
    %84 = arith.maximumf %82, %83 : vector<32x256xf32>
    %85 = arith.truncf %84 : vector<32x256xf32> to vector<32x256xbf16>
    %c0_106 = arith.constant 0 : index
    %c0_107 = arith.constant 0 : index
    %c0_108 = arith.constant 0 : index
    %c0_109 = arith.constant 0 : index
    %86 = vector.load %arg13[%c0_106, %c0_107, %c0_108, %c0_109] : memref<2x4x32x256xbf16, #tpu.memory_space<vmem>>, vector<1x1x32x256xbf16>
    %87 = vector.shape_cast %86 : vector<1x1x32x256xbf16> to vector<32x256xbf16>
    %88 = vector.shape_cast %85 : vector<32x256xbf16> to vector<1x1x32x256xbf16>
    tpu.vector_store %arg13[%c0_106, %c0_107, %c0_108, %c0_109], %88 {strides = array<i32>} : memref<2x4x32x256xbf16, #tpu.memory_space<vmem>>, vector<1x1x32x256xbf16>,
    %c1_110 = arith.constant 1 : index
    %c0_111 = arith.constant 0 : index
    %c0_112 = arith.constant 0 : index
    %89 = vector.load %arg15[%c1_110, %c0_111, %c0_112] : memref<8x32x256xf32, #tpu.memory_space<vmem>>, vector<1x32x256xf32>
    %90 = vector.shape_cast %89 : vector<1x32x256xf32> to vector<32x256xf32>
    %c0_113 = arith.constant 0 : index
    %c0_114 = arith.constant 0 : index
    %91 = vector.load %arg3[%c0_113, %c0_114] : memref<1x256xf32, #tpu.memory_space<vmem>>, vector<1x256xf32>
    %92 = vector.broadcast %91 : vector<1x256xf32> to vector<32x256xf32>
    %93 = arith.addf %90, %92 : vector<32x256xf32>
    %cst_115 = arith.constant 0.000000e+00 : f32
    %94 = vector.broadcast %cst_115 : f32 to vector<32x256xf32>
    %95 = arith.maximumf %93, %94 : vector<32x256xf32>
    %96 = arith.truncf %95 : vector<32x256xf32> to vector<32x256xbf16>
    %c1_116 = arith.constant 1 : index
    %c0_117 = arith.constant 0 : index
    %c0_118 = arith.constant 0 : index
    %c0_119 = arith.constant 0 : index
    %97 = vector.load %arg13[%c1_116, %c0_117, %c0_118, %c0_119] : memref<2x4x32x256xbf16, #tpu.memory_space<vmem>>, vector<1x1x32x256xbf16>
    %98 = vector.shape_cast %97 : vector<1x1x32x256xbf16> to vector<32x256xbf16>
    %99 = vector.shape_cast %96 : vector<32x256xbf16> to vector<1x1x32x256xbf16>
    tpu.vector_store %arg13[%c1_116, %c0_117, %c0_118, %c0_119], %99 {strides = array<i32>} : memref<2x4x32x256xbf16, #tpu.memory_space<vmem>>, vector<1x1x32x256xbf16>,
    %c2_120 = arith.constant 2 : index
    %c0_121 = arith.constant 0 : index
    %c0_122 = arith.constant 0 : index
    %100 = vector.load %arg15[%c2_120, %c0_121, %c0_122] : memref<8x32x256xf32, #tpu.memory_space<vmem>>, vector<1x32x256xf32>
    %101 = vector.shape_cast %100 : vector<1x32x256xf32> to vector<32x256xf32>
    %c0_123 = arith.constant 0 : index
    %c0_124 = arith.constant 0 : index
    %102 = vector.load %arg3[%c0_123, %c0_124] : memref<1x256xf32, #tpu.memory_space<vmem>>, vector<1x256xf32>
    %103 = vector.broadcast %102 : vector<1x256xf32> to vector<32x256xf32>
    %104 = arith.addf %101, %103 : vector<32x256xf32>
    %cst_125 = arith.constant 0.000000e+00 : f32
    %105 = vector.broadcast %cst_125 : f32 to vector<32x256xf32>
    %106 = arith.maximumf %104, %105 : vector<32x256xf32>
    %107 = arith.truncf %106 : vector<32x256xf32> to vector<32x256xbf16>
    %c0_126 = arith.constant 0 : index
    %c1_127 = arith.constant 1 : index
    %c0_128 = arith.constant 0 : index
    %c0_129 = arith.constant 0 : index
    %108 = vector.load %arg13[%c0_126, %c1_127, %c0_128, %c0_129] : memref<2x4x32x256xbf16, #tpu.memory_space<vmem>>, vector<1x1x32x256xbf16>
    %109 = vector.shape_cast %108 : vector<1x1x32x256xbf16> to vector<32x256xbf16>
    %110 = vector.shape_cast %107 : vector<32x256xbf16> to vector<1x1x32x256xbf16>
    tpu.vector_store %arg13[%c0_126, %c1_127, %c0_128, %c0_129], %110 {strides = array<i32>} : memref<2x4x32x256xbf16, #tpu.memory_space<vmem>>, vector<1x1x32x256xbf16>,
    %c3_130 = arith.constant 3 : index
    %c0_131 = arith.constant 0 : index
    %c0_132 = arith.constant 0 : index
    %111 = vector.load %arg15[%c3_130, %c0_131, %c0_132] : memref<8x32x256xf32, #tpu.memory_space<vmem>>, vector<1x32x256xf32>
    %112 = vector.shape_cast %111 : vector<1x32x256xf32> to vector<32x256xf32>
    %c0_133 = arith.constant 0 : index
    %c0_134 = arith.constant 0 : index
    %113 = vector.load %arg3[%c0_133, %c0_134] : memref<1x256xf32, #tpu.memory_space<vmem>>, vector<1x256xf32>
    %114 = vector.broadcast %113 : vector<1x256xf32> to vector<32x256xf32>
    %115 = arith.addf %112, %114 : vector<32x256xf32>
    %cst_135 = arith.constant 0.000000e+00 : f32
    %116 = vector.broadcast %cst_135 : f32 to vector<32x256xf32>
    %117 = arith.maximumf %115, %116 : vector<32x256xf32>
    %118 = arith.truncf %117 : vector<32x256xf32> to vector<32x256xbf16>
    %c1_136 = arith.constant 1 : index
    %c1_137 = arith.constant 1 : index
    %c0_138 = arith.constant 0 : index
    %c0_139 = arith.constant 0 : index
    %119 = vector.load %arg13[%c1_136, %c1_137, %c0_138, %c0_139] : memref<2x4x32x256xbf16, #tpu.memory_space<vmem>>, vector<1x1x32x256xbf16>
    %120 = vector.shape_cast %119 : vector<1x1x32x256xbf16> to vector<32x256xbf16>
    %121 = vector.shape_cast %118 : vector<32x256xbf16> to vector<1x1x32x256xbf16>
    tpu.vector_store %arg13[%c1_136, %c1_137, %c0_138, %c0_139], %121 {strides = array<i32>} : memref<2x4x32x256xbf16, #tpu.memory_space<vmem>>, vector<1x1x32x256xbf16>,
    %c4_140 = arith.constant 4 : index
    %c0_141 = arith.constant 0 : index
    %c0_142 = arith.constant 0 : index
    %122 = vector.load %arg15[%c4_140, %c0_141, %c0_142] : memref<8x32x256xf32, #tpu.memory_space<vmem>>, vector<1x32x256xf32>
    %123 = vector.shape_cast %122 : vector<1x32x256xf32> to vector<32x256xf32>
    %c0_143 = arith.constant 0 : index
    %c0_144 = arith.constant 0 : index
    %124 = vector.load %arg3[%c0_143, %c0_144] : memref<1x256xf32, #tpu.memory_space<vmem>>, vector<1x256xf32>
    %125 = vector.broadcast %124 : vector<1x256xf32> to vector<32x256xf32>
    %126 = arith.addf %123, %125 : vector<32x256xf32>
    %cst_145 = arith.constant 0.000000e+00 : f32
    %127 = vector.broadcast %cst_145 : f32 to vector<32x256xf32>
    %128 = arith.maximumf %126, %127 : vector<32x256xf32>
    %129 = arith.truncf %128 : vector<32x256xf32> to vector<32x256xbf16>
    %c0_146 = arith.constant 0 : index
    %c2_147 = arith.constant 2 : index
    %c0_148 = arith.constant 0 : index
    %c0_149 = arith.constant 0 : index
    %130 = vector.load %arg13[%c0_146, %c2_147, %c0_148, %c0_149] : memref<2x4x32x256xbf16, #tpu.memory_space<vmem>>, vector<1x1x32x256xbf16>
    %131 = vector.shape_cast %130 : vector<1x1x32x256xbf16> to vector<32x256xbf16>
    %132 = vector.shape_cast %129 : vector<32x256xbf16> to vector<1x1x32x256xbf16>
    tpu.vector_store %arg13[%c0_146, %c2_147, %c0_148, %c0_149], %132 {strides = array<i32>} : memref<2x4x32x256xbf16, #tpu.memory_space<vmem>>, vector<1x1x32x256xbf16>,
    %c5_150 = arith.constant 5 : index
    %c0_151 = arith.constant 0 : index
    %c0_152 = arith.constant 0 : index
    %133 = vector.load %arg15[%c5_150, %c0_151, %c0_152] : memref<8x32x256xf32, #tpu.memory_space<vmem>>, vector<1x32x256xf32>
    %134 = vector.shape_cast %133 : vector<1x32x256xf32> to vector<32x256xf32>
    %c0_153 = arith.constant 0 : index
    %c0_154 = arith.constant 0 : index
    %135 = vector.load %arg3[%c0_153, %c0_154] : memref<1x256xf32, #tpu.memory_space<vmem>>, vector<1x256xf32>
    %136 = vector.broadcast %135 : vector<1x256xf32> to vector<32x256xf32>
    %137 = arith.addf %134, %136 : vector<32x256xf32>
    %cst_155 = arith.constant 0.000000e+00 : f32
    %138 = vector.broadcast %cst_155 : f32 to vector<32x256xf32>
    %139 = arith.maximumf %137, %138 : vector<32x256xf32>
    %140 = arith.truncf %139 : vector<32x256xf32> to vector<32x256xbf16>
    %c1_156 = arith.constant 1 : index
    %c2_157 = arith.constant 2 : index
    %c0_158 = arith.constant 0 : index
    %c0_159 = arith.constant 0 : index
    %141 = vector.load %arg13[%c1_156, %c2_157, %c0_158, %c0_159] : memref<2x4x32x256xbf16, #tpu.memory_space<vmem>>, vector<1x1x32x256xbf16>
    %142 = vector.shape_cast %141 : vector<1x1x32x256xbf16> to vector<32x256xbf16>
    %143 = vector.shape_cast %140 : vector<32x256xbf16> to vector<1x1x32x256xbf16>
    tpu.vector_store %arg13[%c1_156, %c2_157, %c0_158, %c0_159], %143 {strides = array<i32>} : memref<2x4x32x256xbf16, #tpu.memory_space<vmem>>, vector<1x1x32x256xbf16>,
    %c6_160 = arith.constant 6 : index
    %c0_161 = arith.constant 0 : index
    %c0_162 = arith.constant 0 : index
    %144 = vector.load %arg15[%c6_160, %c0_161, %c0_162] : memref<8x32x256xf32, #tpu.memory_space<vmem>>, vector<1x32x256xf32>
    %145 = vector.shape_cast %144 : vector<1x32x256xf32> to vector<32x256xf32>
    %c0_163 = arith.constant 0 : index
    %c0_164 = arith.constant 0 : index
    %146 = vector.load %arg3[%c0_163, %c0_164] : memref<1x256xf32, #tpu.memory_space<vmem>>, vector<1x256xf32>
    %147 = vector.broadcast %146 : vector<1x256xf32> to vector<32x256xf32>
    %148 = arith.addf %145, %147 : vector<32x256xf32>
    %cst_165 = arith.constant 0.000000e+00 : f32
    %149 = vector.broadcast %cst_165 : f32 to vector<32x256xf32>
    %150 = arith.maximumf %148, %149 : vector<32x256xf32>
    %151 = arith.truncf %150 : vector<32x256xf32> to vector<32x256xbf16>
    %c0_166 = arith.constant 0 : index
    %c3_167 = arith.constant 3 : index
    %c0_168 = arith.constant 0 : index
    %c0_169 = arith.constant 0 : index
    %152 = vector.load %arg13[%c0_166, %c3_167, %c0_168, %c0_169] : memref<2x4x32x256xbf16, #tpu.memory_space<vmem>>, vector<1x1x32x256xbf16>
    %153 = vector.shape_cast %152 : vector<1x1x32x256xbf16> to vector<32x256xbf16>
    %154 = vector.shape_cast %151 : vector<32x256xbf16> to vector<1x1x32x256xbf16>
    tpu.vector_store %arg13[%c0_166, %c3_167, %c0_168, %c0_169], %154 {strides = array<i32>} : memref<2x4x32x256xbf16, #tpu.memory_space<vmem>>, vector<1x1x32x256xbf16>,
    %c7_170 = arith.constant 7 : index
    %c0_171 = arith.constant 0 : index
    %c0_172 = arith.constant 0 : index
    %155 = vector.load %arg15[%c7_170, %c0_171, %c0_172] : memref<8x32x256xf32, #tpu.memory_space<vmem>>, vector<1x32x256xf32>
    %156 = vector.shape_cast %155 : vector<1x32x256xf32> to vector<32x256xf32>
    %c0_173 = arith.constant 0 : index
    %c0_174 = arith.constant 0 : index
    %157 = vector.load %arg3[%c0_173, %c0_174] : memref<1x256xf32, #tpu.memory_space<vmem>>, vector<1x256xf32>
    %158 = vector.broadcast %157 : vector<1x256xf32> to vector<32x256xf32>
    %159 = arith.addf %156, %158 : vector<32x256xf32>
    %cst_175 = arith.constant 0.000000e+00 : f32
    %160 = vector.broadcast %cst_175 : f32 to vector<32x256xf32>
    %161 = arith.maximumf %159, %160 : vector<32x256xf32>
    %162 = arith.truncf %161 : vector<32x256xf32> to vector<32x256xbf16>
    %c1_176 = arith.constant 1 : index
    %c3_177 = arith.constant 3 : index
    %c0_178 = arith.constant 0 : index
    %c0_179 = arith.constant 0 : index
    %163 = vector.load %arg13[%c1_176, %c3_177, %c0_178, %c0_179] : memref<2x4x32x256xbf16, #tpu.memory_space<vmem>>, vector<1x1x32x256xbf16>
    %164 = vector.shape_cast %163 : vector<1x1x32x256xbf16> to vector<32x256xbf16>
    %165 = vector.shape_cast %162 : vector<32x256xbf16> to vector<1x1x32x256xbf16>
    tpu.vector_store %arg13[%c1_176, %c3_177, %c0_178, %c0_179], %165 {strides = array<i32>} : memref<2x4x32x256xbf16, #tpu.memory_space<vmem>>, vector<1x1x32x256xbf16>,
    %c0_180 = arith.constant 0 : index
    %c0_181 = arith.constant 0 : index
    %c0_182 = arith.constant 0 : index
    %c0_183 = arith.constant 0 : index
    %166 = vector.load %arg13[%c0_180, %c0_181, %c0_182, %c0_183] : memref<2x4x32x256xbf16, #tpu.memory_space<vmem>>, vector<1x3x32x256xbf16>
    %167 = vector.shape_cast %166 : vector<1x3x32x256xbf16> to vector<3x32x256xbf16>
    %168 = vector.shape_cast %167 : vector<3x32x256xbf16> to vector<96x256xbf16>
    %c0_184 = arith.constant 0 : index
    %c0_185 = arith.constant 0 : index
    %c0_186 = arith.constant 0 : index
    %169 = vector.load %arg4[%c0_184, %c0_185, %c0_186] : memref<4x256x256xbf16, #tpu.memory_space<vmem>>, vector<1x256x256xbf16>
    %170 = vector.shape_cast %169 : vector<1x256x256xbf16> to vector<256x256xbf16>
    %cst_187 = arith.constant dense<0.000000e+00> : vector<96x256xf32>
    %171 = tpu.matmul %168, %170, %cst_187 {dimension_numbers = #tpu.dot_dimension_numbers<[1], [0], [0], [1], [0, 0, 1, 1], [], []>} : vector<96x256xbf16>, vector<256x256xbf16>, vector<96x256xf32> -> vector<96x256xf32>
    %172 = vector.shape_cast %171 : vector<96x256xf32> to vector<3x32x256xf32>
    %c0_188 = arith.constant 0 : index
    %c0_189 = arith.constant 0 : index
    %c0_190 = arith.constant 0 : index
    %173 = vector.load %arg16[%c0_188, %c0_189, %c0_190] : memref<3x32x256xf32, #tpu.memory_space<vmem>>, vector<3x32x256xf32>
    tpu.vector_store %arg16[%c0_188, %c0_189, %c0_190], %172 {strides = array<i32>} : memref<3x32x256xf32, #tpu.memory_space<vmem>>, vector<3x32x256xf32>,
    %c1_191 = arith.constant 1 : index
    %c0_192 = arith.constant 0 : index
    %c0_193 = arith.constant 0 : index
    %c0_194 = arith.constant 0 : index
    %174 = vector.load %arg13[%c1_191, %c0_192, %c0_193, %c0_194] : memref<2x4x32x256xbf16, #tpu.memory_space<vmem>>, vector<1x3x32x256xbf16>
    %175 = vector.shape_cast %174 : vector<1x3x32x256xbf16> to vector<3x32x256xbf16>
    %176 = vector.shape_cast %175 : vector<3x32x256xbf16> to vector<96x256xbf16>
    %c1_195 = arith.constant 1 : index
    %c0_196 = arith.constant 0 : index
    %c0_197 = arith.constant 0 : index
    %177 = vector.load %arg4[%c1_195, %c0_196, %c0_197] : memref<4x256x256xbf16, #tpu.memory_space<vmem>>, vector<1x256x256xbf16>
    %178 = vector.shape_cast %177 : vector<1x256x256xbf16> to vector<256x256xbf16>
    %cst_198 = arith.constant dense<0.000000e+00> : vector<96x256xf32>
    %179 = tpu.matmul %176, %178, %cst_198 {dimension_numbers = #tpu.dot_dimension_numbers<[1], [0], [0], [1], [0, 0, 1, 1], [], []>} : vector<96x256xbf16>, vector<256x256xbf16>, vector<96x256xf32> -> vector<96x256xf32>
    %180 = vector.shape_cast %179 : vector<96x256xf32> to vector<3x32x256xf32>
    %c0_199 = arith.constant 0 : index
    %c0_200 = arith.constant 0 : index
    %c0_201 = arith.constant 0 : index
    %181 = vector.load %arg16[%c0_199, %c0_200, %c0_201] : memref<3x32x256xf32, #tpu.memory_space<vmem>>, vector<3x32x256xf32>
    %182 = arith.addf %181, %180 : vector<3x32x256xf32>
    %c0_202 = arith.constant 0 : index
    %c0_203 = arith.constant 0 : index
    %c0_204 = arith.constant 0 : index
    %183 = vector.load %arg16[%c0_202, %c0_203, %c0_204] : memref<3x32x256xf32, #tpu.memory_space<vmem>>, vector<3x32x256xf32>
    tpu.vector_store %arg16[%c0_202, %c0_203, %c0_204], %182 {strides = array<i32>} : memref<3x32x256xf32, #tpu.memory_space<vmem>>, vector<3x32x256xf32>,
    %c0_205 = arith.constant 0 : index
    %c1_206 = arith.constant 1 : index
    %c0_207 = arith.constant 0 : index
    %c0_208 = arith.constant 0 : index
    %184 = vector.load %arg13[%c0_205, %c1_206, %c0_207, %c0_208] : memref<2x4x32x256xbf16, #tpu.memory_space<vmem>>, vector<1x3x32x256xbf16>
    %185 = vector.shape_cast %184 : vector<1x3x32x256xbf16> to vector<3x32x256xbf16>
    %186 = vector.shape_cast %185 : vector<3x32x256xbf16> to vector<96x256xbf16>
    %c2_209 = arith.constant 2 : index
    %c0_210 = arith.constant 0 : index
    %c0_211 = arith.constant 0 : index
    %187 = vector.load %arg4[%c2_209, %c0_210, %c0_211] : memref<4x256x256xbf16, #tpu.memory_space<vmem>>, vector<1x256x256xbf16>
    %188 = vector.shape_cast %187 : vector<1x256x256xbf16> to vector<256x256xbf16>
    %cst_212 = arith.constant dense<0.000000e+00> : vector<96x256xf32>
    %189 = tpu.matmul %186, %188, %cst_212 {dimension_numbers = #tpu.dot_dimension_numbers<[1], [0], [0], [1], [0, 0, 1, 1], [], []>} : vector<96x256xbf16>, vector<256x256xbf16>, vector<96x256xf32> -> vector<96x256xf32>
    %190 = vector.shape_cast %189 : vector<96x256xf32> to vector<3x32x256xf32>
    %c0_213 = arith.constant 0 : index
    %c0_214 = arith.constant 0 : index
    %c0_215 = arith.constant 0 : index
    %191 = vector.load %arg16[%c0_213, %c0_214, %c0_215] : memref<3x32x256xf32, #tpu.memory_space<vmem>>, vector<3x32x256xf32>
    %192 = arith.addf %191, %190 : vector<3x32x256xf32>
    %c0_216 = arith.constant 0 : index
    %c0_217 = arith.constant 0 : index
    %c0_218 = arith.constant 0 : index
    %193 = vector.load %arg16[%c0_216, %c0_217, %c0_218] : memref<3x32x256xf32, #tpu.memory_space<vmem>>, vector<3x32x256xf32>
    tpu.vector_store %arg16[%c0_216, %c0_217, %c0_218], %192 {strides = array<i32>} : memref<3x32x256xf32, #tpu.memory_space<vmem>>, vector<3x32x256xf32>,
    %c1_219 = arith.constant 1 : index
    %c1_220 = arith.constant 1 : index
    %c0_221 = arith.constant 0 : index
    %c0_222 = arith.constant 0 : index
    %194 = vector.load %arg13[%c1_219, %c1_220, %c0_221, %c0_222] : memref<2x4x32x256xbf16, #tpu.memory_space<vmem>>, vector<1x3x32x256xbf16>
    %195 = vector.shape_cast %194 : vector<1x3x32x256xbf16> to vector<3x32x256xbf16>
    %196 = vector.shape_cast %195 : vector<3x32x256xbf16> to vector<96x256xbf16>
    %c3_223 = arith.constant 3 : index
    %c0_224 = arith.constant 0 : index
    %c0_225 = arith.constant 0 : index
    %197 = vector.load %arg4[%c3_223, %c0_224, %c0_225] : memref<4x256x256xbf16, #tpu.memory_space<vmem>>, vector<1x256x256xbf16>
    %198 = vector.shape_cast %197 : vector<1x256x256xbf16> to vector<256x256xbf16>
    %cst_226 = arith.constant dense<0.000000e+00> : vector<96x256xf32>
    %199 = tpu.matmul %196, %198, %cst_226 {dimension_numbers = #tpu.dot_dimension_numbers<[1], [0], [0], [1], [0, 0, 1, 1], [], []>} : vector<96x256xbf16>, vector<256x256xbf16>, vector<96x256xf32> -> vector<96x256xf32>
    %200 = vector.shape_cast %199 : vector<96x256xf32> to vector<3x32x256xf32>
    %c0_227 = arith.constant 0 : index
    %c0_228 = arith.constant 0 : index
    %c0_229 = arith.constant 0 : index
    %201 = vector.load %arg16[%c0_227, %c0_228, %c0_229] : memref<3x32x256xf32, #tpu.memory_space<vmem>>, vector<3x32x256xf32>
    %202 = arith.addf %201, %200 : vector<3x32x256xf32>
    %c0_230 = arith.constant 0 : index
    %c0_231 = arith.constant 0 : index
    %c0_232 = arith.constant 0 : index
    %203 = vector.load %arg16[%c0_230, %c0_231, %c0_232] : memref<3x32x256xf32, #tpu.memory_space<vmem>>, vector<3x32x256xf32>
    tpu.vector_store %arg16[%c0_230, %c0_231, %c0_232], %202 {strides = array<i32>} : memref<3x32x256xf32, #tpu.memory_space<vmem>>, vector<3x32x256xf32>,
    %c0_233 = arith.constant 0 : index
    %c0_234 = arith.constant 0 : index
    %c0_235 = arith.constant 0 : index
    %204 = vector.load %arg16[%c0_233, %c0_234, %c0_235] : memref<3x32x256xf32, #tpu.memory_space<vmem>>, vector<3x32x256xf32>
    %c0_236 = arith.constant 0 : index
    %c0_237 = arith.constant 0 : index
    %205 = vector.load %arg5[%c0_236, %c0_237] : memref<1x256xf32, #tpu.memory_space<vmem>>, vector<1x256xf32>
    %206 = vector.shape_cast %205 : vector<1x256xf32> to vector<1x1x256xf32>
    %207 = vector.broadcast %206 : vector<1x1x256xf32> to vector<3x32x256xf32>
    %208 = arith.addf %204, %207 : vector<3x32x256xf32>
    %cst_238 = arith.constant 0.000000e+00 : f32
    %209 = vector.broadcast %cst_238 : f32 to vector<3x32x256xf32>
    %210 = arith.maximumf %208, %209 : vector<3x32x256xf32>
    %211 = arith.truncf %210 : vector<3x32x256xf32> to vector<3x32x256xbf16>
    %c0_239 = arith.constant 0 : index
    %c0_240 = arith.constant 0 : index
    %c0_241 = arith.constant 0 : index
    %212 = vector.load %arg14[%c0_239, %c0_240, %c0_241] : memref<3x32x256xbf16, #tpu.memory_space<vmem>>, vector<3x32x256xbf16>
    tpu.vector_store %arg14[%c0_239, %c0_240, %c0_241], %211 {strides = array<i32>} : memref<3x32x256xbf16, #tpu.memory_space<vmem>>, vector<3x32x256xbf16>,
    %c0_242 = arith.constant 0 : index
    %c0_243 = arith.constant 0 : index
    %c0_244 = arith.constant 0 : index
    %213 = vector.load %arg14[%c0_242, %c0_243, %c0_244] : memref<3x32x256xbf16, #tpu.memory_space<vmem>>, vector<1x32x256xbf16>
    %214 = vector.shape_cast %213 : vector<1x32x256xbf16> to vector<32x256xbf16>
    %c0_245 = arith.constant 0 : index
    %c0_246 = arith.constant 0 : index
    %c0_247 = arith.constant 0 : index
    %215 = vector.load %arg6[%c0_245, %c0_246, %c0_247] : memref<3x256x128xbf16, #tpu.memory_space<vmem>>, vector<1x256x128xbf16>
    %216 = vector.shape_cast %215 : vector<1x256x128xbf16> to vector<256x128xbf16>
    %cst_248 = arith.constant dense<0.000000e+00> : vector<32x128xf32>
    %217 = tpu.matmul %214, %216, %cst_248 {dimension_numbers = #tpu.dot_dimension_numbers<[1], [0], [0], [1], [0, 0, 1, 1], [], []>} : vector<32x256xbf16>, vector<256x128xbf16>, vector<32x128xf32> -> vector<32x128xf32>
    %218 = vector.shape_cast %217 : vector<32x128xf32> to vector<1x32x128xf32>
    %c0_249 = arith.constant 0 : index
    %c0_250 = arith.constant 0 : index
    %c0_251 = arith.constant 0 : index
    %219 = vector.load %arg17[%c0_249, %c0_250, %c0_251] : memref<1x32x128xf32, #tpu.memory_space<vmem>>, vector<1x32x128xf32>
    tpu.vector_store %arg17[%c0_249, %c0_250, %c0_251], %218 {strides = array<i32>} : memref<1x32x128xf32, #tpu.memory_space<vmem>>, vector<1x32x128xf32>,
    %c1_252 = arith.constant 1 : index
    %c0_253 = arith.constant 0 : index
    %c0_254 = arith.constant 0 : index
    %220 = vector.load %arg14[%c1_252, %c0_253, %c0_254] : memref<3x32x256xbf16, #tpu.memory_space<vmem>>, vector<1x32x256xbf16>
    %221 = vector.shape_cast %220 : vector<1x32x256xbf16> to vector<32x256xbf16>
    %c1_255 = arith.constant 1 : index
    %c0_256 = arith.constant 0 : index
    %c0_257 = arith.constant 0 : index
    %222 = vector.load %arg6[%c1_255, %c0_256, %c0_257] : memref<3x256x128xbf16, #tpu.memory_space<vmem>>, vector<1x256x128xbf16>
    %223 = vector.shape_cast %222 : vector<1x256x128xbf16> to vector<256x128xbf16>
    %cst_258 = arith.constant dense<0.000000e+00> : vector<32x128xf32>
    %224 = tpu.matmul %221, %223, %cst_258 {dimension_numbers = #tpu.dot_dimension_numbers<[1], [0], [0], [1], [0, 0, 1, 1], [], []>} : vector<32x256xbf16>, vector<256x128xbf16>, vector<32x128xf32> -> vector<32x128xf32>
    %225 = vector.shape_cast %224 : vector<32x128xf32> to vector<1x32x128xf32>
    %c0_259 = arith.constant 0 : index
    %c0_260 = arith.constant 0 : index
    %c0_261 = arith.constant 0 : index
    %226 = vector.load %arg17[%c0_259, %c0_260, %c0_261] : memref<1x32x128xf32, #tpu.memory_space<vmem>>, vector<1x32x128xf32>
    %227 = arith.addf %226, %225 : vector<1x32x128xf32>
    %c0_262 = arith.constant 0 : index
    %c0_263 = arith.constant 0 : index
    %c0_264 = arith.constant 0 : index
    %228 = vector.load %arg17[%c0_262, %c0_263, %c0_264] : memref<1x32x128xf32, #tpu.memory_space<vmem>>, vector<1x32x128xf32>
    tpu.vector_store %arg17[%c0_262, %c0_263, %c0_264], %227 {strides = array<i32>} : memref<1x32x128xf32, #tpu.memory_space<vmem>>, vector<1x32x128xf32>,
    %c2_265 = arith.constant 2 : index
    %c0_266 = arith.constant 0 : index
    %c0_267 = arith.constant 0 : index
    %229 = vector.load %arg14[%c2_265, %c0_266, %c0_267] : memref<3x32x256xbf16, #tpu.memory_space<vmem>>, vector<1x32x256xbf16>
    %230 = vector.shape_cast %229 : vector<1x32x256xbf16> to vector<32x256xbf16>
    %c2_268 = arith.constant 2 : index
    %c0_269 = arith.constant 0 : index
    %c0_270 = arith.constant 0 : index
    %231 = vector.load %arg6[%c2_268, %c0_269, %c0_270] : memref<3x256x128xbf16, #tpu.memory_space<vmem>>, vector<1x256x128xbf16>
    %232 = vector.shape_cast %231 : vector<1x256x128xbf16> to vector<256x128xbf16>
    %cst_271 = arith.constant dense<0.000000e+00> : vector<32x128xf32>
    %233 = tpu.matmul %230, %232, %cst_271 {dimension_numbers = #tpu.dot_dimension_numbers<[1], [0], [0], [1], [0, 0, 1, 1], [], []>} : vector<32x256xbf16>, vector<256x128xbf16>, vector<32x128xf32> -> vector<32x128xf32>
    %234 = vector.shape_cast %233 : vector<32x128xf32> to vector<1x32x128xf32>
    %c0_272 = arith.constant 0 : index
    %c0_273 = arith.constant 0 : index
    %c0_274 = arith.constant 0 : index
    %235 = vector.load %arg17[%c0_272, %c0_273, %c0_274] : memref<1x32x128xf32, #tpu.memory_space<vmem>>, vector<1x32x128xf32>
    %236 = arith.addf %235, %234 : vector<1x32x128xf32>
    %c0_275 = arith.constant 0 : index
    %c0_276 = arith.constant 0 : index
    %c0_277 = arith.constant 0 : index
    %237 = vector.load %arg17[%c0_275, %c0_276, %c0_277] : memref<1x32x128xf32, #tpu.memory_space<vmem>>, vector<1x32x128xf32>
    tpu.vector_store %arg17[%c0_275, %c0_276, %c0_277], %236 {strides = array<i32>} : memref<1x32x128xf32, #tpu.memory_space<vmem>>, vector<1x32x128xf32>,
    %c0_278 = arith.constant 0 : index
    %c0_279 = arith.constant 0 : index
    %c0_280 = arith.constant 0 : index
    %238 = vector.load %arg17[%c0_278, %c0_279, %c0_280] : memref<1x32x128xf32, #tpu.memory_space<vmem>>, vector<1x32x128xf32>
    %239 = vector.shape_cast %238 : vector<1x32x128xf32> to vector<32x128xf32>
    %c0_281 = arith.constant 0 : index
    %c0_282 = arith.constant 0 : index
    %240 = vector.load %arg7[%c0_281, %c0_282] : memref<1x128xf32, #tpu.memory_space<vmem>>, vector<1x128xf32>
    %241 = vector.broadcast %240 : vector<1x128xf32> to vector<32x128xf32>
    %242 = arith.addf %239, %241 : vector<32x128xf32>
    %cst_283 = arith.constant 0.000000e+00 : f32
    %243 = vector.broadcast %cst_283 : f32 to vector<32x128xf32>
    %244 = arith.maximumf %242, %243 : vector<32x128xf32>
    %245 = arith.truncf %244 : vector<32x128xf32> to vector<32x128xbf16>
    %c0_284 = arith.constant 0 : index
    %c0_285 = arith.constant 0 : index
    %c0_286 = arith.constant 0 : index
    %246 = vector.load %arg8[%c0_284, %c0_285, %c0_286] : memref<1x128x512xbf16, #tpu.memory_space<vmem>>, vector<1x128x512xbf16>
    %247 = vector.shape_cast %246 : vector<1x128x512xbf16> to vector<128x512xbf16>
    %cst_287 = arith.constant dense<0.000000e+00> : vector<32x512xf32>
    %248 = tpu.matmul %245, %247, %cst_287 {dimension_numbers = #tpu.dot_dimension_numbers<[1], [0], [0], [1], [0, 0, 1, 1], [], []>} : vector<32x128xbf16>, vector<128x512xbf16>, vector<32x512xf32> -> vector<32x512xf32>
    %c0_288 = arith.constant 0 : index
    %c0_289 = arith.constant 0 : index
    %249 = vector.load %arg18[%c0_288, %c0_289] : memref<32x512xf32, #tpu.memory_space<vmem>>, vector<32x512xf32>
    tpu.vector_store %arg18[%c0_288, %c0_289], %248 {strides = array<i32>} : memref<32x512xf32, #tpu.memory_space<vmem>>, vector<32x512xf32>,
    %c0_290 = arith.constant 0 : index
    %c0_291 = arith.constant 0 : index
    %250 = vector.load %arg18[%c0_290, %c0_291] : memref<32x512xf32, #tpu.memory_space<vmem>>, vector<32x512xf32>
    %c0_292 = arith.constant 0 : index
    %c0_293 = arith.constant 0 : index
    %251 = vector.load %arg9[%c0_292, %c0_293] : memref<1x512xf32, #tpu.memory_space<vmem>>, vector<1x512xf32>
    %252 = vector.broadcast %251 : vector<1x512xf32> to vector<32x512xf32>
    %253 = arith.addf %250, %252 : vector<32x512xf32>
    %cst_294 = arith.constant 0.000000e+00 : f32
    %254 = vector.broadcast %cst_294 : f32 to vector<32x512xf32>
    %255 = arith.maximumf %253, %254 : vector<32x512xf32>
    %256 = arith.truncf %255 : vector<32x512xf32> to vector<32x512xbf16>
    %c0_295 = arith.constant 0 : index
    %c0_296 = arith.constant 0 : index
    %257 = vector.load %arg10[%c0_295, %c0_296] : memref<512x128xbf16, #tpu.memory_space<vmem>>, vector<512x128xbf16>
    %cst_297 = arith.constant dense<0.000000e+00> : vector<32x128xf32>
    %258 = tpu.matmul %256, %257, %cst_297 {dimension_numbers = #tpu.dot_dimension_numbers<[1], [0], [0], [1], [0, 0, 1, 1], [], []>} : vector<32x512xbf16>, vector<512x128xbf16>, vector<32x128xf32> -> vector<32x128xf32>
    %c0_298 = arith.constant 0 : index
    %c0_299 = arith.constant 0 : index
    %259 = vector.load %arg11[%c0_298, %c0_299] : memref<1x128xf32, #tpu.memory_space<vmem>>, vector<1x128xf32>
    %260 = vector.broadcast %259 : vector<1x128xf32> to vector<32x128xf32>
    %261 = arith.addf %258, %260 : vector<32x128xf32>
    %c0_300 = arith.constant 0 : index
    %c0_301 = arith.constant 0 : index
    %262 = vector.load %arg12[%c0_300, %c0_301] : memref<32x128xf32, #tpu.memory_space<vmem>>, vector<32x128xf32>
    tpu.vector_store %arg12[%c0_300, %c0_301], %261 {strides = array<i32>} : memref<32x128xf32, #tpu.memory_space<vmem>>, vector<32x128xf32>,
    return
  }
  func.func @transform_0(%arg0: i32) -> (i32, i32, i32, i32) {
    %c0_i32 = arith.constant 0 : i32
    %c0_i32_0 = arith.constant 0 : i32
    %c0_i32_1 = arith.constant 0 : i32
    %c0_i32_2 = arith.constant 0 : i32
    return %c0_i32, %c0_i32_0, %arg0, %c0_i32_1 : i32, i32, i32, i32
  }
  func.func @transform_1(%arg0: i32) -> (i32, i32, i32) {
    %c0_i32 = arith.constant 0 : i32
    %c0_i32_0 = arith.constant 0 : i32
    %c0_i32_1 = arith.constant 0 : i32
    %c0_i32_2 = arith.constant 0 : i32
    return %c0_i32, %c0_i32_0, %c0_i32_1 : i32, i32, i32
  }
  func.func @transform_2(%arg0: i32) -> (i32, i32) {
    %c0_i32 = arith.constant 0 : i32
    %c0_i32_0 = arith.constant 0 : i32
    %c0_i32_1 = arith.constant 0 : i32
    return %c0_i32, %c0_i32_0 : i32, i32
  }
  func.func @transform_3(%arg0: i32) -> (i32, i32, i32) {
    %c0_i32 = arith.constant 0 : i32
    %c0_i32_0 = arith.constant 0 : i32
    %c0_i32_1 = arith.constant 0 : i32
    %c0_i32_2 = arith.constant 0 : i32
    return %c0_i32, %c0_i32_0, %c0_i32_1 : i32, i32, i32
  }
  func.func @transform_4(%arg0: i32) -> (i32, i32) {
    %c0_i32 = arith.constant 0 : i32
    %c0_i32_0 = arith.constant 0 : i32
    %c0_i32_1 = arith.constant 0 : i32
    return %c0_i32, %c0_i32_0 : i32, i32
  }
  func.func @transform_5(%arg0: i32) -> (i32, i32, i32) {
    %c0_i32 = arith.constant 0 : i32
    %c0_i32_0 = arith.constant 0 : i32
    %c0_i32_1 = arith.constant 0 : i32
    %c0_i32_2 = arith.constant 0 : i32
    return %c0_i32, %c0_i32_0, %c0_i32_1 : i32, i32, i32
  }
  func.func @transform_6(%arg0: i32) -> (i32, i32) {
    %c0_i32 = arith.constant 0 : i32
    %c0_i32_0 = arith.constant 0 : i32
    %c0_i32_1 = arith.constant 0 : i32
    return %c0_i32, %c0_i32_0 : i32, i32
  }
  func.func @transform_7(%arg0: i32) -> (i32, i32, i32) {
    %c0_i32 = arith.constant 0 : i32
    %c0_i32_0 = arith.constant 0 : i32
    %c0_i32_1 = arith.constant 0 : i32
    %c0_i32_2 = arith.constant 0 : i32
    return %c0_i32, %c0_i32_0, %c0_i32_1 : i32, i32, i32
  }
  func.func @transform_8(%arg0: i32) -> (i32, i32) {
    %c0_i32 = arith.constant 0 : i32
    %c0_i32_0 = arith.constant 0 : i32
    %c0_i32_1 = arith.constant 0 : i32
    return %c0_i32, %c0_i32_0 : i32, i32
  }
  func.func @transform_9(%arg0: i32) -> (i32, i32) {
    %c0_i32 = arith.constant 0 : i32
    %c0_i32_0 = arith.constant 0 : i32
    %c0_i32_1 = arith.constant 0 : i32
    return %c0_i32, %c0_i32_0 : i32, i32
  }
  func.func @transform_10(%arg0: i32) -> (i32, i32) {
    %c0_i32 = arith.constant 0 : i32
    %c0_i32_0 = arith.constant 0 : i32
    %c0_i32_1 = arith.constant 0 : i32
    return %c0_i32, %c0_i32_0 : i32, i32
  }
  func.func @transform_11(%arg0: i32) -> (i32, i32) {
    %c0_i32 = arith.constant 0 : i32
    %c0_i32_0 = arith.constant 0 : i32
    return %arg0, %c0_i32 : i32, i32
  }
}

</mosaic_0001>

<bundles_post_ra>
// kernel: policy_net_forward.1
= control target key start
LH: loop header
LB: loop body
LE: loop exit
PB: predicated region body
PF: predicated region fallthrough
CT: control target
= control target key end

     0   :  { %vm323_vm0 = vcmask 130048   ;;  %s21092_s1 = inlined_call_operand.vmem [shape: bf16[8,144,256], index: 1, kind: input, shape index: {}]   ;;  %s21093_s0 = inlined_call_operand.vmem [shape: bf16[4,9,32,144], index: 0, kind: input, shape index: {}]   ;;  %s21094_s3 = inlined_call_operand.vmem [shape: bf16[4,256,256], index: 3, kind: input, shape index: {}]   ;;  %s21095_s2 = inlined_call_operand.vmem [shape: f32[1,256], index: 2, kind: input, shape index: {}]   ;;  %s21096_s5 = inlined_call_operand.vmem [shape: bf16[3,256,128], index: 5, kind: input, shape index: {}]   ;;  %s21097_s4 = inlined_call_operand.vmem [shape: f32[1,256], index: 4, kind: input, shape index: {}]   ;;  %s21098_s6 = inlined_call_operand.vmem [shape: f32[1,128], index: 6, kind: input, shape index: {}]   ;;  %s21099_s7 = inlined_call_operand.vmem [shape: bf16[1,128,512], index: 7, kind: input, shape index: {}]   ;;  %s21100_s9 = inlined_call_operand.vmem [shape: bf16[512,128], index: 9, kind: input, shape index: {}]   ;;  %s21101_s10 = inlined_call_operand.vmem [shape: f32[1,128], index: 10, kind: input, shape index: {}]   ;;  %s21102_s8 = inlined_call_operand.vmem [shape: f32[1,512], index: 8, kind: input, shape index: {}]   ;;  %s21103_s11 = inlined_call_operand.vmem [shape: f32[32,128], index: 11, kind: output, shape index: {}]  }
   0x1   :  { %v10809_v0 = vld [vmem:[%s21092_s1 + $0x70] sm:$0xf]  ;;  %v14236_v1 = vld [vmem:[%s21092_s1 + $0x74] sm:$0xf0]  ;;  %v10817_v2 = vld [vmem:[%s21092_s1 + $0x80] sm:$0xf] }
   0x2   :  { %v10810_v3 = vor.u32 %v14236_v1, %v10809_v0  ;;  %v14238_v4 = vld [vmem:[%s21092_s1 + $0x84] sm:$0xf0]  ;;  %v14235_v5 = vld [vmem:[%s21092_s1 + $0x74] sm:$0xf]  ;;  %v10811_v6 = vld [vmem:[%s21092_s1 + $0x78] sm:$0xf0] }
   0x3   :  { %v10818_v7 = vor.u32 %v14238_v4, %v10817_v2  ;;  %v10814_v8 = vor.u32 %v14235_v5, %v10811_v6  ;;  %v14237_v9 = vld [vmem:[%s21092_s1 + $0x84] sm:$0xf]  ;;  %v10819_v10 = vld [vmem:[%s21092_s1 + $0x88] sm:$0xf0]  ;;  %v10801_v14 = vld [vmem:[%s21092_s1 + $0x60] sm:$0xf] }
   0x4   :  { %v14189_v11 = vld [vmem:[%s21093_s0 + $0x4] sm:$0xf]  ;;  %372 = vmatpush.bf16.msra.mxu0 %v10810_v3  ;;  %v10822_v12 = vor.u32 %v14237_v9, %v10819_v10  ;;  %v10627_v13 = vld [vmem:[%s21093_s0 + $0x8] sm:$0xf0]  ;;  %v14234_v15 = vld [vmem:[%s21092_s1 + $0x64] sm:$0xf0] }
   0x5   :  { %468 = vmatpush.bf16.msra.mxu1 %v10818_v7  ;;  %550 = vmatpush.bf16.msra.mxu2 %v10814_v8  ;;  %v10630_v16 = vor.u32 %v14189_v11, %v10627_v13  ;;  %v10802_v17 = vor.u32 %v14234_v15, %v10801_v14  ;;  %v14233_v18 = vld [vmem:[%s21092_s1 + $0x64] sm:$0xf]  ;;  %v10803_v19 = vld [vmem:[%s21092_s1 + $0x68] sm:$0xf0]  ;;  %v10793_v20 = vld [vmem:[%s21092_s1 + $0x50] sm:$0xf] }
   0x6   :  { %646 = vmatpush.bf16.msra.mxu3 %v10822_v12  ;;  %v10806_v21 = vor.u32 %v14233_v18, %v10803_v19  ;;  %v14232_v22 = vld [vmem:[%s21092_s1 + $0x54] sm:$0xf0]  ;;  %v14231_v23 = vld [vmem:[%s21092_s1 + $0x54] sm:$0xf]  ;;  %v10795_v24 = vld [vmem:[%s21092_s1 + $0x58] sm:$0xf0] }
   0x7   :  { %v10794_v25 = vor.u32 %v14232_v22, %v10793_v20  ;;  %v10798_v26 = vor.u32 %v14231_v23, %v10795_v24  ;;  %v10785_v27 = vld [vmem:[%s21092_s1 + $0x40] sm:$0xf]  ;;  %v14230_v28 = vld [vmem:[%s21092_s1 + $0x44] sm:$0xf0]  ;;  %v14229_v29 = vld [vmem:[%s21092_s1 + $0x44] sm:$0xf] }
   0x8   :  { %10823 = vmatmul.msk.bf16.vlgmr.msra.gmra.mxu1 %vm323_vm0, %v10630_v16  ;;  %373 = vmatpush.bf16.msra.mxu0 %v10802_v17  ;;  %v10787_v30 = vld [vmem:[%s21092_s1 + $0x48] sm:$0xf0]  ;;  %v10786_v31 = vor.u32 %v14230_v28, %v10785_v27  ;;  %v10777_v33 = vld [vmem:[%s21092_s1 + $0x30] sm:$0xf]  ;;  %v14228_v34 = vld [vmem:[%s21092_s1 + $0x34] sm:$0xf0] }
   0x9   :  { %10839 = vmatmul.msk.bf16.vlgmr.msra.gmra.mxu3 %vm323_vm0, %v10630_v16  ;;  %551 = vmatpush.bf16.msra.mxu2 %v10806_v21  ;;  %v10790_v32 = vor.u32 %v14229_v29, %v10787_v30  ;;  %v14227_v35 = vld [vmem:[%s21092_s1 + $0x34] sm:$0xf]  ;;  %v10779_v36 = vld [vmem:[%s21092_s1 + $0x38] sm:$0xf0]  ;;  %v11099_v37 = vld [vmem:[%s21092_s1 + $0x110] sm:$0xf]  ;;  %v10778_v39 = vor.u32 %v14228_v34, %v10777_v33 }
   0xa   :  { %v14288_v38 = vld [vmem:[%s21092_s1 + $0x114] sm:$0xf0]  ;;  %v14191_v40 = vld [vmem:[%s21093_s0 + $0x14] sm:$0xf]  ;;  %v10635_v41 = vld [vmem:[%s21093_s0 + $0x18] sm:$0xf0]  ;;  %v10782_v44 = vor.u32 %v14227_v35, %v10779_v36 }
   0xb   :  { %v10769_v42 = vld [vmem:[%s21092_s1 + $0x20] sm:$0xf]  ;;  %v11100_v43 = vor.u32 %v14288_v38, %v11099_v37  ;;  %v14226_v45 = vld [vmem:[%s21092_s1 + $0x24] sm:$0xf0]  ;;  %v14225_v48 = vld [vmem:[%s21092_s1 + $0x24] sm:$0xf]  ;;  %v10638_v51 = vor.u32 %v14191_v40, %v10635_v41 }
   0xc   :  { %374 = vmatpush.bf16.msra.mxu0 %v10794_v25  ;;  %v11091_v46 = vld [vmem:[%s21092_s1 + $0x100] sm:$0xf]  ;;  %v14286_v47 = vld [vmem:[%s21092_s1 + $0x104] sm:$0xf0]  ;;  %v10771_v49 = vld [vmem:[%s21092_s1 + $0x28] sm:$0xf0]  ;;  %v10770_v52 = vor.u32 %v14226_v45, %v10769_v42 }
   0xd   :  { %552 = vmatpush.bf16.msra.mxu2 %v10798_v26  ;;  %1222 = vmatpush.bf16.msrb.mxu3 %v11100_v43  ;;  %v11092_v50 = vor.u32 %v14286_v47, %v11091_v46  ;;  %v10774_v53 = vor.u32 %v14225_v48, %v10771_v49  ;;  %v10761_v54 = vld [vmem:[%s21092_s1 + $0x10] sm:$0xf]  ;;  %v14224_v55 = vld [vmem:[%s21092_s1 + $0x14] sm:$0xf0]  ;;  %v14223_v56 = vld [vmem:[%s21092_s1 + $0x14] sm:$0xf] }
   0xe   :  { %v10763_v57 = vld [vmem:[%s21092_s1 + $0x18] sm:$0xf0]  ;;  %v10762_v58 = vor.u32 %v14224_v55, %v10761_v54  ;;  %v10753_v60 = vld [vmem:[%s21092_s1] sm:$0xf]  ;;  %v14222_v61 = vld [vmem:[%s21092_s1 + $0x4] sm:$0xf0] }
   0xf   :  { %1126 = vmatpush.bf16.msrb.mxu1 %v11092_v50  ;;  %v10766_v59 = vor.u32 %v14223_v56, %v10763_v57  ;;  %v14221_v62 = vld [vmem:[%s21092_s1 + $0x4] sm:$0xf]  ;;  %v10755_v63 = vld [vmem:[%s21092_s1 + $0x8] sm:$0xf0]  ;;  %v14287_v2 = vld [vmem:[%s21092_s1 + $0x114] sm:$0xf]  ;;  %v10754_v4 = vor.u32 %v14222_v61, %v10753_v60 }
  0x10   :  { %375 = vmatpush.bf16.msra.mxu0 %v10786_v31  ;;  %v14285_v0 = vld [vmem:[%s21092_s1 + $0x104] sm:$0xf]  ;;  %v11093_v1 = vld [vmem:[%s21092_s1 + $0x108] sm:$0xf0]  ;;  %v11101_v3 = vld [vmem:[%s21092_s1 + $0x118] sm:$0xf0]  ;;  %v10758_v7 = vor.u32 %v14221_v62, %v10755_v63 }
  0x11   :  { %553 = vmatpush.bf16.msra.mxu2 %v10790_v32  ;;  %v10625_v5 = vld [vmem:[%s21093_s0] sm:$0xf]  ;;  %v14190_v6 = vld [vmem:[%s21093_s0 + $0x4] sm:$0xf0]  ;;  %v11096_v8 = vor.u32 %v14285_v0, %v11093_v1  ;;  %v11104_v9 = vor.u32 %v14287_v2, %v11101_v3  ;;  %v14193_v11 = vld [vmem:[%s21093_s0 + $0x24] sm:$0xf] }
  0x12   :  { %v10626_v10 = vor.u32 %v14190_v6, %v10625_v5  ;;  %v10643_v12 = vld [vmem:[%s21093_s0 + $0x28] sm:$0xf0]  ;;  %v11083_v14 = vld [vmem:[%s21092_s1 + $0xf0] sm:$0xf]  ;;  %v14284_v15 = vld [vmem:[%s21092_s1 + $0xf4] sm:$0xf0] }
  0x13   :  { %v10646_v13 = vor.u32 %v14193_v11, %v10643_v12  ;;  %v14283_v16 = vld [vmem:[%s21092_s1 + $0xf4] sm:$0xf]  ;;  %v11084_v17 = vor.u32 %v14284_v15, %v11083_v14  ;;  %v11085_v18 = vld [vmem:[%s21092_s1 + $0xf8] sm:$0xf0]  ;;  %v10633_v20 = vld [vmem:[%s21093_s0 + $0x10] sm:$0xf] }
  0x14   :  { %376 = vmatpush.bf16.msra.mxu0 %v10778_v39  ;;  %v11088_v19 = vor.u32 %v14283_v16, %v11085_v18  ;;  %v14192_v21 = vld [vmem:[%s21093_s0 + $0x14] sm:$0xf0]  ;;  %v14195_v23 = vld [vmem:[%s21093_s0 + $0x34] sm:$0xf]  ;;  %v10651_v24 = vld [vmem:[%s21093_s0 + $0x38] sm:$0xf0] }
  0x15   :  { %554 = vmatpush.bf16.msra.mxu2 %v10782_v44  ;;  %1127 = vmatpush.bf16.msrb.mxu1 %v11084_v17  ;;  %v10634_v22 = vor.u32 %v14192_v21, %v10633_v20  ;;  %v10654_v25 = vor.u32 %v14195_v23, %v10651_v24  ;;  %v10641_v26 = vld [vmem:[%s21093_s0 + $0x20] sm:$0xf]  ;;  %v14194_v27 = vld [vmem:[%s21093_s0 + $0x24] sm:$0xf0]  ;;  %v14197_v29 = vld [vmem:[%s21093_s0 + $0x44] sm:$0xf] }
  0x16   :  { %v10642_v28 = vor.u32 %v14194_v27, %v10641_v26  ;;  %v10659_v30 = vld [vmem:[%s21093_s0 + $0x48] sm:$0xf0]  ;;  %v11075_v32 = vld [vmem:[%s21092_s1 + $0xe0] sm:$0xf]  ;;  %v14282_v33 = vld [vmem:[%s21092_s1 + $0xe4] sm:$0xf0] }
  0x17   :  { %v10662_v31 = vor.u32 %v14197_v29, %v10659_v30  ;;  %v14281_v34 = vld [vmem:[%s21092_s1 + $0xe4] sm:$0xf]  ;;  %v11076_v35 = vor.u32 %v14282_v33, %v11075_v32  ;;  %v11077_v36 = vld [vmem:[%s21092_s1 + $0xe8] sm:$0xf0]  ;;  %v10649_v38 = vld [vmem:[%s21093_s0 + $0x30] sm:$0xf] }
  0x18   :  { %10824 = vmatmul.msk.bf16.gmra.mxu1 %vm323_vm0, %v10638_v51  ;;  %377 = vmatpush.bf16.msra.mxu0 %v10770_v52  ;;  %v11080_v37 = vor.u32 %v14281_v34, %v11077_v36  ;;  %v14196_v39 = vld [vmem:[%s21093_s0 + $0x34] sm:$0xf0]  ;;  %v14199_v41 = vld [vmem:[%s21093_s0 + $0x54] sm:$0xf]  ;;  %v10667_v42 = vld [vmem:[%s21093_s0 + $0x58] sm:$0xf0] }
  0x19   :  { %10840 = vmatmul.msk.bf16.gmra.mxu3 %vm323_vm0, %v10638_v51  ;;  %555 = vmatpush.bf16.msra.mxu2 %v10774_v53  ;;  %v10650_v40 = vor.u32 %v14196_v39, %v10649_v38  ;;  %v10670_v43 = vor.u32 %v14199_v41, %v10667_v42  ;;  %v10657_v44 = vld [vmem:[%s21093_s0 + $0x40] sm:$0xf]  ;;  %v14198_v45 = vld [vmem:[%s21093_s0 + $0x44] sm:$0xf0]  ;;  %v14201_v47 = vld [vmem:[%s21093_s0 + $0x64] sm:$0xf] }
  0x1a   :  { %1128 = vmatpush.bf16.msrb.mxu1 %v11076_v35  ;;  %v10658_v46 = vor.u32 %v14198_v45, %v10657_v44  ;;  %v10675_v48 = vld [vmem:[%s21093_s0 + $0x68] sm:$0xf0]  ;;  %v11067_v50 = vld [vmem:[%s21092_s1 + $0xd0] sm:$0xf]  ;;  %v14280_v51 = vld [vmem:[%s21092_s1 + $0xd4] sm:$0xf0] }
  0x1b   :  { %v10678_v49 = vor.u32 %v14201_v47, %v10675_v48  ;;  %v14279_v52 = vld [vmem:[%s21092_s1 + $0xd4] sm:$0xf]  ;;  %v11068_v53 = vor.u32 %v14280_v51, %v11067_v50  ;;  %v11069_v54 = vld [vmem:[%s21092_s1 + $0xd8] sm:$0xf0]  ;;  %v10665_v56 = vld [vmem:[%s21093_s0 + $0x50] sm:$0xf] }
  0x1c   :  { %378 = vmatpush.bf16.msra.mxu0 %v10762_v58  ;;  %v11072_v55 = vor.u32 %v14279_v52, %v11069_v54  ;;  %v14200_v57 = vld [vmem:[%s21093_s0 + $0x54] sm:$0xf0]  ;;  %v10683_v60 = vld [vmem:[%s21093_s0 + $0x78] sm:$0xf0]  ;;  %v10673_v62 = vld [vmem:[%s21093_s0 + $0x60] sm:$0xf] }
  0x1d   :  { %556 = vmatpush.bf16.msra.mxu2 %v10766_v59  ;;  %v10666_v58 = vor.u32 %v14200_v57, %v10665_v56  ;;  %v14203_v59 = vld [vmem:[%s21093_s0 + $0x74] sm:$0xf]  ;;  %v14202_v63 = vld [vmem:[%s21093_s0 + $0x64] sm:$0xf0]  ;;  %v14205_v1 = vld [vmem:[%s21093_s0 + $0x84] sm:$0xf] }
  0x1e   :  { %1129 = vmatpush.bf16.msrb.mxu1 %v11068_v53  ;;  %v10686_v61 = vor.u32 %v14203_v59, %v10683_v60  ;;  %v10674_v0 = vor.u32 %v14202_v63, %v10673_v62  ;;  %v10691_v2 = vld [vmem:[%s21093_s0 + $0x88] sm:$0xf0]  ;;  %v11059_v5 = vld [vmem:[%s21092_s1 + $0xc0] sm:$0xf]  ;;  %v14278_v6 = vld [vmem:[%s21092_s1 + $0xc4] sm:$0xf0] }
  0x1f   :  { %v10694_v3 = vor.u32 %v14205_v1, %v10691_v2  ;;  %v10681_v12 = vld [vmem:[%s21093_s0 + $0x70] sm:$0xf]  ;;  %v14207_v16 = vld [vmem:[%s21093_s0 + $0x94] sm:$0xf]  ;;  %v10699_v17 = vld [vmem:[%s21093_s0 + $0x98] sm:$0xf0] }
  0x20   :  { %379 = vmatpush.bf16.msra.mxu0 %v10754_v4  ;;  %v14206_v23 = vld [vmem:[%s21093_s0 + $0x84] sm:$0xf0]  ;;  %v10707_v29 = vld [vmem:[%s21093_s0 + $0xa8] sm:$0xf0]  ;;  %v14276_v38 = vld [vmem:[%s21092_s1 + $0xb4] sm:$0xf0] }
  0x21   :  { %557 = vmatpush.bf16.msra.mxu2 %v10758_v7  ;;  %v14277_v7 = vld [vmem:[%s21092_s1 + $0xc4] sm:$0xf]  ;;  %v14275_v39 = vld [vmem:[%s21092_s1 + $0xb4] sm:$0xf]  ;;  %v11053_v41 = vld [vmem:[%s21092_s1 + $0xb8] sm:$0xf0] }
  0x22   :  { %v11056_v42 = vor.u32 %v14275_v39, %v11053_v41  ;;  %v10697_v44 = vld [vmem:[%s21093_s0 + $0x90] sm:$0xf]  ;;  %v14208_v45 = vld [vmem:[%s21093_s0 + $0x94] sm:$0xf0]  ;;  %v14211_v52 = vld [vmem:[%s21093_s0 + $0xb4] sm:$0xf] }
  0x23   :  { %380 = vmatmul.bf16.vlgmr.msra.gmra.mxu0 %v10626_v10  ;;  %v10698_v48 = vor.u32 %v14208_v45, %v10697_v44  ;;  %v10715_v53 = vld [vmem:[%s21093_s0 + $0xb8] sm:$0xf0]  ;;  %v10705_v62 = vld [vmem:[%s21093_s0 + $0xa0] sm:$0xf]  ;;  %v14210_v63 = vld [vmem:[%s21093_s0 + $0xa4] sm:$0xf0] }
  0x24   :  { %1304 = vmatpush.bf16.msrb.mxu0 %v11096_v8  ;;  %558 = vmatmul.bf16.vlgmr.msra.gmra.mxu2 %v10626_v10  ;;  %v11060_v8 = vor.u32 %v14278_v6, %v11059_v5  ;;  %v10706_v2 = vor.u32 %v14210_v63, %v10705_v62  ;;  %v14213_v6 = vld [vmem:[%s21093_s0 + $0xc4] sm:$0xf]  ;;  %v14214_v44 = vld [vmem:[%s21093_s0 + $0xc4] sm:$0xf0] }
  0x25   :  { %1400 = vmatpush.bf16.msrb.mxu2 %v11104_v9  ;;  %v11061_v9 = vld [vmem:[%s21092_s1 + $0xc8] sm:$0xf0] }
  0x26   :  { %v11064_v10 = vor.u32 %v14277_v7, %v11061_v9  ;;  %1130 = vmatpush.bf16.msrb.mxu1 %v11060_v8  ;;  %v10723_v7 = vld [vmem:[%s21093_s0 + $0xc8] sm:$0xf0] }
  0x27   :  { %v10726_v9 = vor.u32 %v14213_v6, %v10723_v7  ;;  %v11037_v6 = vld [vmem:[%s21092_s1 + $0x98] sm:$0xf0] }
  0x28   :  { %10825 = vmatmul.msk.bf16.gmra.mxu1 %vm323_vm0, %v10646_v13  ;;  %1305 = vmatpush.bf16.msrb.mxu0 %v11088_v19  ;;  %v10702_v19 = vor.u32 %v14207_v16, %v10699_v17  ;;  %v14274_v16 = vld [vmem:[%s21092_s1 + $0xa4] sm:$0xf0]  ;;  %v14273_v17 = vld [vmem:[%s21092_s1 + $0xa4] sm:$0xf] }
  0x29   :  { %10841 = vmatmul.msk.bf16.gmra.mxu3 %vm323_vm0, %v10646_v13  ;;  %v14204_v13 = vld [vmem:[%s21093_s0 + $0x74] sm:$0xf0] }
  0x2a   :  { %v10682_v15 = vor.u32 %v14204_v13, %v10681_v12 }
  0x2c   :  { %1306 = vmatpush.bf16.msrb.mxu0 %v11080_v37  ;;  %v11051_v37 = vld [vmem:[%s21092_s1 + $0xb0] sm:$0xf] }
  0x30   :  { %1307 = vmatpush.bf16.msrb.mxu0 %v11072_v55  ;;  %v10718_v55 = vor.u32 %v14211_v52, %v10715_v53  ;;  %v14217_v53 = vld [vmem:[%s21093_s0 + $0xe4] sm:$0xf] }
  0x33   :  { %385 = vmatmul.bf16.gmra.mxu0 %v10634_v22 }
  0x34   :  { %563 = vmatmul.bf16.gmra.mxu2 %v10634_v22  ;;  %1308 = vmatpush.bf16.msrb.mxu0 %v11064_v10  ;;  %v10689_v22 = vld [vmem:[%s21093_s0 + $0x80] sm:$0xf] }
  0x38   :  { %10826 = vmatmul.msk.bf16.gmra.mxu1 %vm323_vm0, %v10654_v25  ;;  %1309 = vmatpush.bf16.msrb.mxu0 %v11056_v42 }
  0x39   :  { %10842 = vmatmul.msk.bf16.gmra.mxu3 %vm323_vm0, %v10654_v25  ;;  %v10690_v25 = vor.u32 %v14206_v23, %v10689_v22  ;;  %v10713_v22 = vld [vmem:[%s21093_s0 + $0xb0] sm:$0xf]  ;;  %v14212_v23 = vld [vmem:[%s21093_s0 + $0xb4] sm:$0xf0] }
  0x43   :  { %390 = vmatmul.bf16.gmra.mxu0 %v10642_v28 }
  0x44   :  { %568 = vmatmul.bf16.gmra.mxu2 %v10642_v28  ;;  %v14209_v28 = vld [vmem:[%s21093_s0 + $0xa4] sm:$0xf] }
  0x48   :  { %10827 = vmatmul.msk.bf16.gmra.mxu1 %vm323_vm0, %v10662_v31 }
  0x49   :  { %10843 = vmatmul.msk.bf16.gmra.mxu3 %vm323_vm0, %v10662_v31  ;;  %v10710_v31 = vor.u32 %v14209_v28, %v10707_v29 }
  0x53   :  { %395 = vmatmul.bf16.gmra.mxu0 %v10650_v40 }
  0x54   :  { %573 = vmatmul.bf16.gmra.mxu2 %v10650_v40  ;;  %v11052_v40 = vor.u32 %v14276_v38, %v11051_v37 }
  0x56   :  { %1131 = vmatpush.bf16.msrb.mxu1 %v11052_v40 }
  0x58   :  { %10828 = vmatmul.msk.bf16.gmra.mxu1 %vm323_vm0, %v10670_v43 }
  0x59   :  { %10844 = vmatmul.msk.bf16.gmra.mxu3 %vm323_vm0, %v10670_v43 }
  0x63   :  { %400 = vmatmul.bf16.gmra.mxu0 %v10658_v46 }
  0x64   :  { %578 = vmatmul.bf16.gmra.mxu2 %v10658_v46 }
  0x68   :  { %10829 = vmatmul.msk.bf16.gmra.mxu1 %vm323_vm0, %v10678_v49 }
  0x69   :  { %10845 = vmatmul.msk.bf16.gmra.mxu3 %vm323_vm0, %v10678_v49 }
  0x73   :  { %405 = vmatmul.bf16.gmra.mxu0 %v10666_v58 }
  0x74   :  { %583 = vmatmul.bf16.gmra.mxu2 %v10666_v58 }
  0x78   :  { %10830 = vmatmul.msk.bf16.gmra.mxu1 %vm323_vm0, %v10686_v61 }
  0x79   :  { %10846 = vmatmul.msk.bf16.gmra.mxu3 %vm323_vm0, %v10686_v61 }
  0x83   :  { %410 = vmatmul.bf16.gmra.mxu0 %v10674_v0 }
  0x84   :  { %588 = vmatmul.bf16.gmra.mxu2 %v10674_v0 }
  0x85   :  { %v470_v4 = vpop.f32.mrf.mxu1 }
  0x88   :  { %10831 = vmatmul.msk.bf16.gmra.mxu1 %vm323_vm0, %v10694_v3 }
  0x89   :  { %10847 = vmatmul.msk.bf16.gmra.mxu3 %vm323_vm0, %v10694_v3 }
  0x8c   :  { %v648_v11 = vpop.f32.mrf.mxu3 }
  0x8d   :  { %v472_v14 = vpop.f32.mrf.mxu1 }
  0x93   :  { %415 = vmatmul.bf16.gmra.mxu0 %v10682_v15 }
  0x94   :  { %v650_v18 = vpop.f32.mrf.mxu3  ;;  %593 = vmatmul.bf16.gmra.mxu2 %v10682_v15  ;;  %v11043_v15 = vld [vmem:[%s21092_s1 + $0xa0] sm:$0xf] }
  0x95   :  { %v475_v20 = vpop.f32.mrf.mxu1 }
  0x98   :  { %10832 = vmatmul.msk.bf16.gmra.mxu1 %vm323_vm0, %v10702_v19 }
  0x99   :  { %10848 = vmatmul.msk.bf16.gmra.mxu3 %vm323_vm0, %v10702_v19  ;;  %v11045_v19 = vld [vmem:[%s21092_s1 + $0xa8] sm:$0xf0] }
  0x9c   :  { %v653_v21 = vpop.f32.mrf.mxu3 }
  0x9d   :  { %v477_v24 = vpop.f32.mrf.mxu1 }
  0xa0   :  { %v381_v26 = vpop.f32.mrf.mxu0 }
  0xa1   :  { %v15265_v27 = vadd.f32 %v470_v4, %v381_v26  ;;  %v10714_v26 = vor.u32 %v14212_v23, %v10713_v22 }
  0xa3   :  { %420 = vmatmul.bf16.gmra.mxu0 %v10690_v25 }
  0xa4   :  { %v655_v30 = vpop.f32.mrf.mxu3  ;;  %598 = vmatmul.bf16.gmra.mxu2 %v10690_v25 }
  0xa5   :  { %v480_v32 = vpop.f32.mrf.mxu1 }
  0xa7   :  { %v559_v33 = vpop.f32.mrf.mxu2 }
  0xa8   :  { %v15273_v34 = vadd.f32 %v648_v11, %v559_v33  ;;  %10833 = vmatmul.msk.bf16.gmra.mxu1 %vm323_vm0, %v10710_v31  ;;  %v383_v35 = vpop.f32.mrf.mxu0 }
  0xa9   :  { %10849 = vmatmul.msk.bf16.gmra.mxu3 %vm323_vm0, %v10710_v31  ;;  %v15277_v36 = vadd.f32 %v472_v14, %v383_v35  ;;  %v14215_v31 = vld [vmem:[%s21093_s0 + $0xd4] sm:$0xf] }
  0xac   :  { %v658_v43 = vpop.f32.mrf.mxu3 }
  0xad   :  { %v482_v46 = vpop.f32.mrf.mxu1 }
  0xaf   :  { %v561_v47 = vpop.f32.mrf.mxu2 }
  0xb0   :  { %v15297_v49 = vadd.f32 %v650_v18, %v561_v47  ;;  %v386_v50 = vpop.f32.mrf.mxu0  ;;  %v11044_v18 = vor.u32 %v14274_v16, %v11043_v15 }
  0xb1   :  { %v15299_v51 = vadd.f32 %v475_v20, %v386_v50  ;;  %v11048_v20 = vor.u32 %v14273_v17, %v11045_v19  ;;  %v14219_v19 = vld [vmem:[%s21093_s0 + $0xf4] sm:$0xf] }
  0xb2   :  { %1132 = vmatpush.bf16.msrb.mxu1 %v11044_v18 }
  0xb3   :  { %425 = vmatmul.bf16.gmra.mxu0 %v10698_v48 }
  0xb4   :  { %v660_v54 = vpop.f32.mrf.mxu3  ;;  %603 = vmatmul.bf16.gmra.mxu2 %v10698_v48  ;;  %1310 = vmatpush.bf16.msrb.mxu0 %v11048_v20  ;;  %v10747_v20 = vld [vmem:[%s21093_s0 + $0xf8] sm:$0xf0] }
  0xb5   :  { %v485_v56 = vpop.f32.mrf.mxu1  ;;  %v10750_v22 = vor.u32 %v14219_v19, %v10747_v20  ;;  %v10745_v19 = vld [vmem:[%s21093_s0 + $0xf0] sm:$0xf]  ;;  %v14220_v20 = vld [vmem:[%s21093_s0 + $0xf4] sm:$0xf0] }
  0xb7   :  { %v564_v57 = vpop.f32.mrf.mxu2 }
  0xb8   :  { %v15307_v58 = vadd.f32 %v653_v21, %v564_v57  ;;  %10834 = vmatmul.msk.bf16.gmra.mxu1 %vm323_vm0, %v10718_v55  ;;  %v388_v59 = vpop.f32.mrf.mxu0 }
  0xb9   :  { %10850 = vmatmul.msk.bf16.gmra.mxu3 %vm323_vm0, %v10718_v55  ;;  %v15311_v60 = vadd.f32 %v477_v24, %v388_v59  ;;  %v11035_v55 = vld [vmem:[%s21092_s1 + $0x90] sm:$0xf] }
  0xbc   :  { %v663_v61 = vpop.f32.mrf.mxu3 }
  0xbd   :  { %v487_v0 = vpop.f32.mrf.mxu1 }
  0xbf   :  { %v566_v1 = vpop.f32.mrf.mxu2 }
  0xc0   :  { %v15319_v3 = vadd.f32 %v655_v30, %v566_v1  ;;  %v391_v4 = vpop.f32.mrf.mxu0 }
  0xc1   :  { %v15321_v5 = vadd.f32 %v480_v32, %v391_v4  ;;  %v10731_v32 = vld [vmem:[%s21093_s0 + $0xd8] sm:$0xf0]  ;;  %v14271_v4 = vld [vmem:[%s21092_s1 + $0x94] sm:$0xf] }
  0xc2   :  { %v10734_v35 = vor.u32 %v14215_v31, %v10731_v32  ;;  %v11040_v7 = vor.u32 %v14271_v4, %v11037_v6  ;;  %v10737_v32 = vld [vmem:[%s21093_s0 + $0xe0] sm:$0xf] }
  0xc3   :  { %430 = vmatmul.bf16.gmra.mxu0 %v10706_v2 }
  0xc4   :  { %v665_v8 = vpop.f32.mrf.mxu3  ;;  %608 = vmatmul.bf16.gmra.mxu2 %v10706_v2  ;;  %1311 = vmatpush.bf16.msrb.mxu0 %v11040_v7 }
  0xc5   :  { %v490_v10 = vpop.f32.mrf.mxu1 }
  0xc7   :  { %v569_v11 = vpop.f32.mrf.mxu2 }
  0xc8   :  { %v15329_v12 = vadd.f32 %v658_v43, %v569_v11  ;;  %10835 = vmatmul.msk.bf16.gmra.mxu1 %vm323_vm0, %v10726_v9  ;;  %v393_v13 = vpop.f32.mrf.mxu0  ;;  %v10721_v43 = vld [vmem:[%s21093_s0 + $0xc0] sm:$0xf] }
  0xc9   :  { %10851 = vmatmul.msk.bf16.gmra.mxu3 %vm323_vm0, %v10726_v9  ;;  %v15333_v14 = vadd.f32 %v482_v46, %v393_v13  ;;  %v10722_v47 = vor.u32 %v14214_v44, %v10721_v43  ;;  %v10729_v9 = vld [vmem:[%s21093_s0 + $0xd0] sm:$0xf]  ;;  %v10907_v44 = vld [vmem:[%s21093_s0 + $0x120] sm:$0xf] }
  0xcc   :  { %v668_v21 = vpop.f32.mrf.mxu3 }
  0xcd   :  { %v492_v24 = vpop.f32.mrf.mxu1 }
  0xcf   :  { %v571_v25 = vpop.f32.mrf.mxu2 }
  0xd0   :  { %v15353_v28 = vadd.f32 %v660_v54, %v571_v25  ;;  %v396_v29 = vpop.f32.mrf.mxu0  ;;  %v10739_v54 = vld [vmem:[%s21093_s0 + $0xe8] sm:$0xf0] }
  0xd1   :  { %v15355_v30 = vadd.f32 %v485_v56, %v396_v29  ;;  %v14272_v56 = vld [vmem:[%s21092_s1 + $0x94] sm:$0xf0]  ;;  %v10742_v59 = vor.u32 %v14217_v53, %v10739_v54  ;;  %v11381_v54 = vld [vmem:[%s21092_s1 + $0x1a0] sm:$0xf] }
  0xd3   :  { %435 = vmatmul.bf16.gmra.mxu0 %v10714_v26 }
  0xd4   :  { %v670_v33 = vpop.f32.mrf.mxu3  ;;  %613 = vmatmul.bf16.gmra.mxu2 %v10714_v26 }
  0xd5   :  { %v495_v37 = vpop.f32.mrf.mxu1 }
  0xd7   :  { %v574_v38 = vpop.f32.mrf.mxu2 }
  0xd8   :  { %v15363_v39 = vadd.f32 %v663_v61, %v574_v38  ;;  %10836 = vmatmul.msk.bf16.gmra.mxu1 %vm323_vm0, %v10734_v35  ;;  %v398_v40 = vpop.f32.mrf.mxu0  ;;  %v11036_v61 = vor.u32 %v14272_v56, %v11035_v55  ;;  %v14338_v55 = vld [vmem:[%s21092_s1 + $0x1a4] sm:$0xf0]  ;;  %v14337_v56 = vld [vmem:[%s21092_s1 + $0x1a4] sm:$0xf] }
  0xd9   :  { %10852 = vmatmul.msk.bf16.gmra.mxu3 %vm323_vm0, %v10734_v35  ;;  %v15367_v41 = vadd.f32 %v487_v0, %v398_v40 }
  0xda   :  { %1133 = vmatpush.bf16.msrb.mxu1 %v11036_v61  ;;  %v11382_v61 = vor.u32 %v14338_v55, %v11381_v54 }
  0xdc   :  { %v673_v42 = vpop.f32.mrf.mxu3  ;;  %2104 = vmatpush.bf16.msra.mxu3 %v11382_v61 }
  0xdd   :  { %v497_v45 = vpop.f32.mrf.mxu1 }
  0xdf   :  { %v576_v46 = vpop.f32.mrf.mxu2 }
  0xe0   :  { %v15375_v48 = vadd.f32 %v665_v8, %v576_v46  ;;  %v401_v50 = vpop.f32.mrf.mxu0  ;;  %v14239_v46 = vld [vmem:[%s21093_s0 + $0x124] sm:$0xf] }
  0xe1   :  { %v15377_v52 = vadd.f32 %v490_v10, %v401_v50  ;;  %v14216_v10 = vld [vmem:[%s21093_s0 + $0xd4] sm:$0xf0] }
  0xe2   :  { %v10730_v15 = vor.u32 %v14216_v10, %v10729_v9  ;;  %v11373_v9 = vld [vmem:[%s21092_s1 + $0x190] sm:$0xf]  ;;  %v14336_v10 = vld [vmem:[%s21092_s1 + $0x194] sm:$0xf0] }
  0xe3   :  { %440 = vmatmul.bf16.gmra.mxu0 %v10722_v47 }
  0xe4   :  { %v675_v57 = vpop.f32.mrf.mxu3  ;;  %618 = vmatmul.bf16.gmra.mxu2 %v10722_v47  ;;  %v10909_v47 = vld [vmem:[%s21093_s0 + $0x128] sm:$0xf0] }
  0xe5   :  { %v500_v62 = vpop.f32.mrf.mxu1 }
  0xe7   :  { %v579_v63 = vpop.f32.mrf.mxu2 }
  0xe8   :  { %v15391_v0 = vadd.f32 %v668_v21, %v579_v63  ;;  %10837 = vmatmul.msk.bf16.gmra.mxu1 %vm323_vm0, %v10742_v59  ;;  %v403_v1 = vpop.f32.mrf.mxu0 }
  0xe9   :  { %10853 = vmatmul.msk.bf16.gmra.mxu3 %vm323_vm0, %v10742_v59  ;;  %v15395_v2 = vadd.f32 %v492_v24, %v403_v1  ;;  %v10912_v59 = vor.u32 %v14239_v46, %v10909_v47 }
  0xec   :  { %v678_v8 = vpop.f32.mrf.mxu3 }
  0xed   :  { %v502_v11 = vpop.f32.mrf.mxu1 }
  0xef   :  { %v581_v13 = vpop.f32.mrf.mxu2 }
  0xf0   :  { %v15409_v16 = vadd.f32 %v670_v33, %v581_v13  ;;  %v406_v17 = vpop.f32.mrf.mxu0  ;;  %v14218_v33 = vld [vmem:[%s21093_s0 + $0xe4] sm:$0xf0]  ;;  %v11374_v13 = vor.u32 %v14336_v10, %v11373_v9 }
  0xf1   :  { %v15411_v18 = vadd.f32 %v495_v37, %v406_v17  ;;  %v10738_v38 = vor.u32 %v14218_v33, %v10737_v32 }
  0xf2   :  { %2008 = vmatpush.bf16.msra.mxu1 %v11374_v13 }
  0xf3   :  { %445 = vmatmul.bf16.gmra.mxu0 %v10730_v15 }
  0xf4   :  { %v680_v21 = vpop.f32.mrf.mxu3  ;;  %623 = vmatmul.bf16.gmra.mxu2 %v10730_v15  ;;  %v11375_v15 = vld [vmem:[%s21092_s1 + $0x198] sm:$0xf0] }
  0xf5   :  { %v505_v23 = vpop.f32.mrf.mxu1 }
  0xf7   :  { %v584_v24 = vpop.f32.mrf.mxu2 }
  0xf8   :  { %v15419_v25 = vadd.f32 %v673_v42, %v584_v24  ;;  %10838 = vmatmul.msk.bf16.gmra.mxu1 %vm323_vm0, %v10750_v22  ;;  %v408_v26 = vpop.f32.mrf.mxu0 }
  0xf9   :  { %10854 = vmatmul.msk.bf16.gmra.mxu3 %vm323_vm0, %v10750_v22  ;;  %v15423_v29 = vadd.f32 %v497_v45, %v408_v26  ;;  %v14240_v45 = vld [vmem:[%s21093_s0 + $0x124] sm:$0xf0]  ;;  %v10746_v26 = vor.u32 %v14220_v20, %v10745_v19 }
  0xfa   :  { %v10908_v53 = vor.u32 %v14240_v45, %v10907_v44  ;;  %v14241_v44 = vld [vmem:[%s21093_s0 + $0x134] sm:$0xf] }
  0xfc   :  { %v683_v31 = vpop.f32.mrf.mxu3 }
  0xfd   :  { %v507_v35 = vpop.f32.mrf.mxu1 }
  0xff   :  { %v586_v37 = vpop.f32.mrf.mxu2 }
 0x100   :  { %v15431_v40 = vadd.f32 %v675_v57, %v586_v37  ;;  %v411_v42 = vpop.f32.mrf.mxu0 }
 0x101   :  { %v15433_v43 = vadd.f32 %v500_v62, %v411_v42  ;;  %v11383_v62 = vld [vmem:[%s21092_s1 + $0x1a8] sm:$0xf0]  ;;  %v14242_v42 = vld [vmem:[%s21093_s0 + $0x134] sm:$0xf0] }
 0x102   :  { %v11386_v63 = vor.u32 %v14337_v56, %v11383_v62 }
 0x103   :  { %450 = vmatmul.bf16.gmra.mxu0 %v10738_v38 }
 0x104   :  { %v685_v50 = vpop.f32.mrf.mxu3  ;;  %628 = vmatmul.bf16.gmra.mxu2 %v10738_v38  ;;  %v10915_v38 = vld [vmem:[%s21093_s0 + $0x130] sm:$0xf] }
 0x105   :  { %v510_v57 = vpop.f32.mrf.mxu1  ;;  %2282 = vmatpush.bf16.msra.mxu2 %v11386_v63 }
 0x107   :  { %v589_v1 = vpop.f32.mrf.mxu2 }
 0x108   :  { %v15459_v4 = vadd.f32 %v678_v8, %v589_v1  ;;  %1134 = vmatmul.bf16.vlgmr.msrb.gmra.mxu1 %v10908_v53  ;;  %v413_v6 = vpop.f32.mrf.mxu0  ;;  %v14335_v8 = vld [vmem:[%s21092_s1 + $0x194] sm:$0xf] }
 0x109   :  { %11105 = vmatmul.msk.bf16.vlgmr.msrb.gmra.mxu3 %vm323_vm0, %v10912_v59  ;;  %v15462_v7 = vadd.f32 %v502_v11, %v413_v6  ;;  %v11378_v17 = vor.u32 %v14335_v8, %v11375_v15  ;;  %v10923_v8 = vld [vmem:[%s21093_s0 + $0x140] sm:$0xf] }
 0x10b   :  { %2186 = vmatpush.bf16.msra.mxu0 %v11378_v17 }
 0x10c   :  { %v688_v11 = vpop.f32.mrf.mxu3 }
 0x10d   :  { %v512_v22 = vpop.f32.mrf.mxu1 }
 0x10f   :  { %v591_v24 = vpop.f32.mrf.mxu2 }
 0x110   :  { %v15482_v32 = vadd.f32 %v680_v21, %v591_v24  ;;  %v416_v33 = vpop.f32.mrf.mxu0  ;;  %v10917_v21 = vld [vmem:[%s21093_s0 + $0x138] sm:$0xf0] }
 0x111   :  { %v15484_v37 = vadd.f32 %v505_v23, %v416_v33  ;;  %v10916_v23 = vor.u32 %v14242_v42, %v10915_v38  ;;  %v10920_v47 = vor.u32 %v14241_v44, %v10917_v21  ;;  %v11365_v33 = vld [vmem:[%s21092_s1 + $0x180] sm:$0xf]  ;;  %v11367_v38 = vld [vmem:[%s21092_s1 + $0x188] sm:$0xf0] }
 0x113   :  { %455 = vmatmul.bf16.gmra.mxu0 %v10746_v26 }
 0x114   :  { %v690_v45 = vpop.f32.mrf.mxu3  ;;  %633 = vmatmul.bf16.gmra.mxu2 %v10746_v26 }
 0x115   :  { %v515_v46 = vpop.f32.mrf.mxu1 }
 0x117   :  { %v594_v54 = vpop.f32.mrf.mxu2 }
 0x118   :  { %v15498_v55 = vadd.f32 %v683_v31, %v594_v54  ;;  %1139 = vmatmul.bf16.gmra.mxu1 %v10916_v23  ;;  %v418_v56 = vpop.f32.mrf.mxu0  ;;  %v14244_v31 = vld [vmem:[%s21093_s0 + $0x144] sm:$0xf0] }
 0x119   :  { %11106 = vmatmul.msk.bf16.gmra.mxu3 %vm323_vm0, %v10920_v47  ;;  %v15501_v61 = vadd.f32 %v507_v35, %v418_v56  ;;  %v14243_v35 = vld [vmem:[%s21093_s0 + $0x144] sm:$0xf] }
 0x11c   :  { %v693_v62 = vpop.f32.mrf.mxu3 }
 0x11d   :  { %v517_v63 = vpop.f32.mrf.mxu1 }
 0x11f   :  { %v596_v1 = vpop.f32.mrf.mxu2 }
 0x120   :  { %v15503_v6 = vadd.f32 %v685_v50, %v596_v1  ;;  %v421_v9 = vpop.f32.mrf.mxu0  ;;  %v10925_v50 = vld [vmem:[%s21093_s0 + $0x148] sm:$0xf0] }
 0x121   :  { %v15505_v10 = vadd.f32 %v510_v57, %v421_v9  ;;  %v10924_v57 = vor.u32 %v14244_v31, %v10923_v8  ;;  %v10928_v17 = vor.u32 %v14243_v35, %v10925_v50  ;;  %v10931_v9 = vld [vmem:[%s21093_s0 + $0x150] sm:$0xf]  ;;  %v14246_v8 = vld [vmem:[%s21093_s0 + $0x154] sm:$0xf0]  ;;  %v14245_v31 = vld [vmem:[%s21093_s0 + $0x154] sm:$0xf] }
 0x123   :  { %1312 = vmatmul.bf16.vlgmr.msrb.gmra.mxu0 %v10908_v53  ;;  %v14334_v53 = vld [vmem:[%s21092_s1 + $0x184] sm:$0xf0] }
 0x124   :  { %v695_v13 = vpop.f32.mrf.mxu3  ;;  %11121 = vmatmul.msk.bf16.vlgmr.msrb.gmra.mxu2 %vm323_vm0, %v10912_v59  ;;  %v14333_v59 = vld [vmem:[%s21092_s1 + $0x184] sm:$0xf] }
 0x125   :  { %v520_v15 = vpop.f32.mrf.mxu1  ;;  %v11370_v42 = vor.u32 %v14333_v59, %v11367_v38 }
 0x127   :  { %v599_v19 = vpop.f32.mrf.mxu2  ;;  %2187 = vmatpush.bf16.msra.mxu0 %v11370_v42 }
 0x128   :  { %v15520_v20 = vadd.f32 %v688_v11, %v599_v19  ;;  %1144 = vmatmul.bf16.gmra.mxu1 %v10924_v57  ;;  %v423_v24 = vpop.f32.mrf.mxu0  ;;  %v11366_v11 = vor.u32 %v14334_v53, %v11365_v33 }
 0x129   :  { %11107 = vmatmul.msk.bf16.gmra.mxu3 %vm323_vm0, %v10928_v17  ;;  %v15523_v26 = vadd.f32 %v512_v22, %v423_v24 }
 0x12a   :  { %2009 = vmatpush.bf16.msra.mxu1 %v11366_v11 }
 0x12c   :  { %v698_v22 = vpop.f32.mrf.mxu3 }
 0x12d   :  { %v522_v44 = vpop.f32.mrf.mxu1 }
 0x12f   :  { %v601_v21 = vpop.f32.mrf.mxu2 }
 0x130   :  { %v15537_v54 = vadd.f32 %v690_v45, %v601_v21  ;;  %v426_v56 = vpop.f32.mrf.mxu0  ;;  %v10933_v45 = vld [vmem:[%s21093_s0 + $0x158] sm:$0xf0] }
 0x131   :  { %v15539_v1 = vadd.f32 %v515_v46, %v426_v56  ;;  %v10932_v46 = vor.u32 %v14246_v8, %v10931_v9  ;;  %v10936_v19 = vor.u32 %v14245_v31, %v10933_v45 }
 0x132   :  { %21104 = vst [vmem:[#allocation8_spill] sm:$0xff] %v15537_v54 }
 0x133   :  { %1317 = vmatmul.bf16.gmra.mxu0 %v10916_v23 }
 0x134   :  { %v700_v35 = vpop.f32.mrf.mxu3  ;;  %11122 = vmatmul.msk.bf16.gmra.mxu2 %vm323_vm0, %v10920_v47  ;;  %v10939_v47 = vld [vmem:[%s21093_s0 + $0x160] sm:$0xf] }
 0x135   :  { %v525_v50 = vpop.f32.mrf.mxu1 }
 0x137   :  { %v604_v24 = vpop.f32.mrf.mxu2 }
 0x138   :  { %v15554_v33 = vadd.f32 %v693_v62, %v604_v24  ;;  %1149 = vmatmul.bf16.gmra.mxu1 %v10932_v46  ;;  %v428_v53 = vpop.f32.mrf.mxu0  ;;  %v14248_v62 = vld [vmem:[%s21093_s0 + $0x164] sm:$0xf0] }
 0x139   :  { %11108 = vmatmul.msk.bf16.gmra.mxu3 %vm323_vm0, %v10936_v19  ;;  %v15557_v59 = vadd.f32 %v517_v63, %v428_v53  ;;  %v14247_v63 = vld [vmem:[%s21093_s0 + $0x164] sm:$0xf] }
 0x13a   :  { %21105 = vst [vmem:[#allocation9_spill] sm:$0xff] %v15554_v33 }
 0x13c   :  { %v703_v11 = vpop.f32.mrf.mxu3 }
 0x13d   :  { %v527_v38 = vpop.f32.mrf.mxu1 }
 0x13f   :  { %v606_v42 = vpop.f32.mrf.mxu2 }
 0x140   :  { %v15559_v21 = vadd.f32 %v695_v13, %v606_v42  ;;  %v431_v23 = vpop.f32.mrf.mxu0  ;;  %v10941_v13 = vld [vmem:[%s21093_s0 + $0x168] sm:$0xf0] }
 0x141   :  { %v15561_v56 = vadd.f32 %v520_v15, %v431_v23  ;;  %v10940_v15 = vor.u32 %v14248_v62, %v10939_v47  ;;  %v10944_v31 = vor.u32 %v14247_v63, %v10941_v13  ;;  %v11357_v23 = vld [vmem:[%s21092_s1 + $0x170] sm:$0xf]  ;;  %v11359_v47 = vld [vmem:[%s21092_s1 + $0x178] sm:$0xf0] }
 0x142   :  { %21106 = vst [vmem:[#allocation10_spill] sm:$0xff] %v15559_v21  ;;  %v10947_v21 = vld [vmem:[%s21093_s0 + $0x170] sm:$0xf] }
 0x143   :  { %21107 = vst [vmem:[#allocation11_spill] sm:$0xff] %v15561_v56  ;;  %1322 = vmatmul.bf16.gmra.mxu0 %v10924_v57  ;;  %v14332_v57 = vld [vmem:[%s21092_s1 + $0x174] sm:$0xf0] }
 0x144   :  { %v705_v9 = vpop.f32.mrf.mxu3  ;;  %11123 = vmatmul.msk.bf16.gmra.mxu2 %vm323_vm0, %v10928_v17  ;;  %v14331_v17 = vld [vmem:[%s21092_s1 + $0x174] sm:$0xf] }
 0x145   :  { %v530_v8 = vpop.f32.mrf.mxu1  ;;  %v11362_v62 = vor.u32 %v14331_v17, %v11359_v47 }
 0x147   :  { %v609_v45 = vpop.f32.mrf.mxu2  ;;  %2188 = vmatpush.bf16.msra.mxu0 %v11362_v62 }
 0x148   :  { %v15576_v24 = vadd.f32 %v698_v22, %v609_v45  ;;  %1154 = vmatmul.bf16.gmra.mxu1 %v10940_v15  ;;  %v433_v53 = vpop.f32.mrf.mxu0  ;;  %v11358_v22 = vor.u32 %v14332_v57, %v11357_v23  ;;  %v14250_v23 = vld [vmem:[%s21093_s0 + $0x174] sm:$0xf0]  ;;  %v14249_v57 = vld [vmem:[%s21093_s0 + $0x174] sm:$0xf] }
 0x149   :  { %11109 = vmatmul.msk.bf16.gmra.mxu3 %vm323_vm0, %v10944_v31  ;;  %v15579_v42 = vadd.f32 %v522_v44, %v433_v53 }
 0x14a   :  { %21108 = vst [vmem:[#allocation12_spill] sm:$0xff] %v15576_v24  ;;  %2010 = vmatpush.bf16.msra.mxu1 %v11358_v22 }
 0x14b   :  { %21109 = vst [vmem:[#allocation13_spill] sm:$0xff] %v15579_v42 }
 0x14c   :  { %v708_v44 = vpop.f32.mrf.mxu3 }
 0x14d   :  { %v532_v63 = vpop.f32.mrf.mxu1 }
 0x14f   :  { %v611_v13 = vpop.f32.mrf.mxu2 }
 0x150   :  { %v15593_v45 = vadd.f32 %v700_v35, %v611_v13  ;;  %v436_v53 = vpop.f32.mrf.mxu0  ;;  %v10949_v35 = vld [vmem:[%s21093_s0 + $0x178] sm:$0xf0] }
 0x151   :  { %v15595_v24 = vadd.f32 %v525_v50, %v436_v53  ;;  %v10948_v50 = vor.u32 %v14250_v23, %v10947_v21  ;;  %v10952_v47 = vor.u32 %v14249_v57, %v10949_v35  ;;  %v10957_v21 = vld [vmem:[%s21093_s0 + $0x188] sm:$0xf0] }
 0x152   :  { %21110 = vst [vmem:[#allocation14_spill] sm:$0xff] %v15593_v45 }
 0x153   :  { %21111 = vst [vmem:[#allocation15_spill] sm:$0xff] %v15595_v24  ;;  %1327 = vmatmul.bf16.gmra.mxu0 %v10932_v46 }
 0x154   :  { %v710_v17 = vpop.f32.mrf.mxu3  ;;  %11124 = vmatmul.msk.bf16.gmra.mxu2 %vm323_vm0, %v10936_v19  ;;  %v10955_v19 = vld [vmem:[%s21093_s0 + $0x180] sm:$0xf] }
 0x155   :  { %v535_v22 = vpop.f32.mrf.mxu1 }
 0x157   :  { %v614_v62 = vpop.f32.mrf.mxu2 }
 0x158   :  { %v15610_v13 = vadd.f32 %v703_v11, %v614_v62  ;;  %1159 = vmatmul.bf16.gmra.mxu1 %v10948_v50  ;;  %v438_v53 = vpop.f32.mrf.mxu0  ;;  %v14252_v11 = vld [vmem:[%s21093_s0 + $0x184] sm:$0xf0] }
 0x159   :  { %11110 = vmatmul.msk.bf16.gmra.mxu3 %vm323_vm0, %v10952_v47  ;;  %v15613_v45 = vadd.f32 %v527_v38, %v438_v53  ;;  %v14251_v38 = vld [vmem:[%s21093_s0 + $0x184] sm:$0xf] }
 0x15a   :  { %21112 = vst [vmem:[#allocation16_spill] sm:$0xff] %v15610_v13  ;;  %v10960_v23 = vor.u32 %v14251_v38, %v10957_v21 }
 0x15b   :  { %21113 = vst [vmem:[#allocation17_spill] sm:$0xff] %v15613_v45 }
 0x15c   :  { %v713_v24 = vpop.f32.mrf.mxu3 }
 0x15d   :  { %v537_v33 = vpop.f32.mrf.mxu1 }
 0x15f   :  { %v616_v42 = vpop.f32.mrf.mxu2 }
 0x160   :  { %v15615_v54 = vadd.f32 %v705_v9, %v616_v42  ;;  %v441_v46 = vpop.f32.mrf.mxu0 }
 0x161   :  { %v15617_v56 = vadd.f32 %v530_v8, %v441_v46  ;;  %v10956_v8 = vor.u32 %v14252_v11, %v10955_v19  ;;  %v11349_v46 = vld [vmem:[%s21092_s1 + $0x160] sm:$0xf]  ;;  %v11351_v19 = vld [vmem:[%s21092_s1 + $0x168] sm:$0xf0] }
 0x162   :  { %21114 = vst [vmem:[#allocation18_spill] sm:$0xff] %v15615_v54  ;;  %v10963_v54 = vld [vmem:[%s21093_s0 + $0x190] sm:$0xf] }
 0x163   :  { %21115 = vst [vmem:[#allocation19_spill] sm:$0xff] %v15617_v56  ;;  %1332 = vmatmul.bf16.gmra.mxu0 %v10940_v15  ;;  %v14330_v15 = vld [vmem:[%s21092_s1 + $0x164] sm:$0xf0] }
 0x164   :  { %v715_v9 = vpop.f32.mrf.mxu3  ;;  %11125 = vmatmul.msk.bf16.gmra.mxu2 %vm323_vm0, %v10944_v31  ;;  %v14329_v31 = vld [vmem:[%s21092_s1 + $0x164] sm:$0xf] }
 0x165   :  { %v540_v42 = vpop.f32.mrf.mxu1  ;;  %v11354_v11 = vor.u32 %v14329_v31, %v11351_v19 }
 0x167   :  { %v619_v57 = vpop.f32.mrf.mxu2  ;;  %2189 = vmatpush.bf16.msra.mxu0 %v11354_v11 }
 0x168   :  { %v15632_v35 = vadd.f32 %v708_v44, %v619_v57  ;;  %1164 = vmatmul.bf16.gmra.mxu1 %v10956_v8  ;;  %v443_v62 = vpop.f32.mrf.mxu0  ;;  %v11350_v44 = vor.u32 %v14330_v15, %v11349_v46  ;;  %v14254_v46 = vld [vmem:[%s21093_s0 + $0x194] sm:$0xf0]  ;;  %v14253_v15 = vld [vmem:[%s21093_s0 + $0x194] sm:$0xf] }
 0x169   :  { %11111 = vmatmul.msk.bf16.gmra.mxu3 %vm323_vm0, %v10960_v23  ;;  %v15635_v53 = vadd.f32 %v532_v63, %v443_v62 }
 0x16a   :  { %21116 = vst [vmem:[#allocation20_spill] sm:$0xff] %v15632_v35  ;;  %2011 = vmatpush.bf16.msra.mxu1 %v11350_v44 }
 0x16b   :  { %21117 = vst [vmem:[#allocation21_spill] sm:$0xff] %v15635_v53 }
 0x16c   :  { %v718_v63 = vpop.f32.mrf.mxu3 }
 0x16d   :  { %v542_v38 = vpop.f32.mrf.mxu1 }
 0x16f   :  { %v621_v21 = vpop.f32.mrf.mxu2 }
 0x170   :  { %v15649_v57 = vadd.f32 %v710_v17, %v621_v21  ;;  %v446_v62 = vpop.f32.mrf.mxu0  ;;  %v10965_v17 = vld [vmem:[%s21093_s0 + $0x198] sm:$0xf0] }
 0x171   :  { %v15651_v35 = vadd.f32 %v535_v22, %v446_v62  ;;  %v10964_v22 = vor.u32 %v14254_v46, %v10963_v54  ;;  %v10968_v19 = vor.u32 %v14253_v15, %v10965_v17  ;;  %v10971_v54 = vld [vmem:[%s21093_s0 + $0x1a0] sm:$0xf] }
 0x172   :  { %21118 = vst [vmem:[#allocation22_spill] sm:$0xff] %v15649_v57 }
 0x173   :  { %21119 = vst [vmem:[#allocation23_spill] sm:$0xff] %v15651_v35  ;;  %1337 = vmatmul.bf16.gmra.mxu0 %v10948_v50 }
 0x174   :  { %v720_v31 = vpop.f32.mrf.mxu3  ;;  %11126 = vmatmul.msk.bf16.gmra.mxu2 %vm323_vm0, %v10952_v47  ;;  %v10973_v47 = vld [vmem:[%s21093_s0 + $0x1a8] sm:$0xf0] }
 0x175   :  { %v545_v44 = vpop.f32.mrf.mxu1 }
 0x177   :  { %v624_v11 = vpop.f32.mrf.mxu2 }
 0x178   :  { %v15666_v21 = vadd.f32 %v713_v24, %v624_v11  ;;  %1169 = vmatmul.bf16.gmra.mxu1 %v10964_v22  ;;  %v448_v62 = vpop.f32.mrf.mxu0  ;;  %v14256_v24 = vld [vmem:[%s21093_s0 + $0x1a4] sm:$0xf0] }
 0x179   :  { %11112 = vmatmul.msk.bf16.gmra.mxu3 %vm323_vm0, %v10968_v19  ;;  %v15669_v57 = vadd.f32 %v537_v33, %v448_v62  ;;  %v14255_v33 = vld [vmem:[%s21093_s0 + $0x1a4] sm:$0xf] }
 0x17a   :  { %21120 = vst [vmem:[#allocation24_spill] sm:$0xff] %v15666_v21  ;;  %v10976_v46 = vor.u32 %v14255_v33, %v10973_v47 }
 0x17c   :  { %v723_v35 = vpop.f32.mrf.mxu3 }
 0x17d   :  { %v547_v13 = vpop.f32.mrf.mxu1 }
 0x17f   :  { %v626_v53 = vpop.f32.mrf.mxu2 }
 0x180   :  { %v15671_v56 = vadd.f32 %v715_v9, %v626_v53  ;;  %v451_v50 = vpop.f32.mrf.mxu0 }
 0x181   :  { %v15673_v45 = vadd.f32 %v540_v42, %v451_v50  ;;  %v10972_v42 = vor.u32 %v14256_v24, %v10971_v54  ;;  %v11341_v50 = vld [vmem:[%s21092_s1 + $0x150] sm:$0xf]  ;;  %v11343_v54 = vld [vmem:[%s21092_s1 + $0x158] sm:$0xf0] }
 0x182   :  { %21121 = vst [vmem:[#allocation25_spill] sm:$0xff] %v15671_v56 }
 0x183   :  { %1342 = vmatmul.bf16.gmra.mxu0 %v10956_v8  ;;  %v14328_v8 = vld [vmem:[%s21092_s1 + $0x154] sm:$0xf0] }
 0x184   :  { %v725_v9 = vpop.f32.mrf.mxu3  ;;  %11127 = vmatmul.msk.bf16.gmra.mxu2 %vm323_vm0, %v10960_v23  ;;  %v14327_v23 = vld [vmem:[%s21092_s1 + $0x154] sm:$0xf] }
 0x185   :  { %v1135_v53 = vpop.f32.mrf.mxu1 }
 0x187   :  { %v629_v15 = vpop.f32.mrf.mxu2 }
 0x188   :  { %v15688_v17 = vadd.f32 %v718_v63, %v629_v15  ;;  %1174 = vmatmul.bf16.gmra.mxu1 %v10972_v42  ;;  %v453_v11 = vpop.f32.mrf.mxu0  ;;  %v11342_v63 = vor.u32 %v14328_v8, %v11341_v50  ;;  %v10979_v50 = vld [vmem:[%s21093_s0 + $0x1b0] sm:$0xf]  ;;  %v14257_v8 = vld [vmem:[%s21093_s0 + $0x1b4] sm:$0xf] }
 0x189   :  { %11113 = vmatmul.msk.bf16.gmra.mxu3 %vm323_vm0, %v10976_v46  ;;  %v15691_v62 = vadd.f32 %v542_v38, %v453_v11  ;;  %v11346_v38 = vor.u32 %v14327_v23, %v11343_v54 }
 0x18a   :  { %21122 = vst [vmem:[#allocation26_spill] sm:$0xff] %v15688_v17  ;;  %2012 = vmatpush.bf16.msra.mxu1 %v11342_v63 }
 0x18b   :  { %2190 = vmatpush.bf16.msra.mxu0 %v11346_v38 }
 0x18c   :  { %v1224_v24 = vpop.f32.mrf.mxu3 }
 0x18d   :  { %v1225_v33 = vadd.f32 %v1224_v24, %v1135_v53  ;;  %v1137_v47 = vpop.f32.mrf.mxu1  ;;  %v14258_v53 = vld [vmem:[%s21093_s0 + $0x1b4] sm:$0xf0] }
 0x18f   :  { %v15706_v15 = vadd.f32 %v1225_v33, %v15265_v27  ;;  %v631_v11 = vpop.f32.mrf.mxu2  ;;  %v10981_v27 = vld [vmem:[%s21093_s0 + $0x1b8] sm:$0xf0] }
 0x190   :  { %v15708_v17 = vadd.f32 %v720_v31, %v631_v11  ;;  %v456_v56 = vpop.f32.mrf.mxu0  ;;  %v10984_v63 = vor.u32 %v14257_v8, %v10981_v27 }
 0x191   :  { %21123 = vst [vmem:[#allocation27_spill] sm:$0xff] %v15706_v15  ;;  %v15710_v21 = vadd.f32 %v545_v44, %v456_v56  ;;  %v10980_v56 = vor.u32 %v14258_v53, %v10979_v50  ;;  %v14260_v53 = vld [vmem:[%s21093_s0 + $0x1c4] sm:$0xf0] }
 0x192   :  { %21124 = vst [vmem:[#allocation28_spill] sm:$0xff] %v15708_v17 }
 0x193   :  { %1347 = vmatmul.bf16.gmra.mxu0 %v10964_v22 }
 0x194   :  { %v1226_v31 = vpop.f32.mrf.mxu3  ;;  %11128 = vmatmul.msk.bf16.gmra.mxu2 %vm323_vm0, %v10968_v19 }
 0x195   :  { %v1227_v44 = vadd.f32 %v1226_v31, %v1137_v47  ;;  %v1140_v23 = vpop.f32.mrf.mxu1 }
 0x197   :  { %v15726_v54 = vadd.f32 %v1227_v44, %v15277_v36  ;;  %v634_v24 = vpop.f32.mrf.mxu2 }
 0x198   :  { %v15728_v38 = vadd.f32 %v723_v35, %v634_v24  ;;  %1179 = vmatmul.bf16.gmra.mxu1 %v10980_v56  ;;  %v458_v33 = vpop.f32.mrf.mxu0  ;;  %v10987_v35 = vld [vmem:[%s21093_s0 + $0x1c0] sm:$0xf] }
 0x199   :  { %11114 = vmatmul.msk.bf16.gmra.mxu3 %vm323_vm0, %v10984_v63  ;;  %v15731_v11 = vadd.f32 %v547_v13, %v458_v33  ;;  %v14259_v13 = vld [vmem:[%s21093_s0 + $0x1c4] sm:$0xf] }
 0x19c   :  { %v1229_v22 = vpop.f32.mrf.mxu3 }
 0x19d   :  { %v1230_v17 = vadd.f32 %v1229_v22, %v1140_v23  ;;  %v1142_v15 = vpop.f32.mrf.mxu1 }
 0x19f   :  { %v15734_v19 = vadd.f32 %v1230_v17, %v15299_v51  ;;  %v636_v47 = vpop.f32.mrf.mxu2  ;;  %v10989_v51 = vld [vmem:[%s21093_s0 + $0x1c8] sm:$0xf0]  ;;  %v10988_v17 = vor.u32 %v14260_v53, %v10987_v35 }
 0x1a0   :  { %v15736_v50 = vadd.f32 %v725_v9, %v636_v47  ;;  %v1313_v36 = vpop.f32.mrf.mxu0  ;;  %v10992_v31 = vor.u32 %v14259_v13, %v10989_v51  ;;  %v11335_v47 = vld [vmem:[%s21092_s1 + $0x148] sm:$0xf0] }
 0x1a3   :  { %1352 = vmatmul.bf16.gmra.mxu0 %v10972_v42  ;;  %v11333_v42 = vld [vmem:[%s21092_s1 + $0x140] sm:$0xf] }
 0x1a4   :  { %v1231_v9 = vpop.f32.mrf.mxu3  ;;  %11129 = vmatmul.msk.bf16.gmra.mxu2 %vm323_vm0, %v10976_v46  ;;  %v14326_v46 = vld [vmem:[%s21092_s1 + $0x144] sm:$0xf0] }
 0x1a5   :  { %v1232_v8 = vadd.f32 %v1231_v9, %v1142_v15  ;;  %v1145_v27 = vpop.f32.mrf.mxu1  ;;  %v11334_v15 = vor.u32 %v14326_v46, %v11333_v42 }
 0x1a7   :  { %v15752_v44 = vadd.f32 %v1232_v8, %v15311_v60  ;;  %v1402_v23 = vpop.f32.mrf.mxu2  ;;  %v14325_v60 = vld [vmem:[%s21092_s1 + $0x144] sm:$0xf]  ;;  %2013 = vmatpush.bf16.msra.mxu1 %v11334_v15 }
 0x1a8   :  { %v1403_v24 = vadd.f32 %v1402_v23, %v1313_v36  ;;  %1184 = vmatmul.bf16.gmra.mxu1 %v10988_v17  ;;  %v1315_v33 = vpop.f32.mrf.mxu0  ;;  %v10995_v23 = vld [vmem:[%s21093_s0 + $0x1d0] sm:$0xf] }
 0x1a9   :  { %11115 = vmatmul.msk.bf16.gmra.mxu3 %vm323_vm0, %v10992_v31 }
 0x1aa   :  { %v15756_v22 = vadd.f32 %v1403_v24, %v15273_v34  ;;  %v11338_v34 = vor.u32 %v14325_v60, %v11335_v47  ;;  %v14262_v24 = vld [vmem:[%s21093_s0 + $0x1d4] sm:$0xf0] }
 0x1ab   :  { %v10996_v46 = vor.u32 %v14262_v24, %v10995_v23 }
 0x1ac   :  { %v1234_v36 = vpop.f32.mrf.mxu3  ;;  %2191 = vmatpush.bf16.msra.mxu0 %v11338_v34 }
 0x1ad   :  { %v1235_v35 = vadd.f32 %v1234_v36, %v1145_v27  ;;  %v1147_v53 = vpop.f32.mrf.mxu1  ;;  %v14261_v27 = vld [vmem:[%s21093_s0 + $0x1d4] sm:$0xf] }
 0x1af   :  { %v15771_v13 = vadd.f32 %v1235_v35, %v15321_v5  ;;  %v1404_v51 = vpop.f32.mrf.mxu2  ;;  %v10997_v5 = vld [vmem:[%s21093_s0 + $0x1d8] sm:$0xf0] }
 0x1b0   :  { %v1405_v9 = vadd.f32 %v1404_v51, %v1315_v33  ;;  %v1318_v8 = vpop.f32.mrf.mxu0  ;;  %v11000_v47 = vor.u32 %v14261_v27, %v10997_v5  ;;  %v14263_v27 = vld [vmem:[%s21093_s0 + $0x1e4] sm:$0xf] }
 0x1b2   :  { %v15780_v42 = vadd.f32 %v1405_v9, %v15297_v49 }
 0x1b3   :  { %1357 = vmatmul.bf16.gmra.mxu0 %v10980_v56 }
 0x1b4   :  { %21125 = vst [vmem:[#allocation29_spill] sm:$0xff] %v15780_v42  ;;  %v1236_v33 = vpop.f32.mrf.mxu3  ;;  %11130 = vmatmul.msk.bf16.gmra.mxu2 %vm323_vm0, %v10984_v63 }
 0x1b5   :  { %v1237_v60 = vadd.f32 %v1236_v33, %v1147_v53  ;;  %v1150_v15 = vpop.f32.mrf.mxu1 }
 0x1b7   :  { %v15790_v36 = vadd.f32 %v1237_v60, %v15333_v14  ;;  %v1407_v49 = vpop.f32.mrf.mxu2  ;;  %v11003_v14 = vld [vmem:[%s21093_s0 + $0x1e0] sm:$0xf] }
 0x1b8   :  { %v1408_v34 = vadd.f32 %v1407_v49, %v1318_v8  ;;  %1189 = vmatmul.bf16.gmra.mxu1 %v10996_v46  ;;  %v1320_v35 = vpop.f32.mrf.mxu0  ;;  %v14264_v8 = vld [vmem:[%s21093_s0 + $0x1e4] sm:$0xf0] }
 0x1b9   :  { %11116 = vmatmul.msk.bf16.gmra.mxu3 %vm323_vm0, %v11000_v47  ;;  %v11004_v33 = vor.u32 %v14264_v8, %v11003_v14 }
 0x1ba   :  { %v15794_v51 = vadd.f32 %v1408_v34, %v15307_v58 }
 0x1bc   :  { %v1239_v56 = vpop.f32.mrf.mxu3 }
 0x1bd   :  { %v1240_v9 = vadd.f32 %v1239_v56, %v1150_v15  ;;  %v1152_v42 = vpop.f32.mrf.mxu1 }
 0x1bf   :  { %v15797_v63 = vadd.f32 %v1240_v9, %v15355_v30  ;;  %v1409_v53 = vpop.f32.mrf.mxu2  ;;  %v11005_v30 = vld [vmem:[%s21093_s0 + $0x1e8] sm:$0xf0] }
 0x1c0   :  { %v1410_v23 = vadd.f32 %v1409_v53, %v1320_v35  ;;  %v1323_v24 = vpop.f32.mrf.mxu0  ;;  %v11008_v49 = vor.u32 %v14263_v27, %v11005_v30  ;;  %v11327_v53 = vld [vmem:[%s21092_s1 + $0x138] sm:$0xf0] }
 0x1c2   :  { %v15806_v58 = vadd.f32 %v1410_v23, %v15319_v3 }
 0x1c3   :  { %1362 = vmatmul.bf16.gmra.mxu0 %v10988_v17  ;;  %v11325_v17 = vld [vmem:[%s21092_s1 + $0x130] sm:$0xf] }
 0x1c4   :  { %v1241_v5 = vpop.f32.mrf.mxu3  ;;  %11131 = vmatmul.msk.bf16.gmra.mxu2 %vm323_vm0, %v10992_v31  ;;  %v14324_v31 = vld [vmem:[%s21092_s1 + $0x134] sm:$0xf0] }
 0x1c5   :  { %v1242_v60 = vadd.f32 %v1241_v5, %v1152_v42  ;;  %v1155_v15 = vpop.f32.mrf.mxu1  ;;  %v11326_v42 = vor.u32 %v14324_v31, %v11325_v17 }
 0x1c7   :  { %v15816_v34 = vadd.f32 %v1242_v60, %v15367_v41  ;;  %v1412_v3 = vpop.f32.mrf.mxu2  ;;  %v14323_v41 = vld [vmem:[%s21092_s1 + $0x134] sm:$0xf]  ;;  %2014 = vmatpush.bf16.msra.mxu1 %v11326_v42  ;;  %v11011_v60 = vld [vmem:[%s21093_s0 + $0x1f0] sm:$0xf] }
 0x1c8   :  { %v1413_v35 = vadd.f32 %v1412_v3, %v1323_v24  ;;  %1194 = vmatmul.bf16.gmra.mxu1 %v11004_v33  ;;  %v1325_v56 = vpop.f32.mrf.mxu0  ;;  %v14266_v3 = vld [vmem:[%s21093_s0 + $0x1f4] sm:$0xf0] }
 0x1c9   :  { %11117 = vmatmul.msk.bf16.gmra.mxu3 %vm323_vm0, %v11008_v49  ;;  %v11012_v17 = vor.u32 %v14266_v3, %v11011_v60 }
 0x1ca   :  { %v15820_v9 = vadd.f32 %v1413_v35, %v15329_v12  ;;  %v11330_v12 = vor.u32 %v14323_v41, %v11327_v53 }
 0x1cc   :  { %v1244_v23 = vpop.f32.mrf.mxu3  ;;  %2192 = vmatpush.bf16.msra.mxu0 %v11330_v12 }
 0x1cd   :  { %v1245_v24 = vadd.f32 %v1244_v23, %v1155_v15  ;;  %v1157_v14 = vpop.f32.mrf.mxu1  ;;  %v14265_v15 = vld [vmem:[%s21093_s0 + $0x1f4] sm:$0xf] }
 0x1cf   :  { %v15835_v8 = vadd.f32 %v1245_v24, %v15377_v52  ;;  %v1414_v27 = vpop.f32.mrf.mxu2  ;;  %v11013_v52 = vld [vmem:[%s21093_s0 + $0x1f8] sm:$0xf0] }
 0x1d0   :  { %v1415_v30 = vadd.f32 %v1414_v27, %v1325_v56  ;;  %v1328_v5 = vpop.f32.mrf.mxu0  ;;  %v11016_v42 = vor.u32 %v14265_v15, %v11013_v52  ;;  %v14267_v15 = vld [vmem:[%s21093_s0 + $0x204] sm:$0xf]  ;;  %v11317_v52 = vld [vmem:[%s21092_s1 + $0x120] sm:$0xf] }
 0x1d2   :  { %v15844_v35 = vadd.f32 %v1415_v30, %v15353_v28 }
 0x1d3   :  { %1367 = vmatmul.bf16.gmra.mxu0 %v10996_v46 }
 0x1d4   :  { %v1246_v56 = vpop.f32.mrf.mxu3  ;;  %11132 = vmatmul.msk.bf16.gmra.mxu2 %vm323_vm0, %v11000_v47 }
 0x1d5   :  { %v1247_v31 = vadd.f32 %v1246_v56, %v1157_v14  ;;  %v1160_v41 = vpop.f32.mrf.mxu1  ;;  %v14322_v56 = vld [vmem:[%s21092_s1 + $0x124] sm:$0xf0] }
 0x1d7   :  { %v15854_v53 = vadd.f32 %v1247_v31, %v15395_v2  ;;  %v1417_v28 = vpop.f32.mrf.mxu2  ;;  %v11019_v2 = vld [vmem:[%s21093_s0 + $0x200] sm:$0xf] }
 0x1d8   :  { %v1418_v23 = vadd.f32 %v1417_v28, %v1328_v5  ;;  %1199 = vmatmul.bf16.gmra.mxu1 %v11012_v17  ;;  %v1330_v12 = vpop.f32.mrf.mxu0  ;;  %v14268_v5 = vld [vmem:[%s21093_s0 + $0x204] sm:$0xf0] }
 0x1d9   :  { %11118 = vmatmul.msk.bf16.gmra.mxu3 %vm323_vm0, %v11016_v42 }
 0x1da   :  { %v15858_v24 = vadd.f32 %v1418_v23, %v15363_v39 }
 0x1dc   :  { %v1249_v46 = vpop.f32.mrf.mxu3 }
 0x1dd   :  { %v1250_v27 = vadd.f32 %v1249_v46, %v1160_v41  ;;  %v1162_v30 = vpop.f32.mrf.mxu1  ;;  %v11318_v41 = vor.u32 %v14322_v56, %v11317_v52  ;;  %v11027_v56 = vld [vmem:[%s21093_s0 + $0x210] sm:$0xf] }
 0x1df   :  { %v15861_v47 = vadd.f32 %v1250_v27, %v15411_v18  ;;  %v1419_v14 = vpop.f32.mrf.mxu2  ;;  %v11021_v18 = vld [vmem:[%s21093_s0 + $0x208] sm:$0xf0]  ;;  %2015 = vmatpush.bf16.msra.mxu1 %v11318_v41 }
 0x1e0   :  { %v1420_v60 = vadd.f32 %v1419_v14, %v1330_v12  ;;  %v1333_v3 = vpop.f32.mrf.mxu0  ;;  %v11024_v12 = vor.u32 %v14267_v15, %v11021_v18 }
 0x1e2   :  { %v15870_v39 = vadd.f32 %v1420_v60, %v15375_v48  ;;  %v11020_v48 = vor.u32 %v14268_v5, %v11019_v2 }
 0x1e3   :  { %1372 = vmatmul.bf16.gmra.mxu0 %v11004_v33 }
 0x1e4   :  { %v1251_v31 = vpop.f32.mrf.mxu3  ;;  %11133 = vmatmul.msk.bf16.gmra.mxu2 %vm323_vm0, %v11008_v49  ;;  %v14321_v49 = vld [vmem:[%s21092_s1 + $0x124] sm:$0xf] }
 0x1e5   :  { %v1252_v28 = vadd.f32 %v1251_v31, %v1162_v30  ;;  %v1165_v23 = vpop.f32.mrf.mxu1  ;;  %v11319_v30 = vld [vmem:[%s21092_s1 + $0x128] sm:$0xf0]  ;;  %v14270_v31 = vld [vmem:[%s21093_s0 + $0x214] sm:$0xf0] }
 0x1e6   :  { %v11322_v2 = vor.u32 %v14321_v49, %v11319_v30 }
 0x1e7   :  { %v15886_v46 = vadd.f32 %v1252_v28, %v15423_v29  ;;  %v1422_v33 = vpop.f32.mrf.mxu2  ;;  %v14269_v28 = vld [vmem:[%s21093_s0 + $0x214] sm:$0xf] }
 0x1e8   :  { %v1423_v27 = vadd.f32 %v1422_v33, %v1333_v3  ;;  %1204 = vmatmul.bf16.gmra.mxu1 %v11020_v48  ;;  %v1335_v14 = vpop.f32.mrf.mxu0  ;;  %2193 = vmatpush.bf16.msra.mxu0 %v11322_v2  ;;  %v15917_v33 = vor.u32 %v14270_v31, %v11027_v56  ;;  %v14290_v31 = vld [vmem:[%s21093_s0 + $0x244] sm:$0xf0] }
 0x1e9   :  { %11119 = vmatmul.msk.bf16.gmra.mxu3 %vm323_vm0, %v11024_v12 }
 0x1ea   :  { %v15890_v60 = vadd.f32 %v1423_v27, %v15391_v0 }
 0x1ec   :  { %v1254_v29 = vpop.f32.mrf.mxu3 }
 0x1ed   :  { %v1255_v5 = vadd.f32 %v1254_v29, %v1165_v23  ;;  %v1167_v15 = vpop.f32.mrf.mxu1 }
 0x1ef   :  { %v15899_v3 = vadd.f32 %v1255_v5, %v15433_v43  ;;  %v1424_v18 = vpop.f32.mrf.mxu2  ;;  %v11029_v43 = vld [vmem:[%s21093_s0 + $0x218] sm:$0xf0] }
 0x1f0   :  { %v1425_v52 = vadd.f32 %v1424_v18, %v1335_v14  ;;  %v1338_v0 = vpop.f32.mrf.mxu0  ;;  %v15919_v49 = vor.u32 %v14269_v28, %v11029_v43  ;;  %v14289_v28 = vld [vmem:[%s21093_s0 + $0x244] sm:$0xf] }
 0x1f2   :  { %v15908_v41 = vadd.f32 %v1425_v52, %v15409_v16 }
 0x1f3   :  { %1377 = vmatmul.bf16.gmra.mxu0 %v11012_v17 }
 0x1f4   :  { %v1256_v23 = vpop.f32.mrf.mxu3  ;;  %11134 = vmatmul.msk.bf16.gmra.mxu2 %vm323_vm0, %v11016_v42 }
 0x1f5   :  { %v1257_v27 = vadd.f32 %v1256_v23, %v1167_v15  ;;  %v1170_v14 = vpop.f32.mrf.mxu1 }
 0x1f7   :  { %v15922_v16 = vadd.f32 %v1257_v27, %v15462_v7  ;;  %v1427_v30 = vpop.f32.mrf.mxu2 }
 0x1f8   :  { %v1428_v2 = vadd.f32 %v1427_v30, %v1338_v0  ;;  %1209 = vmatmul.bf16.gmra.mxu1 %v15917_v33  ;;  %v1340_v29 = vpop.f32.mrf.mxu0  ;;  %v11189_v0 = vld [vmem:[%s21093_s0 + $0x240] sm:$0xf] }
 0x1f9   :  { %11120 = vmatmul.msk.bf16.gmra.mxu3 %vm323_vm0, %v15919_v49  ;;  %v15949_v23 = vor.u32 %v14290_v31, %v11189_v0  ;;  %v14386_v0 = vld [vmem:[%s21092_s1 + $0x224] sm:$0xf0]  ;;  %v14385_v31 = vld [vmem:[%s21092_s1 + $0x224] sm:$0xf] }
 0x1fa   :  { %v15928_v17 = vadd.f32 %v1428_v2, %v15419_v25 }
 0x1fc   :  { %v1259_v42 = vpop.f32.mrf.mxu3 }
 0x1fd   :  { %v1260_v5 = vadd.f32 %v1259_v42, %v1170_v14  ;;  %v1172_v15 = vpop.f32.mrf.mxu1 }
 0x1ff   :  { %v15931_v18 = vadd.f32 %v1260_v5, %v15484_v37  ;;  %v1429_v52 = vpop.f32.mrf.mxu2  ;;  %v11191_v37 = vld [vmem:[%s21093_s0 + $0x248] sm:$0xf0] }
 0x200   :  { %v1430_v7 = vadd.f32 %v1429_v52, %v1340_v29  ;;  %v1343_v56 = vpop.f32.mrf.mxu0  ;;  %v15951_v30 = vor.u32 %v14289_v28, %v11191_v37  ;;  %v11663_v29 = vld [vmem:[%s21092_s1 + $0x230] sm:$0xf] }
 0x202   :  { %v15940_v25 = vadd.f32 %v1430_v7, %v15431_v40 }
 0x203   :  { %1382 = vmatmul.bf16.gmra.mxu0 %v11020_v48  ;;  %v14388_v48 = vld [vmem:[%s21092_s1 + $0x234] sm:$0xf0] }
 0x204   :  { %v1261_v43 = vpop.f32.mrf.mxu3  ;;  %11135 = vmatmul.msk.bf16.gmra.mxu2 %vm323_vm0, %v11024_v12  ;;  %v14387_v12 = vld [vmem:[%s21092_s1 + $0x234] sm:$0xf] }
 0x205   :  { %v1262_v27 = vadd.f32 %v1261_v43, %v1172_v15  ;;  %v1175_v14 = vpop.f32.mrf.mxu1  ;;  %v11664_v15 = vor.u32 %v14388_v48, %v11663_v29 }
 0x207   :  { %v15954_v40 = vadd.f32 %v1262_v27, %v15501_v61  ;;  %v1432_v2 = vpop.f32.mrf.mxu2  ;;  %v11665_v61 = vld [vmem:[%s21092_s1 + $0x238] sm:$0xf0]  ;;  %2986 = vmatpush.bf16.msrb.mxu3 %v11664_v15  ;;  %v11197_v15 = vld [vmem:[%s21093_s0 + $0x250] sm:$0xf] }
 0x208   :  { %v1433_v42 = vadd.f32 %v1432_v2, %v1343_v56  ;;  %2016 = vmatmul.bf16.vlgmr.msra.gmra.mxu1 %v15949_v23  ;;  %v1345_v5 = vpop.f32.mrf.mxu0  ;;  %v11668_v52 = vor.u32 %v14387_v12, %v11665_v61  ;;  %v11655_v56 = vld [vmem:[%s21092_s1 + $0x220] sm:$0xf]  ;;  %v14292_v61 = vld [vmem:[%s21093_s0 + $0x254] sm:$0xf0] }
 0x209   :  { %11387 = vmatmul.msk.bf16.vlgmr.msra.gmra.mxu3 %vm323_vm0, %v15951_v30  ;;  %v11656_v28 = vor.u32 %v14386_v0, %v11655_v56  ;;  %v11198_v56 = vor.u32 %v14292_v61, %v11197_v15 }
 0x20a   :  { %v15972_v7 = vadd.f32 %v1433_v42, %v15459_v4  ;;  %3164 = vmatpush.bf16.msrb.mxu2 %v11668_v52  ;;  %v11657_v4 = vld [vmem:[%s21092_s1 + $0x228] sm:$0xf0] }
 0x20b   :  { %v11660_v43 = vor.u32 %v14385_v31, %v11657_v4  ;;  %2890 = vmatpush.bf16.msrb.mxu1 %v11656_v28 }
 0x20c   :  { %v1264_v37 = vpop.f32.mrf.mxu3 }
 0x20d   :  { %v1265_v27 = vadd.f32 %v1264_v37, %v1175_v14  ;;  %v1177_v2 = vpop.f32.mrf.mxu1  ;;  %3068 = vmatpush.bf16.msrb.mxu0 %v11660_v43  ;;  %v14291_v14 = vld [vmem:[%s21093_s0 + $0x254] sm:$0xf] }
 0x20f   :  { %v15987_v29 = vadd.f32 %v1265_v27, %v15505_v10  ;;  %v1434_v48 = vpop.f32.mrf.mxu2  ;;  %v11199_v10 = vld [vmem:[%s21093_s0 + $0x258] sm:$0xf0] }
 0x210   :  { %v1435_v12 = vadd.f32 %v1434_v48, %v1345_v5  ;;  %v1348_v42 = vpop.f32.mrf.mxu0  ;;  %v11202_v28 = vor.u32 %v14291_v14, %v11199_v10  ;;  %v14293_v14 = vld [vmem:[%s21093_s0 + $0x264] sm:$0xf] }
 0x212   :  { %v15996_v52 = vadd.f32 %v1435_v12, %v15482_v32 }
 0x213   :  { %1387 = vmatmul.bf16.gmra.mxu0 %v15917_v33 }
 0x214   :  { %v1266_v5 = vpop.f32.mrf.mxu3  ;;  %11136 = vmatmul.msk.bf16.gmra.mxu2 %vm323_vm0, %v15919_v49 }
 0x215   :  { %v1267_v0 = vadd.f32 %v1266_v5, %v1177_v2  ;;  %v1180_v31 = vpop.f32.mrf.mxu1 }
 0x217   :  { %v16008_v32 = vadd.f32 %v1267_v0, %v15523_v26  ;;  %v1437_v4 = vpop.f32.mrf.mxu2  ;;  %v11205_v26 = vld [vmem:[%s21093_s0 + $0x260] sm:$0xf] }
 0x218   :  { %v1438_v37 = vadd.f32 %v1437_v4, %v1348_v42  ;;  %2021 = vmatmul.bf16.gmra.mxu1 %v11198_v56  ;;  %v1350_v43 = vpop.f32.mrf.mxu0  ;;  %v14294_v42 = vld [vmem:[%s21093_s0 + $0x264] sm:$0xf0] }
 0x219   :  { %11388 = vmatmul.msk.bf16.gmra.mxu3 %vm323_vm0, %v11202_v28  ;;  %v11206_v5 = vor.u32 %v14294_v42, %v11205_v26  ;;  %v21128_v42 = vld [vmem:[#allocation11_spill] sm:$0xff] }
 0x21a   :  { %v16012_v27 = vadd.f32 %v1438_v37, %v15498_v55 }
 0x21c   :  { %v1269_v33 = vpop.f32.mrf.mxu3 }
 0x21d   :  { %v1270_v48 = vadd.f32 %v1269_v33, %v1180_v31  ;;  %v1182_v12 = vpop.f32.mrf.mxu1 }
 0x21f   :  { %v16015_v49 = vadd.f32 %v1270_v48, %v15539_v1  ;;  %v1439_v2 = vpop.f32.mrf.mxu2  ;;  %v11207_v1 = vld [vmem:[%s21093_s0 + $0x268] sm:$0xf0] }
 0x220   :  { %v1440_v15 = vadd.f32 %v1439_v2, %v1350_v43  ;;  %v1353_v61 = vpop.f32.mrf.mxu0  ;;  %v11210_v4 = vor.u32 %v14293_v14, %v11207_v1  ;;  %v11649_v2 = vld [vmem:[%s21092_s1 + $0x218] sm:$0xf0] }
 0x222   :  { %v16024_v55 = vadd.f32 %v1440_v15, %v15503_v6 }
 0x223   :  { %2194 = vmatmul.bf16.vlgmr.msra.gmra.mxu0 %v15949_v23  ;;  %v11647_v23 = vld [vmem:[%s21092_s1 + $0x210] sm:$0xf] }
 0x224   :  { %v1271_v10 = vpop.f32.mrf.mxu3  ;;  %11403 = vmatmul.msk.bf16.vlgmr.msra.gmra.mxu2 %vm323_vm0, %v15951_v30  ;;  %v14384_v30 = vld [vmem:[%s21092_s1 + $0x214] sm:$0xf0] }
 0x225   :  { %v1272_v0 = vadd.f32 %v1271_v10, %v1182_v12  ;;  %v1185_v31 = vpop.f32.mrf.mxu1  ;;  %v11648_v12 = vor.u32 %v14384_v30, %v11647_v23  ;;  %v21130_v23 = vld [vmem:[#allocation8_spill] sm:$0xff] }
 0x227   :  { %v16036_v6 = vadd.f32 %v1272_v0, %v15557_v59  ;;  %v1442_v37 = vpop.f32.mrf.mxu2  ;;  %v14383_v59 = vld [vmem:[%s21092_s1 + $0x214] sm:$0xf]  ;;  %2891 = vmatpush.bf16.msrb.mxu1 %v11648_v12 }
 0x228   :  { %v1443_v43 = vadd.f32 %v1442_v37, %v1353_v61  ;;  %2026 = vmatmul.bf16.gmra.mxu1 %v11206_v5  ;;  %v1355_v33 = vpop.f32.mrf.mxu0  ;;  %v11213_v37 = vld [vmem:[%s21093_s0 + $0x270] sm:$0xf] }
 0x229   :  { %21126 = vst [vmem:[#allocation30_spill] sm:$0xff] %v16036_v6  ;;  %11389 = vmatmul.msk.bf16.gmra.mxu3 %vm323_vm0, %v11210_v4 }
 0x22a   :  { %v16040_v48 = vadd.f32 %v1443_v43, %v15520_v20  ;;  %v11652_v20 = vor.u32 %v14383_v59, %v11649_v2  ;;  %v14296_v43 = vld [vmem:[%s21093_s0 + $0x274] sm:$0xf0] }
 0x22b   :  { %v11214_v12 = vor.u32 %v14296_v43, %v11213_v37 }
 0x22c   :  { %21127 = vst [vmem:[#allocation31_spill] sm:$0xff] %v16040_v48  ;;  %v1274_v15 = vpop.f32.mrf.mxu3  ;;  %3069 = vmatpush.bf16.msrb.mxu0 %v11652_v20 }
 0x22d   :  { %v1275_v61 = vadd.f32 %v1274_v15, %v1185_v31  ;;  %v1187_v26 = vpop.f32.mrf.mxu1  ;;  %v14295_v31 = vld [vmem:[%s21093_s0 + $0x274] sm:$0xf] }
 0x22f   :  { %v16055_v14 = vadd.f32 %v1275_v61, %v21128_v42  ;;  %v1444_v1 = vpop.f32.mrf.mxu2  ;;  %v21132_v61 = vld [vmem:[#allocation13_spill] sm:$0xff] }
 0x230   :  { %v1445_v10 = vadd.f32 %v1444_v1, %v1355_v33  ;;  %v1358_v0 = vpop.f32.mrf.mxu0  ;;  %v11215_v33 = vld [vmem:[%s21093_s0 + $0x278] sm:$0xf0] }
 0x231   :  { %21129 = vst [vmem:[#allocation11_spill] sm:$0xff] %v16055_v14  ;;  %v11218_v20 = vor.u32 %v14295_v31, %v11215_v33  ;;  %v14298_v33 = vld [vmem:[%s21093_s0 + $0x284] sm:$0xf0] }
 0x232   :  { %v16064_v30 = vadd.f32 %v1445_v10, %v21130_v23 }
 0x233   :  { %2199 = vmatmul.bf16.gmra.mxu0 %v11198_v56 }
 0x234   :  { %21131 = vst [vmem:[#allocation8_spill] sm:$0xff] %v16064_v30  ;;  %v1276_v59 = vpop.f32.mrf.mxu3  ;;  %11404 = vmatmul.msk.bf16.gmra.mxu2 %vm323_vm0, %v11202_v28  ;;  %v21134_v30 = vld [vmem:[#allocation9_spill] sm:$0xff]  ;;  %v21136_v28 = vld [vmem:[#allocation15_spill] sm:$0xff] }
 0x235   :  { %v1277_v2 = vadd.f32 %v1276_v59, %v1187_v26  ;;  %v1190_v15 = vpop.f32.mrf.mxu1  ;;  %v21138_v59 = vld [vmem:[#allocation10_spill] sm:$0xff] }
 0x237   :  { %v16074_v42 = vadd.f32 %v1277_v2, %v21132_v61  ;;  %v1447_v1 = vpop.f32.mrf.mxu2  ;;  %v14297_v2 = vld [vmem:[%s21093_s0 + $0x284] sm:$0xf] }
 0x238   :  { %v1448_v10 = vadd.f32 %v1447_v1, %v1358_v0  ;;  %2031 = vmatmul.bf16.gmra.mxu1 %v11214_v12  ;;  %v1360_v23 = vpop.f32.mrf.mxu0  ;;  %v11221_v0 = vld [vmem:[%s21093_s0 + $0x280] sm:$0xf] }
 0x239   :  { %21133 = vst [vmem:[#allocation13_spill] sm:$0xff] %v16074_v42  ;;  %11390 = vmatmul.msk.bf16.gmra.mxu3 %vm323_vm0, %v11218_v20  ;;  %v11222_v61 = vor.u32 %v14298_v33, %v11221_v0  ;;  %v11641_v0 = vld [vmem:[%s21092_s1 + $0x208] sm:$0xf0] }
 0x23a   :  { %v16078_v14 = vadd.f32 %v1448_v10, %v21134_v30 }
 0x23c   :  { %21135 = vst [vmem:[#allocation9_spill] sm:$0xff] %v16078_v14  ;;  %v1279_v56 = vpop.f32.mrf.mxu3 }
 0x23d   :  { %v1280_v48 = vadd.f32 %v1279_v56, %v1190_v15  ;;  %v1192_v6 = vpop.f32.mrf.mxu1  ;;  %v21140_v56 = vld [vmem:[#allocation17_spill] sm:$0xff] }
 0x23f   :  { %v16081_v37 = vadd.f32 %v1280_v48, %v21136_v28  ;;  %v1449_v26 = vpop.f32.mrf.mxu2  ;;  %v11223_v48 = vld [vmem:[%s21093_s0 + $0x288] sm:$0xf0] }
 0x240   :  { %v1450_v43 = vadd.f32 %v1449_v26, %v1360_v23  ;;  %v1363_v31 = vpop.f32.mrf.mxu0  ;;  %v11226_v23 = vor.u32 %v14297_v2, %v11223_v48 }
 0x241   :  { %21137 = vst [vmem:[#allocation15_spill] sm:$0xff] %v16081_v37 }
 0x242   :  { %v16090_v30 = vadd.f32 %v1450_v43, %v21138_v59 }
 0x243   :  { %2204 = vmatmul.bf16.gmra.mxu0 %v11206_v5  ;;  %v11639_v5 = vld [vmem:[%s21092_s1 + $0x200] sm:$0xf] }
 0x244   :  { %21139 = vst [vmem:[#allocation10_spill] sm:$0xff] %v16090_v30  ;;  %v1281_v15 = vpop.f32.mrf.mxu3  ;;  %11405 = vmatmul.msk.bf16.gmra.mxu2 %vm323_vm0, %v11210_v4  ;;  %v21142_v30 = vld [vmem:[#allocation12_spill] sm:$0xff]  ;;  %v14382_v4 = vld [vmem:[%s21092_s1 + $0x204] sm:$0xf0] }
 0x245   :  { %v1282_v1 = vadd.f32 %v1281_v15, %v1192_v6  ;;  %v1195_v10 = vpop.f32.mrf.mxu1  ;;  %v14381_v6 = vld [vmem:[%s21092_s1 + $0x204] sm:$0xf]  ;;  %v21144_v15 = vld [vmem:[#allocation19_spill] sm:$0xff] }
 0x247   :  { %v16100_v28 = vadd.f32 %v1282_v1, %v21140_v56  ;;  %v1452_v26 = vpop.f32.mrf.mxu2 }
 0x248   :  { %v1453_v43 = vadd.f32 %v1452_v26, %v1363_v31  ;;  %2036 = vmatmul.bf16.gmra.mxu1 %v11222_v61  ;;  %v1365_v59 = vpop.f32.mrf.mxu0  ;;  %v11640_v31 = vor.u32 %v14382_v4, %v11639_v5  ;;  %v11229_v5 = vld [vmem:[%s21093_s0 + $0x290] sm:$0xf]  ;;  %v14300_v4 = vld [vmem:[%s21093_s0 + $0x294] sm:$0xf0] }
 0x249   :  { %21141 = vst [vmem:[#allocation17_spill] sm:$0xff] %v16100_v28  ;;  %11391 = vmatmul.msk.bf16.gmra.mxu3 %vm323_vm0, %v11226_v23 }
 0x24a   :  { %v16104_v37 = vadd.f32 %v1453_v43, %v21142_v30  ;;  %v11644_v30 = vor.u32 %v14381_v6, %v11641_v0  ;;  %2892 = vmatpush.bf16.msrb.mxu1 %v11640_v31  ;;  %v11230_v0 = vor.u32 %v14300_v4, %v11229_v5 }
 0x24c   :  { %21143 = vst [vmem:[#allocation12_spill] sm:$0xff] %v16104_v37  ;;  %v1284_v33 = vpop.f32.mrf.mxu3  ;;  %3070 = vmatpush.bf16.msrb.mxu0 %v11644_v30  ;;  %v21146_v37 = vld [vmem:[#allocation14_spill] sm:$0xff] }
 0x24d   :  { %v1285_v2 = vadd.f32 %v1284_v33, %v1195_v10  ;;  %v1197_v48 = vpop.f32.mrf.mxu1  ;;  %v14299_v10 = vld [vmem:[%s21093_s0 + $0x294] sm:$0xf] }
 0x24f   :  { %v16119_v1 = vadd.f32 %v1285_v2, %v21144_v15  ;;  %v1454_v56 = vpop.f32.mrf.mxu2  ;;  %v21148_v15 = vld [vmem:[#allocation21_spill] sm:$0xff] }
 0x250   :  { %v1455_v26 = vadd.f32 %v1454_v56, %v1365_v59  ;;  %v1368_v43 = vpop.f32.mrf.mxu0  ;;  %v11231_v59 = vld [vmem:[%s21093_s0 + $0x298] sm:$0xf0] }
 0x251   :  { %21145 = vst [vmem:[#allocation19_spill] sm:$0xff] %v16119_v1  ;;  %v11234_v2 = vor.u32 %v14299_v10, %v11231_v59  ;;  %v21149_v1 = vld [vmem:[#allocation16_spill] sm:$0xff]  ;;  %v14302_v59 = vld [vmem:[%s21093_s0 + $0x2a4] sm:$0xf0] }
 0x252   :  { %v16128_v6 = vadd.f32 %v1455_v26, %v21146_v37 }
 0x253   :  { %2209 = vmatmul.bf16.gmra.mxu0 %v11214_v12 }
 0x254   :  { %21147 = vst [vmem:[#allocation14_spill] sm:$0xff] %v16128_v6  ;;  %v1286_v31 = vpop.f32.mrf.mxu3  ;;  %11406 = vmatmul.msk.bf16.gmra.mxu2 %vm323_vm0, %v11218_v20  ;;  %v21150_v20 = vld [vmem:[#allocation23_spill] sm:$0xff] }
 0x255   :  { %v1287_v33 = vadd.f32 %v1286_v31, %v1197_v48  ;;  %v1200_v30 = vpop.f32.mrf.mxu1  ;;  %v21151_v31 = vld [vmem:[#allocation18_spill] sm:$0xff] }
 0x257   :  { %v16138_v56 = vadd.f32 %v1287_v33, %v21148_v15  ;;  %v1457_v37 = vpop.f32.mrf.mxu2  ;;  %v14301_v33 = vld [vmem:[%s21093_s0 + $0x2a4] sm:$0xf] }
 0x258   :  { %v1458_v26 = vadd.f32 %v1457_v37, %v1368_v43  ;;  %2041 = vmatmul.bf16.gmra.mxu1 %v11230_v0  ;;  %v1370_v6 = vpop.f32.mrf.mxu0  ;;  %v11237_v43 = vld [vmem:[%s21093_s0 + $0x2a0] sm:$0xf] }
 0x259   :  { %11392 = vmatmul.msk.bf16.gmra.mxu3 %vm323_vm0, %v11234_v2 }
 0x25a   :  { %v16142_v28 = vadd.f32 %v1458_v26, %v21149_v1 }
 0x25c   :  { %v1289_v12 = vpop.f32.mrf.mxu3 }
 0x25d   :  { %v1290_v14 = vadd.f32 %v1289_v12, %v1200_v30  ;;  %v1202_v42 = vpop.f32.mrf.mxu1  ;;  %v11238_v30 = vor.u32 %v14302_v59, %v11237_v43 }
 0x25f   :  { %v16145_v5 = vadd.f32 %v1290_v14, %v21150_v20  ;;  %v1459_v48 = vpop.f32.mrf.mxu2  ;;  %v11239_v14 = vld [vmem:[%s21093_s0 + $0x2a8] sm:$0xf0] }
 0x260   :  { %v1460_v4 = vadd.f32 %v1459_v48, %v1370_v6  ;;  %v1373_v10 = vpop.f32.mrf.mxu0  ;;  %v11242_v26 = vor.u32 %v14301_v33, %v11239_v14 }
 0x262   :  { %v16154_v1 = vadd.f32 %v1460_v4, %v21151_v31  ;;  %v21154_v31 = vld [vmem:[#allocation20_spill] sm:$0xff] }
 0x263   :  { %2214 = vmatmul.bf16.gmra.mxu0 %v11222_v61  ;;  %v11631_v61 = vld [vmem:[%s21092_s1 + $0x1f0] sm:$0xf] }
 0x264   :  { %21152 = vst [vmem:[#allocation21_spill] sm:$0xff] %v16154_v1  ;;  %v1291_v6 = vpop.f32.mrf.mxu3  ;;  %11407 = vmatmul.msk.bf16.gmra.mxu2 %vm323_vm0, %v11226_v23 }
 0x265   :  { %v1292_v15 = vadd.f32 %v1291_v6, %v1202_v42  ;;  %v1205_v37 = vpop.f32.mrf.mxu1  ;;  %v14380_v42 = vld [vmem:[%s21092_s1 + $0x1f4] sm:$0xf0] }
 0x266   :  { %v11632_v23 = vor.u32 %v14380_v42, %v11631_v61  ;;  %v14304_v61 = vld [vmem:[%s21093_s0 + $0x2b4] sm:$0xf0]  ;;  %v21157_v42 = vld [vmem:[#allocation22_spill] sm:$0xff] }
 0x267   :  { %v16164_v12 = vadd.f32 %v1292_v15, %v15669_v57  ;;  %v1462_v20 = vpop.f32.mrf.mxu2  ;;  %v14379_v57 = vld [vmem:[%s21092_s1 + $0x1f4] sm:$0xf] }
 0x268   :  { %v1463_v48 = vadd.f32 %v1462_v20, %v1373_v10  ;;  %2046 = vmatmul.bf16.gmra.mxu1 %v11238_v30  ;;  %v1375_v4 = vpop.f32.mrf.mxu0  ;;  %v11633_v10 = vld [vmem:[%s21092_s1 + $0x1f8] sm:$0xf0] }
 0x269   :  { %21153 = vst [vmem:[#allocation16_spill] sm:$0xff] %v16164_v12  ;;  %11393 = vmatmul.msk.bf16.gmra.mxu3 %vm323_vm0, %v11242_v26  ;;  %v11636_v59 = vor.u32 %v14379_v57, %v11633_v10  ;;  %2893 = vmatpush.bf16.msrb.mxu1 %v11632_v23 }
 0x26a   :  { %v16168_v1 = vadd.f32 %v1463_v48, %v21154_v31  ;;  %v11245_v31 = vld [vmem:[%s21093_s0 + $0x2b0] sm:$0xf] }
 0x26b   :  { %3071 = vmatpush.bf16.msrb.mxu0 %v11636_v59  ;;  %v11246_v23 = vor.u32 %v14304_v61, %v11245_v31 }
 0x26c   :  { %21155 = vst [vmem:[#allocation23_spill] sm:$0xff] %v16168_v1  ;;  %v1294_v43 = vpop.f32.mrf.mxu3 }
 0x26d   :  { %v1295_v33 = vadd.f32 %v1294_v43, %v1205_v37  ;;  %v1207_v14 = vpop.f32.mrf.mxu1  ;;  %v14303_v37 = vld [vmem:[%s21093_s0 + $0x2b4] sm:$0xf] }
 0x26f   :  { %v16183_v6 = vadd.f32 %v1295_v33, %v15673_v45  ;;  %v1464_v15 = vpop.f32.mrf.mxu2  ;;  %v11247_v45 = vld [vmem:[%s21093_s0 + $0x2b8] sm:$0xf0] }
 0x270   :  { %v1465_v20 = vadd.f32 %v1464_v15, %v1375_v4  ;;  %v1378_v48 = vpop.f32.mrf.mxu0  ;;  %v11250_v59 = vor.u32 %v14303_v37, %v11247_v45  ;;  %v21160_v37 = vld [vmem:[#allocation25_spill] sm:$0xff]  ;;  %v14305_v45 = vld [vmem:[%s21093_s0 + $0x2c4] sm:$0xf] }
 0x271   :  { %21156 = vst [vmem:[#allocation18_spill] sm:$0xff] %v16183_v6 }
 0x272   :  { %v16192_v57 = vadd.f32 %v1465_v20, %v21157_v42 }
 0x273   :  { %2219 = vmatmul.bf16.gmra.mxu0 %v11230_v0 }
 0x274   :  { %21158 = vst [vmem:[#allocation20_spill] sm:$0xff] %v16192_v57  ;;  %v1296_v4 = vpop.f32.mrf.mxu3  ;;  %11408 = vmatmul.msk.bf16.gmra.mxu2 %vm323_vm0, %v11234_v2  ;;  %v21159_v57 = vld [vmem:[#allocation24_spill] sm:$0xff] }
 0x275   :  { %v1297_v10 = vadd.f32 %v1296_v4, %v1207_v14  ;;  %v1210_v43 = vpop.f32.mrf.mxu1 }
 0x277   :  { %v16202_v33 = vadd.f32 %v1297_v10, %v15691_v62  ;;  %v1467_v15 = vpop.f32.mrf.mxu2  ;;  %v11253_v62 = vld [vmem:[%s21093_s0 + $0x2c0] sm:$0xf] }
 0x278   :  { %v1468_v20 = vadd.f32 %v1467_v15, %v1378_v48  ;;  %2051 = vmatmul.bf16.gmra.mxu1 %v11246_v23  ;;  %v1380_v42 = vpop.f32.mrf.mxu0  ;;  %v14306_v48 = vld [vmem:[%s21093_s0 + $0x2c4] sm:$0xf0] }
 0x279   :  { %11394 = vmatmul.msk.bf16.gmra.mxu3 %vm323_vm0, %v11250_v59  ;;  %v11254_v4 = vor.u32 %v14306_v48, %v11253_v62 }
 0x27a   :  { %v16206_v6 = vadd.f32 %v1468_v20, %v21159_v57 }
 0x27c   :  { %v1299_v0 = vpop.f32.mrf.mxu3 }
 0x27d   :  { %v1300_v1 = vadd.f32 %v1299_v0, %v1210_v43  ;;  %v1212_v12 = vpop.f32.mrf.mxu1 }
 0x27f   :  { %v16209_v2 = vadd.f32 %v1300_v1, %v15710_v21  ;;  %v1469_v14 = vpop.f32.mrf.mxu2  ;;  %v11255_v21 = vld [vmem:[%s21093_s0 + $0x2c8] sm:$0xf0] }
 0x280   :  { %v1470_v31 = vadd.f32 %v1469_v14, %v1380_v42  ;;  %v1383_v61 = vpop.f32.mrf.mxu0  ;;  %v11258_v15 = vor.u32 %v14305_v45, %v11255_v21 }
 0x282   :  { %v16218_v57 = vadd.f32 %v1470_v31, %v21160_v37  ;;  %v21162_v31 = vld [vmem:[#allocation26_spill] sm:$0xff] }
 0x283   :  { %2224 = vmatmul.bf16.gmra.mxu0 %v11238_v30  ;;  %v11623_v30 = vld [vmem:[%s21092_s1 + $0x1e0] sm:$0xf] }
 0x284   :  { %v1301_v1 = vpop.f32.mrf.mxu3  ;;  %11409 = vmatmul.msk.bf16.gmra.mxu2 %vm323_vm0, %v11242_v26  ;;  %v14378_v26 = vld [vmem:[%s21092_s1 + $0x1e4] sm:$0xf0] }
 0x285   :  { %v1302_v10 = vadd.f32 %v1301_v1, %v1212_v12  ;;  %v2017_v43 = vpop.f32.mrf.mxu1  ;;  %v11624_v12 = vor.u32 %v14378_v26, %v11623_v30  ;;  %v21164_v1 = vld [vmem:[#allocation27_spill] sm:$0xff]  ;;  %v11261_v30 = vld [vmem:[%s21093_s0 + $0x2d0] sm:$0xf] }
 0x286   :  { %v14308_v26 = vld [vmem:[%s21093_s0 + $0x2d4] sm:$0xf0] }
 0x287   :  { %v16228_v20 = vadd.f32 %v1302_v10, %v15731_v11  ;;  %v1472_v42 = vpop.f32.mrf.mxu2  ;;  %v14377_v11 = vld [vmem:[%s21092_s1 + $0x1e4] sm:$0xf]  ;;  %2894 = vmatpush.bf16.msrb.mxu1 %v11624_v12 }
 0x288   :  { %v1473_v0 = vadd.f32 %v1472_v42, %v1383_v61  ;;  %2056 = vmatmul.bf16.gmra.mxu1 %v11254_v4  ;;  %v1385_v14 = vpop.f32.mrf.mxu0  ;;  %v11625_v61 = vld [vmem:[%s21092_s1 + $0x1e8] sm:$0xf0] }
 0x289   :  { %21161 = vst [vmem:[#allocation22_spill] sm:$0xff] %v16228_v20  ;;  %11395 = vmatmul.msk.bf16.gmra.mxu3 %vm323_vm0, %v11258_v15  ;;  %v11628_v48 = vor.u32 %v14377_v11, %v11625_v61  ;;  %v11262_v61 = vor.u32 %v14308_v26, %v11261_v30 }
 0x28a   :  { %v16232_v37 = vadd.f32 %v1473_v0, %v21162_v31 }
 0x28b   :  { %3072 = vmatpush.bf16.msrb.mxu0 %v11628_v48 }
 0x28c   :  { %21163 = vst [vmem:[#allocation24_spill] sm:$0xff] %v16232_v37  ;;  %v2106_v62 = vpop.f32.mrf.mxu3  ;;  %v21166_v37 = vld [vmem:[#allocation28_spill] sm:$0xff] }
 0x28d   :  { %v2107_v45 = vadd.f32 %v2106_v62, %v2017_v43  ;;  %v2019_v21 = vpop.f32.mrf.mxu1  ;;  %v14307_v43 = vld [vmem:[%s21093_s0 + $0x2d4] sm:$0xf] }
 0x28f   :  { %v16247_v10 = vadd.f32 %v2107_v45, %v21164_v1  ;;  %v1474_v42 = vpop.f32.mrf.mxu2 }
 0x290   :  { %v1475_v0 = vadd.f32 %v1474_v42, %v1385_v14  ;;  %v1388_v31 = vpop.f32.mrf.mxu0  ;;  %v11263_v14 = vld [vmem:[%s21093_s0 + $0x2d8] sm:$0xf0] }
 0x291   :  { %21165 = vst [vmem:[#allocation25_spill] sm:$0xff] %v16247_v10  ;;  %v11266_v45 = vor.u32 %v14307_v43, %v11263_v14  ;;  %v14309_v43 = vld [vmem:[%s21093_s0 + $0x2e4] sm:$0xf] }
 0x292   :  { %v16256_v11 = vadd.f32 %v1475_v0, %v21166_v37 }
 0x293   :  { %2229 = vmatmul.bf16.gmra.mxu0 %v11246_v23 }
 0x294   :  { %21167 = vst [vmem:[#allocation26_spill] sm:$0xff] %v16256_v11  ;;  %v2108_v12 = vpop.f32.mrf.mxu3  ;;  %11410 = vmatmul.msk.bf16.gmra.mxu2 %vm323_vm0, %v11250_v59 }
 0x295   :  { %v2109_v62 = vadd.f32 %v2108_v12, %v2019_v21  ;;  %v2022_v48 = vpop.f32.mrf.mxu1 }
 0x297   :  { %v16266_v1 = vadd.f32 %v2109_v62, %v15726_v54  ;;  %v1477_v37 = vpop.f32.mrf.mxu2  ;;  %v11269_v54 = vld [vmem:[%s21093_s0 + $0x2e0] sm:$0xf] }
 0x298   :  { %v1478_v42 = vadd.f32 %v1477_v37, %v1388_v31  ;;  %2061 = vmatmul.bf16.gmra.mxu1 %v11262_v61  ;;  %v1390_v0 = vpop.f32.mrf.mxu0  ;;  %v14310_v31 = vld [vmem:[%s21093_s0 + $0x2e4] sm:$0xf0] }
 0x299   :  { %11396 = vmatmul.msk.bf16.gmra.mxu3 %vm323_vm0, %v11266_v45  ;;  %v11270_v14 = vor.u32 %v14310_v31, %v11269_v54 }
 0x29a   :  { %v16270_v11 = vadd.f32 %v1478_v42, %v15728_v38 }
 0x29c   :  { %v2111_v23 = vpop.f32.mrf.mxu3 }
 0x29d   :  { %v2112_v10 = vadd.f32 %v2111_v23, %v2022_v48  ;;  %v2024_v20 = vpop.f32.mrf.mxu1 }
 0x29f   :  { %v16273_v59 = vadd.f32 %v2112_v10, %v15734_v19  ;;  %v1479_v21 = vpop.f32.mrf.mxu2  ;;  %v11271_v19 = vld [vmem:[%s21093_s0 + $0x2e8] sm:$0xf0] }
 0x2a0   :  { %v1480_v30 = vadd.f32 %v1479_v21, %v1390_v0  ;;  %v2195_v26 = vpop.f32.mrf.mxu0  ;;  %v11274_v48 = vor.u32 %v14309_v43, %v11271_v19  ;;  %v11617_v21 = vld [vmem:[%s21092_s1 + $0x1d8] sm:$0xf0] }
 0x2a2   :  { %v16282_v38 = vadd.f32 %v1480_v30, %v15736_v50 }
 0x2a3   :  { %2234 = vmatmul.bf16.gmra.mxu0 %v11254_v4  ;;  %v11615_v4 = vld [vmem:[%s21092_s1 + $0x1d0] sm:$0xf] }
 0x2a4   :  { %v2113_v10 = vpop.f32.mrf.mxu3  ;;  %11411 = vmatmul.msk.bf16.gmra.mxu2 %vm323_vm0, %v11258_v15  ;;  %v14376_v15 = vld [vmem:[%s21092_s1 + $0x1d4] sm:$0xf0] }
 0x2a5   :  { %v2114_v12 = vadd.f32 %v2113_v10, %v2024_v20  ;;  %v2027_v62 = vpop.f32.mrf.mxu1  ;;  %v11616_v20 = vor.u32 %v14376_v15, %v11615_v4 }
 0x2a7   :  { %v16292_v37 = vadd.f32 %v2114_v12, %v15752_v44  ;;  %v2284_v50 = vpop.f32.mrf.mxu2  ;;  %v14375_v44 = vld [vmem:[%s21092_s1 + $0x1d4] sm:$0xf]  ;;  %2895 = vmatpush.bf16.msrb.mxu1 %v11616_v20  ;;  %v11277_v12 = vld [vmem:[%s21093_s0 + $0x2f0] sm:$0xf] }
 0x2a8   :  { %v2285_v42 = vadd.f32 %v2284_v50, %v2195_v26  ;;  %2066 = vmatmul.bf16.gmra.mxu1 %v11270_v14  ;;  %v2197_v0 = vpop.f32.mrf.mxu0  ;;  %v14312_v50 = vld [vmem:[%s21093_s0 + $0x2f4] sm:$0xf0] }
 0x2a9   :  { %11397 = vmatmul.msk.bf16.gmra.mxu3 %vm323_vm0, %v11274_v48  ;;  %v11278_v15 = vor.u32 %v14312_v50, %v11277_v12 }
 0x2aa   :  { %v16296_v23 = vadd.f32 %v2285_v42, %v15756_v22  ;;  %v11620_v22 = vor.u32 %v14375_v44, %v11617_v21  ;;  %v21168_v42 = vld [vmem:[#allocation29_spill] sm:$0xff] }
 0x2ac   :  { %v2116_v30 = vpop.f32.mrf.mxu3  ;;  %3073 = vmatpush.bf16.msrb.mxu0 %v11620_v22 }
 0x2ad   :  { %v2117_v26 = vadd.f32 %v2116_v30, %v2027_v62  ;;  %v2029_v54 = vpop.f32.mrf.mxu1  ;;  %v14311_v62 = vld [vmem:[%s21093_s0 + $0x2f4] sm:$0xf] }
 0x2af   :  { %v16311_v31 = vadd.f32 %v2117_v26, %v15771_v13  ;;  %v2286_v43 = vpop.f32.mrf.mxu2  ;;  %v11279_v13 = vld [vmem:[%s21093_s0 + $0x2f8] sm:$0xf0] }
 0x2b0   :  { %v2287_v19 = vadd.f32 %v2286_v43, %v2197_v0  ;;  %v2200_v10 = vpop.f32.mrf.mxu0  ;;  %v11282_v21 = vor.u32 %v14311_v62, %v11279_v13  ;;  %v14313_v62 = vld [vmem:[%s21093_s0 + $0x304] sm:$0xf] }
 0x2b2   :  { %v16320_v4 = vadd.f32 %v2287_v19, %v21168_v42 }
 0x2b3   :  { %2239 = vmatmul.bf16.gmra.mxu0 %v11262_v61 }
 0x2b4   :  { %21169 = vst [vmem:[#allocation27_spill] sm:$0xff] %v16320_v4  ;;  %v2118_v0 = vpop.f32.mrf.mxu3  ;;  %11412 = vmatmul.msk.bf16.gmra.mxu2 %vm323_vm0, %v11266_v45 }
 0x2b5   :  { %v2119_v44 = vadd.f32 %v2118_v0, %v2029_v54  ;;  %v2032_v20 = vpop.f32.mrf.mxu1 }
 0x2b7   :  { %v16330_v30 = vadd.f32 %v2119_v44, %v15790_v36  ;;  %v2289_v22 = vpop.f32.mrf.mxu2  ;;  %v11285_v36 = vld [vmem:[%s21093_s0 + $0x300] sm:$0xf] }
 0x2b8   :  { %v2290_v26 = vadd.f32 %v2289_v22, %v2200_v10  ;;  %2071 = vmatmul.bf16.gmra.mxu1 %v11278_v15  ;;  %v2202_v43 = vpop.f32.mrf.mxu0  ;;  %v14314_v10 = vld [vmem:[%s21093_s0 + $0x304] sm:$0xf0] }
 0x2b9   :  { %11398 = vmatmul.msk.bf16.gmra.mxu3 %vm323_vm0, %v11282_v21  ;;  %v11286_v0 = vor.u32 %v14314_v10, %v11285_v36 }
 0x2ba   :  { %v16334_v19 = vadd.f32 %v2290_v26, %v15794_v51 }
 0x2bc   :  { %v2121_v61 = vpop.f32.mrf.mxu3 }
 0x2bd   :  { %v2122_v42 = vadd.f32 %v2121_v61, %v2032_v20  ;;  %v2034_v4 = vpop.f32.mrf.mxu1 }
 0x2bf   :  { %v16337_v45 = vadd.f32 %v2122_v42, %v15797_v63  ;;  %v2291_v54 = vpop.f32.mrf.mxu2  ;;  %v11287_v63 = vld [vmem:[%s21093_s0 + $0x308] sm:$0xf0] }
 0x2c0   :  { %v2292_v12 = vadd.f32 %v2291_v54, %v2202_v43  ;;  %v2205_v50 = vpop.f32.mrf.mxu0  ;;  %v11290_v22 = vor.u32 %v14313_v62, %v11287_v63  ;;  %v11609_v54 = vld [vmem:[%s21092_s1 + $0x1c8] sm:$0xf0] }
 0x2c2   :  { %v16346_v51 = vadd.f32 %v2292_v12, %v15806_v58 }
 0x2c3   :  { %2244 = vmatmul.bf16.gmra.mxu0 %v11270_v14  ;;  %v11607_v14 = vld [vmem:[%s21092_s1 + $0x1c0] sm:$0xf] }
 0x2c4   :  { %v2123_v13 = vpop.f32.mrf.mxu3  ;;  %11413 = vmatmul.msk.bf16.gmra.mxu2 %vm323_vm0, %v11274_v48  ;;  %v14374_v48 = vld [vmem:[%s21092_s1 + $0x1c4] sm:$0xf0] }
 0x2c5   :  { %v2124_v44 = vadd.f32 %v2123_v13, %v2034_v4  ;;  %v2037_v20 = vpop.f32.mrf.mxu1  ;;  %v11608_v4 = vor.u32 %v14374_v48, %v11607_v14 }
 0x2c7   :  { %v16356_v26 = vadd.f32 %v2124_v44, %v15816_v34  ;;  %v2294_v58 = vpop.f32.mrf.mxu2  ;;  %v14373_v34 = vld [vmem:[%s21092_s1 + $0x1c4] sm:$0xf]  ;;  %2896 = vmatpush.bf16.msrb.mxu1 %v11608_v4  ;;  %v11293_v44 = vld [vmem:[%s21093_s0 + $0x310] sm:$0xf] }
 0x2c8   :  { %v2295_v43 = vadd.f32 %v2294_v58, %v2205_v50  ;;  %2076 = vmatmul.bf16.gmra.mxu1 %v11286_v0  ;;  %v2207_v61 = vpop.f32.mrf.mxu0  ;;  %v14316_v58 = vld [vmem:[%s21093_s0 + $0x314] sm:$0xf0] }
 0x2c9   :  { %11399 = vmatmul.msk.bf16.gmra.mxu3 %vm323_vm0, %v11290_v22  ;;  %v11294_v14 = vor.u32 %v14316_v58, %v11293_v44 }
 0x2ca   :  { %v16360_v42 = vadd.f32 %v2295_v43, %v15820_v9  ;;  %v11612_v9 = vor.u32 %v14373_v34, %v11609_v54 }
 0x2cc   :  { %v2126_v12 = vpop.f32.mrf.mxu3  ;;  %3074 = vmatpush.bf16.msrb.mxu0 %v11612_v9 }
 0x2cd   :  { %v2127_v50 = vadd.f32 %v2126_v12, %v2037_v20  ;;  %v2039_v36 = vpop.f32.mrf.mxu1  ;;  %v14315_v20 = vld [vmem:[%s21093_s0 + $0x314] sm:$0xf] }
 0x2cf   :  { %v16375_v10 = vadd.f32 %v2127_v50, %v15835_v8  ;;  %v2296_v62 = vpop.f32.mrf.mxu2  ;;  %v11295_v8 = vld [vmem:[%s21093_s0 + $0x318] sm:$0xf0] }
 0x2d0   :  { %v2297_v63 = vadd.f32 %v2296_v62, %v2207_v61  ;;  %v2210_v13 = vpop.f32.mrf.mxu0  ;;  %v11298_v4 = vor.u32 %v14315_v20, %v11295_v8  ;;  %v14317_v20 = vld [vmem:[%s21093_s0 + $0x324] sm:$0xf]  ;;  %v11599_v8 = vld [vmem:[%s21092_s1 + $0x1b0] sm:$0xf] }
 0x2d2   :  { %v16384_v43 = vadd.f32 %v2297_v63, %v15844_v35 }
 0x2d3   :  { %2249 = vmatmul.bf16.gmra.mxu0 %v11278_v15 }
 0x2d4   :  { %v2128_v61 = vpop.f32.mrf.mxu3  ;;  %11414 = vmatmul.msk.bf16.gmra.mxu2 %vm323_vm0, %v11282_v21 }
 0x2d5   :  { %v2129_v48 = vadd.f32 %v2128_v61, %v2039_v36  ;;  %v2042_v34 = vpop.f32.mrf.mxu1  ;;  %v14372_v61 = vld [vmem:[%s21092_s1 + $0x1b4] sm:$0xf0] }
 0x2d7   :  { %v16394_v54 = vadd.f32 %v2129_v48, %v15854_v53  ;;  %v2299_v35 = vpop.f32.mrf.mxu2  ;;  %v11301_v53 = vld [vmem:[%s21093_s0 + $0x320] sm:$0xf] }
 0x2d8   :  { %v2300_v12 = vadd.f32 %v2299_v35, %v2210_v13  ;;  %2081 = vmatmul.bf16.gmra.mxu1 %v11294_v14  ;;  %v2212_v9 = vpop.f32.mrf.mxu0  ;;  %v14318_v13 = vld [vmem:[%s21093_s0 + $0x324] sm:$0xf0] }
 0x2d9   :  { %11400 = vmatmul.msk.bf16.gmra.mxu3 %vm323_vm0, %v11298_v4 }
 0x2da   :  { %v16398_v50 = vadd.f32 %v2300_v12, %v15858_v24 }
 0x2dc   :  { %v2131_v15 = vpop.f32.mrf.mxu3 }
 0x2dd   :  { %v2132_v62 = vadd.f32 %v2131_v15, %v2042_v34  ;;  %v2044_v63 = vpop.f32.mrf.mxu1  ;;  %v11600_v34 = vor.u32 %v14372_v61, %v11599_v8  ;;  %v11309_v61 = vld [vmem:[%s21093_s0 + $0x330] sm:$0xf] }
 0x2df   :  { %v16401_v21 = vadd.f32 %v2132_v62, %v15861_v47  ;;  %v2301_v36 = vpop.f32.mrf.mxu2  ;;  %v11303_v47 = vld [vmem:[%s21093_s0 + $0x328] sm:$0xf0]  ;;  %2897 = vmatpush.bf16.msrb.mxu1 %v11600_v34 }
 0x2e0   :  { %v2302_v44 = vadd.f32 %v2301_v36, %v2212_v9  ;;  %v2215_v58 = vpop.f32.mrf.mxu0  ;;  %v11306_v9 = vor.u32 %v14317_v20, %v11303_v47 }
 0x2e2   :  { %v16410_v24 = vadd.f32 %v2302_v44, %v15870_v39  ;;  %v11302_v39 = vor.u32 %v14318_v13, %v11301_v53 }
 0x2e3   :  { %2254 = vmatmul.bf16.gmra.mxu0 %v11286_v0 }
 0x2e4   :  { %v2133_v48 = vpop.f32.mrf.mxu3  ;;  %11415 = vmatmul.msk.bf16.gmra.mxu2 %vm323_vm0, %v11290_v22  ;;  %v14371_v22 = vld [vmem:[%s21092_s1 + $0x1b4] sm:$0xf] }
 0x2e5   :  { %v2134_v35 = vadd.f32 %v2133_v48, %v2044_v63  ;;  %v2047_v12 = vpop.f32.mrf.mxu1  ;;  %v11601_v63 = vld [vmem:[%s21092_s1 + $0x1b8] sm:$0xf0]  ;;  %v14320_v48 = vld [vmem:[%s21093_s0 + $0x334] sm:$0xf0] }
 0x2e6   :  { %v11604_v53 = vor.u32 %v14371_v22, %v11601_v63 }
 0x2e7   :  { %v16426_v15 = vadd.f32 %v2134_v35, %v15886_v46  ;;  %v2304_v0 = vpop.f32.mrf.mxu2  ;;  %v14319_v35 = vld [vmem:[%s21093_s0 + $0x334] sm:$0xf] }
 0x2e8   :  { %v2305_v62 = vadd.f32 %v2304_v0, %v2215_v58  ;;  %2086 = vmatmul.bf16.gmra.mxu1 %v11302_v39  ;;  %v2217_v36 = vpop.f32.mrf.mxu0  ;;  %3075 = vmatpush.bf16.msrb.mxu0 %v11604_v53  ;;  %v16457_v0 = vor.u32 %v14320_v48, %v11309_v61  ;;  %v14340_v48 = vld [vmem:[%s21093_s0 + $0x364] sm:$0xf0] }
 0x2e9   :  { %11401 = vmatmul.msk.bf16.gmra.mxu3 %vm323_vm0, %v11306_v9 }
 0x2ea   :  { %v16430_v44 = vadd.f32 %v2305_v62, %v15890_v60 }
 0x2ec   :  { %v2136_v46 = vpop.f32.mrf.mxu3 }
 0x2ed   :  { %v2137_v13 = vadd.f32 %v2136_v46, %v2047_v12  ;;  %v2049_v20 = vpop.f32.mrf.mxu1 }
 0x2ef   :  { %v16439_v58 = vadd.f32 %v2137_v13, %v15899_v3  ;;  %v2306_v47 = vpop.f32.mrf.mxu2  ;;  %v11311_v3 = vld [vmem:[%s21093_s0 + $0x338] sm:$0xf0] }
 0x2f0   :  { %v2307_v8 = vadd.f32 %v2306_v47, %v2217_v36  ;;  %v2220_v60 = vpop.f32.mrf.mxu0  ;;  %v16459_v22 = vor.u32 %v14319_v35, %v11311_v3  ;;  %v14339_v35 = vld [vmem:[%s21093_s0 + $0x364] sm:$0xf] }
 0x2f2   :  { %v16448_v34 = vadd.f32 %v2307_v8, %v15908_v41 }
 0x2f3   :  { %2259 = vmatmul.bf16.gmra.mxu0 %v11294_v14 }
 0x2f4   :  { %v2138_v12 = vpop.f32.mrf.mxu3  ;;  %11416 = vmatmul.msk.bf16.gmra.mxu2 %vm323_vm0, %v11298_v4 }
 0x2f5   :  { %v2139_v62 = vadd.f32 %v2138_v12, %v2049_v20  ;;  %v2052_v36 = vpop.f32.mrf.mxu1 }
 0x2f7   :  { %v16462_v41 = vadd.f32 %v2139_v62, %v15922_v16  ;;  %v2309_v63 = vpop.f32.mrf.mxu2 }
 0x2f8   :  { %v2310_v53 = vadd.f32 %v2309_v63, %v2220_v60  ;;  %2091 = vmatmul.bf16.gmra.mxu1 %v16457_v0  ;;  %v2222_v46 = vpop.f32.mrf.mxu0  ;;  %v11471_v60 = vld [vmem:[%s21093_s0 + $0x360] sm:$0xf] }
 0x2f9   :  { %11402 = vmatmul.msk.bf16.gmra.mxu3 %vm323_vm0, %v16459_v22  ;;  %v16489_v12 = vor.u32 %v14340_v48, %v11471_v60  ;;  %v14436_v60 = vld [vmem:[%s21092_s1 + $0x2b4] sm:$0xf0]  ;;  %v14435_v48 = vld [vmem:[%s21092_s1 + $0x2b4] sm:$0xf] }
 0x2fa   :  { %v16468_v14 = vadd.f32 %v2310_v53, %v15928_v17 }
 0x2fc   :  { %v2141_v4 = vpop.f32.mrf.mxu3 }
 0x2fd   :  { %v2142_v13 = vadd.f32 %v2141_v4, %v2052_v36  ;;  %v2054_v20 = vpop.f32.mrf.mxu1 }
 0x2ff   :  { %v16471_v47 = vadd.f32 %v2142_v13, %v15931_v18  ;;  %v2311_v8 = vpop.f32.mrf.mxu2  ;;  %v11473_v18 = vld [vmem:[%s21093_s0 + $0x368] sm:$0xf0] }
 0x300   :  { %v2312_v16 = vadd.f32 %v2311_v8, %v2222_v46  ;;  %v2225_v61 = vpop.f32.mrf.mxu0  ;;  %v16491_v63 = vor.u32 %v14339_v35, %v11473_v18  ;;  %v11945_v46 = vld [vmem:[%s21092_s1 + $0x2c0] sm:$0xf] }
 0x302   :  { %v16480_v17 = vadd.f32 %v2312_v16, %v15940_v25 }
 0x303   :  { %2264 = vmatmul.bf16.gmra.mxu0 %v11302_v39  ;;  %v14438_v39 = vld [vmem:[%s21092_s1 + $0x2c4] sm:$0xf0] }
 0x304   :  { %v2143_v3 = vpop.f32.mrf.mxu3  ;;  %11417 = vmatmul.msk.bf16.gmra.mxu2 %vm323_vm0, %v11306_v9  ;;  %v14437_v9 = vld [vmem:[%s21092_s1 + $0x2c4] sm:$0xf] }
 0x305   :  { %v2144_v62 = vadd.f32 %v2143_v3, %v2054_v20  ;;  %v2057_v36 = vpop.f32.mrf.mxu1  ;;  %v11946_v20 = vor.u32 %v14438_v39, %v11945_v46 }
 0x307   :  { %v16494_v25 = vadd.f32 %v2144_v62, %v15954_v40  ;;  %v2314_v53 = vpop.f32.mrf.mxu2  ;;  %v11947_v40 = vld [vmem:[%s21092_s1 + $0x2c8] sm:$0xf0]  ;;  %3868 = vmatpush.bf16.msra.mxu3 %v11946_v20  ;;  %v11479_v20 = vld [vmem:[%s21093_s0 + $0x370] sm:$0xf] }
 0x308   :  { %v2315_v4 = vadd.f32 %v2314_v53, %v2225_v61  ;;  %2898 = vmatmul.bf16.vlgmr.msrb.gmra.mxu1 %v16489_v12  ;;  %v2227_v13 = vpop.f32.mrf.mxu0  ;;  %v11950_v8 = vor.u32 %v14437_v9, %v11947_v40  ;;  %v11937_v61 = vld [vmem:[%s21092_s1 + $0x2b0] sm:$0xf]  ;;  %v14342_v40 = vld [vmem:[%s21093_s0 + $0x374] sm:$0xf0] }
 0x309   :  { %11669 = vmatmul.msk.bf16.vlgmr.msrb.gmra.mxu3 %vm323_vm0, %v16491_v63  ;;  %v11938_v35 = vor.u32 %v14436_v60, %v11937_v61  ;;  %v11480_v61 = vor.u32 %v14342_v40, %v11479_v20 }
 0x30a   :  { %v16512_v16 = vadd.f32 %v2315_v4, %v15972_v7  ;;  %4046 = vmatpush.bf16.msra.mxu2 %v11950_v8  ;;  %v11939_v7 = vld [vmem:[%s21092_s1 + $0x2b8] sm:$0xf0] }
 0x30b   :  { %v11942_v3 = vor.u32 %v14435_v48, %v11939_v7  ;;  %3772 = vmatpush.bf16.msra.mxu1 %v11938_v35 }
 0x30c   :  { %v2146_v18 = vpop.f32.mrf.mxu3 }
 0x30d   :  { %v2147_v62 = vadd.f32 %v2146_v18, %v2057_v36  ;;  %v2059_v53 = vpop.f32.mrf.mxu1  ;;  %3950 = vmatpush.bf16.msra.mxu0 %v11942_v3  ;;  %v14341_v36 = vld [vmem:[%s21093_s0 + $0x374] sm:$0xf] }
 0x30f   :  { %v16527_v46 = vadd.f32 %v2147_v62, %v15987_v29  ;;  %v2316_v39 = vpop.f32.mrf.mxu2  ;;  %v11481_v29 = vld [vmem:[%s21093_s0 + $0x378] sm:$0xf0] }
 0x310   :  { %v2317_v9 = vadd.f32 %v2316_v39, %v2227_v13  ;;  %v2230_v4 = vpop.f32.mrf.mxu0  ;;  %v11484_v35 = vor.u32 %v14341_v36, %v11481_v29  ;;  %v14343_v36 = vld [vmem:[%s21093_s0 + $0x384] sm:$0xf] }
 0x312   :  { %v16536_v8 = vadd.f32 %v2317_v9, %v15996_v52 }
 0x313   :  { %2269 = vmatmul.bf16.gmra.mxu0 %v16457_v0 }
 0x314   :  { %v2148_v13 = vpop.f32.mrf.mxu3  ;;  %11418 = vmatmul.msk.bf16.gmra.mxu2 %vm323_vm0, %v16459_v22 }
 0x315   :  { %v2149_v60 = vadd.f32 %v2148_v13, %v2059_v53  ;;  %v2062_v48 = vpop.f32.mrf.mxu1 }
 0x317   :  { %v16548_v52 = vadd.f32 %v2149_v60, %v16008_v32  ;;  %v2319_v7 = vpop.f32.mrf.mxu2  ;;  %v11487_v32 = vld [vmem:[%s21093_s0 + $0x380] sm:$0xf] }
 0x318   :  { %v2320_v18 = vadd.f32 %v2319_v7, %v2230_v4  ;;  %2903 = vmatmul.bf16.gmra.mxu1 %v11480_v61  ;;  %v2232_v3 = vpop.f32.mrf.mxu0  ;;  %v14344_v4 = vld [vmem:[%s21093_s0 + $0x384] sm:$0xf0] }
 0x319   :  { %11670 = vmatmul.msk.bf16.gmra.mxu3 %vm323_vm0, %v11484_v35  ;;  %v11488_v13 = vor.u32 %v14344_v4, %v11487_v32  ;;  %v11931_v32 = vld [vmem:[%s21092_s1 + $0x2a8] sm:$0xf0] }
 0x31a   :  { %v16552_v62 = vadd.f32 %v2320_v18, %v16012_v27 }
 0x31c   :  { %v2151_v0 = vpop.f32.mrf.mxu3 }
 0x31d   :  { %v2152_v39 = vadd.f32 %v2151_v0, %v2062_v48  ;;  %v2064_v9 = vpop.f32.mrf.mxu1 }
 0x31f   :  { %v16555_v22 = vadd.f32 %v2152_v39, %v16015_v49  ;;  %v2321_v53 = vpop.f32.mrf.mxu2  ;;  %v11489_v49 = vld [vmem:[%s21093_s0 + $0x388] sm:$0xf0] }
 0x320   :  { %v2322_v20 = vadd.f32 %v2321_v53, %v2232_v3  ;;  %v2235_v40 = vpop.f32.mrf.mxu0  ;;  %v11492_v7 = vor.u32 %v14343_v36, %v11489_v49  ;;  %v21174_v53 = vld [vmem:[#allocation31_spill] sm:$0xff] }
 0x321   :  { %21170 = vst [vmem:[#allocation28_spill] sm:$0xff] %v16555_v22 }
 0x322   :  { %v16564_v27 = vadd.f32 %v2322_v20, %v16024_v55  ;;  %v21172_v55 = vld [vmem:[#allocation30_spill] sm:$0xff] }
 0x323   :  { %3076 = vmatmul.bf16.vlgmr.msrb.gmra.mxu0 %v16489_v12  ;;  %v11929_v12 = vld [vmem:[%s21092_s1 + $0x2a0] sm:$0xf] }
 0x324   :  { %21171 = vst [vmem:[#allocation29_spill] sm:$0xff] %v16564_v27  ;;  %v2153_v29 = vpop.f32.mrf.mxu3  ;;  %11685 = vmatmul.msk.bf16.vlgmr.msrb.gmra.mxu2 %vm323_vm0, %v16491_v63  ;;  %v14434_v63 = vld [vmem:[%s21092_s1 + $0x2a4] sm:$0xf0] }
 0x325   :  { %v2154_v60 = vadd.f32 %v2153_v29, %v2064_v9  ;;  %v2067_v48 = vpop.f32.mrf.mxu1  ;;  %v14433_v9 = vld [vmem:[%s21092_s1 + $0x2a4] sm:$0xf] }
 0x326   :  { %v11934_v36 = vor.u32 %v14433_v9, %v11931_v32 }
 0x327   :  { %v16576_v18 = vadd.f32 %v2154_v60, %v21172_v55  ;;  %v2324_v3 = vpop.f32.mrf.mxu2  ;;  %v21176_v60 = vld [vmem:[#allocation11_spill] sm:$0xff] }
 0x328   :  { %v2325_v0 = vadd.f32 %v2324_v3, %v2235_v40  ;;  %2908 = vmatmul.bf16.gmra.mxu1 %v11488_v13  ;;  %v2237_v39 = vpop.f32.mrf.mxu0  ;;  %v11930_v40 = vor.u32 %v14434_v63, %v11929_v12  ;;  %3951 = vmatpush.bf16.msra.mxu0 %v11934_v36  ;;  %v11495_v12 = vld [vmem:[%s21093_s0 + $0x390] sm:$0xf]  ;;  %v14346_v63 = vld [vmem:[%s21093_s0 + $0x394] sm:$0xf0] }
 0x329   :  { %21173 = vst [vmem:[#allocation30_spill] sm:$0xff] %v16576_v18  ;;  %11671 = vmatmul.msk.bf16.gmra.mxu3 %vm323_vm0, %v11492_v7  ;;  %v11496_v32 = vor.u32 %v14346_v63, %v11495_v12 }
 0x32a   :  { %v16580_v20 = vadd.f32 %v2325_v0, %v21174_v53  ;;  %3773 = vmatpush.bf16.msra.mxu1 %v11930_v40 }
 0x32c   :  { %21175 = vst [vmem:[#allocation31_spill] sm:$0xff] %v16580_v20  ;;  %v2156_v4 = vpop.f32.mrf.mxu3  ;;  %v21178_v20 = vld [vmem:[#allocation8_spill] sm:$0xff] }
 0x32d   :  { %v2157_v49 = vadd.f32 %v2156_v4, %v2067_v48  ;;  %v2069_v29 = vpop.f32.mrf.mxu1  ;;  %v14345_v48 = vld [vmem:[%s21093_s0 + $0x394] sm:$0xf] }
 0x32f   :  { %v16595_v55 = vadd.f32 %v2157_v49, %v21176_v60  ;;  %v2326_v3 = vpop.f32.mrf.mxu2  ;;  %v21180_v60 = vld [vmem:[#allocation13_spill] sm:$0xff] }
 0x330   :  { %v2327_v0 = vadd.f32 %v2326_v3, %v2237_v39  ;;  %v2240_v53 = vpop.f32.mrf.mxu0  ;;  %v11497_v39 = vld [vmem:[%s21093_s0 + $0x398] sm:$0xf0] }
 0x331   :  { %21177 = vst [vmem:[#allocation11_spill] sm:$0xff] %v16595_v55  ;;  %v11500_v49 = vor.u32 %v14345_v48, %v11497_v39  ;;  %v21181_v55 = vld [vmem:[#allocation9_spill] sm:$0xff] }
 0x332   :  { %v16604_v9 = vadd.f32 %v2327_v0, %v21178_v20  ;;  %v14348_v39 = vld [vmem:[%s21093_s0 + $0x3a4] sm:$0xf0] }
 0x333   :  { %3081 = vmatmul.bf16.gmra.mxu0 %v11480_v61 }
 0x334   :  { %21179 = vst [vmem:[#allocation8_spill] sm:$0xff] %v16604_v9  ;;  %v2158_v40 = vpop.f32.mrf.mxu3  ;;  %11686 = vmatmul.msk.bf16.gmra.mxu2 %vm323_vm0, %v11484_v35  ;;  %v21182_v35 = vld [vmem:[#allocation15_spill] sm:$0xff] }
 0x335   :  { %v2159_v4 = vadd.f32 %v2158_v40, %v2069_v29  ;;  %v2072_v36 = vpop.f32.mrf.mxu1  ;;  %v21184_v40 = vld [vmem:[#allocation10_spill] sm:$0xff] }
 0x337   :  { %v16614_v3 = vadd.f32 %v2159_v4, %v21180_v60  ;;  %v2329_v20 = vpop.f32.mrf.mxu2  ;;  %v14347_v4 = vld [vmem:[%s21093_s0 + $0x3a4] sm:$0xf] }
 0x338   :  { %v2330_v0 = vadd.f32 %v2329_v20, %v2240_v53  ;;  %2913 = vmatmul.bf16.gmra.mxu1 %v11496_v32  ;;  %v2242_v9 = vpop.f32.mrf.mxu0  ;;  %v11503_v53 = vld [vmem:[%s21093_s0 + $0x3a0] sm:$0xf] }
 0x339   :  { %11672 = vmatmul.msk.bf16.gmra.mxu3 %vm323_vm0, %v11500_v49 }
 0x33a   :  { %v16618_v18 = vadd.f32 %v2330_v0, %v21181_v55 }
 0x33c   :  { %v2161_v61 = vpop.f32.mrf.mxu3 }
 0x33d   :  { %v2162_v27 = vadd.f32 %v2161_v61, %v2072_v36  ;;  %v2074_v22 = vpop.f32.mrf.mxu1  ;;  %v11504_v36 = vor.u32 %v14348_v39, %v11503_v53  ;;  %v21186_v61 = vld [vmem:[#allocation17_spill] sm:$0xff]  ;;  %v11923_v53 = vld [vmem:[%s21092_s1 + $0x298] sm:$0xf0] }
 0x33f   :  { %v16621_v12 = vadd.f32 %v2162_v27, %v21182_v35  ;;  %v2331_v29 = vpop.f32.mrf.mxu2  ;;  %v11505_v27 = vld [vmem:[%s21093_s0 + $0x3a8] sm:$0xf0] }
 0x340   :  { %v2332_v63 = vadd.f32 %v2331_v29, %v2242_v9  ;;  %v2245_v48 = vpop.f32.mrf.mxu0  ;;  %v11508_v0 = vor.u32 %v14347_v4, %v11505_v27 }
 0x341   :  { %21183 = vst [vmem:[#allocation13_spill] sm:$0xff] %v16621_v12 }
 0x342   :  { %v16630_v55 = vadd.f32 %v2332_v63, %v21184_v40 }
 0x343   :  { %3086 = vmatmul.bf16.gmra.mxu0 %v11488_v13  ;;  %v11921_v13 = vld [vmem:[%s21092_s1 + $0x290] sm:$0xf] }
 0x344   :  { %21185 = vst [vmem:[#allocation9_spill] sm:$0xff] %v16630_v55  ;;  %v2163_v9 = vpop.f32.mrf.mxu3  ;;  %11687 = vmatmul.msk.bf16.gmra.mxu2 %vm323_vm0, %v11492_v7  ;;  %v21188_v55 = vld [vmem:[#allocation12_spill] sm:$0xff]  ;;  %v14431_v7 = vld [vmem:[%s21092_s1 + $0x294] sm:$0xf] }
 0x345   :  { %v2164_v60 = vadd.f32 %v2163_v9, %v2074_v22  ;;  %v2077_v20 = vpop.f32.mrf.mxu1  ;;  %v14432_v22 = vld [vmem:[%s21092_s1 + $0x294] sm:$0xf0] }
 0x346   :  { %v21190_v9 = vld [vmem:[#allocation19_spill] sm:$0xff] }
 0x347   :  { %v16640_v35 = vadd.f32 %v2164_v60, %v21186_v61  ;;  %v2334_v29 = vpop.f32.mrf.mxu2 }
 0x348   :  { %v2335_v63 = vadd.f32 %v2334_v29, %v2245_v48  ;;  %2918 = vmatmul.bf16.gmra.mxu1 %v11504_v36  ;;  %v2247_v40 = vpop.f32.mrf.mxu0  ;;  %v11922_v48 = vor.u32 %v14432_v22, %v11921_v13  ;;  %v11511_v13 = vld [vmem:[%s21093_s0 + $0x3b0] sm:$0xf]  ;;  %v14350_v22 = vld [vmem:[%s21093_s0 + $0x3b4] sm:$0xf0] }
 0x349   :  { %21187 = vst [vmem:[#allocation15_spill] sm:$0xff] %v16640_v35  ;;  %11673 = vmatmul.msk.bf16.gmra.mxu3 %vm323_vm0, %v11508_v0 }
 0x34a   :  { %v16644_v12 = vadd.f32 %v2335_v63, %v21188_v55  ;;  %v11926_v55 = vor.u32 %v14431_v7, %v11923_v53  ;;  %3774 = vmatpush.bf16.msra.mxu1 %v11922_v48  ;;  %v11512_v53 = vor.u32 %v14350_v22, %v11511_v13 }
 0x34c   :  { %21189 = vst [vmem:[#allocation10_spill] sm:$0xff] %v16644_v12  ;;  %v2166_v39 = vpop.f32.mrf.mxu3  ;;  %3952 = vmatpush.bf16.msra.mxu0 %v11926_v55  ;;  %v21192_v12 = vld [vmem:[#allocation14_spill] sm:$0xff] }
 0x34d   :  { %v2167_v4 = vadd.f32 %v2166_v39, %v2077_v20  ;;  %v2079_v27 = vpop.f32.mrf.mxu1  ;;  %v14349_v20 = vld [vmem:[%s21093_s0 + $0x3b4] sm:$0xf] }
 0x34f   :  { %v16659_v60 = vadd.f32 %v2167_v4, %v21190_v9  ;;  %v2336_v61 = vpop.f32.mrf.mxu2 }
 0x350   :  { %v2337_v29 = vadd.f32 %v2336_v61, %v2247_v40  ;;  %v2250_v63 = vpop.f32.mrf.mxu0  ;;  %v11513_v40 = vld [vmem:[%s21093_s0 + $0x3b8] sm:$0xf0] }
 0x351   :  { %21191 = vst [vmem:[#allocation17_spill] sm:$0xff] %v16659_v60  ;;  %v11516_v4 = vor.u32 %v14349_v20, %v11513_v40  ;;  %v21194_v20 = vld [vmem:[#allocation21_spill] sm:$0xff]  ;;  %v14351_v40 = vld [vmem:[%s21093_s0 + $0x3c4] sm:$0xf] }
 0x352   :  { %v16668_v7 = vadd.f32 %v2337_v29, %v21192_v12 }
 0x353   :  { %3091 = vmatmul.bf16.gmra.mxu0 %v11496_v32 }
 0x354   :  { %21193 = vst [vmem:[#allocation12_spill] sm:$0xff] %v16668_v7  ;;  %v2168_v48 = vpop.f32.mrf.mxu3  ;;  %11688 = vmatmul.msk.bf16.gmra.mxu2 %vm323_vm0, %v11500_v49 }
 0x355   :  { %v2169_v39 = vadd.f32 %v2168_v48, %v2079_v27  ;;  %v2082_v55 = vpop.f32.mrf.mxu1 }
 0x357   :  { %v16678_v9 = vadd.f32 %v2169_v39, %v16138_v56  ;;  %v2339_v12 = vpop.f32.mrf.mxu2  ;;  %v11519_v56 = vld [vmem:[%s21093_s0 + $0x3c0] sm:$0xf] }
 0x358   :  { %v2340_v61 = vadd.f32 %v2339_v12, %v2250_v63  ;;  %2923 = vmatmul.bf16.gmra.mxu1 %v11512_v53  ;;  %v2252_v29 = vpop.f32.mrf.mxu0  ;;  %v14352_v63 = vld [vmem:[%s21093_s0 + $0x3c4] sm:$0xf0] }
 0x359   :  { %11674 = vmatmul.msk.bf16.gmra.mxu3 %vm323_vm0, %v11516_v4  ;;  %v11520_v48 = vor.u32 %v14352_v63, %v11519_v56  ;;  %v11915_v56 = vld [vmem:[%s21092_s1 + $0x288] sm:$0xf0] }
 0x35a   :  { %v16682_v7 = vadd.f32 %v2340_v61, %v16142_v28  ;;  %v21196_v61 = vld [vmem:[#allocation16_spill] sm:$0xff] }
 0x35c   :  { %v2171_v32 = vpop.f32.mrf.mxu3 }
 0x35d   :  { %v2172_v60 = vadd.f32 %v2171_v32, %v2082_v55  ;;  %v2084_v35 = vpop.f32.mrf.mxu1 }
 0x35f   :  { %v16685_v49 = vadd.f32 %v2172_v60, %v16145_v5  ;;  %v2341_v27 = vpop.f32.mrf.mxu2  ;;  %v11521_v5 = vld [vmem:[%s21093_s0 + $0x3c8] sm:$0xf0] }
 0x360   :  { %v2342_v13 = vadd.f32 %v2341_v27, %v2252_v29  ;;  %v2255_v22 = vpop.f32.mrf.mxu0  ;;  %v11524_v12 = vor.u32 %v14351_v40, %v11521_v5 }
 0x362   :  { %v16694_v28 = vadd.f32 %v2342_v13, %v21194_v20  ;;  %v21198_v20 = vld [vmem:[#allocation23_spill] sm:$0xff] }
 0x363   :  { %3096 = vmatmul.bf16.gmra.mxu0 %v11504_v36  ;;  %v11913_v36 = vld [vmem:[%s21092_s1 + $0x280] sm:$0xf] }
 0x364   :  { %21195 = vst [vmem:[#allocation19_spill] sm:$0xff] %v16694_v28  ;;  %v2173_v60 = vpop.f32.mrf.mxu3  ;;  %11689 = vmatmul.msk.bf16.gmra.mxu2 %vm323_vm0, %v11508_v0  ;;  %v14430_v0 = vld [vmem:[%s21092_s1 + $0x284] sm:$0xf0] }
 0x365   :  { %v2174_v39 = vadd.f32 %v2173_v60, %v2084_v35  ;;  %v2087_v55 = vpop.f32.mrf.mxu1  ;;  %v14429_v35 = vld [vmem:[%s21092_s1 + $0x284] sm:$0xf] }
 0x366   :  { %v11918_v40 = vor.u32 %v14429_v35, %v11915_v56 }
 0x367   :  { %v16704_v29 = vadd.f32 %v2174_v39, %v21196_v61  ;;  %v2344_v32 = vpop.f32.mrf.mxu2  ;;  %v21200_v39 = vld [vmem:[#allocation18_spill] sm:$0xff] }
 0x368   :  { %v2345_v27 = vadd.f32 %v2344_v32, %v2255_v22  ;;  %2928 = vmatmul.bf16.gmra.mxu1 %v11520_v48  ;;  %v2257_v13 = vpop.f32.mrf.mxu0  ;;  %v11914_v22 = vor.u32 %v14430_v0, %v11913_v36  ;;  %3953 = vmatpush.bf16.msra.mxu0 %v11918_v40  ;;  %v11527_v36 = vld [vmem:[%s21093_s0 + $0x3d0] sm:$0xf]  ;;  %v14354_v0 = vld [vmem:[%s21093_s0 + $0x3d4] sm:$0xf0] }
 0x369   :  { %21197 = vst [vmem:[#allocation14_spill] sm:$0xff] %v16704_v29  ;;  %11675 = vmatmul.msk.bf16.gmra.mxu3 %vm323_vm0, %v11524_v12  ;;  %v11528_v56 = vor.u32 %v14354_v0, %v11527_v36 }
 0x36a   :  { %v16708_v28 = vadd.f32 %v2345_v27, %v21198_v20  ;;  %3775 = vmatpush.bf16.msra.mxu1 %v11914_v22 }
 0x36c   :  { %21199 = vst [vmem:[#allocation21_spill] sm:$0xff] %v16708_v28  ;;  %v2176_v63 = vpop.f32.mrf.mxu3  ;;  %v21202_v28 = vld [vmem:[#allocation20_spill] sm:$0xff] }
 0x36d   :  { %v2177_v5 = vadd.f32 %v2176_v63, %v2087_v55  ;;  %v2089_v60 = vpop.f32.mrf.mxu1  ;;  %v14353_v55 = vld [vmem:[%s21093_s0 + $0x3d4] sm:$0xf] }
 0x36f   :  { %v16723_v61 = vadd.f32 %v2177_v5, %v21200_v39  ;;  %v2346_v32 = vpop.f32.mrf.mxu2 }
 0x370   :  { %v2347_v27 = vadd.f32 %v2346_v32, %v2257_v13  ;;  %v2260_v20 = vpop.f32.mrf.mxu0  ;;  %v11529_v13 = vld [vmem:[%s21093_s0 + $0x3d8] sm:$0xf0] }
 0x371   :  { %21201 = vst [vmem:[#allocation16_spill] sm:$0xff] %v16723_v61  ;;  %v11532_v5 = vor.u32 %v14353_v55, %v11529_v13  ;;  %v14355_v55 = vld [vmem:[%s21093_s0 + $0x3e4] sm:$0xf] }
 0x372   :  { %v16732_v35 = vadd.f32 %v2347_v27, %v21202_v28 }
 0x373   :  { %3101 = vmatmul.bf16.gmra.mxu0 %v11512_v53 }
 0x374   :  { %21203 = vst [vmem:[#allocation23_spill] sm:$0xff] %v16732_v35  ;;  %v2178_v22 = vpop.f32.mrf.mxu3  ;;  %11690 = vmatmul.msk.bf16.gmra.mxu2 %vm323_vm0, %v11516_v4 }
 0x375   :  { %v2179_v63 = vadd.f32 %v2178_v22, %v2089_v60  ;;  %v2092_v40 = vpop.f32.mrf.mxu1 }
 0x377   :  { %v16742_v39 = vadd.f32 %v2179_v63, %v16202_v33  ;;  %v2349_v28 = vpop.f32.mrf.mxu2  ;;  %v11535_v33 = vld [vmem:[%s21093_s0 + $0x3e0] sm:$0xf] }
 0x378   :  { %v2350_v32 = vadd.f32 %v2349_v28, %v2260_v20  ;;  %2933 = vmatmul.bf16.gmra.mxu1 %v11528_v56  ;;  %v2262_v27 = vpop.f32.mrf.mxu0  ;;  %v14356_v20 = vld [vmem:[%s21093_s0 + $0x3e4] sm:$0xf0]  ;;  %v21204_v28 = vld [vmem:[#allocation22_spill] sm:$0xff] }
 0x379   :  { %11676 = vmatmul.msk.bf16.gmra.mxu3 %vm323_vm0, %v11532_v5  ;;  %v11536_v13 = vor.u32 %v14356_v20, %v11535_v33  ;;  %v11907_v33 = vld [vmem:[%s21092_s1 + $0x278] sm:$0xf0] }
 0x37a   :  { %v16746_v35 = vadd.f32 %v2350_v32, %v16206_v6 }
 0x37c   :  { %v2181_v53 = vpop.f32.mrf.mxu3 }
 0x37d   :  { %v2182_v61 = vadd.f32 %v2181_v53, %v2092_v40  ;;  %v2094_v29 = vpop.f32.mrf.mxu1 }
 0x37f   :  { %v16749_v4 = vadd.f32 %v2182_v61, %v16209_v2  ;;  %v2351_v60 = vpop.f32.mrf.mxu2  ;;  %v11537_v2 = vld [vmem:[%s21093_s0 + $0x3e8] sm:$0xf0] }
 0x380   :  { %v2352_v36 = vadd.f32 %v2351_v60, %v2262_v27  ;;  %v2265_v0 = vpop.f32.mrf.mxu0  ;;  %v11540_v40 = vor.u32 %v14355_v55, %v11537_v2  ;;  %v21206_v60 = vld [vmem:[#allocation24_spill] sm:$0xff] }
 0x382   :  { %v16758_v6 = vadd.f32 %v2352_v36, %v16218_v57 }
 0x383   :  { %3106 = vmatmul.bf16.gmra.mxu0 %v11520_v48  ;;  %v11905_v48 = vld [vmem:[%s21092_s1 + $0x270] sm:$0xf] }
 0x384   :  { %v2183_v61 = vpop.f32.mrf.mxu3  ;;  %11691 = vmatmul.msk.bf16.gmra.mxu2 %vm323_vm0, %v11524_v12  ;;  %v14428_v12 = vld [vmem:[%s21092_s1 + $0x274] sm:$0xf0] }
 0x385   :  { %v2184_v22 = vadd.f32 %v2183_v61, %v2094_v29  ;;  %v2899_v63 = vpop.f32.mrf.mxu1  ;;  %v14427_v29 = vld [vmem:[%s21092_s1 + $0x274] sm:$0xf] }
 0x386   :  { %v11910_v55 = vor.u32 %v14427_v29, %v11907_v33 }
 0x387   :  { %v16768_v32 = vadd.f32 %v2184_v22, %v21204_v28  ;;  %v2354_v57 = vpop.f32.mrf.mxu2  ;;  %v21208_v22 = vld [vmem:[#allocation25_spill] sm:$0xff] }
 0x388   :  { %v2355_v27 = vadd.f32 %v2354_v57, %v2265_v0  ;;  %2938 = vmatmul.bf16.gmra.mxu1 %v11536_v13  ;;  %v2267_v53 = vpop.f32.mrf.mxu0  ;;  %v11906_v0 = vor.u32 %v14428_v12, %v11905_v48  ;;  %3954 = vmatpush.bf16.msra.mxu0 %v11910_v55  ;;  %v11543_v48 = vld [vmem:[%s21093_s0 + $0x3f0] sm:$0xf]  ;;  %v14358_v12 = vld [vmem:[%s21093_s0 + $0x3f4] sm:$0xf0] }
 0x389   :  { %21205 = vst [vmem:[#allocation18_spill] sm:$0xff] %v16768_v32  ;;  %11677 = vmatmul.msk.bf16.gmra.mxu3 %vm323_vm0, %v11540_v40  ;;  %v11544_v33 = vor.u32 %v14358_v12, %v11543_v48 }
 0x38a   :  { %v16772_v36 = vadd.f32 %v2355_v27, %v21206_v60  ;;  %3776 = vmatpush.bf16.msra.mxu1 %v11906_v0 }
 0x38c   :  { %21207 = vst [vmem:[#allocation20_spill] sm:$0xff] %v16772_v36  ;;  %v2988_v20 = vpop.f32.mrf.mxu3  ;;  %v21210_v36 = vld [vmem:[#allocation26_spill] sm:$0xff] }
 0x38d   :  { %v2989_v2 = vadd.f32 %v2988_v20, %v2899_v63  ;;  %v2901_v61 = vpop.f32.mrf.mxu1  ;;  %v14357_v63 = vld [vmem:[%s21093_s0 + $0x3f4] sm:$0xf] }
 0x38f   :  { %v16787_v28 = vadd.f32 %v2989_v2, %v21208_v22  ;;  %v2356_v57 = vpop.f32.mrf.mxu2 }
 0x390   :  { %v2357_v27 = vadd.f32 %v2356_v57, %v2267_v53  ;;  %v2270_v60 = vpop.f32.mrf.mxu0  ;;  %v11545_v53 = vld [vmem:[%s21093_s0 + $0x3f8] sm:$0xf0] }
 0x391   :  { %21209 = vst [vmem:[#allocation22_spill] sm:$0xff] %v16787_v28  ;;  %v11548_v2 = vor.u32 %v14357_v63, %v11545_v53  ;;  %v14359_v63 = vld [vmem:[%s21093_s0 + $0x404] sm:$0xf] }
 0x392   :  { %v16796_v29 = vadd.f32 %v2357_v27, %v21210_v36 }
 0x393   :  { %3111 = vmatmul.bf16.gmra.mxu0 %v11528_v56 }
 0x394   :  { %21211 = vst [vmem:[#allocation24_spill] sm:$0xff] %v16796_v29  ;;  %v2990_v0 = vpop.f32.mrf.mxu3  ;;  %11692 = vmatmul.msk.bf16.gmra.mxu2 %vm323_vm0, %v11532_v5 }
 0x395   :  { %v2991_v20 = vadd.f32 %v2990_v0, %v2901_v61  ;;  %v2904_v55 = vpop.f32.mrf.mxu1 }
 0x397   :  { %v16806_v22 = vadd.f32 %v2991_v20, %v16266_v1  ;;  %v2359_v36 = vpop.f32.mrf.mxu2  ;;  %v11551_v1 = vld [vmem:[%s21093_s0 + $0x400] sm:$0xf] }
 0x398   :  { %v2360_v57 = vadd.f32 %v2359_v36, %v2270_v60  ;;  %2943 = vmatmul.bf16.gmra.mxu1 %v11544_v33  ;;  %v2272_v27 = vpop.f32.mrf.mxu0  ;;  %v14360_v60 = vld [vmem:[%s21093_s0 + $0x404] sm:$0xf0] }
 0x399   :  { %11678 = vmatmul.msk.bf16.gmra.mxu3 %vm323_vm0, %v11548_v2  ;;  %v11552_v53 = vor.u32 %v14360_v60, %v11551_v1 }
 0x39a   :  { %v16810_v29 = vadd.f32 %v2360_v57, %v16270_v11 }
 0x39c   :  { %v2993_v56 = vpop.f32.mrf.mxu3 }
 0x39d   :  { %v2994_v28 = vadd.f32 %v2993_v56, %v2904_v55  ;;  %v2906_v32 = vpop.f32.mrf.mxu1 }
 0x39f   :  { %v16813_v5 = vadd.f32 %v2994_v28, %v16273_v59  ;;  %v2361_v61 = vpop.f32.mrf.mxu2  ;;  %v11553_v59 = vld [vmem:[%s21093_s0 + $0x408] sm:$0xf0] }
 0x3a0   :  { %v2362_v48 = vadd.f32 %v2361_v61, %v2272_v27  ;;  %v3077_v12 = vpop.f32.mrf.mxu0  ;;  %v11556_v55 = vor.u32 %v14359_v63, %v11553_v59  ;;  %v11899_v61 = vld [vmem:[%s21092_s1 + $0x268] sm:$0xf0] }
 0x3a2   :  { %v16822_v11 = vadd.f32 %v2362_v48, %v16282_v38 }
 0x3a3   :  { %3116 = vmatmul.bf16.gmra.mxu0 %v11536_v13  ;;  %v11897_v13 = vld [vmem:[%s21092_s1 + $0x260] sm:$0xf] }
 0x3a4   :  { %v2995_v28 = vpop.f32.mrf.mxu3  ;;  %11693 = vmatmul.msk.bf16.gmra.mxu2 %vm323_vm0, %v11540_v40  ;;  %v14426_v40 = vld [vmem:[%s21092_s1 + $0x264] sm:$0xf0] }
 0x3a5   :  { %v2996_v0 = vadd.f32 %v2995_v28, %v2906_v32  ;;  %v2909_v20 = vpop.f32.mrf.mxu1  ;;  %v11898_v32 = vor.u32 %v14426_v40, %v11897_v13 }
 0x3a7   :  { %v16832_v36 = vadd.f32 %v2996_v0, %v16292_v37  ;;  %v3166_v38 = vpop.f32.mrf.mxu2  ;;  %v14425_v37 = vld [vmem:[%s21092_s1 + $0x264] sm:$0xf]  ;;  %3777 = vmatpush.bf16.msra.mxu1 %v11898_v32  ;;  %v11559_v0 = vld [vmem:[%s21093_s0 + $0x410] sm:$0xf] }
 0x3a8   :  { %v3167_v57 = vadd.f32 %v3166_v38, %v3077_v12  ;;  %2948 = vmatmul.bf16.gmra.mxu1 %v11552_v53  ;;  %v3079_v27 = vpop.f32.mrf.mxu0  ;;  %v14362_v38 = vld [vmem:[%s21093_s0 + $0x414] sm:$0xf0] }
 0x3a9   :  { %11679 = vmatmul.msk.bf16.gmra.mxu3 %vm323_vm0, %v11556_v55  ;;  %v11560_v40 = vor.u32 %v14362_v38, %v11559_v0 }
 0x3aa   :  { %v16836_v56 = vadd.f32 %v3167_v57, %v16296_v23  ;;  %v11902_v23 = vor.u32 %v14425_v37, %v11899_v61  ;;  %v21212_v57 = vld [vmem:[#allocation27_spill] sm:$0xff] }
 0x3ac   :  { %v2998_v48 = vpop.f32.mrf.mxu3  ;;  %3955 = vmatpush.bf16.msra.mxu0 %v11902_v23 }
 0x3ad   :  { %v2999_v12 = vadd.f32 %v2998_v48, %v2909_v20  ;;  %v2911_v1 = vpop.f32.mrf.mxu1  ;;  %v14361_v20 = vld [vmem:[%s21093_s0 + $0x414] sm:$0xf] }
 0x3af   :  { %v16851_v60 = vadd.f32 %v2999_v12, %v16311_v31  ;;  %v3168_v63 = vpop.f32.mrf.mxu2  ;;  %v11561_v31 = vld [vmem:[%s21093_s0 + $0x418] sm:$0xf0] }
 0x3b0   :  { %v3169_v59 = vadd.f32 %v3168_v63, %v3079_v27  ;;  %v3082_v28 = vpop.f32.mrf.mxu0  ;;  %v11564_v61 = vor.u32 %v14361_v20, %v11561_v31  ;;  %v14363_v20 = vld [vmem:[%s21093_s0 + $0x424] sm:$0xf] }
 0x3b2   :  { %v16860_v13 = vadd.f32 %v3169_v59, %v21212_v57 }
 0x3b3   :  { %3121 = vmatmul.bf16.gmra.mxu0 %v11544_v33 }
 0x3b4   :  { %21213 = vst [vmem:[#allocation25_spill] sm:$0xff] %v16860_v13  ;;  %v3000_v27 = vpop.f32.mrf.mxu3  ;;  %11694 = vmatmul.msk.bf16.gmra.mxu2 %vm323_vm0, %v11548_v2 }
 0x3b5   :  { %v3001_v37 = vadd.f32 %v3000_v27, %v2911_v1  ;;  %v2914_v32 = vpop.f32.mrf.mxu1 }
 0x3b7   :  { %v16870_v48 = vadd.f32 %v3001_v37, %v16330_v30  ;;  %v3171_v23 = vpop.f32.mrf.mxu2  ;;  %v11567_v30 = vld [vmem:[%s21093_s0 + $0x420] sm:$0xf] }
 0x3b8   :  { %v3172_v12 = vadd.f32 %v3171_v23, %v3082_v28  ;;  %2953 = vmatmul.bf16.gmra.mxu1 %v11560_v40  ;;  %v3084_v63 = vpop.f32.mrf.mxu0  ;;  %v14364_v28 = vld [vmem:[%s21093_s0 + $0x424] sm:$0xf0] }
 0x3b9   :  { %11680 = vmatmul.msk.bf16.gmra.mxu3 %vm323_vm0, %v11564_v61  ;;  %v11568_v27 = vor.u32 %v14364_v28, %v11567_v30 }
 0x3ba   :  { %v16874_v59 = vadd.f32 %v3172_v12, %v16334_v19 }
 0x3bc   :  { %v3003_v33 = vpop.f32.mrf.mxu3 }
 0x3bd   :  { %v3004_v57 = vadd.f32 %v3003_v33, %v2914_v32  ;;  %v2916_v13 = vpop.f32.mrf.mxu1 }
 0x3bf   :  { %v16877_v2 = vadd.f32 %v3004_v57, %v16337_v45  ;;  %v3173_v1 = vpop.f32.mrf.mxu2  ;;  %v11569_v45 = vld [vmem:[%s21093_s0 + $0x428] sm:$0xf0] }
 0x3c0   :  { %v3174_v0 = vadd.f32 %v3173_v1, %v3084_v63  ;;  %v3087_v38 = vpop.f32.mrf.mxu0  ;;  %v11572_v23 = vor.u32 %v14363_v20, %v11569_v45  ;;  %v11891_v1 = vld [vmem:[%s21092_s1 + $0x258] sm:$0xf0] }
 0x3c2   :  { %v16886_v19 = vadd.f32 %v3174_v0, %v16346_v51 }
 0x3c3   :  { %3126 = vmatmul.bf16.gmra.mxu0 %v11552_v53  ;;  %v11889_v53 = vld [vmem:[%s21092_s1 + $0x250] sm:$0xf] }
 0x3c4   :  { %v3005_v31 = vpop.f32.mrf.mxu3  ;;  %11695 = vmatmul.msk.bf16.gmra.mxu2 %vm323_vm0, %v11556_v55  ;;  %v14424_v55 = vld [vmem:[%s21092_s1 + $0x254] sm:$0xf0] }
 0x3c5   :  { %v3006_v37 = vadd.f32 %v3005_v31, %v2916_v13  ;;  %v2919_v32 = vpop.f32.mrf.mxu1  ;;  %v11890_v13 = vor.u32 %v14424_v55, %v11889_v53 }
 0x3c7   :  { %v16896_v12 = vadd.f32 %v3006_v37, %v16356_v26  ;;  %v3176_v51 = vpop.f32.mrf.mxu2  ;;  %v14423_v26 = vld [vmem:[%s21092_s1 + $0x254] sm:$0xf]  ;;  %3778 = vmatpush.bf16.msra.mxu1 %v11890_v13  ;;  %v11575_v37 = vld [vmem:[%s21093_s0 + $0x430] sm:$0xf] }
 0x3c8   :  { %v3177_v63 = vadd.f32 %v3176_v51, %v3087_v38  ;;  %2958 = vmatmul.bf16.gmra.mxu1 %v11568_v27  ;;  %v3089_v33 = vpop.f32.mrf.mxu0  ;;  %v14366_v51 = vld [vmem:[%s21093_s0 + $0x434] sm:$0xf0] }
 0x3c9   :  { %11681 = vmatmul.msk.bf16.gmra.mxu3 %vm323_vm0, %v11572_v23  ;;  %v11576_v53 = vor.u32 %v14366_v51, %v11575_v37 }
 0x3ca   :  { %v16900_v57 = vadd.f32 %v3177_v63, %v16360_v42  ;;  %v11894_v42 = vor.u32 %v14423_v26, %v11891_v1 }
 0x3cc   :  { %v3008_v0 = vpop.f32.mrf.mxu3  ;;  %3956 = vmatpush.bf16.msra.mxu0 %v11894_v42 }
 0x3cd   :  { %v3009_v38 = vadd.f32 %v3008_v0, %v2919_v32  ;;  %v2921_v30 = vpop.f32.mrf.mxu1  ;;  %v14365_v32 = vld [vmem:[%s21093_s0 + $0x434] sm:$0xf] }
 0x3cf   :  { %v16915_v28 = vadd.f32 %v3009_v38, %v16375_v10  ;;  %v3178_v20 = vpop.f32.mrf.mxu2  ;;  %v11577_v10 = vld [vmem:[%s21093_s0 + $0x438] sm:$0xf0] }
 0x3d0   :  { %v3179_v45 = vadd.f32 %v3178_v20, %v3089_v33  ;;  %v3092_v31 = vpop.f32.mrf.mxu0  ;;  %v11580_v13 = vor.u32 %v14365_v32, %v11577_v10  ;;  %v14367_v32 = vld [vmem:[%s21093_s0 + $0x444] sm:$0xf]  ;;  %v11881_v10 = vld [vmem:[%s21092_s1 + $0x240] sm:$0xf] }
 0x3d2   :  { %v16924_v63 = vadd.f32 %v3179_v45, %v16384_v43 }
 0x3d3   :  { %3131 = vmatmul.bf16.gmra.mxu0 %v11560_v40 }
 0x3d4   :  { %v3010_v33 = vpop.f32.mrf.mxu3  ;;  %11696 = vmatmul.msk.bf16.gmra.mxu2 %vm323_vm0, %v11564_v61 }
 0x3d5   :  { %v3011_v55 = vadd.f32 %v3010_v33, %v2921_v30  ;;  %v2924_v26 = vpop.f32.mrf.mxu1  ;;  %v14422_v33 = vld [vmem:[%s21092_s1 + $0x244] sm:$0xf0] }
 0x3d7   :  { %v16934_v1 = vadd.f32 %v3011_v55, %v16394_v54  ;;  %v3181_v43 = vpop.f32.mrf.mxu2  ;;  %v11583_v54 = vld [vmem:[%s21093_s0 + $0x440] sm:$0xf] }
 0x3d8   :  { %v3182_v0 = vadd.f32 %v3181_v43, %v3092_v31  ;;  %2963 = vmatmul.bf16.gmra.mxu1 %v11576_v53  ;;  %v3094_v42 = vpop.f32.mrf.mxu0  ;;  %v14368_v31 = vld [vmem:[%s21093_s0 + $0x444] sm:$0xf0] }
 0x3d9   :  { %11682 = vmatmul.msk.bf16.gmra.mxu3 %vm323_vm0, %v11580_v13 }
 0x3da   :  { %v16938_v38 = vadd.f32 %v3182_v0, %v16398_v50 }
 0x3dc   :  { %v3013_v40 = vpop.f32.mrf.mxu3 }
 0x3dd   :  { %v3014_v20 = vadd.f32 %v3013_v40, %v2924_v26  ;;  %v2926_v45 = vpop.f32.mrf.mxu1  ;;  %v11882_v26 = vor.u32 %v14422_v33, %v11881_v10  ;;  %v11591_v33 = vld [vmem:[%s21093_s0 + $0x450] sm:$0xf] }
 0x3df   :  { %v16941_v61 = vadd.f32 %v3014_v20, %v16401_v21  ;;  %v3183_v30 = vpop.f32.mrf.mxu2  ;;  %v11585_v21 = vld [vmem:[%s21093_s0 + $0x448] sm:$0xf0]  ;;  %3779 = vmatpush.bf16.msra.mxu1 %v11882_v26 }
 0x3e0   :  { %v3184_v37 = vadd.f32 %v3183_v30, %v3094_v42  ;;  %v3097_v51 = vpop.f32.mrf.mxu0  ;;  %v11588_v42 = vor.u32 %v14367_v32, %v11585_v21 }
 0x3e2   :  { %v16950_v50 = vadd.f32 %v3184_v37, %v16410_v24  ;;  %v11584_v24 = vor.u32 %v14368_v31, %v11583_v54 }
 0x3e3   :  { %3136 = vmatmul.bf16.gmra.mxu0 %v11568_v27 }
 0x3e4   :  { %v3015_v55 = vpop.f32.mrf.mxu3  ;;  %11697 = vmatmul.msk.bf16.gmra.mxu2 %vm323_vm0, %v11572_v23  ;;  %v14421_v23 = vld [vmem:[%s21092_s1 + $0x244] sm:$0xf] }
 0x3e5   :  { %v3016_v43 = vadd.f32 %v3015_v55, %v2926_v45  ;;  %v2929_v0 = vpop.f32.mrf.mxu1  ;;  %v11883_v45 = vld [vmem:[%s21092_s1 + $0x248] sm:$0xf0]  ;;  %v14370_v55 = vld [vmem:[%s21093_s0 + $0x454] sm:$0xf0] }
 0x3e6   :  { %v11886_v54 = vor.u32 %v14421_v23, %v11883_v45 }
 0x3e7   :  { %v16966_v40 = vadd.f32 %v3016_v43, %v16426_v15  ;;  %v3186_v27 = vpop.f32.mrf.mxu2  ;;  %v14369_v43 = vld [vmem:[%s21093_s0 + $0x454] sm:$0xf] }
 0x3e8   :  { %v3187_v20 = vadd.f32 %v3186_v27, %v3097_v51  ;;  %2968 = vmatmul.bf16.gmra.mxu1 %v11584_v24  ;;  %v3099_v30 = vpop.f32.mrf.mxu0  ;;  %3957 = vmatpush.bf16.msra.mxu0 %v11886_v54  ;;  %v16997_v27 = vor.u32 %v14370_v55, %v11591_v33  ;;  %v14390_v55 = vld [vmem:[%s21093_s0 + $0x24] sm:$0xf0] }
 0x3e9   :  { %11683 = vmatmul.msk.bf16.gmra.mxu3 %vm323_vm0, %v11588_v42 }
 0x3ea   :  { %v16970_v37 = vadd.f32 %v3187_v20, %v16430_v44 }
 0x3ec   :  { %v3018_v15 = vpop.f32.mrf.mxu3 }
 0x3ed   :  { %v3019_v31 = vadd.f32 %v3018_v15, %v2929_v0  ;;  %v2931_v32 = vpop.f32.mrf.mxu1 }
 0x3ef   :  { %v16979_v51 = vadd.f32 %v3019_v31, %v16439_v58  ;;  %v3188_v21 = vpop.f32.mrf.mxu2  ;;  %v11593_v58 = vld [vmem:[%s21093_s0 + $0x458] sm:$0xf0] }
 0x3f0   :  { %v3189_v10 = vadd.f32 %v3188_v21, %v3099_v30  ;;  %v3102_v44 = vpop.f32.mrf.mxu0  ;;  %v16999_v23 = vor.u32 %v14369_v43, %v11593_v58  ;;  %v14389_v43 = vld [vmem:[%s21093_s0 + $0x24] sm:$0xf] }
 0x3f2   :  { %v16988_v26 = vadd.f32 %v3189_v10, %v16448_v34 }
 0x3f3   :  { %3141 = vmatmul.bf16.gmra.mxu0 %v11576_v53 }
 0x3f4   :  { %v3020_v0 = vpop.f32.mrf.mxu3  ;;  %11698 = vmatmul.msk.bf16.gmra.mxu2 %vm323_vm0, %v11580_v13 }
 0x3f5   :  { %v3021_v20 = vadd.f32 %v3020_v0, %v2931_v32  ;;  %v2934_v30 = vpop.f32.mrf.mxu1 }
 0x3f7   :  { %v17002_v34 = vadd.f32 %v3021_v20, %v16462_v41  ;;  %v3191_v45 = vpop.f32.mrf.mxu2 }
 0x3f8   :  { %v3192_v54 = vadd.f32 %v3191_v45, %v3102_v44  ;;  %2973 = vmatmul.bf16.gmra.mxu1 %v16997_v27  ;;  %v3104_v15 = vpop.f32.mrf.mxu0  ;;  %v11753_v44 = vld [vmem:[%s21093_s0 + $0x20] sm:$0xf] }
 0x3f9   :  { %11684 = vmatmul.msk.bf16.gmra.mxu3 %vm323_vm0, %v16999_v23  ;;  %v17029_v0 = vor.u32 %v14390_v55, %v11753_v44  ;;  %v14486_v44 = vld [vmem:[%s21092_s1 + $0x344] sm:$0xf0]  ;;  %v14485_v55 = vld [vmem:[%s21092_s1 + $0x344] sm:$0xf] }
 0x3fa   :  { %v17008_v53 = vadd.f32 %v3192_v54, %v16468_v14 }
 0x3fc   :  { %v3023_v13 = vpop.f32.mrf.mxu3 }
 0x3fd   :  { %v3024_v31 = vadd.f32 %v3023_v13, %v2934_v30  ;;  %v2936_v32 = vpop.f32.mrf.mxu1 }
 0x3ff   :  { %v17011_v21 = vadd.f32 %v3024_v31, %v16471_v47  ;;  %v3193_v10 = vpop.f32.mrf.mxu2  ;;  %v11755_v47 = vld [vmem:[%s21093_s0 + $0x28] sm:$0xf0] }
 0x400   :  { %v3194_v41 = vadd.f32 %v3193_v10, %v3104_v15  ;;  %v3107_v33 = vpop.f32.mrf.mxu0  ;;  %v17031_v45 = vor.u32 %v14389_v43, %v11755_v47  ;;  %v12227_v15 = vld [vmem:[%s21092_s1 + $0x350] sm:$0xf] }
 0x402   :  { %v17020_v14 = vadd.f32 %v3194_v41, %v16480_v17 }
 0x403   :  { %3146 = vmatmul.bf16.gmra.mxu0 %v11584_v24  ;;  %v14488_v24 = vld [vmem:[%s21092_s1 + $0x354] sm:$0xf0] }
 0x404   :  { %v3025_v58 = vpop.f32.mrf.mxu3  ;;  %11699 = vmatmul.msk.bf16.gmra.mxu2 %vm323_vm0, %v11588_v42  ;;  %v14487_v42 = vld [vmem:[%s21092_s1 + $0x354] sm:$0xf] }
 0x405   :  { %v3026_v20 = vadd.f32 %v3025_v58, %v2936_v32  ;;  %v2939_v30 = vpop.f32.mrf.mxu1  ;;  %v12228_v32 = vor.u32 %v14488_v24, %v12227_v15 }
 0x407   :  { %v17034_v17 = vadd.f32 %v3026_v20, %v16494_v25  ;;  %v3196_v54 = vpop.f32.mrf.mxu2  ;;  %v12229_v25 = vld [vmem:[%s21092_s1 + $0x358] sm:$0xf0]  ;;  %4750 = vmatpush.bf16.msrb.mxu3 %v12228_v32  ;;  %v11761_v32 = vld [vmem:[%s21093_s0 + $0x30] sm:$0xf] }
 0x408   :  { %v3197_v13 = vadd.f32 %v3196_v54, %v3107_v33  ;;  %3780 = vmatmul.bf16.vlgmr.msra.gmra.mxu1 %v17029_v0  ;;  %v3109_v31 = vpop.f32.mrf.mxu0  ;;  %v12232_v10 = vor.u32 %v14487_v42, %v12229_v25  ;;  %v12219_v33 = vld [vmem:[%s21092_s1 + $0x340] sm:$0xf]  ;;  %v14392_v25 = vld [vmem:[%s21093_s0 + $0x34] sm:$0xf0] }
 0x409   :  { %11951 = vmatmul.msk.bf16.vlgmr.msra.gmra.mxu3 %vm323_vm0, %v17031_v45  ;;  %v12220_v43 = vor.u32 %v14486_v44, %v12219_v33  ;;  %v11762_v33 = vor.u32 %v14392_v25, %v11761_v32 }
 0x40a   :  { %v17052_v41 = vadd.f32 %v3197_v13, %v16512_v16  ;;  %4928 = vmatpush.bf16.msrb.mxu2 %v12232_v10  ;;  %v12221_v16 = vld [vmem:[%s21092_s1 + $0x348] sm:$0xf0] }
 0x40b   :  { %v12224_v58 = vor.u32 %v14485_v55, %v12221_v16  ;;  %4654 = vmatpush.bf16.msrb.mxu1 %v12220_v43 }
 0x40c   :  { %v3028_v47 = vpop.f32.mrf.mxu3 }
 0x40d   :  { %v3029_v20 = vadd.f32 %v3028_v47, %v2939_v30  ;;  %v2941_v54 = vpop.f32.mrf.mxu1  ;;  %4832 = vmatpush.bf16.msrb.mxu0 %v12224_v58  ;;  %v14391_v30 = vld [vmem:[%s21093_s0 + $0x34] sm:$0xf] }
 0x40f   :  { %v17067_v15 = vadd.f32 %v3029_v20, %v16527_v46  ;;  %v3198_v24 = vpop.f32.mrf.mxu2  ;;  %v11763_v46 = vld [vmem:[%s21093_s0 + $0x38] sm:$0xf0] }
 0x410   :  { %v3199_v42 = vadd.f32 %v3198_v24, %v3109_v31  ;;  %v3112_v13 = vpop.f32.mrf.mxu0  ;;  %v11766_v43 = vor.u32 %v14391_v30, %v11763_v46  ;;  %v21216_v46 = vld [vmem:[#allocation29_spill] sm:$0xff] }
 0x412   :  { %v17076_v10 = vadd.f32 %v3199_v42, %v16536_v8 }
 0x413   :  { %3151 = vmatmul.bf16.gmra.mxu0 %v16997_v27 }
 0x414   :  { %v3030_v31 = vpop.f32.mrf.mxu3  ;;  %11700 = vmatmul.msk.bf16.gmra.mxu2 %vm323_vm0, %v16999_v23  ;;  %v21214_v23 = vld [vmem:[#allocation28_spill] sm:$0xff] }
 0x415   :  { %v3031_v44 = vadd.f32 %v3030_v31, %v2941_v54  ;;  %v2944_v55 = vpop.f32.mrf.mxu1  ;;  %v14393_v31 = vld [vmem:[%s21093_s0 + $0x44] sm:$0xf] }
 0x417   :  { %v17088_v8 = vadd.f32 %v3031_v44, %v16548_v52  ;;  %v3201_v16 = vpop.f32.mrf.mxu2  ;;  %v11769_v52 = vld [vmem:[%s21093_s0 + $0x40] sm:$0xf]  ;;  %v11771_v44 = vld [vmem:[%s21093_s0 + $0x48] sm:$0xf0] }
 0x418   :  { %v3202_v47 = vadd.f32 %v3201_v16, %v3112_v13  ;;  %3785 = vmatmul.bf16.gmra.mxu1 %v11762_v33  ;;  %v3114_v58 = vpop.f32.mrf.mxu0  ;;  %v14394_v13 = vld [vmem:[%s21093_s0 + $0x44] sm:$0xf0] }
 0x419   :  { %11952 = vmatmul.msk.bf16.gmra.mxu3 %vm323_vm0, %v11766_v43  ;;  %v11770_v16 = vor.u32 %v14394_v13, %v11769_v52  ;;  %v12213_v52 = vld [vmem:[%s21092_s1 + $0x338] sm:$0xf0] }
 0x41a   :  { %v17092_v20 = vadd.f32 %v3202_v47, %v16552_v62 }
 0x41c   :  { %v3033_v27 = vpop.f32.mrf.mxu3 }
 0x41d   :  { %v3034_v24 = vadd.f32 %v3033_v27, %v2944_v55  ;;  %v2946_v42 = vpop.f32.mrf.mxu1  ;;  %v11774_v27 = vor.u32 %v14393_v31, %v11771_v44 }
 0x41f   :  { %v17095_v32 = vadd.f32 %v3034_v24, %v21214_v23  ;;  %v3203_v54 = vpop.f32.mrf.mxu2  ;;  %v21218_v24 = vld [vmem:[#allocation30_spill] sm:$0xff] }
 0x420   :  { %v3204_v25 = vadd.f32 %v3203_v54, %v3114_v58  ;;  %v3117_v30 = vpop.f32.mrf.mxu0 }
 0x421   :  { %21215 = vst [vmem:[#allocation26_spill] sm:$0xff] %v17095_v32 }
 0x422   :  { %v17104_v62 = vadd.f32 %v3204_v25, %v21216_v46 }
 0x423   :  { %3958 = vmatmul.bf16.vlgmr.msra.gmra.mxu0 %v17029_v0  ;;  %v12211_v0 = vld [vmem:[%s21092_s1 + $0x330] sm:$0xf] }
 0x424   :  { %21217 = vst [vmem:[#allocation27_spill] sm:$0xff] %v17104_v62  ;;  %v3035_v55 = vpop.f32.mrf.mxu3  ;;  %11967 = vmatmul.msk.bf16.vlgmr.msra.gmra.mxu2 %vm323_vm0, %v17031_v45  ;;  %v21220_v62 = vld [vmem:[#allocation31_spill] sm:$0xff] }
 0x425   :  { %v3036_v47 = vadd.f32 %v3035_v55, %v2946_v42  ;;  %v2949_v58 = vpop.f32.mrf.mxu1  ;;  %v14484_v45 = vld [vmem:[%s21092_s1 + $0x334] sm:$0xf0]  ;;  %v14483_v42 = vld [vmem:[%s21092_s1 + $0x334] sm:$0xf] }
 0x426   :  { %v21222_v55 = vld [vmem:[#allocation11_spill] sm:$0xff] }
 0x427   :  { %v17116_v23 = vadd.f32 %v3036_v47, %v21218_v24  ;;  %v3206_v54 = vpop.f32.mrf.mxu2 }
 0x428   :  { %v3207_v25 = vadd.f32 %v3206_v54, %v3117_v30  ;;  %3790 = vmatmul.bf16.gmra.mxu1 %v11770_v16  ;;  %v3119_v46 = vpop.f32.mrf.mxu0  ;;  %v12212_v30 = vor.u32 %v14484_v45, %v12211_v0  ;;  %v11777_v0 = vld [vmem:[%s21093_s0 + $0x50] sm:$0xf]  ;;  %v14396_v45 = vld [vmem:[%s21093_s0 + $0x54] sm:$0xf0] }
 0x429   :  { %21219 = vst [vmem:[#allocation28_spill] sm:$0xff] %v17116_v23  ;;  %11953 = vmatmul.msk.bf16.gmra.mxu3 %vm323_vm0, %v11774_v27 }
 0x42a   :  { %v17120_v32 = vadd.f32 %v3207_v25, %v21220_v62  ;;  %v12216_v62 = vor.u32 %v14483_v42, %v12213_v52  ;;  %4655 = vmatpush.bf16.msrb.mxu1 %v12212_v30  ;;  %v11778_v52 = vor.u32 %v14396_v45, %v11777_v0 }
 0x42c   :  { %21221 = vst [vmem:[#allocation29_spill] sm:$0xff] %v17120_v32  ;;  %v3038_v13 = vpop.f32.mrf.mxu3  ;;  %4833 = vmatpush.bf16.msrb.mxu0 %v12216_v62  ;;  %v21224_v32 = vld [vmem:[#allocation8_spill] sm:$0xff] }
 0x42d   :  { %v3039_v31 = vadd.f32 %v3038_v13, %v2949_v58  ;;  %v2951_v44 = vpop.f32.mrf.mxu1  ;;  %v14395_v58 = vld [vmem:[%s21093_s0 + $0x54] sm:$0xf] }
 0x42f   :  { %v17135_v47 = vadd.f32 %v3039_v31, %v21222_v55  ;;  %v3208_v24 = vpop.f32.mrf.mxu2 }
 0x430   :  { %v3209_v54 = vadd.f32 %v3208_v24, %v3119_v46  ;;  %v3122_v25 = vpop.f32.mrf.mxu0  ;;  %v11779_v46 = vld [vmem:[%s21093_s0 + $0x58] sm:$0xf0] }
 0x431   :  { %21223 = vst [vmem:[#allocation30_spill] sm:$0xff] %v17135_v47  ;;  %v11782_v31 = vor.u32 %v14395_v58, %v11779_v46  ;;  %v21228_v46 = vld [vmem:[#allocation9_spill] sm:$0xff] }
 0x432   :  { %v17144_v42 = vadd.f32 %v3209_v54, %v21224_v32 }
 0x433   :  { %3963 = vmatmul.bf16.gmra.mxu0 %v11762_v33 }
 0x434   :  { %21225 = vst [vmem:[#allocation31_spill] sm:$0xff] %v17144_v42  ;;  %v3040_v30 = vpop.f32.mrf.mxu3  ;;  %11968 = vmatmul.msk.bf16.gmra.mxu2 %vm323_vm0, %v11766_v43  ;;  %v21226_v43 = vld [vmem:[#allocation13_spill] sm:$0xff] }
 0x435   :  { %v3041_v13 = vadd.f32 %v3040_v30, %v2951_v44  ;;  %v2954_v62 = vpop.f32.mrf.mxu1  ;;  %v14397_v30 = vld [vmem:[%s21093_s0 + $0x64] sm:$0xf] }
 0x437   :  { %v17154_v55 = vadd.f32 %v3041_v13, %v16614_v3  ;;  %v3211_v32 = vpop.f32.mrf.mxu2  ;;  %v11785_v3 = vld [vmem:[%s21093_s0 + $0x60] sm:$0xf] }
 0x438   :  { %v3212_v24 = vadd.f32 %v3211_v32, %v3122_v25  ;;  %3795 = vmatmul.bf16.gmra.mxu1 %v11778_v52  ;;  %v3124_v54 = vpop.f32.mrf.mxu0  ;;  %v14398_v25 = vld [vmem:[%s21093_s0 + $0x64] sm:$0xf0] }
 0x439   :  { %11954 = vmatmul.msk.bf16.gmra.mxu3 %vm323_vm0, %v11782_v31 }
 0x43a   :  { %v17158_v42 = vadd.f32 %v3212_v24, %v16618_v18 }
 0x43c   :  { %v3043_v33 = vpop.f32.mrf.mxu3 }
 0x43d   :  { %v3044_v47 = vadd.f32 %v3043_v33, %v2954_v62  ;;  %v2956_v23 = vpop.f32.mrf.mxu1  ;;  %v11786_v62 = vor.u32 %v14398_v25, %v11785_v3  ;;  %v21230_v33 = vld [vmem:[#allocation15_spill] sm:$0xff]  ;;  %v12205_v3 = vld [vmem:[%s21092_s1 + $0x328] sm:$0xf0] }
 0x43f   :  { %v17161_v0 = vadd.f32 %v3044_v47, %v21226_v43  ;;  %v3213_v44 = vpop.f32.mrf.mxu2  ;;  %v11787_v47 = vld [vmem:[%s21093_s0 + $0x68] sm:$0xf0] }
 0x440   :  { %v3214_v45 = vadd.f32 %v3213_v44, %v3124_v54  ;;  %v3127_v58 = vpop.f32.mrf.mxu0  ;;  %v11790_v54 = vor.u32 %v14397_v30, %v11787_v47 }
 0x441   :  { %21227 = vst [vmem:[#allocation11_spill] sm:$0xff] %v17161_v0 }
 0x442   :  { %v17170_v18 = vadd.f32 %v3214_v45, %v21228_v46 }
 0x443   :  { %3968 = vmatmul.bf16.gmra.mxu0 %v11770_v16  ;;  %v12203_v16 = vld [vmem:[%s21092_s1 + $0x320] sm:$0xf] }
 0x444   :  { %21229 = vst [vmem:[#allocation8_spill] sm:$0xff] %v17170_v18  ;;  %v3045_v13 = vpop.f32.mrf.mxu3  ;;  %11969 = vmatmul.msk.bf16.gmra.mxu2 %vm323_vm0, %v11774_v27  ;;  %v21232_v18 = vld [vmem:[#allocation10_spill] sm:$0xff]  ;;  %v14482_v27 = vld [vmem:[%s21092_s1 + $0x324] sm:$0xf0] }
 0x445   :  { %v3046_v32 = vadd.f32 %v3045_v13, %v2956_v23  ;;  %v2959_v24 = vpop.f32.mrf.mxu1  ;;  %v14481_v23 = vld [vmem:[%s21092_s1 + $0x324] sm:$0xf]  ;;  %v21234_v13 = vld [vmem:[#allocation17_spill] sm:$0xff] }
 0x447   :  { %v17180_v43 = vadd.f32 %v3046_v32, %v21230_v33  ;;  %v3216_v44 = vpop.f32.mrf.mxu2 }
 0x448   :  { %v3217_v45 = vadd.f32 %v3216_v44, %v3127_v58  ;;  %3800 = vmatmul.bf16.gmra.mxu1 %v11786_v62  ;;  %v3129_v46 = vpop.f32.mrf.mxu0  ;;  %v12204_v58 = vor.u32 %v14482_v27, %v12203_v16  ;;  %v11793_v16 = vld [vmem:[%s21093_s0 + $0x70] sm:$0xf]  ;;  %v14400_v27 = vld [vmem:[%s21093_s0 + $0x74] sm:$0xf0] }
 0x449   :  { %21231 = vst [vmem:[#allocation13_spill] sm:$0xff] %v17180_v43  ;;  %11955 = vmatmul.msk.bf16.gmra.mxu3 %vm323_vm0, %v11790_v54 }
 0x44a   :  { %v17184_v0 = vadd.f32 %v3217_v45, %v21232_v18  ;;  %v12208_v18 = vor.u32 %v14481_v23, %v12205_v3  ;;  %4656 = vmatpush.bf16.msrb.mxu1 %v12204_v58  ;;  %v11794_v3 = vor.u32 %v14400_v27, %v11793_v16 }
 0x44c   :  { %21233 = vst [vmem:[#allocation9_spill] sm:$0xff] %v17184_v0  ;;  %v3048_v25 = vpop.f32.mrf.mxu3  ;;  %4834 = vmatpush.bf16.msrb.mxu0 %v12208_v18  ;;  %v21236_v0 = vld [vmem:[#allocation12_spill] sm:$0xff] }
 0x44d   :  { %v3049_v30 = vadd.f32 %v3048_v25, %v2959_v24  ;;  %v2961_v47 = vpop.f32.mrf.mxu1  ;;  %v14399_v24 = vld [vmem:[%s21093_s0 + $0x74] sm:$0xf] }
 0x44f   :  { %v17199_v32 = vadd.f32 %v3049_v30, %v21234_v13  ;;  %v3218_v33 = vpop.f32.mrf.mxu2 }
 0x450   :  { %v3219_v44 = vadd.f32 %v3218_v33, %v3129_v46  ;;  %v3132_v45 = vpop.f32.mrf.mxu0  ;;  %v11795_v46 = vld [vmem:[%s21093_s0 + $0x78] sm:$0xf0] }
 0x451   :  { %21235 = vst [vmem:[#allocation15_spill] sm:$0xff] %v17199_v32  ;;  %v11798_v30 = vor.u32 %v14399_v24, %v11795_v46  ;;  %v21238_v24 = vld [vmem:[#allocation19_spill] sm:$0xff]  ;;  %v14401_v46 = vld [vmem:[%s21093_s0 + $0x84] sm:$0xf] }
 0x452   :  { %v17208_v23 = vadd.f32 %v3219_v44, %v21236_v0 }
 0x453   :  { %3973 = vmatmul.bf16.gmra.mxu0 %v11778_v52 }
 0x454   :  { %21237 = vst [vmem:[#allocation10_spill] sm:$0xff] %v17208_v23  ;;  %v3050_v58 = vpop.f32.mrf.mxu3  ;;  %11970 = vmatmul.msk.bf16.gmra.mxu2 %vm323_vm0, %v11782_v31 }
 0x455   :  { %v3051_v25 = vadd.f32 %v3050_v58, %v2961_v47  ;;  %v2964_v18 = vpop.f32.mrf.mxu1 }
 0x457   :  { %v17218_v13 = vadd.f32 %v3051_v25, %v16678_v9  ;;  %v3221_v0 = vpop.f32.mrf.mxu2  ;;  %v11801_v9 = vld [vmem:[%s21093_s0 + $0x80] sm:$0xf] }
 0x458   :  { %v3222_v33 = vadd.f32 %v3221_v0, %v3132_v45  ;;  %3805 = vmatmul.bf16.gmra.mxu1 %v11794_v3  ;;  %v3134_v44 = vpop.f32.mrf.mxu0  ;;  %v14402_v45 = vld [vmem:[%s21093_s0 + $0x84] sm:$0xf0] }
 0x459   :  { %11956 = vmatmul.msk.bf16.gmra.mxu3 %vm323_vm0, %v11798_v30  ;;  %v11802_v58 = vor.u32 %v14402_v45, %v11801_v9  ;;  %v12197_v9 = vld [vmem:[%s21092_s1 + $0x318] sm:$0xf0] }
 0x45a   :  { %v17222_v23 = vadd.f32 %v3222_v33, %v16682_v7  ;;  %v21240_v33 = vld [vmem:[#allocation14_spill] sm:$0xff] }
 0x45c   :  { %v3053_v52 = vpop.f32.mrf.mxu3 }
 0x45d   :  { %v3054_v32 = vadd.f32 %v3053_v52, %v2964_v18  ;;  %v2966_v43 = vpop.f32.mrf.mxu1 }
 0x45f   :  { %v17225_v31 = vadd.f32 %v3054_v32, %v16685_v49  ;;  %v3223_v47 = vpop.f32.mrf.mxu2  ;;  %v11803_v49 = vld [vmem:[%s21093_s0 + $0x88] sm:$0xf0] }
 0x460   :  { %v3224_v16 = vadd.f32 %v3223_v47, %v3134_v44  ;;  %v3137_v27 = vpop.f32.mrf.mxu0  ;;  %v11806_v0 = vor.u32 %v14401_v46, %v11803_v49 }
 0x462   :  { %v17234_v7 = vadd.f32 %v3224_v16, %v21238_v24  ;;  %v21242_v24 = vld [vmem:[#allocation21_spill] sm:$0xff] }
 0x463   :  { %3978 = vmatmul.bf16.gmra.mxu0 %v11786_v62  ;;  %v12195_v62 = vld [vmem:[%s21092_s1 + $0x310] sm:$0xf] }
 0x464   :  { %21239 = vst [vmem:[#allocation17_spill] sm:$0xff] %v17234_v7  ;;  %v3055_v32 = vpop.f32.mrf.mxu3  ;;  %11971 = vmatmul.msk.bf16.gmra.mxu2 %vm323_vm0, %v11790_v54  ;;  %v14480_v54 = vld [vmem:[%s21092_s1 + $0x314] sm:$0xf0] }
 0x465   :  { %v3056_v25 = vadd.f32 %v3055_v32, %v2966_v43  ;;  %v2969_v18 = vpop.f32.mrf.mxu1  ;;  %v14479_v43 = vld [vmem:[%s21092_s1 + $0x314] sm:$0xf] }
 0x466   :  { %v12200_v46 = vor.u32 %v14479_v43, %v12197_v9 }
 0x467   :  { %v17244_v44 = vadd.f32 %v3056_v25, %v21240_v33  ;;  %v3226_v52 = vpop.f32.mrf.mxu2  ;;  %v21244_v25 = vld [vmem:[#allocation16_spill] sm:$0xff] }
 0x468   :  { %v3227_v47 = vadd.f32 %v3226_v52, %v3137_v27  ;;  %3810 = vmatmul.bf16.gmra.mxu1 %v11802_v58  ;;  %v3139_v16 = vpop.f32.mrf.mxu0  ;;  %v12196_v27 = vor.u32 %v14480_v54, %v12195_v62  ;;  %4835 = vmatpush.bf16.msrb.mxu0 %v12200_v46  ;;  %v11809_v62 = vld [vmem:[%s21093_s0 + $0x90] sm:$0xf]  ;;  %v14404_v54 = vld [vmem:[%s21093_s0 + $0x94] sm:$0xf0] }
 0x469   :  { %21241 = vst [vmem:[#allocation12_spill] sm:$0xff] %v17244_v44  ;;  %11957 = vmatmul.msk.bf16.gmra.mxu3 %vm323_vm0, %v11806_v0  ;;  %v11810_v9 = vor.u32 %v14404_v54, %v11809_v62 }
 0x46a   :  { %v17248_v7 = vadd.f32 %v3227_v47, %v21242_v24  ;;  %4657 = vmatpush.bf16.msrb.mxu1 %v12196_v27 }
 0x46c   :  { %21243 = vst [vmem:[#allocation19_spill] sm:$0xff] %v17248_v7  ;;  %v3058_v45 = vpop.f32.mrf.mxu3  ;;  %v21246_v7 = vld [vmem:[#allocation23_spill] sm:$0xff] }
 0x46d   :  { %v3059_v49 = vadd.f32 %v3058_v45, %v2969_v18  ;;  %v2971_v32 = vpop.f32.mrf.mxu1  ;;  %v14403_v18 = vld [vmem:[%s21093_s0 + $0x94] sm:$0xf] }
 0x46f   :  { %v17263_v33 = vadd.f32 %v3059_v49, %v21244_v25  ;;  %v3228_v52 = vpop.f32.mrf.mxu2 }
 0x470   :  { %v3229_v47 = vadd.f32 %v3228_v52, %v3139_v16  ;;  %v3142_v24 = vpop.f32.mrf.mxu0  ;;  %v11811_v16 = vld [vmem:[%s21093_s0 + $0x98] sm:$0xf0] }
 0x471   :  { %21245 = vst [vmem:[#allocation14_spill] sm:$0xff] %v17263_v33  ;;  %v11814_v49 = vor.u32 %v14403_v18, %v11811_v16  ;;  %v14405_v18 = vld [vmem:[%s21093_s0 + $0xa4] sm:$0xf] }
 0x472   :  { %v17272_v43 = vadd.f32 %v3229_v47, %v21246_v7 }
 0x473   :  { %3983 = vmatmul.bf16.gmra.mxu0 %v11794_v3 }
 0x474   :  { %21247 = vst [vmem:[#allocation21_spill] sm:$0xff] %v17272_v43  ;;  %v3060_v27 = vpop.f32.mrf.mxu3  ;;  %11972 = vmatmul.msk.bf16.gmra.mxu2 %vm323_vm0, %v11798_v30 }
 0x475   :  { %v3061_v45 = vadd.f32 %v3060_v27, %v2971_v32  ;;  %v2974_v46 = vpop.f32.mrf.mxu1 }
 0x477   :  { %v17282_v25 = vadd.f32 %v3061_v45, %v16742_v39  ;;  %v3231_v7 = vpop.f32.mrf.mxu2  ;;  %v11817_v39 = vld [vmem:[%s21093_s0 + $0xa0] sm:$0xf] }
 0x478   :  { %v3232_v52 = vadd.f32 %v3231_v7, %v3142_v24  ;;  %3815 = vmatmul.bf16.gmra.mxu1 %v11810_v9  ;;  %v3144_v47 = vpop.f32.mrf.mxu0  ;;  %v14406_v24 = vld [vmem:[%s21093_s0 + $0xa4] sm:$0xf0]  ;;  %v21248_v7 = vld [vmem:[#allocation18_spill] sm:$0xff] }
 0x479   :  { %11958 = vmatmul.msk.bf16.gmra.mxu3 %vm323_vm0, %v11814_v49  ;;  %v11818_v16 = vor.u32 %v14406_v24, %v11817_v39  ;;  %v12189_v39 = vld [vmem:[%s21092_s1 + $0x308] sm:$0xf0] }
 0x47a   :  { %v17286_v43 = vadd.f32 %v3232_v52, %v16746_v35 }
 0x47c   :  { %v3063_v3 = vpop.f32.mrf.mxu3 }
 0x47d   :  { %v3064_v33 = vadd.f32 %v3063_v3, %v2974_v46  ;;  %v2976_v44 = vpop.f32.mrf.mxu1 }
 0x47f   :  { %v17289_v30 = vadd.f32 %v3064_v33, %v16749_v4  ;;  %v3233_v32 = vpop.f32.mrf.mxu2  ;;  %v11819_v4 = vld [vmem:[%s21093_s0 + $0xa8] sm:$0xf0] }
 0x480   :  { %v3234_v62 = vadd.f32 %v3233_v32, %v3144_v47  ;;  %v3147_v54 = vpop.f32.mrf.mxu0  ;;  %v11822_v46 = vor.u32 %v14405_v18, %v11819_v4  ;;  %v21250_v32 = vld [vmem:[#allocation20_spill] sm:$0xff] }
 0x482   :  { %v17298_v35 = vadd.f32 %v3234_v62, %v16758_v6 }
 0x483   :  { %3988 = vmatmul.bf16.gmra.mxu0 %v11802_v58  ;;  %v12187_v58 = vld [vmem:[%s21092_s1 + $0x300] sm:$0xf] }
 0x484   :  { %v3065_v33 = vpop.f32.mrf.mxu3  ;;  %11973 = vmatmul.msk.bf16.gmra.mxu2 %vm323_vm0, %v11806_v0  ;;  %v14478_v0 = vld [vmem:[%s21092_s1 + $0x304] sm:$0xf0] }
 0x485   :  { %v3066_v27 = vadd.f32 %v3065_v33, %v2976_v44  ;;  %v3781_v45 = vpop.f32.mrf.mxu1  ;;  %v14477_v44 = vld [vmem:[%s21092_s1 + $0x304] sm:$0xf] }
 0x486   :  { %v12192_v18 = vor.u32 %v14477_v44, %v12189_v39 }
 0x487   :  { %v17308_v52 = vadd.f32 %v3066_v27, %v21248_v7  ;;  %v3236_v6 = vpop.f32.mrf.mxu2  ;;  %v21252_v27 = vld [vmem:[#allocation22_spill] sm:$0xff] }
 0x488   :  { %v3237_v47 = vadd.f32 %v3236_v6, %v3147_v54  ;;  %3820 = vmatmul.bf16.gmra.mxu1 %v11818_v16  ;;  %v3149_v3 = vpop.f32.mrf.mxu0  ;;  %v12188_v54 = vor.u32 %v14478_v0, %v12187_v58  ;;  %4836 = vmatpush.bf16.msrb.mxu0 %v12192_v18  ;;  %v11825_v58 = vld [vmem:[%s21093_s0 + $0xb0] sm:$0xf]  ;;  %v14408_v0 = vld [vmem:[%s21093_s0 + $0xb4] sm:$0xf0] }
 0x489   :  { %21249 = vst [vmem:[#allocation16_spill] sm:$0xff] %v17308_v52  ;;  %11959 = vmatmul.msk.bf16.gmra.mxu3 %vm323_vm0, %v11822_v46  ;;  %v11826_v39 = vor.u32 %v14408_v0, %v11825_v58 }
 0x48a   :  { %v17312_v62 = vadd.f32 %v3237_v47, %v21250_v32  ;;  %4658 = vmatpush.bf16.msrb.mxu1 %v12188_v54 }
 0x48c   :  { %21251 = vst [vmem:[#allocation23_spill] sm:$0xff] %v17312_v62  ;;  %v3870_v24 = vpop.f32.mrf.mxu3  ;;  %v21254_v62 = vld [vmem:[#allocation24_spill] sm:$0xff] }
 0x48d   :  { %v3871_v4 = vadd.f32 %v3870_v24, %v3781_v45  ;;  %v3783_v33 = vpop.f32.mrf.mxu1  ;;  %v14407_v45 = vld [vmem:[%s21093_s0 + $0xb4] sm:$0xf] }
 0x48f   :  { %v17327_v7 = vadd.f32 %v3871_v4, %v21252_v27  ;;  %v3238_v6 = vpop.f32.mrf.mxu2 }
 0x490   :  { %v3239_v47 = vadd.f32 %v3238_v6, %v3149_v3  ;;  %v3152_v32 = vpop.f32.mrf.mxu0  ;;  %v11827_v3 = vld [vmem:[%s21093_s0 + $0xb8] sm:$0xf0] }
 0x491   :  { %21253 = vst [vmem:[#allocation18_spill] sm:$0xff] %v17327_v7  ;;  %v11830_v4 = vor.u32 %v14407_v45, %v11827_v3  ;;  %v14409_v45 = vld [vmem:[%s21093_s0 + $0xc4] sm:$0xf] }
 0x492   :  { %v17336_v44 = vadd.f32 %v3239_v47, %v21254_v62 }
 0x493   :  { %3993 = vmatmul.bf16.gmra.mxu0 %v11810_v9 }
 0x494   :  { %21255 = vst [vmem:[#allocation20_spill] sm:$0xff] %v17336_v44  ;;  %v3872_v54 = vpop.f32.mrf.mxu3  ;;  %11974 = vmatmul.msk.bf16.gmra.mxu2 %vm323_vm0, %v11814_v49 }
 0x495   :  { %v3873_v24 = vadd.f32 %v3872_v54, %v3783_v33  ;;  %v3786_v18 = vpop.f32.mrf.mxu1 }
 0x497   :  { %v17346_v27 = vadd.f32 %v3873_v24, %v16806_v22  ;;  %v3241_v62 = vpop.f32.mrf.mxu2  ;;  %v11833_v22 = vld [vmem:[%s21093_s0 + $0xc0] sm:$0xf] }
 0x498   :  { %v3242_v6 = vadd.f32 %v3241_v62, %v3152_v32  ;;  %3825 = vmatmul.bf16.gmra.mxu1 %v11826_v39  ;;  %v3154_v47 = vpop.f32.mrf.mxu0  ;;  %v14410_v32 = vld [vmem:[%s21093_s0 + $0xc4] sm:$0xf0] }
 0x499   :  { %11960 = vmatmul.msk.bf16.gmra.mxu3 %vm323_vm0, %v11830_v4  ;;  %v11834_v3 = vor.u32 %v14410_v32, %v11833_v22 }
 0x49a   :  { %v17350_v44 = vadd.f32 %v3242_v6, %v16810_v29 }
 0x49c   :  { %v3875_v9 = vpop.f32.mrf.mxu3 }
 0x49d   :  { %v3876_v7 = vadd.f32 %v3875_v9, %v3786_v18  ;;  %v3788_v52 = vpop.f32.mrf.mxu1 }
 0x49f   :  { %v17353_v49 = vadd.f32 %v3876_v7, %v16813_v5  ;;  %v3243_v33 = vpop.f32.mrf.mxu2  ;;  %v11835_v5 = vld [vmem:[%s21093_s0 + $0xc8] sm:$0xf0] }
 0x4a0   :  { %v3244_v58 = vadd.f32 %v3243_v33, %v3154_v47  ;;  %v3959_v0 = vpop.f32.mrf.mxu0  ;;  %v11838_v18 = vor.u32 %v14409_v45, %v11835_v5  ;;  %v12181_v33 = vld [vmem:[%s21092_s1 + $0x2f8] sm:$0xf0] }
 0x4a2   :  { %v17362_v29 = vadd.f32 %v3244_v58, %v16822_v11 }
 0x4a3   :  { %3998 = vmatmul.bf16.gmra.mxu0 %v11818_v16  ;;  %v12179_v16 = vld [vmem:[%s21092_s1 + $0x2f0] sm:$0xf] }
 0x4a4   :  { %v3877_v7 = vpop.f32.mrf.mxu3  ;;  %11975 = vmatmul.msk.bf16.gmra.mxu2 %vm323_vm0, %v11822_v46  ;;  %v14476_v46 = vld [vmem:[%s21092_s1 + $0x2f4] sm:$0xf0] }
 0x4a5   :  { %v3878_v54 = vadd.f32 %v3877_v7, %v3788_v52  ;;  %v3791_v24 = vpop.f32.mrf.mxu1  ;;  %v12180_v52 = vor.u32 %v14476_v46, %v12179_v16 }
 0x4a7   :  { %v17372_v62 = vadd.f32 %v3878_v54, %v16832_v36  ;;  %v4048_v11 = vpop.f32.mrf.mxu2  ;;  %v14475_v36 = vld [vmem:[%s21092_s1 + $0x2f4] sm:$0xf]  ;;  %4659 = vmatpush.bf16.msrb.mxu1 %v12180_v52  ;;  %v11841_v54 = vld [vmem:[%s21093_s0 + $0xd0] sm:$0xf] }
 0x4a8   :  { %v4049_v6 = vadd.f32 %v4048_v11, %v3959_v0  ;;  %3830 = vmatmul.bf16.gmra.mxu1 %v11834_v3  ;;  %v3961_v47 = vpop.f32.mrf.mxu0  ;;  %v14412_v11 = vld [vmem:[%s21093_s0 + $0xd4] sm:$0xf0] }
 0x4a9   :  { %11961 = vmatmul.msk.bf16.gmra.mxu3 %vm323_vm0, %v11838_v18  ;;  %v11842_v46 = vor.u32 %v14412_v11, %v11841_v54 }
 0x4aa   :  { %v17376_v9 = vadd.f32 %v4049_v6, %v16836_v56  ;;  %v12184_v56 = vor.u32 %v14475_v36, %v12181_v33  ;;  %v21256_v6 = vld [vmem:[#allocation25_spill] sm:$0xff] }
 0x4ac   :  { %v3880_v58 = vpop.f32.mrf.mxu3  ;;  %4837 = vmatpush.bf16.msrb.mxu0 %v12184_v56 }
 0x4ad   :  { %v3881_v0 = vadd.f32 %v3880_v58, %v3791_v24  ;;  %v3793_v22 = vpop.f32.mrf.mxu1  ;;  %v14411_v24 = vld [vmem:[%s21093_s0 + $0xd4] sm:$0xf] }
 0x4af   :  { %v17391_v32 = vadd.f32 %v3881_v0, %v16851_v60  ;;  %v4050_v45 = vpop.f32.mrf.mxu2  ;;  %v11843_v60 = vld [vmem:[%s21093_s0 + $0xd8] sm:$0xf0] }
 0x4b0   :  { %v4051_v5 = vadd.f32 %v4050_v45, %v3961_v47  ;;  %v3964_v7 = vpop.f32.mrf.mxu0  ;;  %v11846_v33 = vor.u32 %v14411_v24, %v11843_v60  ;;  %v14413_v24 = vld [vmem:[%s21093_s0 + $0xe4] sm:$0xf] }
 0x4b2   :  { %v17400_v16 = vadd.f32 %v4051_v5, %v21256_v6 }
 0x4b3   :  { %4003 = vmatmul.bf16.gmra.mxu0 %v11826_v39 }
 0x4b4   :  { %21257 = vst [vmem:[#allocation22_spill] sm:$0xff] %v17400_v16  ;;  %v3882_v47 = vpop.f32.mrf.mxu3  ;;  %11976 = vmatmul.msk.bf16.gmra.mxu2 %vm323_vm0, %v11830_v4 }
 0x4b5   :  { %v3883_v36 = vadd.f32 %v3882_v47, %v3793_v22  ;;  %v3796_v52 = vpop.f32.mrf.mxu1 }
 0x4b7   :  { %v17410_v58 = vadd.f32 %v3883_v36, %v16870_v48  ;;  %v4053_v56 = vpop.f32.mrf.mxu2  ;;  %v11849_v48 = vld [vmem:[%s21093_s0 + $0xe0] sm:$0xf] }
 0x4b8   :  { %v4054_v0 = vadd.f32 %v4053_v56, %v3964_v7  ;;  %3835 = vmatmul.bf16.gmra.mxu1 %v11842_v46  ;;  %v3966_v45 = vpop.f32.mrf.mxu0  ;;  %v14414_v7 = vld [vmem:[%s21093_s0 + $0xe4] sm:$0xf0] }
 0x4b9   :  { %11962 = vmatmul.msk.bf16.gmra.mxu3 %vm323_vm0, %v11846_v33  ;;  %v11850_v47 = vor.u32 %v14414_v7, %v11849_v48 }
 0x4ba   :  { %v17414_v5 = vadd.f32 %v4054_v0, %v16874_v59 }
 0x4bc   :  { %v3885_v39 = vpop.f32.mrf.mxu3 }
 0x4bd   :  { %v3886_v6 = vadd.f32 %v3885_v39, %v3796_v52  ;;  %v3798_v16 = vpop.f32.mrf.mxu1 }
 0x4bf   :  { %v17417_v4 = vadd.f32 %v3886_v6, %v16877_v2  ;;  %v4055_v22 = vpop.f32.mrf.mxu2  ;;  %v11851_v2 = vld [vmem:[%s21093_s0 + $0xe8] sm:$0xf0] }
 0x4c0   :  { %v4056_v54 = vadd.f32 %v4055_v22, %v3966_v45  ;;  %v3969_v11 = vpop.f32.mrf.mxu0  ;;  %v11854_v56 = vor.u32 %v14413_v24, %v11851_v2  ;;  %v12173_v22 = vld [vmem:[%s21092_s1 + $0x2e8] sm:$0xf0] }
 0x4c2   :  { %v17426_v59 = vadd.f32 %v4056_v54, %v16886_v19 }
 0x4c3   :  { %4008 = vmatmul.bf16.gmra.mxu0 %v11834_v3  ;;  %v12171_v3 = vld [vmem:[%s21092_s1 + $0x2e0] sm:$0xf] }
 0x4c4   :  { %v3887_v60 = vpop.f32.mrf.mxu3  ;;  %11977 = vmatmul.msk.bf16.gmra.mxu2 %vm323_vm0, %v11838_v18  ;;  %v14474_v18 = vld [vmem:[%s21092_s1 + $0x2e4] sm:$0xf0] }
 0x4c5   :  { %v3888_v36 = vadd.f32 %v3887_v60, %v3798_v16  ;;  %v3801_v52 = vpop.f32.mrf.mxu1  ;;  %v12172_v16 = vor.u32 %v14474_v18, %v12171_v3 }
 0x4c7   :  { %v17436_v0 = vadd.f32 %v3888_v36, %v16896_v12  ;;  %v4058_v19 = vpop.f32.mrf.mxu2  ;;  %v14473_v12 = vld [vmem:[%s21092_s1 + $0x2e4] sm:$0xf]  ;;  %4660 = vmatpush.bf16.msrb.mxu1 %v12172_v16  ;;  %v11857_v36 = vld [vmem:[%s21093_s0 + $0xf0] sm:$0xf] }
 0x4c8   :  { %v4059_v45 = vadd.f32 %v4058_v19, %v3969_v11  ;;  %3840 = vmatmul.bf16.gmra.mxu1 %v11850_v47  ;;  %v3971_v39 = vpop.f32.mrf.mxu0  ;;  %v14416_v19 = vld [vmem:[%s21093_s0 + $0xf4] sm:$0xf0] }
 0x4c9   :  { %11963 = vmatmul.msk.bf16.gmra.mxu3 %vm323_vm0, %v11854_v56  ;;  %v11858_v3 = vor.u32 %v14416_v19, %v11857_v36 }
 0x4ca   :  { %v17440_v6 = vadd.f32 %v4059_v45, %v16900_v57  ;;  %v12176_v57 = vor.u32 %v14473_v12, %v12173_v22 }
 0x4cc   :  { %v3890_v54 = vpop.f32.mrf.mxu3  ;;  %4838 = vmatpush.bf16.msrb.mxu0 %v12176_v57 }
 0x4cd   :  { %v3891_v11 = vadd.f32 %v3890_v54, %v3801_v52  ;;  %v3803_v48 = vpop.f32.mrf.mxu1  ;;  %v14415_v52 = vld [vmem:[%s21093_s0 + $0xf4] sm:$0xf] }
 0x4cf   :  { %v17455_v7 = vadd.f32 %v3891_v11, %v16915_v28  ;;  %v4060_v24 = vpop.f32.mrf.mxu2  ;;  %v11859_v28 = vld [vmem:[%s21093_s0 + $0xf8] sm:$0xf0] }
 0x4d0   :  { %v4061_v2 = vadd.f32 %v4060_v24, %v3971_v39  ;;  %v3974_v60 = vpop.f32.mrf.mxu0  ;;  %v11862_v16 = vor.u32 %v14415_v52, %v11859_v28  ;;  %v14417_v52 = vld [vmem:[%s21093_s0 + $0x104] sm:$0xf]  ;;  %v12163_v28 = vld [vmem:[%s21092_s1 + $0x2d0] sm:$0xf] }
 0x4d2   :  { %v17464_v45 = vadd.f32 %v4061_v2, %v16924_v63 }
 0x4d3   :  { %4013 = vmatmul.bf16.gmra.mxu0 %v11842_v46 }
 0x4d4   :  { %v3892_v39 = vpop.f32.mrf.mxu3  ;;  %11978 = vmatmul.msk.bf16.gmra.mxu2 %vm323_vm0, %v11846_v33 }
 0x4d5   :  { %v3893_v18 = vadd.f32 %v3892_v39, %v3803_v48  ;;  %v3806_v12 = vpop.f32.mrf.mxu1  ;;  %v14472_v39 = vld [vmem:[%s21092_s1 + $0x2d4] sm:$0xf0] }
 0x4d7   :  { %v17474_v22 = vadd.f32 %v3893_v18, %v16934_v1  ;;  %v4063_v63 = vpop.f32.mrf.mxu2  ;;  %v11865_v1 = vld [vmem:[%s21093_s0 + $0x100] sm:$0xf] }
 0x4d8   :  { %v4064_v54 = vadd.f32 %v4063_v63, %v3974_v60  ;;  %3845 = vmatmul.bf16.gmra.mxu1 %v11858_v3  ;;  %v3976_v57 = vpop.f32.mrf.mxu0  ;;  %v14418_v60 = vld [vmem:[%s21093_s0 + $0x104] sm:$0xf0] }
 0x4d9   :  { %11964 = vmatmul.msk.bf16.gmra.mxu3 %vm323_vm0, %v11862_v16 }
 0x4da   :  { %v17478_v11 = vadd.f32 %v4064_v54, %v16938_v38 }
 0x4dc   :  { %v3895_v46 = vpop.f32.mrf.mxu3 }
 0x4dd   :  { %v3896_v24 = vadd.f32 %v3895_v46, %v3806_v12  ;;  %v3808_v2 = vpop.f32.mrf.mxu1  ;;  %v12164_v12 = vor.u32 %v14472_v39, %v12163_v28  ;;  %v11873_v39 = vld [vmem:[%s21093_s0 + $0x110] sm:$0xf] }
 0x4df   :  { %v17481_v33 = vadd.f32 %v3896_v24, %v16941_v61  ;;  %v4065_v48 = vpop.f32.mrf.mxu2  ;;  %v11867_v61 = vld [vmem:[%s21093_s0 + $0x108] sm:$0xf0]  ;;  %4661 = vmatpush.bf16.msrb.mxu1 %v12164_v12 }
 0x4e0   :  { %v4066_v36 = vadd.f32 %v4065_v48, %v3976_v57  ;;  %v3979_v19 = vpop.f32.mrf.mxu0  ;;  %v11870_v57 = vor.u32 %v14417_v52, %v11867_v61 }
 0x4e2   :  { %v17490_v38 = vadd.f32 %v4066_v36, %v16950_v50  ;;  %v11866_v50 = vor.u32 %v14418_v60, %v11865_v1 }
 0x4e3   :  { %4018 = vmatmul.bf16.gmra.mxu0 %v11850_v47 }
 0x4e4   :  { %v3897_v18 = vpop.f32.mrf.mxu3  ;;  %11979 = vmatmul.msk.bf16.gmra.mxu2 %vm323_vm0, %v11854_v56  ;;  %v14471_v56 = vld [vmem:[%s21092_s1 + $0x2d4] sm:$0xf] }
 0x4e5   :  { %v3898_v63 = vadd.f32 %v3897_v18, %v3808_v2  ;;  %v3811_v54 = vpop.f32.mrf.mxu1  ;;  %v12165_v2 = vld [vmem:[%s21092_s1 + $0x2d8] sm:$0xf0]  ;;  %v14420_v18 = vld [vmem:[%s21093_s0 + $0x114] sm:$0xf0] }
 0x4e6   :  { %v12168_v1 = vor.u32 %v14471_v56, %v12165_v2 }
 0x4e7   :  { %v17506_v46 = vadd.f32 %v3898_v63, %v16966_v40  ;;  %v4068_v47 = vpop.f32.mrf.mxu2  ;;  %v14419_v63 = vld [vmem:[%s21093_s0 + $0x114] sm:$0xf] }
 0x4e8   :  { %v4069_v24 = vadd.f32 %v4068_v47, %v3979_v19  ;;  %3850 = vmatmul.bf16.gmra.mxu1 %v11866_v50  ;;  %v3981_v48 = vpop.f32.mrf.mxu0  ;;  %4839 = vmatpush.bf16.msrb.mxu0 %v12168_v1  ;;  %v17537_v47 = vor.u32 %v14420_v18, %v11873_v39  ;;  %v14440_v18 = vld [vmem:[%s21093_s0 + $0x144] sm:$0xf0] }
 0x4e9   :  { %11965 = vmatmul.msk.bf16.gmra.mxu3 %vm323_vm0, %v11870_v57 }
 0x4ea   :  { %v17510_v36 = vadd.f32 %v4069_v24, %v16970_v37 }
 0x4ec   :  { %v3900_v40 = vpop.f32.mrf.mxu3 }
 0x4ed   :  { %v3901_v60 = vadd.f32 %v3900_v40, %v3811_v54  ;;  %v3813_v52 = vpop.f32.mrf.mxu1 }
 0x4ef   :  { %v17519_v19 = vadd.f32 %v3901_v60, %v16979_v51  ;;  %v4070_v61 = vpop.f32.mrf.mxu2  ;;  %v11875_v51 = vld [vmem:[%s21093_s0 + $0x118] sm:$0xf0] }
 0x4f0   :  { %v4071_v28 = vadd.f32 %v4070_v61, %v3981_v48  ;;  %v3984_v37 = vpop.f32.mrf.mxu0  ;;  %v17539_v56 = vor.u32 %v14419_v63, %v11875_v51  ;;  %v14439_v63 = vld [vmem:[%s21093_s0 + $0x144] sm:$0xf] }
 0x4f2   :  { %v17528_v12 = vadd.f32 %v4071_v28, %v16988_v26 }
 0x4f3   :  { %4023 = vmatmul.bf16.gmra.mxu0 %v11858_v3 }
 0x4f4   :  { %v3902_v54 = vpop.f32.mrf.mxu3  ;;  %11980 = vmatmul.msk.bf16.gmra.mxu2 %vm323_vm0, %v11862_v16 }
 0x4f5   :  { %v3903_v24 = vadd.f32 %v3902_v54, %v3813_v52  ;;  %v3816_v48 = vpop.f32.mrf.mxu1 }
 0x4f7   :  { %v17542_v26 = vadd.f32 %v3903_v24, %v17002_v34  ;;  %v4073_v2 = vpop.f32.mrf.mxu2 }
 0x4f8   :  { %v4074_v1 = vadd.f32 %v4073_v2, %v3984_v37  ;;  %3855 = vmatmul.bf16.gmra.mxu1 %v17537_v47  ;;  %v3986_v40 = vpop.f32.mrf.mxu0  ;;  %v12035_v37 = vld [vmem:[%s21093_s0 + $0x140] sm:$0xf] }
 0x4f9   :  { %11966 = vmatmul.msk.bf16.gmra.mxu3 %vm323_vm0, %v17539_v56  ;;  %v17569_v54 = vor.u32 %v14440_v18, %v12035_v37  ;;  %v14536_v37 = vld [vmem:[%s21092_s1 + $0x3d4] sm:$0xf0]  ;;  %v14535_v18 = vld [vmem:[%s21092_s1 + $0x3d4] sm:$0xf] }
 0x4fa   :  { %v17548_v3 = vadd.f32 %v4074_v1, %v17008_v53 }
 0x4fc   :  { %v3905_v16 = vpop.f32.mrf.mxu3 }
 0x4fd   :  { %v3906_v60 = vadd.f32 %v3905_v16, %v3816_v48  ;;  %v3818_v52 = vpop.f32.mrf.mxu1 }
 0x4ff   :  { %v17551_v61 = vadd.f32 %v3906_v60, %v17011_v21  ;;  %v4075_v28 = vpop.f32.mrf.mxu2  ;;  %v12037_v21 = vld [vmem:[%s21093_s0 + $0x148] sm:$0xf0] }
 0x500   :  { %v4076_v34 = vadd.f32 %v4075_v28, %v3986_v40  ;;  %v3989_v39 = vpop.f32.mrf.mxu0  ;;  %v17571_v2 = vor.u32 %v14439_v63, %v12037_v21  ;;  %v12509_v40 = vld [vmem:[%s21092_s1 + $0x3e0] sm:$0xf] }
 0x502   :  { %v17560_v53 = vadd.f32 %v4076_v34, %v17020_v14 }
 0x503   :  { %4028 = vmatmul.bf16.gmra.mxu0 %v11866_v50  ;;  %v14538_v50 = vld [vmem:[%s21092_s1 + $0x3e4] sm:$0xf0] }
 0x504   :  { %v3907_v51 = vpop.f32.mrf.mxu3  ;;  %11981 = vmatmul.msk.bf16.gmra.mxu2 %vm323_vm0, %v11870_v57  ;;  %v14537_v57 = vld [vmem:[%s21092_s1 + $0x3e4] sm:$0xf] }
 0x505   :  { %v3908_v24 = vadd.f32 %v3907_v51, %v3818_v52  ;;  %v3821_v48 = vpop.f32.mrf.mxu1  ;;  %v12510_v52 = vor.u32 %v14538_v50, %v12509_v40 }
 0x507   :  { %v17574_v14 = vadd.f32 %v3908_v24, %v17034_v17  ;;  %v4078_v1 = vpop.f32.mrf.mxu2  ;;  %v12511_v17 = vld [vmem:[%s21092_s1 + $0x3e8] sm:$0xf0]  ;;  %5632 = vmatpush.bf16.msra.mxu3 %v12510_v52  ;;  %v12043_v52 = vld [vmem:[%s21093_s0 + $0x150] sm:$0xf] }
 0x508   :  { %v4079_v16 = vadd.f32 %v4078_v1, %v3989_v39  ;;  %4662 = vmatmul.bf16.vlgmr.msrb.gmra.mxu1 %v17569_v54  ;;  %v3991_v60 = vpop.f32.mrf.mxu0  ;;  %v12514_v28 = vor.u32 %v14537_v57, %v12511_v17  ;;  %v12501_v39 = vld [vmem:[%s21092_s1 + $0x3d0] sm:$0xf]  ;;  %v14442_v17 = vld [vmem:[%s21093_s0 + $0x154] sm:$0xf0] }
 0x509   :  { %12233 = vmatmul.msk.bf16.vlgmr.msrb.gmra.mxu3 %vm323_vm0, %v17571_v2  ;;  %v12502_v63 = vor.u32 %v14536_v37, %v12501_v39  ;;  %v12044_v39 = vor.u32 %v14442_v17, %v12043_v52 }
 0x50a   :  { %v17592_v34 = vadd.f32 %v4079_v16, %v17052_v41  ;;  %5810 = vmatpush.bf16.msra.mxu2 %v12514_v28  ;;  %v12503_v41 = vld [vmem:[%s21092_s1 + $0x3d8] sm:$0xf0] }
 0x50b   :  { %v12506_v51 = vor.u32 %v14535_v18, %v12503_v41  ;;  %5536 = vmatpush.bf16.msra.mxu1 %v12502_v63 }
 0x50c   :  { %v3910_v21 = vpop.f32.mrf.mxu3 }
 0x50d   :  { %v3911_v24 = vadd.f32 %v3910_v21, %v3821_v48  ;;  %v3823_v1 = vpop.f32.mrf.mxu1  ;;  %5714 = vmatpush.bf16.msra.mxu0 %v12506_v51  ;;  %v14441_v48 = vld [vmem:[%s21093_s0 + $0x154] sm:$0xf] }
 0x50f   :  { %v17607_v40 = vadd.f32 %v3911_v24, %v17067_v15  ;;  %v4080_v50 = vpop.f32.mrf.mxu2  ;;  %v12045_v15 = vld [vmem:[%s21093_s0 + $0x158] sm:$0xf0] }
 0x510   :  { %v4081_v57 = vadd.f32 %v4080_v50, %v3991_v60  ;;  %v3994_v16 = vpop.f32.mrf.mxu0  ;;  %v12048_v63 = vor.u32 %v14441_v48, %v12045_v15  ;;  %v21260_v15 = vld [vmem:[#allocation27_spill] sm:$0xff] }
 0x512   :  { %v17616_v28 = vadd.f32 %v4081_v57, %v17076_v10 }
 0x513   :  { %4033 = vmatmul.bf16.gmra.mxu0 %v17537_v47 }
 0x514   :  { %v3912_v60 = vpop.f32.mrf.mxu3  ;;  %11982 = vmatmul.msk.bf16.gmra.mxu2 %vm323_vm0, %v17539_v56  ;;  %v21258_v56 = vld [vmem:[#allocation26_spill] sm:$0xff] }
 0x515   :  { %v3913_v37 = vadd.f32 %v3912_v60, %v3823_v1  ;;  %v3826_v18 = vpop.f32.mrf.mxu1  ;;  %v14443_v60 = vld [vmem:[%s21093_s0 + $0x164] sm:$0xf] }
 0x517   :  { %v17628_v10 = vadd.f32 %v3913_v37, %v17088_v8  ;;  %v4083_v41 = vpop.f32.mrf.mxu2  ;;  %v12051_v8 = vld [vmem:[%s21093_s0 + $0x160] sm:$0xf]  ;;  %v12053_v37 = vld [vmem:[%s21093_s0 + $0x168] sm:$0xf0] }
 0x518   :  { %v4084_v21 = vadd.f32 %v4083_v41, %v3994_v16  ;;  %4667 = vmatmul.bf16.gmra.mxu1 %v12044_v39  ;;  %v3996_v51 = vpop.f32.mrf.mxu0  ;;  %v14444_v16 = vld [vmem:[%s21093_s0 + $0x164] sm:$0xf0] }
 0x519   :  { %12234 = vmatmul.msk.bf16.gmra.mxu3 %vm323_vm0, %v12048_v63  ;;  %v12052_v41 = vor.u32 %v14444_v16, %v12051_v8  ;;  %v12495_v8 = vld [vmem:[%s21092_s1 + $0x3c8] sm:$0xf0] }
 0x51a   :  { %v17632_v24 = vadd.f32 %v4084_v21, %v17092_v20 }
 0x51c   :  { %v3915_v47 = vpop.f32.mrf.mxu3 }
 0x51d   :  { %v3916_v50 = vadd.f32 %v3915_v47, %v3826_v18  ;;  %v3828_v57 = vpop.f32.mrf.mxu1  ;;  %v12056_v47 = vor.u32 %v14443_v60, %v12053_v37 }
 0x51f   :  { %v17635_v52 = vadd.f32 %v3916_v50, %v21258_v56  ;;  %v4085_v1 = vpop.f32.mrf.mxu2  ;;  %v21262_v50 = vld [vmem:[#allocation28_spill] sm:$0xff] }
 0x520   :  { %v4086_v17 = vadd.f32 %v4085_v1, %v3996_v51  ;;  %v3999_v48 = vpop.f32.mrf.mxu0 }
 0x521   :  { %21259 = vst [vmem:[#allocation24_spill] sm:$0xff] %v17635_v52 }
 0x522   :  { %v17644_v20 = vadd.f32 %v4086_v17, %v21260_v15 }
 0x523   :  { %4840 = vmatmul.bf16.vlgmr.msrb.gmra.mxu0 %v17569_v54  ;;  %v12493_v54 = vld [vmem:[%s21092_s1 + $0x3c0] sm:$0xf] }
 0x524   :  { %21261 = vst [vmem:[#allocation25_spill] sm:$0xff] %v17644_v20  ;;  %v3917_v18 = vpop.f32.mrf.mxu3  ;;  %12249 = vmatmul.msk.bf16.vlgmr.msrb.gmra.mxu2 %vm323_vm0, %v17571_v2  ;;  %v21264_v20 = vld [vmem:[#allocation29_spill] sm:$0xff] }
 0x525   :  { %v3918_v21 = vadd.f32 %v3917_v18, %v3828_v57  ;;  %v3831_v51 = vpop.f32.mrf.mxu1  ;;  %v14534_v2 = vld [vmem:[%s21092_s1 + $0x3c4] sm:$0xf0]  ;;  %v14533_v57 = vld [vmem:[%s21092_s1 + $0x3c4] sm:$0xf]  ;;  %v21266_v18 = vld [vmem:[#allocation30_spill] sm:$0xff] }
 0x527   :  { %v17656_v56 = vadd.f32 %v3918_v21, %v21262_v50  ;;  %v4088_v1 = vpop.f32.mrf.mxu2 }
 0x528   :  { %v4089_v17 = vadd.f32 %v4088_v1, %v3999_v48  ;;  %4672 = vmatmul.bf16.gmra.mxu1 %v12052_v41  ;;  %v4001_v15 = vpop.f32.mrf.mxu0  ;;  %v12494_v48 = vor.u32 %v14534_v2, %v12493_v54  ;;  %v12059_v54 = vld [vmem:[%s21093_s0 + $0x170] sm:$0xf]  ;;  %v14446_v2 = vld [vmem:[%s21093_s0 + $0x174] sm:$0xf0] }
 0x529   :  { %21263 = vst [vmem:[#allocation26_spill] sm:$0xff] %v17656_v56  ;;  %12235 = vmatmul.msk.bf16.gmra.mxu3 %vm323_vm0, %v12056_v47 }
 0x52a   :  { %v17660_v52 = vadd.f32 %v4089_v17, %v21264_v20  ;;  %v12498_v20 = vor.u32 %v14533_v57, %v12495_v8  ;;  %5537 = vmatpush.bf16.msra.mxu1 %v12494_v48  ;;  %v12060_v8 = vor.u32 %v14446_v2, %v12059_v54 }
 0x52c   :  { %21265 = vst [vmem:[#allocation27_spill] sm:$0xff] %v17660_v52  ;;  %v3920_v16 = vpop.f32.mrf.mxu3  ;;  %5715 = vmatpush.bf16.msra.mxu0 %v12498_v20  ;;  %v21268_v52 = vld [vmem:[#allocation31_spill] sm:$0xff] }
 0x52d   :  { %v3921_v60 = vadd.f32 %v3920_v16, %v3831_v51  ;;  %v3833_v37 = vpop.f32.mrf.mxu1  ;;  %v14445_v51 = vld [vmem:[%s21093_s0 + $0x174] sm:$0xf] }
 0x52f   :  { %v17675_v21 = vadd.f32 %v3921_v60, %v21266_v18  ;;  %v4090_v50 = vpop.f32.mrf.mxu2 }
 0x530   :  { %v4091_v1 = vadd.f32 %v4090_v50, %v4001_v15  ;;  %v4004_v17 = vpop.f32.mrf.mxu0  ;;  %v12061_v15 = vld [vmem:[%s21093_s0 + $0x178] sm:$0xf0] }
 0x531   :  { %21267 = vst [vmem:[#allocation28_spill] sm:$0xff] %v17675_v21  ;;  %v12064_v60 = vor.u32 %v14445_v51, %v12061_v15  ;;  %v21272_v15 = vld [vmem:[#allocation8_spill] sm:$0xff] }
 0x532   :  { %v17684_v57 = vadd.f32 %v4091_v1, %v21268_v52 }
 0x533   :  { %4845 = vmatmul.bf16.gmra.mxu0 %v12044_v39 }
 0x534   :  { %21269 = vst [vmem:[#allocation29_spill] sm:$0xff] %v17684_v57  ;;  %v3922_v48 = vpop.f32.mrf.mxu3  ;;  %12250 = vmatmul.msk.bf16.gmra.mxu2 %vm323_vm0, %v12048_v63  ;;  %v21270_v63 = vld [vmem:[#allocation11_spill] sm:$0xff] }
 0x535   :  { %v3923_v16 = vadd.f32 %v3922_v48, %v3833_v37  ;;  %v3836_v20 = vpop.f32.mrf.mxu1  ;;  %v14447_v48 = vld [vmem:[%s21093_s0 + $0x184] sm:$0xf] }
 0x537   :  { %v17694_v18 = vadd.f32 %v3923_v16, %v17154_v55  ;;  %v4093_v52 = vpop.f32.mrf.mxu2  ;;  %v12067_v55 = vld [vmem:[%s21093_s0 + $0x180] sm:$0xf] }
 0x538   :  { %v4094_v50 = vadd.f32 %v4093_v52, %v4004_v17  ;;  %4677 = vmatmul.bf16.gmra.mxu1 %v12060_v8  ;;  %v4006_v1 = vpop.f32.mrf.mxu0  ;;  %v14448_v17 = vld [vmem:[%s21093_s0 + $0x184] sm:$0xf0] }
 0x539   :  { %12236 = vmatmul.msk.bf16.gmra.mxu3 %vm323_vm0, %v12064_v60 }
 0x53a   :  { %v17698_v57 = vadd.f32 %v4094_v50, %v17158_v42 }
 0x53c   :  { %v3925_v39 = vpop.f32.mrf.mxu3 }
 0x53d   :  { %v3926_v21 = vadd.f32 %v3925_v39, %v3836_v20  ;;  %v3838_v56 = vpop.f32.mrf.mxu1  ;;  %v12068_v20 = vor.u32 %v14448_v17, %v12067_v55  ;;  %v21274_v39 = vld [vmem:[#allocation13_spill] sm:$0xff]  ;;  %v12487_v55 = vld [vmem:[%s21092_s1 + $0x3b8] sm:$0xf0] }
 0x53f   :  { %v17701_v54 = vadd.f32 %v3926_v21, %v21270_v63  ;;  %v4095_v37 = vpop.f32.mrf.mxu2  ;;  %v12069_v21 = vld [vmem:[%s21093_s0 + $0x188] sm:$0xf0] }
 0x540   :  { %v4096_v2 = vadd.f32 %v4095_v37, %v4006_v1  ;;  %v4009_v51 = vpop.f32.mrf.mxu0  ;;  %v12072_v1 = vor.u32 %v14447_v48, %v12069_v21 }
 0x541   :  { %21271 = vst [vmem:[#allocation30_spill] sm:$0xff] %v17701_v54 }
 0x542   :  { %v17710_v42 = vadd.f32 %v4096_v2, %v21272_v15 }
 0x543   :  { %4850 = vmatmul.bf16.gmra.mxu0 %v12052_v41  ;;  %v12485_v41 = vld [vmem:[%s21092_s1 + $0x3b0] sm:$0xf] }
 0x544   :  { %21273 = vst [vmem:[#allocation31_spill] sm:$0xff] %v17710_v42  ;;  %v3927_v16 = vpop.f32.mrf.mxu3  ;;  %12251 = vmatmul.msk.bf16.gmra.mxu2 %vm323_vm0, %v12056_v47  ;;  %v21276_v42 = vld [vmem:[#allocation9_spill] sm:$0xff]  ;;  %v14532_v47 = vld [vmem:[%s21092_s1 + $0x3b4] sm:$0xf0] }
 0x545   :  { %v3928_v52 = vadd.f32 %v3927_v16, %v3838_v56  ;;  %v3841_v50 = vpop.f32.mrf.mxu1  ;;  %v14531_v56 = vld [vmem:[%s21092_s1 + $0x3b4] sm:$0xf]  ;;  %v21278_v16 = vld [vmem:[#allocation15_spill] sm:$0xff] }
 0x547   :  { %v17720_v63 = vadd.f32 %v3928_v52, %v21274_v39  ;;  %v4098_v37 = vpop.f32.mrf.mxu2 }
 0x548   :  { %v4099_v2 = vadd.f32 %v4098_v37, %v4009_v51  ;;  %4682 = vmatmul.bf16.gmra.mxu1 %v12068_v20  ;;  %v4011_v15 = vpop.f32.mrf.mxu0  ;;  %v12486_v51 = vor.u32 %v14532_v47, %v12485_v41  ;;  %v12075_v41 = vld [vmem:[%s21093_s0 + $0x190] sm:$0xf]  ;;  %v14450_v47 = vld [vmem:[%s21093_s0 + $0x194] sm:$0xf0] }
 0x549   :  { %21275 = vst [vmem:[#allocation11_spill] sm:$0xff] %v17720_v63  ;;  %12237 = vmatmul.msk.bf16.gmra.mxu3 %vm323_vm0, %v12072_v1 }
 0x54a   :  { %v17724_v54 = vadd.f32 %v4099_v2, %v21276_v42  ;;  %v12490_v42 = vor.u32 %v14531_v56, %v12487_v55  ;;  %5538 = vmatpush.bf16.msra.mxu1 %v12486_v51  ;;  %v12076_v55 = vor.u32 %v14450_v47, %v12075_v41 }
 0x54c   :  { %21277 = vst [vmem:[#allocation8_spill] sm:$0xff] %v17724_v54  ;;  %v3930_v17 = vpop.f32.mrf.mxu3  ;;  %5716 = vmatpush.bf16.msra.mxu0 %v12490_v42  ;;  %v21280_v54 = vld [vmem:[#allocation10_spill] sm:$0xff] }
 0x54d   :  { %v3931_v48 = vadd.f32 %v3930_v17, %v3841_v50  ;;  %v3843_v21 = vpop.f32.mrf.mxu1  ;;  %v14449_v50 = vld [vmem:[%s21093_s0 + $0x194] sm:$0xf] }
 0x54f   :  { %v17739_v52 = vadd.f32 %v3931_v48, %v21278_v16  ;;  %v4100_v39 = vpop.f32.mrf.mxu2 }
 0x550   :  { %v4101_v37 = vadd.f32 %v4100_v39, %v4011_v15  ;;  %v4014_v2 = vpop.f32.mrf.mxu0  ;;  %v12077_v15 = vld [vmem:[%s21093_s0 + $0x198] sm:$0xf0] }
 0x551   :  { %21279 = vst [vmem:[#allocation13_spill] sm:$0xff] %v17739_v52  ;;  %v12080_v48 = vor.u32 %v14449_v50, %v12077_v15  ;;  %v21282_v50 = vld [vmem:[#allocation17_spill] sm:$0xff]  ;;  %v14451_v15 = vld [vmem:[%s21093_s0 + $0x1a4] sm:$0xf] }
 0x552   :  { %v17748_v56 = vadd.f32 %v4101_v37, %v21280_v54 }
 0x553   :  { %4855 = vmatmul.bf16.gmra.mxu0 %v12060_v8 }
 0x554   :  { %21281 = vst [vmem:[#allocation9_spill] sm:$0xff] %v17748_v56  ;;  %v3932_v51 = vpop.f32.mrf.mxu3  ;;  %12252 = vmatmul.msk.bf16.gmra.mxu2 %vm323_vm0, %v12064_v60 }
 0x555   :  { %v3933_v17 = vadd.f32 %v3932_v51, %v3843_v21  ;;  %v3846_v42 = vpop.f32.mrf.mxu1 }
 0x557   :  { %v17758_v16 = vadd.f32 %v3933_v17, %v17218_v13  ;;  %v4103_v54 = vpop.f32.mrf.mxu2  ;;  %v12083_v13 = vld [vmem:[%s21093_s0 + $0x1a0] sm:$0xf] }
 0x558   :  { %v4104_v39 = vadd.f32 %v4103_v54, %v4014_v2  ;;  %4687 = vmatmul.bf16.gmra.mxu1 %v12076_v55  ;;  %v4016_v37 = vpop.f32.mrf.mxu0  ;;  %v14452_v2 = vld [vmem:[%s21093_s0 + $0x1a4] sm:$0xf0] }
 0x559   :  { %12238 = vmatmul.msk.bf16.gmra.mxu3 %vm323_vm0, %v12080_v48  ;;  %v12084_v51 = vor.u32 %v14452_v2, %v12083_v13  ;;  %v12479_v13 = vld [vmem:[%s21092_s1 + $0x3a8] sm:$0xf0] }
 0x55a   :  { %v17762_v56 = vadd.f32 %v4104_v39, %v17222_v23  ;;  %v21284_v39 = vld [vmem:[#allocation12_spill] sm:$0xff] }
 0x55c   :  { %v3935_v8 = vpop.f32.mrf.mxu3 }
 0x55d   :  { %v3936_v52 = vadd.f32 %v3935_v8, %v3846_v42  ;;  %v3848_v63 = vpop.f32.mrf.mxu1 }
 0x55f   :  { %v17765_v60 = vadd.f32 %v3936_v52, %v17225_v31  ;;  %v4105_v21 = vpop.f32.mrf.mxu2  ;;  %v12085_v31 = vld [vmem:[%s21093_s0 + $0x1a8] sm:$0xf0] }
 0x560   :  { %v4106_v41 = vadd.f32 %v4105_v21, %v4016_v37  ;;  %v4019_v47 = vpop.f32.mrf.mxu0  ;;  %v12088_v54 = vor.u32 %v14451_v15, %v12085_v31 }
 0x562   :  { %v17774_v23 = vadd.f32 %v4106_v41, %v21282_v50  ;;  %v21286_v50 = vld [vmem:[#allocation19_spill] sm:$0xff] }
 0x563   :  { %4860 = vmatmul.bf16.gmra.mxu0 %v12068_v20  ;;  %v12477_v20 = vld [vmem:[%s21092_s1 + $0x3a0] sm:$0xf] }
 0x564   :  { %21283 = vst [vmem:[#allocation15_spill] sm:$0xff] %v17774_v23  ;;  %v3937_v52 = vpop.f32.mrf.mxu3  ;;  %12253 = vmatmul.msk.bf16.gmra.mxu2 %vm323_vm0, %v12072_v1  ;;  %v14530_v1 = vld [vmem:[%s21092_s1 + $0x3a4] sm:$0xf0] }
 0x565   :  { %v3938_v17 = vadd.f32 %v3937_v52, %v3848_v63  ;;  %v3851_v42 = vpop.f32.mrf.mxu1  ;;  %v14529_v63 = vld [vmem:[%s21092_s1 + $0x3a4] sm:$0xf] }
 0x566   :  { %v12482_v15 = vor.u32 %v14529_v63, %v12479_v13 }
 0x567   :  { %v17784_v37 = vadd.f32 %v3938_v17, %v21284_v39  ;;  %v4108_v8 = vpop.f32.mrf.mxu2  ;;  %v21288_v17 = vld [vmem:[#allocation14_spill] sm:$0xff] }
 0x568   :  { %v4109_v21 = vadd.f32 %v4108_v8, %v4019_v47  ;;  %4692 = vmatmul.bf16.gmra.mxu1 %v12084_v51  ;;  %v4021_v41 = vpop.f32.mrf.mxu0  ;;  %v12478_v47 = vor.u32 %v14530_v1, %v12477_v20  ;;  %5717 = vmatpush.bf16.msra.mxu0 %v12482_v15  ;;  %v12091_v20 = vld [vmem:[%s21093_s0 + $0x1b0] sm:$0xf]  ;;  %v14454_v1 = vld [vmem:[%s21093_s0 + $0x1b4] sm:$0xf0] }
 0x569   :  { %21285 = vst [vmem:[#allocation10_spill] sm:$0xff] %v17784_v37  ;;  %12239 = vmatmul.msk.bf16.gmra.mxu3 %vm323_vm0, %v12088_v54  ;;  %v12092_v13 = vor.u32 %v14454_v1, %v12091_v20 }
 0x56a   :  { %v17788_v23 = vadd.f32 %v4109_v21, %v21286_v50  ;;  %5539 = vmatpush.bf16.msra.mxu1 %v12478_v47 }
 0x56c   :  { %21287 = vst [vmem:[#allocation17_spill] sm:$0xff] %v17788_v23  ;;  %v3940_v2 = vpop.f32.mrf.mxu3  ;;  %v21290_v23 = vld [vmem:[#allocation21_spill] sm:$0xff] }
 0x56d   :  { %v3941_v31 = vadd.f32 %v3940_v2, %v3851_v42  ;;  %v3853_v52 = vpop.f32.mrf.mxu1  ;;  %v14453_v42 = vld [vmem:[%s21093_s0 + $0x1b4] sm:$0xf] }
 0x56f   :  { %v17803_v39 = vadd.f32 %v3941_v31, %v21288_v17  ;;  %v4110_v8 = vpop.f32.mrf.mxu2 }
 0x570   :  { %v4111_v21 = vadd.f32 %v4110_v8, %v4021_v41  ;;  %v4024_v50 = vpop.f32.mrf.mxu0  ;;  %v12093_v41 = vld [vmem:[%s21093_s0 + $0x1b8] sm:$0xf0] }
 0x571   :  { %21289 = vst [vmem:[#allocation12_spill] sm:$0xff] %v17803_v39  ;;  %v12096_v31 = vor.u32 %v14453_v42, %v12093_v41  ;;  %v14455_v42 = vld [vmem:[%s21093_s0 + $0x1c4] sm:$0xf] }
 0x572   :  { %v17812_v63 = vadd.f32 %v4111_v21, %v21290_v23 }
 0x573   :  { %4865 = vmatmul.bf16.gmra.mxu0 %v12076_v55 }
 0x574   :  { %21291 = vst [vmem:[#allocation19_spill] sm:$0xff] %v17812_v63  ;;  %v3942_v47 = vpop.f32.mrf.mxu3  ;;  %12254 = vmatmul.msk.bf16.gmra.mxu2 %vm323_vm0, %v12080_v48 }
 0x575   :  { %v3943_v2 = vadd.f32 %v3942_v47, %v3853_v52  ;;  %v3856_v15 = vpop.f32.mrf.mxu1 }
 0x577   :  { %v17822_v17 = vadd.f32 %v3943_v2, %v17282_v25  ;;  %v4113_v23 = vpop.f32.mrf.mxu2  ;;  %v12099_v25 = vld [vmem:[%s21093_s0 + $0x1c0] sm:$0xf] }
 0x578   :  { %v4114_v8 = vadd.f32 %v4113_v23, %v4024_v50  ;;  %4697 = vmatmul.bf16.gmra.mxu1 %v12092_v13  ;;  %v4026_v21 = vpop.f32.mrf.mxu0  ;;  %v14456_v50 = vld [vmem:[%s21093_s0 + $0x1c4] sm:$0xf0]  ;;  %v21292_v23 = vld [vmem:[#allocation16_spill] sm:$0xff] }
 0x579   :  { %12240 = vmatmul.msk.bf16.gmra.mxu3 %vm323_vm0, %v12096_v31  ;;  %v12100_v41 = vor.u32 %v14456_v50, %v12099_v25  ;;  %v12471_v25 = vld [vmem:[%s21092_s1 + $0x398] sm:$0xf0] }
 0x57a   :  { %v17826_v63 = vadd.f32 %v4114_v8, %v17286_v43 }
 0x57c   :  { %v3945_v55 = vpop.f32.mrf.mxu3 }
 0x57d   :  { %v3946_v39 = vadd.f32 %v3945_v55, %v3856_v15  ;;  %v3858_v37 = vpop.f32.mrf.mxu1 }
 0x57f   :  { %v17829_v48 = vadd.f32 %v3946_v39, %v17289_v30  ;;  %v4115_v52 = vpop.f32.mrf.mxu2  ;;  %v12101_v30 = vld [vmem:[%s21093_s0 + $0x1c8] sm:$0xf0] }
 0x580   :  { %v4116_v20 = vadd.f32 %v4115_v52, %v4026_v21  ;;  %v4029_v1 = vpop.f32.mrf.mxu0  ;;  %v12104_v15 = vor.u32 %v14455_v42, %v12101_v30  ;;  %v21294_v52 = vld [vmem:[#allocation23_spill] sm:$0xff] }
 0x582   :  { %v17838_v43 = vadd.f32 %v4116_v20, %v17298_v35 }
 0x583   :  { %4870 = vmatmul.bf16.gmra.mxu0 %v12084_v51  ;;  %v12469_v51 = vld [vmem:[%s21092_s1 + $0x390] sm:$0xf] }
 0x584   :  { %v3947_v39 = vpop.f32.mrf.mxu3  ;;  %12255 = vmatmul.msk.bf16.gmra.mxu2 %vm323_vm0, %v12088_v54  ;;  %v14528_v54 = vld [vmem:[%s21092_s1 + $0x394] sm:$0xf0] }
 0x585   :  { %v3948_v47 = vadd.f32 %v3947_v39, %v3858_v37  ;;  %v4663_v2 = vpop.f32.mrf.mxu1  ;;  %v14527_v37 = vld [vmem:[%s21092_s1 + $0x394] sm:$0xf] }
 0x586   :  { %v12474_v42 = vor.u32 %v14527_v37, %v12471_v25 }
 0x587   :  { %v17848_v8 = vadd.f32 %v3948_v47, %v21292_v23  ;;  %v4118_v35 = vpop.f32.mrf.mxu2  ;;  %v21296_v47 = vld [vmem:[#allocation18_spill] sm:$0xff] }
 0x588   :  { %v4119_v21 = vadd.f32 %v4118_v35, %v4029_v1  ;;  %4702 = vmatmul.bf16.gmra.mxu1 %v12100_v41  ;;  %v4031_v55 = vpop.f32.mrf.mxu0  ;;  %v12470_v1 = vor.u32 %v14528_v54, %v12469_v51  ;;  %5718 = vmatpush.bf16.msra.mxu0 %v12474_v42  ;;  %v12107_v51 = vld [vmem:[%s21093_s0 + $0x1d0] sm:$0xf]  ;;  %v14458_v54 = vld [vmem:[%s21093_s0 + $0x1d4] sm:$0xf0] }
 0x589   :  { %21293 = vst [vmem:[#allocation14_spill] sm:$0xff] %v17848_v8  ;;  %12241 = vmatmul.msk.bf16.gmra.mxu3 %vm323_vm0, %v12104_v15  ;;  %v12108_v25 = vor.u32 %v14458_v54, %v12107_v51 }
 0x58a   :  { %v17852_v20 = vadd.f32 %v4119_v21, %v21294_v52  ;;  %5540 = vmatpush.bf16.msra.mxu1 %v12470_v1 }
 0x58c   :  { %21295 = vst [vmem:[#allocation21_spill] sm:$0xff] %v17852_v20  ;;  %v4752_v50 = vpop.f32.mrf.mxu3  ;;  %v21298_v20 = vld [vmem:[#allocation20_spill] sm:$0xff] }
 0x58d   :  { %v4753_v30 = vadd.f32 %v4752_v50, %v4663_v2  ;;  %v4665_v39 = vpop.f32.mrf.mxu1  ;;  %v14457_v2 = vld [vmem:[%s21093_s0 + $0x1d4] sm:$0xf] }
 0x58f   :  { %v17867_v23 = vadd.f32 %v4753_v30, %v21296_v47  ;;  %v4120_v35 = vpop.f32.mrf.mxu2 }
 0x590   :  { %v4121_v21 = vadd.f32 %v4120_v35, %v4031_v55  ;;  %v4034_v52 = vpop.f32.mrf.mxu0  ;;  %v12109_v55 = vld [vmem:[%s21093_s0 + $0x1d8] sm:$0xf0] }
 0x591   :  { %21297 = vst [vmem:[#allocation16_spill] sm:$0xff] %v17867_v23  ;;  %v12112_v30 = vor.u32 %v14457_v2, %v12109_v55  ;;  %v14459_v2 = vld [vmem:[%s21093_s0 + $0x1e4] sm:$0xf] }
 0x592   :  { %v17876_v37 = vadd.f32 %v4121_v21, %v21298_v20 }
 0x593   :  { %4875 = vmatmul.bf16.gmra.mxu0 %v12092_v13 }
 0x594   :  { %21299 = vst [vmem:[#allocation23_spill] sm:$0xff] %v17876_v37  ;;  %v4754_v1 = vpop.f32.mrf.mxu3  ;;  %12256 = vmatmul.msk.bf16.gmra.mxu2 %vm323_vm0, %v12096_v31 }
 0x595   :  { %v4755_v50 = vadd.f32 %v4754_v1, %v4665_v39  ;;  %v4668_v42 = vpop.f32.mrf.mxu1 }
 0x597   :  { %v17886_v47 = vadd.f32 %v4755_v50, %v17346_v27  ;;  %v4123_v20 = vpop.f32.mrf.mxu2  ;;  %v12115_v27 = vld [vmem:[%s21093_s0 + $0x1e0] sm:$0xf] }
 0x598   :  { %v4124_v35 = vadd.f32 %v4123_v20, %v4034_v52  ;;  %4707 = vmatmul.bf16.gmra.mxu1 %v12108_v25  ;;  %v4036_v21 = vpop.f32.mrf.mxu0  ;;  %v14460_v52 = vld [vmem:[%s21093_s0 + $0x1e4] sm:$0xf0] }
 0x599   :  { %12242 = vmatmul.msk.bf16.gmra.mxu3 %vm323_vm0, %v12112_v30  ;;  %v12116_v55 = vor.u32 %v14460_v52, %v12115_v27 }
 0x59a   :  { %v17890_v37 = vadd.f32 %v4124_v35, %v17350_v44 }
 0x59c   :  { %v4757_v13 = vpop.f32.mrf.mxu3 }
 0x59d   :  { %v4758_v23 = vadd.f32 %v4757_v13, %v4668_v42  ;;  %v4670_v8 = vpop.f32.mrf.mxu1 }
 0x59f   :  { %v17893_v31 = vadd.f32 %v4758_v23, %v17353_v49  ;;  %v4125_v39 = vpop.f32.mrf.mxu2  ;;  %v12117_v49 = vld [vmem:[%s21093_s0 + $0x1e8] sm:$0xf0] }
 0x5a0   :  { %v4126_v51 = vadd.f32 %v4125_v39, %v4036_v21  ;;  %v4841_v54 = vpop.f32.mrf.mxu0  ;;  %v12120_v42 = vor.u32 %v14459_v2, %v12117_v49  ;;  %v12463_v39 = vld [vmem:[%s21092_s1 + $0x388] sm:$0xf0] }
 0x5a2   :  { %v17902_v44 = vadd.f32 %v4126_v51, %v17362_v29 }
 0x5a3   :  { %4880 = vmatmul.bf16.gmra.mxu0 %v12100_v41  ;;  %v12461_v41 = vld [vmem:[%s21092_s1 + $0x380] sm:$0xf] }
 0x5a4   :  { %v4759_v23 = vpop.f32.mrf.mxu3  ;;  %12257 = vmatmul.msk.bf16.gmra.mxu2 %vm323_vm0, %v12104_v15  ;;  %v14526_v15 = vld [vmem:[%s21092_s1 + $0x384] sm:$0xf0] }
 0x5a5   :  { %v4760_v1 = vadd.f32 %v4759_v23, %v4670_v8  ;;  %v4673_v50 = vpop.f32.mrf.mxu1  ;;  %v12462_v8 = vor.u32 %v14526_v15, %v12461_v41 }
 0x5a7   :  { %v17912_v20 = vadd.f32 %v4760_v1, %v17372_v62  ;;  %v4930_v29 = vpop.f32.mrf.mxu2  ;;  %v14525_v62 = vld [vmem:[%s21092_s1 + $0x384] sm:$0xf]  ;;  %5541 = vmatpush.bf16.msra.mxu1 %v12462_v8  ;;  %v12123_v1 = vld [vmem:[%s21093_s0 + $0x1f0] sm:$0xf] }
 0x5a8   :  { %v4931_v35 = vadd.f32 %v4930_v29, %v4841_v54  ;;  %4712 = vmatmul.bf16.gmra.mxu1 %v12116_v55  ;;  %v4843_v21 = vpop.f32.mrf.mxu0  ;;  %v14462_v29 = vld [vmem:[%s21093_s0 + $0x1f4] sm:$0xf0] }
 0x5a9   :  { %12243 = vmatmul.msk.bf16.gmra.mxu3 %vm323_vm0, %v12120_v42  ;;  %v12124_v15 = vor.u32 %v14462_v29, %v12123_v1 }
 0x5aa   :  { %v17916_v13 = vadd.f32 %v4931_v35, %v17376_v9  ;;  %v12466_v9 = vor.u32 %v14525_v62, %v12463_v39  ;;  %v21300_v35 = vld [vmem:[#allocation22_spill] sm:$0xff] }
 0x5ac   :  { %v4762_v51 = vpop.f32.mrf.mxu3  ;;  %5719 = vmatpush.bf16.msra.mxu0 %v12466_v9 }
 0x5ad   :  { %v4763_v54 = vadd.f32 %v4762_v51, %v4673_v50  ;;  %v4675_v27 = vpop.f32.mrf.mxu1  ;;  %v14461_v50 = vld [vmem:[%s21093_s0 + $0x1f4] sm:$0xf] }
 0x5af   :  { %v17931_v52 = vadd.f32 %v4763_v54, %v17391_v32  ;;  %v4932_v2 = vpop.f32.mrf.mxu2  ;;  %v12125_v32 = vld [vmem:[%s21093_s0 + $0x1f8] sm:$0xf0] }
 0x5b0   :  { %v4933_v49 = vadd.f32 %v4932_v2, %v4843_v21  ;;  %v4846_v23 = vpop.f32.mrf.mxu0  ;;  %v12128_v39 = vor.u32 %v14461_v50, %v12125_v32  ;;  %v14463_v50 = vld [vmem:[%s21093_s0 + $0x204] sm:$0xf] }
 0x5b2   :  { %v17940_v41 = vadd.f32 %v4933_v49, %v21300_v35 }
 0x5b3   :  { %4885 = vmatmul.bf16.gmra.mxu0 %v12108_v25 }
 0x5b4   :  { %21301 = vst [vmem:[#allocation18_spill] sm:$0xff] %v17940_v41  ;;  %v4764_v21 = vpop.f32.mrf.mxu3  ;;  %12258 = vmatmul.msk.bf16.gmra.mxu2 %vm323_vm0, %v12112_v30 }
 0x5b5   :  { %v4765_v62 = vadd.f32 %v4764_v21, %v4675_v27  ;;  %v4678_v8 = vpop.f32.mrf.mxu1 }
 0x5b7   :  { %v17950_v51 = vadd.f32 %v4765_v62, %v17410_v58  ;;  %v4935_v9 = vpop.f32.mrf.mxu2  ;;  %v12131_v58 = vld [vmem:[%s21093_s0 + $0x200] sm:$0xf] }
 0x5b8   :  { %v4936_v54 = vadd.f32 %v4935_v9, %v4846_v23  ;;  %4717 = vmatmul.bf16.gmra.mxu1 %v12124_v15  ;;  %v4848_v2 = vpop.f32.mrf.mxu0  ;;  %v14464_v23 = vld [vmem:[%s21093_s0 + $0x204] sm:$0xf0] }
 0x5b9   :  { %12244 = vmatmul.msk.bf16.gmra.mxu3 %vm323_vm0, %v12128_v39  ;;  %v12132_v21 = vor.u32 %v14464_v23, %v12131_v58 }
 0x5ba   :  { %v17954_v49 = vadd.f32 %v4936_v54, %v17414_v5 }
 0x5bc   :  { %v4767_v25 = vpop.f32.mrf.mxu3 }
 0x5bd   :  { %v4768_v35 = vadd.f32 %v4767_v25, %v4678_v8  ;;  %v4680_v41 = vpop.f32.mrf.mxu1 }
 0x5bf   :  { %v17957_v30 = vadd.f32 %v4768_v35, %v17417_v4  ;;  %v4937_v27 = vpop.f32.mrf.mxu2  ;;  %v12133_v4 = vld [vmem:[%s21093_s0 + $0x208] sm:$0xf0] }
 0x5c0   :  { %v4938_v1 = vadd.f32 %v4937_v27, %v4848_v2  ;;  %v4851_v29 = vpop.f32.mrf.mxu0  ;;  %v12136_v9 = vor.u32 %v14463_v50, %v12133_v4  ;;  %v12455_v27 = vld [vmem:[%s21092_s1 + $0x378] sm:$0xf0] }
 0x5c2   :  { %v17966_v5 = vadd.f32 %v4938_v1, %v17426_v59 }
 0x5c3   :  { %4890 = vmatmul.bf16.gmra.mxu0 %v12116_v55  ;;  %v12453_v55 = vld [vmem:[%s21092_s1 + $0x370] sm:$0xf] }
 0x5c4   :  { %v4769_v32 = vpop.f32.mrf.mxu3  ;;  %12259 = vmatmul.msk.bf16.gmra.mxu2 %vm323_vm0, %v12120_v42  ;;  %v14524_v42 = vld [vmem:[%s21092_s1 + $0x374] sm:$0xf0] }
 0x5c5   :  { %v4770_v62 = vadd.f32 %v4769_v32, %v4680_v41  ;;  %v4683_v8 = vpop.f32.mrf.mxu1  ;;  %v12454_v41 = vor.u32 %v14524_v42, %v12453_v55 }
 0x5c7   :  { %v17976_v54 = vadd.f32 %v4770_v62, %v17436_v0  ;;  %v4940_v59 = vpop.f32.mrf.mxu2  ;;  %v14523_v0 = vld [vmem:[%s21092_s1 + $0x374] sm:$0xf]  ;;  %5542 = vmatpush.bf16.msra.mxu1 %v12454_v41  ;;  %v12139_v62 = vld [vmem:[%s21093_s0 + $0x210] sm:$0xf] }
 0x5c8   :  { %v4941_v2 = vadd.f32 %v4940_v59, %v4851_v29  ;;  %4722 = vmatmul.bf16.gmra.mxu1 %v12132_v21  ;;  %v4853_v25 = vpop.f32.mrf.mxu0  ;;  %v14466_v59 = vld [vmem:[%s21093_s0 + $0x214] sm:$0xf0] }
 0x5c9   :  { %12245 = vmatmul.msk.bf16.gmra.mxu3 %vm323_vm0, %v12136_v9  ;;  %v12140_v55 = vor.u32 %v14466_v59, %v12139_v62 }
 0x5ca   :  { %v17980_v35 = vadd.f32 %v4941_v2, %v17440_v6  ;;  %v12458_v6 = vor.u32 %v14523_v0, %v12455_v27 }
 0x5cc   :  { %v4772_v1 = vpop.f32.mrf.mxu3  ;;  %5720 = vmatpush.bf16.msra.mxu0 %v12458_v6 }
 0x5cd   :  { %v4773_v29 = vadd.f32 %v4772_v1, %v4683_v8  ;;  %v4685_v58 = vpop.f32.mrf.mxu1  ;;  %v14465_v8 = vld [vmem:[%s21093_s0 + $0x214] sm:$0xf] }
 0x5cf   :  { %v17995_v23 = vadd.f32 %v4773_v29, %v17455_v7  ;;  %v4942_v50 = vpop.f32.mrf.mxu2  ;;  %v12141_v7 = vld [vmem:[%s21093_s0 + $0x218] sm:$0xf0] }
 0x5d0   :  { %v4943_v4 = vadd.f32 %v4942_v50, %v4853_v25  ;;  %v4856_v32 = vpop.f32.mrf.mxu0  ;;  %v12144_v41 = vor.u32 %v14465_v8, %v12141_v7  ;;  %v14467_v8 = vld [vmem:[%s21093_s0 + $0x224] sm:$0xf]  ;;  %v12445_v7 = vld [vmem:[%s21092_s1 + $0x360] sm:$0xf] }
 0x5d2   :  { %v18004_v2 = vadd.f32 %v4943_v4, %v17464_v45 }
 0x5d3   :  { %4895 = vmatmul.bf16.gmra.mxu0 %v12124_v15 }
 0x5d4   :  { %v4774_v25 = vpop.f32.mrf.mxu3  ;;  %12260 = vmatmul.msk.bf16.gmra.mxu2 %vm323_vm0, %v12128_v39 }
 0x5d5   :  { %v4775_v42 = vadd.f32 %v4774_v25, %v4685_v58  ;;  %v4688_v0 = vpop.f32.mrf.mxu1  ;;  %v14522_v25 = vld [vmem:[%s21092_s1 + $0x364] sm:$0xf0] }
 0x5d7   :  { %v18014_v27 = vadd.f32 %v4775_v42, %v17474_v22  ;;  %v4945_v45 = vpop.f32.mrf.mxu2  ;;  %v12147_v22 = vld [vmem:[%s21093_s0 + $0x220] sm:$0xf] }
 0x5d8   :  { %v4946_v1 = vadd.f32 %v4945_v45, %v4856_v32  ;;  %4727 = vmatmul.bf16.gmra.mxu1 %v12140_v55  ;;  %v4858_v6 = vpop.f32.mrf.mxu0  ;;  %v14468_v32 = vld [vmem:[%s21093_s0 + $0x224] sm:$0xf0] }
 0x5d9   :  { %12246 = vmatmul.msk.bf16.gmra.mxu3 %vm323_vm0, %v12144_v41 }
 0x5da   :  { %v18018_v29 = vadd.f32 %v4946_v1, %v17478_v11 }
 0x5dc   :  { %v4777_v15 = vpop.f32.mrf.mxu3 }
 0x5dd   :  { %v4778_v50 = vadd.f32 %v4777_v15, %v4688_v0  ;;  %v4690_v4 = vpop.f32.mrf.mxu1  ;;  %v12446_v0 = vor.u32 %v14522_v25, %v12445_v7  ;;  %v12155_v25 = vld [vmem:[%s21093_s0 + $0x230] sm:$0xf] }
 0x5df   :  { %v18021_v39 = vadd.f32 %v4778_v50, %v17481_v33  ;;  %v4947_v58 = vpop.f32.mrf.mxu2  ;;  %v12149_v33 = vld [vmem:[%s21093_s0 + $0x228] sm:$0xf0]  ;;  %5543 = vmatpush.bf16.msra.mxu1 %v12446_v0 }
 0x5e0   :  { %v4948_v62 = vadd.f32 %v4947_v58, %v4858_v6  ;;  %v4861_v59 = vpop.f32.mrf.mxu0  ;;  %v12152_v6 = vor.u32 %v14467_v8, %v12149_v33 }
 0x5e2   :  { %v18030_v11 = vadd.f32 %v4948_v62, %v17490_v38  ;;  %v12148_v38 = vor.u32 %v14468_v32, %v12147_v22 }
 0x5e3   :  { %4900 = vmatmul.bf16.gmra.mxu0 %v12132_v21 }
 0x5e4   :  { %v4779_v42 = vpop.f32.mrf.mxu3  ;;  %12261 = vmatmul.msk.bf16.gmra.mxu2 %vm323_vm0, %v12136_v9  ;;  %v14521_v9 = vld [vmem:[%s21092_s1 + $0x364] sm:$0xf] }
 0x5e5   :  { %v4780_v45 = vadd.f32 %v4779_v42, %v4690_v4  ;;  %v4693_v1 = vpop.f32.mrf.mxu1  ;;  %v12447_v4 = vld [vmem:[%s21092_s1 + $0x368] sm:$0xf0]  ;;  %v14470_v42 = vld [vmem:[%s21093_s0 + $0x234] sm:$0xf0] }
 0x5e6   :  { %v12450_v22 = vor.u32 %v14521_v9, %v12447_v4 }
 0x5e7   :  { %v18046_v15 = vadd.f32 %v4780_v45, %v17506_v46  ;;  %v4950_v21 = vpop.f32.mrf.mxu2  ;;  %v14469_v45 = vld [vmem:[%s21093_s0 + $0x234] sm:$0xf] }
 0x5e8   :  { %v4951_v50 = vadd.f32 %v4950_v21, %v4861_v59  ;;  %4732 = vmatmul.bf16.gmra.mxu1 %v12148_v38  ;;  %v4863_v58 = vpop.f32.mrf.mxu0  ;;  %5721 = vmatpush.bf16.msra.mxu0 %v12450_v22  ;;  %v18077_v21 = vor.u32 %v14470_v42, %v12155_v25  ;;  %v14490_v42 = vld [vmem:[%s21093_s0 + $0x264] sm:$0xf0] }
 0x5e9   :  { %12247 = vmatmul.msk.bf16.gmra.mxu3 %vm323_vm0, %v12152_v6 }
 0x5ea   :  { %v18050_v62 = vadd.f32 %v4951_v50, %v17510_v36 }
 0x5ec   :  { %v4782_v46 = vpop.f32.mrf.mxu3 }
 0x5ed   :  { %v4783_v32 = vadd.f32 %v4782_v46, %v4693_v1  ;;  %v4695_v8 = vpop.f32.mrf.mxu1 }
 0x5ef   :  { %v18059_v59 = vadd.f32 %v4783_v32, %v17519_v19  ;;  %v4952_v33 = vpop.f32.mrf.mxu2  ;;  %v12157_v19 = vld [vmem:[%s21093_s0 + $0x238] sm:$0xf0] }
 0x5f0   :  { %v4953_v7 = vadd.f32 %v4952_v33, %v4863_v58  ;;  %v4866_v36 = vpop.f32.mrf.mxu0  ;;  %v18079_v9 = vor.u32 %v14469_v45, %v12157_v19  ;;  %v14489_v45 = vld [vmem:[%s21093_s0 + $0x264] sm:$0xf] }
 0x5f2   :  { %v18068_v0 = vadd.f32 %v4953_v7, %v17528_v12 }
 0x5f3   :  { %4905 = vmatmul.bf16.gmra.mxu0 %v12140_v55 }
 0x5f4   :  { %v4784_v1 = vpop.f32.mrf.mxu3  ;;  %12262 = vmatmul.msk.bf16.gmra.mxu2 %vm323_vm0, %v12144_v41 }
 0x5f5   :  { %v4785_v50 = vadd.f32 %v4784_v1, %v4695_v8  ;;  %v4698_v58 = vpop.f32.mrf.mxu1 }
 0x5f7   :  { %v18082_v12 = vadd.f32 %v4785_v50, %v17542_v26  ;;  %v4955_v4 = vpop.f32.mrf.mxu2 }
 0x5f8   :  { %v4956_v22 = vadd.f32 %v4955_v4, %v4866_v36  ;;  %4737 = vmatmul.bf16.gmra.mxu1 %v18077_v21  ;;  %v4868_v46 = vpop.f32.mrf.mxu0  ;;  %v12317_v36 = vld [vmem:[%s21093_s0 + $0x260] sm:$0xf] }
 0x5f9   :  { %12248 = vmatmul.msk.bf16.gmra.mxu3 %vm323_vm0, %v18079_v9  ;;  %v18109_v1 = vor.u32 %v14490_v42, %v12317_v36  ;;  %v14586_v36 = vld [vmem:[%s21092_s1 + $0x464] sm:$0xf0]  ;;  %v14585_v42 = vld [vmem:[%s21092_s1 + $0x464] sm:$0xf] }
 0x5fa   :  { %v18088_v55 = vadd.f32 %v4956_v22, %v17548_v3 }
 0x5fc   :  { %v4787_v41 = vpop.f32.mrf.mxu3 }
 0x5fd   :  { %v4788_v32 = vadd.f32 %v4787_v41, %v4698_v58  ;;  %v4700_v8 = vpop.f32.mrf.mxu1 }
 0x5ff   :  { %v18091_v33 = vadd.f32 %v4788_v32, %v17551_v61  ;;  %v4957_v7 = vpop.f32.mrf.mxu2  ;;  %v12319_v61 = vld [vmem:[%s21093_s0 + $0x268] sm:$0xf0] }
 0x600   :  { %v4958_v26 = vadd.f32 %v4957_v7, %v4868_v46  ;;  %v4871_v25 = vpop.f32.mrf.mxu0  ;;  %v18111_v4 = vor.u32 %v14489_v45, %v12319_v61  ;;  %v12791_v46 = vld [vmem:[%s21092_s1 + $0x470] sm:$0xf] }
 0x602   :  { %v18100_v3 = vadd.f32 %v4958_v26, %v17560_v53 }
 0x603   :  { %4910 = vmatmul.bf16.gmra.mxu0 %v12148_v38  ;;  %v14588_v38 = vld [vmem:[%s21092_s1 + $0x474] sm:$0xf0] }
 0x604   :  { %v4789_v19 = vpop.f32.mrf.mxu3  ;;  %12263 = vmatmul.msk.bf16.gmra.mxu2 %vm323_vm0, %v12152_v6  ;;  %v14587_v6 = vld [vmem:[%s21092_s1 + $0x474] sm:$0xf] }
 0x605   :  { %v4790_v50 = vadd.f32 %v4789_v19, %v4700_v8  ;;  %v4703_v58 = vpop.f32.mrf.mxu1  ;;  %v12792_v8 = vor.u32 %v14588_v38, %v12791_v46 }
 0x607   :  { %v18114_v53 = vadd.f32 %v4790_v50, %v17574_v14  ;;  %v4960_v22 = vpop.f32.mrf.mxu2  ;;  %v12793_v14 = vld [vmem:[%s21092_s1 + $0x478] sm:$0xf0]  ;;  %6514 = vmatpush.bf16.msrb.mxu3 %v12792_v8  ;;  %v12325_v8 = vld [vmem:[%s21093_s0 + $0x270] sm:$0xf] }
 0x608   :  { %v4961_v41 = vadd.f32 %v4960_v22, %v4871_v25  ;;  %5544 = vmatmul.bf16.vlgmr.msra.gmra.mxu1 %v18109_v1  ;;  %v4873_v32 = vpop.f32.mrf.mxu0  ;;  %v12796_v7 = vor.u32 %v14587_v6, %v12793_v14  ;;  %v12783_v25 = vld [vmem:[%s21092_s1 + $0x460] sm:$0xf]  ;;  %v14492_v14 = vld [vmem:[%s21093_s0 + $0x274] sm:$0xf0] }
 0x609   :  { %12515 = vmatmul.msk.bf16.vlgmr.msra.gmra.mxu3 %vm323_vm0, %v18111_v4  ;;  %v12784_v45 = vor.u32 %v14586_v36, %v12783_v25  ;;  %v12326_v25 = vor.u32 %v14492_v14, %v12325_v8 }
 0x60a   :  { %v18132_v26 = vadd.f32 %v4961_v41, %v17592_v34  ;;  %6692 = vmatpush.bf16.msrb.mxu2 %v12796_v7  ;;  %v12785_v34 = vld [vmem:[%s21092_s1 + $0x468] sm:$0xf0] }
 0x60b   :  { %v12788_v19 = vor.u32 %v14585_v42, %v12785_v34  ;;  %6418 = vmatpush.bf16.msrb.mxu1 %v12784_v45 }
 0x60c   :  { %v4792_v61 = vpop.f32.mrf.mxu3 }
 0x60d   :  { %v4793_v50 = vadd.f32 %v4792_v61, %v4703_v58  ;;  %v4705_v22 = vpop.f32.mrf.mxu1  ;;  %6596 = vmatpush.bf16.msrb.mxu0 %v12788_v19  ;;  %v14491_v58 = vld [vmem:[%s21093_s0 + $0x274] sm:$0xf] }
 0x60f   :  { %v18147_v46 = vadd.f32 %v4793_v50, %v17607_v40  ;;  %v4962_v38 = vpop.f32.mrf.mxu2  ;;  %v12327_v40 = vld [vmem:[%s21093_s0 + $0x278] sm:$0xf0] }
 0x610   :  { %v4963_v6 = vadd.f32 %v4962_v38, %v4873_v32  ;;  %v4876_v41 = vpop.f32.mrf.mxu0  ;;  %v12330_v45 = vor.u32 %v14491_v58, %v12327_v40  ;;  %v21304_v40 = vld [vmem:[#allocation25_spill] sm:$0xff] }
 0x612   :  { %v18156_v7 = vadd.f32 %v4963_v6, %v17616_v28 }
 0x613   :  { %4915 = vmatmul.bf16.gmra.mxu0 %v18077_v21 }
 0x614   :  { %v4794_v32 = vpop.f32.mrf.mxu3  ;;  %12264 = vmatmul.msk.bf16.gmra.mxu2 %vm323_vm0, %v18079_v9  ;;  %v21302_v9 = vld [vmem:[#allocation24_spill] sm:$0xff] }
 0x615   :  { %v4795_v36 = vadd.f32 %v4794_v32, %v4705_v22  ;;  %v4708_v42 = vpop.f32.mrf.mxu1  ;;  %v14493_v32 = vld [vmem:[%s21093_s0 + $0x284] sm:$0xf] }
 0x617   :  { %v18168_v28 = vadd.f32 %v4795_v36, %v17628_v10  ;;  %v4965_v34 = vpop.f32.mrf.mxu2  ;;  %v12333_v10 = vld [vmem:[%s21093_s0 + $0x280] sm:$0xf]  ;;  %v12335_v36 = vld [vmem:[%s21093_s0 + $0x288] sm:$0xf0] }
 0x618   :  { %v4966_v61 = vadd.f32 %v4965_v34, %v4876_v41  ;;  %5549 = vmatmul.bf16.gmra.mxu1 %v12326_v25  ;;  %v4878_v19 = vpop.f32.mrf.mxu0  ;;  %v14494_v41 = vld [vmem:[%s21093_s0 + $0x284] sm:$0xf0] }
 0x619   :  { %12516 = vmatmul.msk.bf16.gmra.mxu3 %vm323_vm0, %v12330_v45  ;;  %v12334_v34 = vor.u32 %v14494_v41, %v12333_v10  ;;  %v12777_v10 = vld [vmem:[%s21092_s1 + $0x458] sm:$0xf0] }
 0x61a   :  { %v18172_v50 = vadd.f32 %v4966_v61, %v17632_v24 }
 0x61c   :  { %v4797_v21 = vpop.f32.mrf.mxu3 }
 0x61d   :  { %v4798_v38 = vadd.f32 %v4797_v21, %v4708_v42  ;;  %v4710_v6 = vpop.f32.mrf.mxu1  ;;  %v12338_v21 = vor.u32 %v14493_v32, %v12335_v36 }
 0x61f   :  { %v18175_v8 = vadd.f32 %v4798_v38, %v21302_v9  ;;  %v4967_v22 = vpop.f32.mrf.mxu2  ;;  %v21306_v38 = vld [vmem:[#allocation26_spill] sm:$0xff] }
 0x620   :  { %v4968_v14 = vadd.f32 %v4967_v22, %v4878_v19  ;;  %v4881_v58 = vpop.f32.mrf.mxu0 }
 0x621   :  { %21303 = vst [vmem:[#allocation20_spill] sm:$0xff] %v18175_v8 }
 0x622   :  { %v18184_v24 = vadd.f32 %v4968_v14, %v21304_v40 }
 0x623   :  { %5722 = vmatmul.bf16.vlgmr.msra.gmra.mxu0 %v18109_v1  ;;  %v12775_v1 = vld [vmem:[%s21092_s1 + $0x450] sm:$0xf] }
 0x624   :  { %21305 = vst [vmem:[#allocation22_spill] sm:$0xff] %v18184_v24  ;;  %v4799_v42 = vpop.f32.mrf.mxu3  ;;  %12531 = vmatmul.msk.bf16.vlgmr.msra.gmra.mxu2 %vm323_vm0, %v18111_v4  ;;  %v21308_v24 = vld [vmem:[#allocation27_spill] sm:$0xff] }
 0x625   :  { %v4800_v61 = vadd.f32 %v4799_v42, %v4710_v6  ;;  %v4713_v19 = vpop.f32.mrf.mxu1  ;;  %v14584_v4 = vld [vmem:[%s21092_s1 + $0x454] sm:$0xf0]  ;;  %v14583_v6 = vld [vmem:[%s21092_s1 + $0x454] sm:$0xf]  ;;  %v21310_v42 = vld [vmem:[#allocation28_spill] sm:$0xff] }
 0x627   :  { %v18196_v9 = vadd.f32 %v4800_v61, %v21306_v38  ;;  %v4970_v22 = vpop.f32.mrf.mxu2 }
 0x628   :  { %v4971_v14 = vadd.f32 %v4970_v22, %v4881_v58  ;;  %5554 = vmatmul.bf16.gmra.mxu1 %v12334_v34  ;;  %v4883_v40 = vpop.f32.mrf.mxu0  ;;  %v12776_v58 = vor.u32 %v14584_v4, %v12775_v1  ;;  %v12341_v1 = vld [vmem:[%s21093_s0 + $0x290] sm:$0xf]  ;;  %v14496_v4 = vld [vmem:[%s21093_s0 + $0x294] sm:$0xf0] }
 0x629   :  { %21307 = vst [vmem:[#allocation24_spill] sm:$0xff] %v18196_v9  ;;  %12517 = vmatmul.msk.bf16.gmra.mxu3 %vm323_vm0, %v12338_v21 }
 0x62a   :  { %v18200_v8 = vadd.f32 %v4971_v14, %v21308_v24  ;;  %v12780_v24 = vor.u32 %v14583_v6, %v12777_v10  ;;  %6419 = vmatpush.bf16.msrb.mxu1 %v12776_v58  ;;  %v12342_v10 = vor.u32 %v14496_v4, %v12341_v1 }
 0x62c   :  { %21309 = vst [vmem:[#allocation25_spill] sm:$0xff] %v18200_v8  ;;  %v4802_v41 = vpop.f32.mrf.mxu3  ;;  %6597 = vmatpush.bf16.msrb.mxu0 %v12780_v24  ;;  %v21312_v8 = vld [vmem:[#allocation29_spill] sm:$0xff] }
 0x62d   :  { %v4803_v32 = vadd.f32 %v4802_v41, %v4713_v19  ;;  %v4715_v36 = vpop.f32.mrf.mxu1  ;;  %v14495_v19 = vld [vmem:[%s21093_s0 + $0x294] sm:$0xf] }
 0x62f   :  { %v18215_v61 = vadd.f32 %v4803_v32, %v21310_v42  ;;  %v4972_v38 = vpop.f32.mrf.mxu2 }
 0x630   :  { %v4973_v22 = vadd.f32 %v4972_v38, %v4883_v40  ;;  %v4886_v14 = vpop.f32.mrf.mxu0  ;;  %v12343_v40 = vld [vmem:[%s21093_s0 + $0x298] sm:$0xf0] }
 0x631   :  { %21311 = vst [vmem:[#allocation26_spill] sm:$0xff] %v18215_v61  ;;  %v12346_v32 = vor.u32 %v14495_v19, %v12343_v40  ;;  %v21316_v40 = vld [vmem:[#allocation31_spill] sm:$0xff] }
 0x632   :  { %v18224_v6 = vadd.f32 %v4973_v22, %v21312_v8 }
 0x633   :  { %5727 = vmatmul.bf16.gmra.mxu0 %v12326_v25 }
 0x634   :  { %21313 = vst [vmem:[#allocation27_spill] sm:$0xff] %v18224_v6  ;;  %v4804_v58 = vpop.f32.mrf.mxu3  ;;  %12532 = vmatmul.msk.bf16.gmra.mxu2 %vm323_vm0, %v12330_v45  ;;  %v21314_v45 = vld [vmem:[#allocation30_spill] sm:$0xff] }
 0x635   :  { %v4805_v41 = vadd.f32 %v4804_v58, %v4715_v36  ;;  %v4718_v24 = vpop.f32.mrf.mxu1  ;;  %v14497_v58 = vld [vmem:[%s21093_s0 + $0x2a4] sm:$0xf] }
 0x637   :  { %v18234_v42 = vadd.f32 %v4805_v41, %v17694_v18  ;;  %v4975_v8 = vpop.f32.mrf.mxu2  ;;  %v12349_v18 = vld [vmem:[%s21093_s0 + $0x2a0] sm:$0xf] }
 0x638   :  { %v4976_v38 = vadd.f32 %v4975_v8, %v4886_v14  ;;  %5559 = vmatmul.bf16.gmra.mxu1 %v12342_v10  ;;  %v4888_v22 = vpop.f32.mrf.mxu0  ;;  %v14498_v14 = vld [vmem:[%s21093_s0 + $0x2a4] sm:$0xf0] }
 0x639   :  { %12518 = vmatmul.msk.bf16.gmra.mxu3 %vm323_vm0, %v12346_v32 }
 0x63a   :  { %v18238_v6 = vadd.f32 %v4976_v38, %v17698_v57 }
 0x63c   :  { %v4807_v25 = vpop.f32.mrf.mxu3 }
 0x63d   :  { %v4808_v61 = vadd.f32 %v4807_v25, %v4718_v24  ;;  %v4720_v9 = vpop.f32.mrf.mxu1  ;;  %v12350_v24 = vor.u32 %v14498_v14, %v12349_v18  ;;  %v21318_v25 = vld [vmem:[#allocation11_spill] sm:$0xff]  ;;  %v12769_v18 = vld [vmem:[%s21092_s1 + $0x448] sm:$0xf0] }
 0x63f   :  { %v18241_v1 = vadd.f32 %v4808_v61, %v21314_v45  ;;  %v4977_v36 = vpop.f32.mrf.mxu2  ;;  %v12351_v61 = vld [vmem:[%s21093_s0 + $0x2a8] sm:$0xf0] }
 0x640   :  { %v4978_v4 = vadd.f32 %v4977_v36, %v4888_v22  ;;  %v4891_v19 = vpop.f32.mrf.mxu0  ;;  %v12354_v22 = vor.u32 %v14497_v58, %v12351_v61 }
 0x641   :  { %21315 = vst [vmem:[#allocation28_spill] sm:$0xff] %v18241_v1 }
 0x642   :  { %v18250_v57 = vadd.f32 %v4978_v4, %v21316_v40 }
 0x643   :  { %5732 = vmatmul.bf16.gmra.mxu0 %v12334_v34  ;;  %v12767_v34 = vld [vmem:[%s21092_s1 + $0x440] sm:$0xf] }
 0x644   :  { %21317 = vst [vmem:[#allocation29_spill] sm:$0xff] %v18250_v57  ;;  %v4809_v41 = vpop.f32.mrf.mxu3  ;;  %12533 = vmatmul.msk.bf16.gmra.mxu2 %vm323_vm0, %v12338_v21  ;;  %v21320_v57 = vld [vmem:[#allocation8_spill] sm:$0xff]  ;;  %v14582_v21 = vld [vmem:[%s21092_s1 + $0x444] sm:$0xf0] }
 0x645   :  { %v4810_v8 = vadd.f32 %v4809_v41, %v4720_v9  ;;  %v4723_v38 = vpop.f32.mrf.mxu1  ;;  %v14581_v9 = vld [vmem:[%s21092_s1 + $0x444] sm:$0xf]  ;;  %v21322_v41 = vld [vmem:[#allocation13_spill] sm:$0xff] }
 0x647   :  { %v18260_v45 = vadd.f32 %v4810_v8, %v21318_v25  ;;  %v4980_v36 = vpop.f32.mrf.mxu2 }
 0x648   :  { %v4981_v4 = vadd.f32 %v4980_v36, %v4891_v19  ;;  %5564 = vmatmul.bf16.gmra.mxu1 %v12350_v24  ;;  %v4893_v40 = vpop.f32.mrf.mxu0  ;;  %v12768_v19 = vor.u32 %v14582_v21, %v12767_v34  ;;  %v12357_v34 = vld [vmem:[%s21093_s0 + $0x2b0] sm:$0xf]  ;;  %v14500_v21 = vld [vmem:[%s21093_s0 + $0x2b4] sm:$0xf0] }
 0x649   :  { %21319 = vst [vmem:[#allocation30_spill] sm:$0xff] %v18260_v45  ;;  %12519 = vmatmul.msk.bf16.gmra.mxu3 %vm323_vm0, %v12354_v22 }
 0x64a   :  { %v18264_v1 = vadd.f32 %v4981_v4, %v21320_v57  ;;  %v12772_v57 = vor.u32 %v14581_v9, %v12769_v18  ;;  %6420 = vmatpush.bf16.msrb.mxu1 %v12768_v19  ;;  %v12358_v18 = vor.u32 %v14500_v21, %v12357_v34 }
 0x64c   :  { %21321 = vst [vmem:[#allocation31_spill] sm:$0xff] %v18264_v1  ;;  %v4812_v14 = vpop.f32.mrf.mxu3  ;;  %6598 = vmatpush.bf16.msrb.mxu0 %v12772_v57  ;;  %v21324_v1 = vld [vmem:[#allocation9_spill] sm:$0xff] }
 0x64d   :  { %v4813_v58 = vadd.f32 %v4812_v14, %v4723_v38  ;;  %v4725_v61 = vpop.f32.mrf.mxu1  ;;  %v14499_v38 = vld [vmem:[%s21093_s0 + $0x2b4] sm:$0xf] }
 0x64f   :  { %v18279_v8 = vadd.f32 %v4813_v58, %v21322_v41  ;;  %v4982_v25 = vpop.f32.mrf.mxu2 }
 0x650   :  { %v4983_v36 = vadd.f32 %v4982_v25, %v4893_v40  ;;  %v4896_v4 = vpop.f32.mrf.mxu0  ;;  %v12359_v40 = vld [vmem:[%s21093_s0 + $0x2b8] sm:$0xf0] }
 0x651   :  { %21323 = vst [vmem:[#allocation11_spill] sm:$0xff] %v18279_v8  ;;  %v12362_v58 = vor.u32 %v14499_v38, %v12359_v40  ;;  %v21326_v38 = vld [vmem:[#allocation15_spill] sm:$0xff]  ;;  %v14501_v40 = vld [vmem:[%s21093_s0 + $0x2c4] sm:$0xf] }
 0x652   :  { %v18288_v9 = vadd.f32 %v4983_v36, %v21324_v1 }
 0x653   :  { %5737 = vmatmul.bf16.gmra.mxu0 %v12342_v10 }
 0x654   :  { %21325 = vst [vmem:[#allocation8_spill] sm:$0xff] %v18288_v9  ;;  %v4814_v19 = vpop.f32.mrf.mxu3  ;;  %12534 = vmatmul.msk.bf16.gmra.mxu2 %vm323_vm0, %v12346_v32 }
 0x655   :  { %v4815_v14 = vadd.f32 %v4814_v19, %v4725_v61  ;;  %v4728_v57 = vpop.f32.mrf.mxu1 }
 0x657   :  { %v18298_v41 = vadd.f32 %v4815_v14, %v17758_v16  ;;  %v4985_v1 = vpop.f32.mrf.mxu2  ;;  %v12365_v16 = vld [vmem:[%s21093_s0 + $0x2c0] sm:$0xf] }
 0x658   :  { %v4986_v25 = vadd.f32 %v4985_v1, %v4896_v4  ;;  %5569 = vmatmul.bf16.gmra.mxu1 %v12358_v18  ;;  %v4898_v36 = vpop.f32.mrf.mxu0  ;;  %v14502_v4 = vld [vmem:[%s21093_s0 + $0x2c4] sm:$0xf0] }
 0x659   :  { %12520 = vmatmul.msk.bf16.gmra.mxu3 %vm323_vm0, %v12362_v58  ;;  %v12366_v19 = vor.u32 %v14502_v4, %v12365_v16  ;;  %v12761_v16 = vld [vmem:[%s21092_s1 + $0x438] sm:$0xf0] }
 0x65a   :  { %v18302_v9 = vadd.f32 %v4986_v25, %v17762_v56  ;;  %v21328_v25 = vld [vmem:[#allocation10_spill] sm:$0xff] }
 0x65c   :  { %v4817_v10 = vpop.f32.mrf.mxu3 }
 0x65d   :  { %v4818_v8 = vadd.f32 %v4817_v10, %v4728_v57  ;;  %v4730_v45 = vpop.f32.mrf.mxu1 }
 0x65f   :  { %v18305_v32 = vadd.f32 %v4818_v8, %v17765_v60  ;;  %v4987_v61 = vpop.f32.mrf.mxu2  ;;  %v12367_v60 = vld [vmem:[%s21093_s0 + $0x2c8] sm:$0xf0] }
 0x660   :  { %v4988_v34 = vadd.f32 %v4987_v61, %v4898_v36  ;;  %v4901_v21 = vpop.f32.mrf.mxu0  ;;  %v12370_v1 = vor.u32 %v14501_v40, %v12367_v60 }
 0x662   :  { %v18314_v56 = vadd.f32 %v4988_v34, %v21326_v38  ;;  %v21330_v38 = vld [vmem:[#allocation17_spill] sm:$0xff] }
 0x663   :  { %5742 = vmatmul.bf16.gmra.mxu0 %v12350_v24  ;;  %v12759_v24 = vld [vmem:[%s21092_s1 + $0x430] sm:$0xf] }
 0x664   :  { %21327 = vst [vmem:[#allocation13_spill] sm:$0xff] %v18314_v56  ;;  %v4819_v8 = vpop.f32.mrf.mxu3  ;;  %12535 = vmatmul.msk.bf16.gmra.mxu2 %vm323_vm0, %v12354_v22  ;;  %v14580_v22 = vld [vmem:[%s21092_s1 + $0x434] sm:$0xf0] }
 0x665   :  { %v4820_v14 = vadd.f32 %v4819_v8, %v4730_v45  ;;  %v4733_v57 = vpop.f32.mrf.mxu1  ;;  %v14579_v45 = vld [vmem:[%s21092_s1 + $0x434] sm:$0xf] }
 0x666   :  { %v12764_v40 = vor.u32 %v14579_v45, %v12761_v16 }
 0x667   :  { %v18324_v36 = vadd.f32 %v4820_v14, %v21328_v25  ;;  %v4990_v10 = vpop.f32.mrf.mxu2  ;;  %v21332_v14 = vld [vmem:[#allocation12_spill] sm:$0xff] }
 0x668   :  { %v4991_v61 = vadd.f32 %v4990_v10, %v4901_v21  ;;  %5574 = vmatmul.bf16.gmra.mxu1 %v12366_v19  ;;  %v4903_v34 = vpop.f32.mrf.mxu0  ;;  %v12760_v21 = vor.u32 %v14580_v22, %v12759_v24  ;;  %6599 = vmatpush.bf16.msrb.mxu0 %v12764_v40  ;;  %v12373_v24 = vld [vmem:[%s21093_s0 + $0x2d0] sm:$0xf]  ;;  %v14504_v22 = vld [vmem:[%s21093_s0 + $0x2d4] sm:$0xf0] }
 0x669   :  { %21329 = vst [vmem:[#allocation9_spill] sm:$0xff] %v18324_v36  ;;  %12521 = vmatmul.msk.bf16.gmra.mxu3 %vm323_vm0, %v12370_v1  ;;  %v12374_v16 = vor.u32 %v14504_v22, %v12373_v24 }
 0x66a   :  { %v18328_v56 = vadd.f32 %v4991_v61, %v21330_v38  ;;  %6421 = vmatpush.bf16.msrb.mxu1 %v12760_v21 }
 0x66c   :  { %21331 = vst [vmem:[#allocation15_spill] sm:$0xff] %v18328_v56  ;;  %v4822_v4 = vpop.f32.mrf.mxu3  ;;  %v21334_v56 = vld [vmem:[#allocation19_spill] sm:$0xff] }
 0x66d   :  { %v4823_v60 = vadd.f32 %v4822_v4, %v4733_v57  ;;  %v4735_v8 = vpop.f32.mrf.mxu1  ;;  %v14503_v57 = vld [vmem:[%s21093_s0 + $0x2d4] sm:$0xf] }
 0x66f   :  { %v18343_v25 = vadd.f32 %v4823_v60, %v21332_v14  ;;  %v4992_v10 = vpop.f32.mrf.mxu2 }
 0x670   :  { %v4993_v61 = vadd.f32 %v4992_v10, %v4903_v34  ;;  %v4906_v38 = vpop.f32.mrf.mxu0  ;;  %v12375_v34 = vld [vmem:[%s21093_s0 + $0x2d8] sm:$0xf0] }
 0x671   :  { %21333 = vst [vmem:[#allocation10_spill] sm:$0xff] %v18343_v25  ;;  %v12378_v60 = vor.u32 %v14503_v57, %v12375_v34  ;;  %v14505_v57 = vld [vmem:[%s21093_s0 + $0x2e4] sm:$0xf] }
 0x672   :  { %v18352_v45 = vadd.f32 %v4993_v61, %v21334_v56 }
 0x673   :  { %5747 = vmatmul.bf16.gmra.mxu0 %v12358_v18 }
 0x674   :  { %21335 = vst [vmem:[#allocation17_spill] sm:$0xff] %v18352_v45  ;;  %v4824_v21 = vpop.f32.mrf.mxu3  ;;  %12536 = vmatmul.msk.bf16.gmra.mxu2 %vm323_vm0, %v12362_v58 }
 0x675   :  { %v4825_v4 = vadd.f32 %v4824_v21, %v4735_v8  ;;  %v4738_v40 = vpop.f32.mrf.mxu1 }
 0x677   :  { %v18362_v14 = vadd.f32 %v4825_v4, %v17822_v17  ;;  %v4995_v56 = vpop.f32.mrf.mxu2  ;;  %v12381_v17 = vld [vmem:[%s21093_s0 + $0x2e0] sm:$0xf] }
 0x678   :  { %v4996_v10 = vadd.f32 %v4995_v56, %v4906_v38  ;;  %5579 = vmatmul.bf16.gmra.mxu1 %v12374_v16  ;;  %v4908_v61 = vpop.f32.mrf.mxu0  ;;  %v14506_v38 = vld [vmem:[%s21093_s0 + $0x2e4] sm:$0xf0]  ;;  %v21336_v56 = vld [vmem:[#allocation14_spill] sm:$0xff] }
 0x679   :  { %12522 = vmatmul.msk.bf16.gmra.mxu3 %vm323_vm0, %v12378_v60  ;;  %v12382_v34 = vor.u32 %v14506_v38, %v12381_v17  ;;  %v12753_v17 = vld [vmem:[%s21092_s1 + $0x428] sm:$0xf0] }
 0x67a   :  { %v18366_v45 = vadd.f32 %v4996_v10, %v17826_v63 }
 0x67c   :  { %v4827_v18 = vpop.f32.mrf.mxu3 }
 0x67d   :  { %v4828_v25 = vadd.f32 %v4827_v18, %v4738_v40  ;;  %v4740_v36 = vpop.f32.mrf.mxu1 }
 0x67f   :  { %v18369_v58 = vadd.f32 %v4828_v25, %v17829_v48  ;;  %v4997_v8 = vpop.f32.mrf.mxu2  ;;  %v12383_v48 = vld [vmem:[%s21093_s0 + $0x2e8] sm:$0xf0] }
 0x680   :  { %v4998_v24 = vadd.f32 %v4997_v8, %v4908_v61  ;;  %v4911_v22 = vpop.f32.mrf.mxu0  ;;  %v12386_v40 = vor.u32 %v14505_v57, %v12383_v48  ;;  %v21338_v8 = vld [vmem:[#allocation21_spill] sm:$0xff] }
 0x682   :  { %v18378_v63 = vadd.f32 %v4998_v24, %v17838_v43 }
 0x683   :  { %5752 = vmatmul.bf16.gmra.mxu0 %v12366_v19  ;;  %v12751_v19 = vld [vmem:[%s21092_s1 + $0x420] sm:$0xf] }
 0x684   :  { %v4829_v25 = vpop.f32.mrf.mxu3  ;;  %12537 = vmatmul.msk.bf16.gmra.mxu2 %vm323_vm0, %v12370_v1  ;;  %v14578_v1 = vld [vmem:[%s21092_s1 + $0x424] sm:$0xf0] }
 0x685   :  { %v4830_v21 = vadd.f32 %v4829_v25, %v4740_v36  ;;  %v5545_v4 = vpop.f32.mrf.mxu1  ;;  %v14577_v36 = vld [vmem:[%s21092_s1 + $0x424] sm:$0xf] }
 0x686   :  { %v12756_v57 = vor.u32 %v14577_v36, %v12753_v17 }
 0x687   :  { %v18388_v10 = vadd.f32 %v4830_v21, %v21336_v56  ;;  %v5000_v43 = vpop.f32.mrf.mxu2  ;;  %v21340_v21 = vld [vmem:[#allocation16_spill] sm:$0xff] }
 0x688   :  { %v5001_v61 = vadd.f32 %v5000_v43, %v4911_v22  ;;  %5584 = vmatmul.bf16.gmra.mxu1 %v12382_v34  ;;  %v4913_v18 = vpop.f32.mrf.mxu0  ;;  %v12752_v22 = vor.u32 %v14578_v1, %v12751_v19  ;;  %6600 = vmatpush.bf16.msrb.mxu0 %v12756_v57  ;;  %v12389_v19 = vld [vmem:[%s21093_s0 + $0x2f0] sm:$0xf]  ;;  %v14508_v1 = vld [vmem:[%s21093_s0 + $0x2f4] sm:$0xf0] }
 0x689   :  { %21337 = vst [vmem:[#allocation12_spill] sm:$0xff] %v18388_v10  ;;  %12523 = vmatmul.msk.bf16.gmra.mxu3 %vm323_vm0, %v12386_v40  ;;  %v12390_v17 = vor.u32 %v14508_v1, %v12389_v19 }
 0x68a   :  { %v18392_v24 = vadd.f32 %v5001_v61, %v21338_v8  ;;  %6422 = vmatpush.bf16.msrb.mxu1 %v12752_v22 }
 0x68c   :  { %21339 = vst [vmem:[#allocation19_spill] sm:$0xff] %v18392_v24  ;;  %v5634_v38 = vpop.f32.mrf.mxu3  ;;  %v21342_v24 = vld [vmem:[#allocation23_spill] sm:$0xff] }
 0x68d   :  { %v5635_v48 = vadd.f32 %v5634_v38, %v5545_v4  ;;  %v5547_v25 = vpop.f32.mrf.mxu1  ;;  %v14507_v4 = vld [vmem:[%s21093_s0 + $0x2f4] sm:$0xf] }
 0x68f   :  { %v18407_v56 = vadd.f32 %v5635_v48, %v21340_v21  ;;  %v5002_v43 = vpop.f32.mrf.mxu2 }
 0x690   :  { %v5003_v61 = vadd.f32 %v5002_v43, %v4913_v18  ;;  %v4916_v8 = vpop.f32.mrf.mxu0  ;;  %v12391_v18 = vld [vmem:[%s21093_s0 + $0x2f8] sm:$0xf0] }
 0x691   :  { %21341 = vst [vmem:[#allocation14_spill] sm:$0xff] %v18407_v56  ;;  %v12394_v48 = vor.u32 %v14507_v4, %v12391_v18  ;;  %v14509_v4 = vld [vmem:[%s21093_s0 + $0x304] sm:$0xf] }
 0x692   :  { %v18416_v36 = vadd.f32 %v5003_v61, %v21342_v24 }
 0x693   :  { %5757 = vmatmul.bf16.gmra.mxu0 %v12374_v16 }
 0x694   :  { %21343 = vst [vmem:[#allocation21_spill] sm:$0xff] %v18416_v36  ;;  %v5636_v22 = vpop.f32.mrf.mxu3  ;;  %12538 = vmatmul.msk.bf16.gmra.mxu2 %vm323_vm0, %v12378_v60 }
 0x695   :  { %v5637_v38 = vadd.f32 %v5636_v22, %v5547_v25  ;;  %v5550_v57 = vpop.f32.mrf.mxu1 }
 0x697   :  { %v18426_v21 = vadd.f32 %v5637_v38, %v17886_v47  ;;  %v5005_v24 = vpop.f32.mrf.mxu2  ;;  %v12397_v47 = vld [vmem:[%s21093_s0 + $0x300] sm:$0xf] }
 0x698   :  { %v5006_v43 = vadd.f32 %v5005_v24, %v4916_v8  ;;  %5589 = vmatmul.bf16.gmra.mxu1 %v12390_v17  ;;  %v4918_v61 = vpop.f32.mrf.mxu0  ;;  %v14510_v8 = vld [vmem:[%s21093_s0 + $0x304] sm:$0xf0] }
 0x699   :  { %12524 = vmatmul.msk.bf16.gmra.mxu3 %vm323_vm0, %v12394_v48  ;;  %v12398_v18 = vor.u32 %v14510_v8, %v12397_v47 }
 0x69a   :  { %v18430_v56 = vadd.f32 %v5006_v43, %v17890_v37 }
 0x69c   :  { %v5639_v16 = vpop.f32.mrf.mxu3 }
 0x69d   :  { %v5640_v36 = vadd.f32 %v5639_v16, %v5550_v57  ;;  %v5552_v10 = vpop.f32.mrf.mxu1 }
 0x69f   :  { %v18433_v60 = vadd.f32 %v5640_v36, %v17893_v31  ;;  %v5007_v25 = vpop.f32.mrf.mxu2  ;;  %v12399_v31 = vld [vmem:[%s21093_s0 + $0x308] sm:$0xf0] }
 0x6a0   :  { %v5008_v19 = vadd.f32 %v5007_v25, %v4918_v61  ;;  %v5723_v1 = vpop.f32.mrf.mxu0  ;;  %v12402_v57 = vor.u32 %v14509_v4, %v12399_v31  ;;  %v12745_v25 = vld [vmem:[%s21092_s1 + $0x418] sm:$0xf0] }
 0x6a2   :  { %v18442_v37 = vadd.f32 %v5008_v19, %v17902_v44 }
 0x6a3   :  { %5762 = vmatmul.bf16.gmra.mxu0 %v12382_v34  ;;  %v12743_v34 = vld [vmem:[%s21092_s1 + $0x410] sm:$0xf] }
 0x6a4   :  { %v5641_v36 = vpop.f32.mrf.mxu3  ;;  %12539 = vmatmul.msk.bf16.gmra.mxu2 %vm323_vm0, %v12386_v40  ;;  %v14576_v40 = vld [vmem:[%s21092_s1 + $0x414] sm:$0xf0] }
 0x6a5   :  { %v5642_v22 = vadd.f32 %v5641_v36, %v5552_v10  ;;  %v5555_v38 = vpop.f32.mrf.mxu1  ;;  %v12744_v10 = vor.u32 %v14576_v40, %v12743_v34 }
 0x6a7   :  { %v18452_v24 = vadd.f32 %v5642_v22, %v17912_v20  ;;  %v5812_v44 = vpop.f32.mrf.mxu2  ;;  %v14575_v20 = vld [vmem:[%s21092_s1 + $0x414] sm:$0xf]  ;;  %6423 = vmatpush.bf16.msrb.mxu1 %v12744_v10  ;;  %v12405_v22 = vld [vmem:[%s21093_s0 + $0x310] sm:$0xf] }
 0x6a8   :  { %v5813_v43 = vadd.f32 %v5812_v44, %v5723_v1  ;;  %5594 = vmatmul.bf16.gmra.mxu1 %v12398_v18  ;;  %v5725_v61 = vpop.f32.mrf.mxu0  ;;  %v14512_v44 = vld [vmem:[%s21093_s0 + $0x314] sm:$0xf0] }
 0x6a9   :  { %12525 = vmatmul.msk.bf16.gmra.mxu3 %vm323_vm0, %v12402_v57  ;;  %v12406_v40 = vor.u32 %v14512_v44, %v12405_v22 }
 0x6aa   :  { %v18456_v16 = vadd.f32 %v5813_v43, %v17916_v13  ;;  %v12748_v13 = vor.u32 %v14575_v20, %v12745_v25  ;;  %v21345_v43 = vld [vmem:[#allocation18_spill] sm:$0xff] }
 0x6ac   :  { %v5644_v19 = vpop.f32.mrf.mxu3  ;;  %6601 = vmatpush.bf16.msrb.mxu0 %v12748_v13 }
 0x6ad   :  { %v5645_v1 = vadd.f32 %v5644_v19, %v5555_v38  ;;  %v5557_v47 = vpop.f32.mrf.mxu1  ;;  %v14511_v38 = vld [vmem:[%s21093_s0 + $0x314] sm:$0xf] }
 0x6af   :  { %v18471_v8 = vadd.f32 %v5645_v1, %v17931_v52  ;;  %v5814_v4 = vpop.f32.mrf.mxu2  ;;  %v12407_v52 = vld [vmem:[%s21093_s0 + $0x318] sm:$0xf0] }
 0x6b0   :  { %v5815_v31 = vadd.f32 %v5814_v4, %v5725_v61  ;;  %v5728_v36 = vpop.f32.mrf.mxu0  ;;  %v12410_v25 = vor.u32 %v14511_v38, %v12407_v52  ;;  %v14513_v38 = vld [vmem:[%s21093_s0 + $0x324] sm:$0xf] }
 0x6b1   :  { %21344 = vst [vmem:[#allocation16_spill] sm:$0xff] %v18471_v8 }
 0x6b2   :  { %v18480_v34 = vadd.f32 %v5815_v31, %v21345_v43 }
 0x6b3   :  { %5767 = vmatmul.bf16.gmra.mxu0 %v12390_v17 }
 0x6b4   :  { %v5646_v61 = vpop.f32.mrf.mxu3  ;;  %12540 = vmatmul.msk.bf16.gmra.mxu2 %vm323_vm0, %v12394_v48 }
 0x6b5   :  { %v5647_v20 = vadd.f32 %v5646_v61, %v5557_v47  ;;  %v5560_v10 = vpop.f32.mrf.mxu1 }
 0x6b7   :  { %v18490_v19 = vadd.f32 %v5647_v20, %v17950_v51  ;;  %v5817_v13 = vpop.f32.mrf.mxu2  ;;  %v12413_v51 = vld [vmem:[%s21093_s0 + $0x320] sm:$0xf] }
 0x6b8   :  { %v5818_v1 = vadd.f32 %v5817_v13, %v5728_v36  ;;  %5599 = vmatmul.bf16.gmra.mxu1 %v12406_v40  ;;  %v5730_v4 = vpop.f32.mrf.mxu0  ;;  %v14514_v36 = vld [vmem:[%s21093_s0 + $0x324] sm:$0xf0] }
 0x6b9   :  { %12526 = vmatmul.msk.bf16.gmra.mxu3 %vm323_vm0, %v12410_v25  ;;  %v12414_v61 = vor.u32 %v14514_v36, %v12413_v51 }
 0x6ba   :  { %v18494_v31 = vadd.f32 %v5818_v1, %v17954_v49 }
 0x6bc   :  { %v5649_v17 = vpop.f32.mrf.mxu3 }
 0x6bd   :  { %v5650_v43 = vadd.f32 %v5649_v17, %v5560_v10  ;;  %v5562_v8 = vpop.f32.mrf.mxu1 }
 0x6bf   :  { %v18497_v48 = vadd.f32 %v5650_v43, %v17957_v30  ;;  %v5819_v47 = vpop.f32.mrf.mxu2  ;;  %v12415_v30 = vld [vmem:[%s21093_s0 + $0x328] sm:$0xf0] }
 0x6c0   :  { %v5820_v22 = vadd.f32 %v5819_v47, %v5730_v4  ;;  %v5733_v44 = vpop.f32.mrf.mxu0  ;;  %v12418_v13 = vor.u32 %v14513_v38, %v12415_v30  ;;  %v12737_v47 = vld [vmem:[%s21092_s1 + $0x408] sm:$0xf0] }
 0x6c2   :  { %v18506_v49 = vadd.f32 %v5820_v22, %v17966_v5 }
 0x6c3   :  { %5772 = vmatmul.bf16.gmra.mxu0 %v12398_v18  ;;  %v12735_v18 = vld [vmem:[%s21092_s1 + $0x400] sm:$0xf] }
 0x6c4   :  { %v5651_v52 = vpop.f32.mrf.mxu3  ;;  %12541 = vmatmul.msk.bf16.gmra.mxu2 %vm323_vm0, %v12402_v57  ;;  %v14574_v57 = vld [vmem:[%s21092_s1 + $0x404] sm:$0xf0] }
 0x6c5   :  { %v5652_v20 = vadd.f32 %v5651_v52, %v5562_v8  ;;  %v5565_v10 = vpop.f32.mrf.mxu1  ;;  %v12736_v8 = vor.u32 %v14574_v57, %v12735_v18 }
 0x6c7   :  { %v18516_v1 = vadd.f32 %v5652_v20, %v17976_v54  ;;  %v5822_v5 = vpop.f32.mrf.mxu2  ;;  %v14573_v54 = vld [vmem:[%s21092_s1 + $0x404] sm:$0xf]  ;;  %6424 = vmatpush.bf16.msrb.mxu1 %v12736_v8  ;;  %v12421_v20 = vld [vmem:[%s21093_s0 + $0x330] sm:$0xf] }
 0x6c8   :  { %v5823_v4 = vadd.f32 %v5822_v5, %v5733_v44  ;;  %5604 = vmatmul.bf16.gmra.mxu1 %v12414_v61  ;;  %v5735_v17 = vpop.f32.mrf.mxu0  ;;  %v14516_v5 = vld [vmem:[%s21093_s0 + $0x334] sm:$0xf0] }
 0x6c9   :  { %12527 = vmatmul.msk.bf16.gmra.mxu3 %vm323_vm0, %v12418_v13  ;;  %v12422_v18 = vor.u32 %v14516_v5, %v12421_v20 }
 0x6ca   :  { %v18520_v43 = vadd.f32 %v5823_v4, %v17980_v35  ;;  %v12740_v35 = vor.u32 %v14573_v54, %v12737_v47 }
 0x6cc   :  { %v5654_v22 = vpop.f32.mrf.mxu3  ;;  %6602 = vmatpush.bf16.msrb.mxu0 %v12740_v35 }
 0x6cd   :  { %v5655_v44 = vadd.f32 %v5654_v22, %v5565_v10  ;;  %v5567_v51 = vpop.f32.mrf.mxu1  ;;  %v14515_v10 = vld [vmem:[%s21093_s0 + $0x334] sm:$0xf] }
 0x6cf   :  { %v18535_v36 = vadd.f32 %v5655_v44, %v17995_v23  ;;  %v5824_v38 = vpop.f32.mrf.mxu2  ;;  %v12423_v23 = vld [vmem:[%s21093_s0 + $0x338] sm:$0xf0] }
 0x6d0   :  { %v5825_v30 = vadd.f32 %v5824_v38, %v5735_v17  ;;  %v5738_v52 = vpop.f32.mrf.mxu0  ;;  %v12426_v8 = vor.u32 %v14515_v10, %v12423_v23  ;;  %v14517_v10 = vld [vmem:[%s21093_s0 + $0x344] sm:$0xf]  ;;  %v12727_v23 = vld [vmem:[%s21092_s1 + $0x3f0] sm:$0xf] }
 0x6d2   :  { %v18544_v4 = vadd.f32 %v5825_v30, %v18004_v2 }
 0x6d3   :  { %5777 = vmatmul.bf16.gmra.mxu0 %v12406_v40 }
 0x6d4   :  { %v5656_v17 = vpop.f32.mrf.mxu3  ;;  %12542 = vmatmul.msk.bf16.gmra.mxu2 %vm323_vm0, %v12410_v25 }
 0x6d5   :  { %v5657_v57 = vadd.f32 %v5656_v17, %v5567_v51  ;;  %v5570_v54 = vpop.f32.mrf.mxu1  ;;  %v14572_v17 = vld [vmem:[%s21092_s1 + $0x3f4] sm:$0xf0] }
 0x6d7   :  { %v18554_v47 = vadd.f32 %v5657_v57, %v18014_v27  ;;  %v5827_v2 = vpop.f32.mrf.mxu2  ;;  %v12429_v27 = vld [vmem:[%s21093_s0 + $0x340] sm:$0xf] }
 0x6d8   :  { %v5828_v22 = vadd.f32 %v5827_v2, %v5738_v52  ;;  %5609 = vmatmul.bf16.gmra.mxu1 %v12422_v18  ;;  %v5740_v35 = vpop.f32.mrf.mxu0  ;;  %v14518_v52 = vld [vmem:[%s21093_s0 + $0x344] sm:$0xf0] }
 0x6d9   :  { %12528 = vmatmul.msk.bf16.gmra.mxu3 %vm323_vm0, %v12426_v8 }
 0x6da   :  { %v18558_v44 = vadd.f32 %v5828_v22, %v18018_v29 }
 0x6dc   :  { %v5659_v40 = vpop.f32.mrf.mxu3 }
 0x6dd   :  { %v5660_v38 = vadd.f32 %v5659_v40, %v5570_v54  ;;  %v5572_v30 = vpop.f32.mrf.mxu1  ;;  %v12728_v54 = vor.u32 %v14572_v17, %v12727_v23  ;;  %v12437_v17 = vld [vmem:[%s21093_s0 + $0x350] sm:$0xf] }
 0x6df   :  { %v18561_v25 = vadd.f32 %v5660_v38, %v18021_v39  ;;  %v5829_v51 = vpop.f32.mrf.mxu2  ;;  %v12431_v39 = vld [vmem:[%s21093_s0 + $0x348] sm:$0xf0]  ;;  %6425 = vmatpush.bf16.msrb.mxu1 %v12728_v54 }
 0x6e0   :  { %v5830_v20 = vadd.f32 %v5829_v51, %v5740_v35  ;;  %v5743_v5 = vpop.f32.mrf.mxu0  ;;  %v12434_v35 = vor.u32 %v14517_v10, %v12431_v39 }
 0x6e2   :  { %v18570_v29 = vadd.f32 %v5830_v20, %v18030_v11  ;;  %v12430_v11 = vor.u32 %v14518_v52, %v12429_v27 }
 0x6e3   :  { %5782 = vmatmul.bf16.gmra.mxu0 %v12414_v61 }
 0x6e4   :  { %v5661_v57 = vpop.f32.mrf.mxu3  ;;  %12543 = vmatmul.msk.bf16.gmra.mxu2 %vm323_vm0, %v12418_v13  ;;  %v14571_v13 = vld [vmem:[%s21092_s1 + $0x3f4] sm:$0xf] }
 0x6e5   :  { %v5662_v2 = vadd.f32 %v5661_v57, %v5572_v30  ;;  %v5575_v22 = vpop.f32.mrf.mxu1  ;;  %v12729_v30 = vld [vmem:[%s21092_s1 + $0x3f8] sm:$0xf0]  ;;  %v14520_v57 = vld [vmem:[%s21093_s0 + $0x354] sm:$0xf0] }
 0x6e6   :  { %v12732_v27 = vor.u32 %v14571_v13, %v12729_v30 }
 0x6e7   :  { %v18586_v40 = vadd.f32 %v5662_v2, %v18046_v15  ;;  %v5832_v61 = vpop.f32.mrf.mxu2  ;;  %v14519_v2 = vld [vmem:[%s21093_s0 + $0x354] sm:$0xf] }
 0x6e8   :  { %v5833_v38 = vadd.f32 %v5832_v61, %v5743_v5  ;;  %5614 = vmatmul.bf16.gmra.mxu1 %v12430_v11  ;;  %v5745_v51 = vpop.f32.mrf.mxu0  ;;  %6603 = vmatpush.bf16.msrb.mxu0 %v12732_v27  ;;  %v18617_v61 = vor.u32 %v14520_v57, %v12437_v17  ;;  %v14540_v57 = vld [vmem:[%s21093_s0 + $0x384] sm:$0xf0] }
 0x6e9   :  { %12529 = vmatmul.msk.bf16.gmra.mxu3 %vm323_vm0, %v12434_v35 }
 0x6ea   :  { %v18590_v20 = vadd.f32 %v5833_v38, %v18050_v62 }
 0x6ec   :  { %v5664_v15 = vpop.f32.mrf.mxu3 }
 0x6ed   :  { %v5665_v52 = vadd.f32 %v5664_v15, %v5575_v22  ;;  %v5577_v10 = vpop.f32.mrf.mxu1 }
 0x6ef   :  { %v18599_v5 = vadd.f32 %v5665_v52, %v18059_v59  ;;  %v5834_v39 = vpop.f32.mrf.mxu2  ;;  %v12439_v59 = vld [vmem:[%s21093_s0 + $0x358] sm:$0xf0] }
 0x6f0   :  { %v5835_v23 = vadd.f32 %v5834_v39, %v5745_v51  ;;  %v5748_v62 = vpop.f32.mrf.mxu0  ;;  %v18619_v13 = vor.u32 %v14519_v2, %v12439_v59  ;;  %v14539_v2 = vld [vmem:[%s21093_s0 + $0x384] sm:$0xf] }
 0x6f2   :  { %v18608_v54 = vadd.f32 %v5835_v23, %v18068_v0 }
 0x6f3   :  { %5787 = vmatmul.bf16.gmra.mxu0 %v12422_v18 }
 0x6f4   :  { %v5666_v22 = vpop.f32.mrf.mxu3  ;;  %12544 = vmatmul.msk.bf16.gmra.mxu2 %vm323_vm0, %v12426_v8 }
 0x6f5   :  { %v5667_v38 = vadd.f32 %v5666_v22, %v5577_v10  ;;  %v5580_v51 = vpop.f32.mrf.mxu1 }
 0x6f7   :  { %v18622_v0 = vadd.f32 %v5667_v38, %v18082_v12  ;;  %v5837_v30 = vpop.f32.mrf.mxu2 }
 0x6f8   :  { %v5838_v27 = vadd.f32 %v5837_v30, %v5748_v62  ;;  %5619 = vmatmul.bf16.gmra.mxu1 %v18617_v61  ;;  %v5750_v15 = vpop.f32.mrf.mxu0  ;;  %v12599_v62 = vld [vmem:[%s21093_s0 + $0x380] sm:$0xf] }
 0x6f9   :  { %12530 = vmatmul.msk.bf16.gmra.mxu3 %vm323_vm0, %v18619_v13  ;;  %v18649_v22 = vor.u32 %v14540_v57, %v12599_v62  ;;  %v14616_v62 = vld [vmem:[%s21094_s3 + $0x74] sm:$0xf0]  ;;  %v14615_v57 = vld [vmem:[%s21094_s3 + $0x74] sm:$0xf] }
 0x6fa   :  { %v18628_v18 = vadd.f32 %v5838_v27, %v18088_v55 }
 0x6fc   :  { %v5669_v8 = vpop.f32.mrf.mxu3 }
 0x6fd   :  { %v5670_v52 = vadd.f32 %v5669_v8, %v5580_v51  ;;  %v5582_v10 = vpop.f32.mrf.mxu1 }
 0x6ff   :  { %v18631_v39 = vadd.f32 %v5670_v52, %v18091_v33  ;;  %v5839_v23 = vpop.f32.mrf.mxu2  ;;  %v12601_v33 = vld [vmem:[%s21093_s0 + $0x388] sm:$0xf0] }
 0x700   :  { %v5840_v12 = vadd.f32 %v5839_v23, %v5750_v15  ;;  %v5753_v17 = vpop.f32.mrf.mxu0  ;;  %v18651_v30 = vor.u32 %v14539_v2, %v12601_v33  ;;  %v12999_v15 = vld [vmem:[%s21094_s3 + $0xf0] sm:$0xf] }
 0x702   :  { %v18640_v55 = vadd.f32 %v5840_v12, %v18100_v3 }
 0x703   :  { %5792 = vmatmul.bf16.gmra.mxu0 %v12430_v11  ;;  %v14632_v11 = vld [vmem:[%s21094_s3 + $0xf4] sm:$0xf0] }
 0x704   :  { %v5671_v59 = vpop.f32.mrf.mxu3  ;;  %12545 = vmatmul.msk.bf16.gmra.mxu2 %vm323_vm0, %v12434_v35  ;;  %v14631_v35 = vld [vmem:[%s21094_s3 + $0xf4] sm:$0xf] }
 0x705   :  { %v5672_v38 = vadd.f32 %v5671_v59, %v5582_v10  ;;  %v5585_v51 = vpop.f32.mrf.mxu1  ;;  %v13000_v10 = vor.u32 %v14632_v11, %v12999_v15 }
 0x707   :  { %v18654_v3 = vadd.f32 %v5672_v38, %v18114_v53  ;;  %v5842_v27 = vpop.f32.mrf.mxu2  ;;  %v13001_v53 = vld [vmem:[%s21094_s3 + $0xf8] sm:$0xf0]  ;;  %7587 = vmatpush.bf16.msra.mxu3 %v13000_v10  ;;  %v12607_v10 = vld [vmem:[%s21093_s0 + $0x390] sm:$0xf] }
 0x708   :  { %v5843_v8 = vadd.f32 %v5842_v27, %v5753_v17  ;;  %6426 = vmatmul.bf16.vlgmr.msrb.gmra.mxu1 %v18649_v22  ;;  %v5755_v52 = vpop.f32.mrf.mxu0  ;;  %v13004_v23 = vor.u32 %v14631_v35, %v13001_v53  ;;  %v12935_v17 = vld [vmem:[%s21094_s3 + $0x70] sm:$0xf]  ;;  %v14542_v53 = vld [vmem:[%s21093_s0 + $0x394] sm:$0xf0] }
 0x709   :  { %12797 = vmatmul.msk.bf16.vlgmr.msrb.gmra.mxu3 %vm323_vm0, %v18651_v30  ;;  %v12936_v2 = vor.u32 %v14616_v62, %v12935_v17  ;;  %v18707_v17 = vor.u32 %v14542_v53, %v12607_v10 }
 0x70a   :  { %v18672_v12 = vadd.f32 %v5843_v8, %v18132_v26  ;;  %7665 = vmatpush.bf16.msra.mxu2 %v13004_v23  ;;  %v12937_v26 = vld [vmem:[%s21094_s3 + $0x78] sm:$0xf0] }
 0x70b   :  { %v12940_v59 = vor.u32 %v14615_v57, %v12937_v26  ;;  %7548 = vmatpush.bf16.msra.mxu1 %v12936_v2 }
 0x70c   :  { %v5674_v33 = vpop.f32.mrf.mxu3 }
 0x70d   :  { %v5675_v38 = vadd.f32 %v5674_v33, %v5585_v51  ;;  %v5587_v27 = vpop.f32.mrf.mxu1  ;;  %7626 = vmatpush.bf16.msra.mxu0 %v12940_v59  ;;  %v14541_v51 = vld [vmem:[%s21093_s0 + $0x394] sm:$0xf] }
 0x70f   :  { %v18687_v15 = vadd.f32 %v5675_v38, %v18147_v46  ;;  %v5844_v11 = vpop.f32.mrf.mxu2  ;;  %v12609_v46 = vld [vmem:[%s21093_s0 + $0x398] sm:$0xf0] }
 0x710   :  { %v5845_v35 = vadd.f32 %v5844_v11, %v5755_v52  ;;  %v5758_v8 = vpop.f32.mrf.mxu0  ;;  %v21347_v11 = vld [vmem:[#allocation20_spill] sm:$0xff] }
 0x712   :  { %v18696_v23 = vadd.f32 %v5845_v35, %v18156_v7  ;;  %v18709_v7 = vor.u32 %v14541_v51, %v12609_v46  ;;  %v14544_v51 = vld [vmem:[%s21093_s0 + $0x3a4] sm:$0xf0]  ;;  %v21349_v46 = vld [vmem:[#allocation22_spill] sm:$0xff] }
 0x713   :  { %5797 = vmatmul.bf16.gmra.mxu0 %v18617_v61 }
 0x714   :  { %v5676_v52 = vpop.f32.mrf.mxu3  ;;  %12546 = vmatmul.msk.bf16.gmra.mxu2 %vm323_vm0, %v18619_v13 }
 0x715   :  { %v5677_v62 = vadd.f32 %v5676_v52, %v5587_v27  ;;  %v5590_v57 = vpop.f32.mrf.mxu1  ;;  %v14543_v52 = vld [vmem:[%s21093_s0 + $0x3a4] sm:$0xf] }
 0x717   :  { %v18712_v2 = vadd.f32 %v5677_v62, %v18168_v28  ;;  %v5847_v26 = vpop.f32.mrf.mxu2  ;;  %v12617_v62 = vld [vmem:[%s21093_s0 + $0x3a8] sm:$0xf0] }
 0x718   :  { %v5848_v33 = vadd.f32 %v5847_v26, %v5758_v8  ;;  %6431 = vmatmul.bf16.gmra.mxu1 %v18707_v17  ;;  %v5760_v59 = vpop.f32.mrf.mxu0  ;;  %v12615_v8 = vld [vmem:[%s21093_s0 + $0x3a0] sm:$0xf] }
 0x719   :  { %21346 = vst [vmem:[#allocation23_spill] sm:$0xff] %v18712_v2  ;;  %12798 = vmatmul.msk.bf16.gmra.mxu3 %vm323_vm0, %v18709_v7  ;;  %v18741_v26 = vor.u32 %v14544_v51, %v12615_v8 }
 0x71a   :  { %v18718_v61 = vadd.f32 %v5848_v33, %v18172_v50 }
 0x71c   :  { %v5679_v13 = vpop.f32.mrf.mxu3 }
 0x71d   :  { %v5680_v38 = vadd.f32 %v5679_v13, %v5590_v57  ;;  %v5592_v27 = vpop.f32.mrf.mxu1  ;;  %v18743_v13 = vor.u32 %v14543_v52, %v12617_v62  ;;  %v21352_v62 = vld [vmem:[#allocation25_spill] sm:$0xff] }
 0x71f   :  { %v18721_v35 = vadd.f32 %v5680_v38, %v21347_v11  ;;  %v5849_v10 = vpop.f32.mrf.mxu2  ;;  %v21350_v38 = vld [vmem:[#allocation24_spill] sm:$0xff] }
 0x720   :  { %v5850_v28 = vadd.f32 %v5849_v10, %v5760_v59  ;;  %v5763_v53 = vpop.f32.mrf.mxu0 }
 0x721   :  { %21348 = vst [vmem:[#allocation18_spill] sm:$0xff] %v18721_v35 }
 0x722   :  { %v18730_v50 = vadd.f32 %v5850_v28, %v21349_v46  ;;  %v12991_v28 = vld [vmem:[%s21094_s3 + $0xe0] sm:$0xf]  ;;  %v12993_v46 = vld [vmem:[%s21094_s3 + $0xe8] sm:$0xf0] }
 0x723   :  { %6604 = vmatmul.bf16.vlgmr.msrb.gmra.mxu0 %v18649_v22  ;;  %v14630_v22 = vld [vmem:[%s21094_s3 + $0xe4] sm:$0xf0] }
 0x724   :  { %v5681_v57 = vpop.f32.mrf.mxu3  ;;  %12813 = vmatmul.msk.bf16.vlgmr.msrb.gmra.mxu2 %vm323_vm0, %v18651_v30  ;;  %v14629_v30 = vld [vmem:[%s21094_s3 + $0xe4] sm:$0xf]  ;;  %v12992_v51 = vor.u32 %v14630_v22, %v12991_v28  ;;  %v12929_v28 = vld [vmem:[%s21094_s3 + $0x68] sm:$0xf0] }
 0x725   :  { %v5682_v33 = vadd.f32 %v5681_v57, %v5592_v27  ;;  %v5595_v59 = vpop.f32.mrf.mxu1  ;;  %v12996_v52 = vor.u32 %v14629_v30, %v12993_v46  ;;  %v21353_v46 = vld [vmem:[#allocation26_spill] sm:$0xff] }
 0x726   :  { %7588 = vmatpush.bf16.msra.mxu3 %v12992_v51 }
 0x727   :  { %v18746_v11 = vadd.f32 %v5682_v33, %v21350_v38  ;;  %v5852_v10 = vpop.f32.mrf.mxu2  ;;  %v14614_v33 = vld [vmem:[%s21094_s3 + $0x64] sm:$0xf0]  ;;  %v14613_v38 = vld [vmem:[%s21094_s3 + $0x64] sm:$0xf]  ;;  %7666 = vmatpush.bf16.msra.mxu2 %v12996_v52  ;;  %v12623_v52 = vld [vmem:[%s21093_s0 + $0x3b0] sm:$0xf] }
 0x728   :  { %v5853_v27 = vadd.f32 %v5852_v10, %v5763_v53  ;;  %6436 = vmatmul.bf16.gmra.mxu1 %v18741_v26  ;;  %v5765_v8 = vpop.f32.mrf.mxu0  ;;  %v12927_v53 = vld [vmem:[%s21094_s3 + $0x60] sm:$0xf]  ;;  %v12932_v30 = vor.u32 %v14613_v38, %v12929_v28 }
 0x729   :  { %21351 = vst [vmem:[#allocation20_spill] sm:$0xff] %v18746_v11  ;;  %12799 = vmatmul.msk.bf16.gmra.mxu3 %vm323_vm0, %v18743_v13  ;;  %v12928_v10 = vor.u32 %v14614_v33, %v12927_v53  ;;  %v14546_v53 = vld [vmem:[%s21093_s0 + $0x3b4] sm:$0xf0] }
 0x72a   :  { %v18764_v57 = vadd.f32 %v5853_v27, %v21352_v62  ;;  %7627 = vmatpush.bf16.msra.mxu0 %v12932_v30  ;;  %v21355_v33 = vld [vmem:[#allocation27_spill] sm:$0xff] }
 0x72b   :  { %7549 = vmatpush.bf16.msra.mxu1 %v12928_v10  ;;  %v18799_v10 = vor.u32 %v14546_v53, %v12623_v52  ;;  %v21357_v53 = vld [vmem:[#allocation28_spill] sm:$0xff] }
 0x72c   :  { %v5684_v22 = vpop.f32.mrf.mxu3 }
 0x72d   :  { %v5685_v27 = vadd.f32 %v5684_v22, %v5595_v59  ;;  %v5597_v51 = vpop.f32.mrf.mxu1  ;;  %v14545_v59 = vld [vmem:[%s21093_s0 + $0x3b4] sm:$0xf] }
 0x72f   :  { %v18779_v62 = vadd.f32 %v5685_v27, %v21353_v46  ;;  %v5854_v11 = vpop.f32.mrf.mxu2 }
 0x730   :  { %v5855_v35 = vadd.f32 %v5854_v11, %v5765_v8  ;;  %v5768_v2 = vpop.f32.mrf.mxu0  ;;  %v12625_v11 = vld [vmem:[%s21093_s0 + $0x3b8] sm:$0xf0] }
 0x731   :  { %21354 = vst [vmem:[#allocation22_spill] sm:$0xff] %v18779_v62 }
 0x732   :  { %v18788_v38 = vadd.f32 %v5855_v35, %v21355_v33  ;;  %v18801_v35 = vor.u32 %v14545_v59, %v12625_v11 }
 0x733   :  { %6609 = vmatmul.bf16.gmra.mxu0 %v18707_v17 }
 0x734   :  { %v5686_v8 = vpop.f32.mrf.mxu3  ;;  %12814 = vmatmul.msk.bf16.gmra.mxu2 %vm323_vm0, %v18709_v7 }
 0x735   :  { %v5687_v28 = vadd.f32 %v5686_v8, %v5597_v51  ;;  %v5600_v22 = vpop.f32.mrf.mxu1 }
 0x737   :  { %v18804_v30 = vadd.f32 %v5687_v28, %v18234_v42  ;;  %v5857_v27 = vpop.f32.mrf.mxu2  ;;  %v14548_v28 = vld [vmem:[%s21093_s0 + $0x3c4] sm:$0xf0] }
 0x738   :  { %v5858_v46 = vadd.f32 %v5857_v27, %v5768_v2  ;;  %6441 = vmatmul.bf16.gmra.mxu1 %v18799_v10  ;;  %v5770_v33 = vpop.f32.mrf.mxu0  ;;  %v12631_v2 = vld [vmem:[%s21093_s0 + $0x3c0] sm:$0xf]  ;;  %v21359_v27 = vld [vmem:[#allocation29_spill] sm:$0xff] }
 0x739   :  { %21356 = vst [vmem:[#allocation24_spill] sm:$0xff] %v18804_v30  ;;  %12800 = vmatmul.msk.bf16.gmra.mxu3 %vm323_vm0, %v18801_v35  ;;  %v12983_v30 = vld [vmem:[%s21094_s3 + $0xd0] sm:$0xf] }
 0x73a   :  { %v18810_v17 = vadd.f32 %v5858_v46, %v18238_v6  ;;  %v12633_v46 = vld [vmem:[%s21093_s0 + $0x3c8] sm:$0xf0] }
 0x73c   :  { %v5689_v7 = vpop.f32.mrf.mxu3 }
 0x73d   :  { %v5690_v52 = vadd.f32 %v5689_v7, %v5600_v22  ;;  %v5602_v51 = vpop.f32.mrf.mxu1  ;;  %v14547_v22 = vld [vmem:[%s21093_s0 + $0x3c4] sm:$0xf]  ;;  %v18833_v7 = vor.u32 %v14548_v28, %v12631_v2 }
 0x73f   :  { %v18813_v59 = vadd.f32 %v5690_v52, %v21357_v53  ;;  %v5859_v11 = vpop.f32.mrf.mxu2 }
 0x740   :  { %v5860_v42 = vadd.f32 %v5859_v11, %v5770_v33  ;;  %v5773_v8 = vpop.f32.mrf.mxu0  ;;  %v18835_v11 = vor.u32 %v14547_v22, %v12633_v46  ;;  %v12985_v22 = vld [vmem:[%s21094_s3 + $0xd8] sm:$0xf0] }
 0x741   :  { %21358 = vst [vmem:[#allocation25_spill] sm:$0xff] %v18813_v59 }
 0x742   :  { %v18822_v6 = vadd.f32 %v5860_v42, %v21359_v27  ;;  %v21361_v42 = vld [vmem:[#allocation30_spill] sm:$0xff] }
 0x743   :  { %6614 = vmatmul.bf16.gmra.mxu0 %v18741_v26  ;;  %v14628_v26 = vld [vmem:[%s21094_s3 + $0xd4] sm:$0xf0] }
 0x744   :  { %21360 = vst [vmem:[#allocation26_spill] sm:$0xff] %v18822_v6  ;;  %v5691_v33 = vpop.f32.mrf.mxu3  ;;  %12815 = vmatmul.msk.bf16.gmra.mxu2 %vm323_vm0, %v18743_v13  ;;  %v14627_v13 = vld [vmem:[%s21094_s3 + $0xd4] sm:$0xf]  ;;  %v12984_v28 = vor.u32 %v14628_v26, %v12983_v30  ;;  %v14612_v30 = vld [vmem:[%s21094_s3 + $0x54] sm:$0xf0] }
 0x745   :  { %v5692_v52 = vadd.f32 %v5691_v33, %v5602_v51  ;;  %v5605_v53 = vpop.f32.mrf.mxu1  ;;  %v12988_v46 = vor.u32 %v14627_v13, %v12985_v22  ;;  %v21363_v33 = vld [vmem:[#allocation31_spill] sm:$0xff] }
 0x746   :  { %7589 = vmatpush.bf16.msra.mxu3 %v12984_v28  ;;  %v12921_v26 = vld [vmem:[%s21094_s3 + $0x58] sm:$0xf0] }
 0x747   :  { %v18838_v27 = vadd.f32 %v5692_v52, %v21361_v42  ;;  %v5862_v59 = vpop.f32.mrf.mxu2  ;;  %7667 = vmatpush.bf16.msra.mxu2 %v12988_v46  ;;  %v12639_v46 = vld [vmem:[%s21093_s0 + $0x3d0] sm:$0xf] }
 0x748   :  { %v5863_v51 = vadd.f32 %v5862_v59, %v5773_v8  ;;  %6446 = vmatmul.bf16.gmra.mxu1 %v18833_v7  ;;  %v5775_v2 = vpop.f32.mrf.mxu0  ;;  %v12919_v59 = vld [vmem:[%s21094_s3 + $0x50] sm:$0xf]  ;;  %v14611_v8 = vld [vmem:[%s21094_s3 + $0x54] sm:$0xf] }
 0x749   :  { %21362 = vst [vmem:[#allocation27_spill] sm:$0xff] %v18838_v27  ;;  %12801 = vmatmul.msk.bf16.gmra.mxu3 %vm323_vm0, %v18835_v11  ;;  %v12920_v42 = vor.u32 %v14612_v30, %v12919_v59  ;;  %v14550_v59 = vld [vmem:[%s21093_s0 + $0x3d4] sm:$0xf0]  ;;  %v21367_v30 = vld [vmem:[#allocation8_spill] sm:$0xff] }
 0x74a   :  { %v18856_v52 = vadd.f32 %v5863_v51, %v21363_v33  ;;  %v12924_v51 = vor.u32 %v14611_v8, %v12921_v26  ;;  %v21365_v33 = vld [vmem:[#allocation11_spill] sm:$0xff] }
 0x74b   :  { %7550 = vmatpush.bf16.msra.mxu1 %v12920_v42  ;;  %v18891_v42 = vor.u32 %v14550_v59, %v12639_v46 }
 0x74c   :  { %21364 = vst [vmem:[#allocation28_spill] sm:$0xff] %v18856_v52  ;;  %v5694_v13 = vpop.f32.mrf.mxu3  ;;  %7628 = vmatpush.bf16.msra.mxu0 %v12924_v51 }
 0x74d   :  { %v5695_v28 = vadd.f32 %v5694_v13, %v5605_v53  ;;  %v5607_v22 = vpop.f32.mrf.mxu1  ;;  %v14549_v53 = vld [vmem:[%s21093_s0 + $0x3d4] sm:$0xf] }
 0x74f   :  { %v18871_v27 = vadd.f32 %v5695_v28, %v21365_v33  ;;  %v5864_v52 = vpop.f32.mrf.mxu2 }
 0x750   :  { %v5865_v62 = vadd.f32 %v5864_v52, %v5775_v2  ;;  %v5778_v6 = vpop.f32.mrf.mxu0  ;;  %v12641_v2 = vld [vmem:[%s21093_s0 + $0x3d8] sm:$0xf0] }
 0x751   :  { %21366 = vst [vmem:[#allocation29_spill] sm:$0xff] %v18871_v27 }
 0x752   :  { %v18880_v8 = vadd.f32 %v5865_v62, %v21367_v30  ;;  %v18893_v62 = vor.u32 %v14549_v53, %v12641_v2 }
 0x753   :  { %6619 = vmatmul.bf16.gmra.mxu0 %v18799_v10 }
 0x754   :  { %21368 = vst [vmem:[#allocation30_spill] sm:$0xff] %v18880_v8  ;;  %v5696_v52 = vpop.f32.mrf.mxu3  ;;  %12816 = vmatmul.msk.bf16.gmra.mxu2 %vm323_vm0, %v18801_v35 }
 0x755   :  { %v5697_v26 = vadd.f32 %v5696_v52, %v5607_v22  ;;  %v5610_v13 = vpop.f32.mrf.mxu1  ;;  %v14552_v52 = vld [vmem:[%s21093_s0 + $0x3e4] sm:$0xf0] }
 0x757   :  { %v18896_v51 = vadd.f32 %v5697_v26, %v18298_v41  ;;  %v5867_v28 = vpop.f32.mrf.mxu2  ;;  %v21372_v26 = vld [vmem:[#allocation13_spill] sm:$0xff] }
 0x758   :  { %v5868_v33 = vadd.f32 %v5867_v28, %v5778_v6  ;;  %6451 = vmatmul.bf16.gmra.mxu1 %v18891_v42  ;;  %v5780_v30 = vpop.f32.mrf.mxu0  ;;  %v12647_v6 = vld [vmem:[%s21093_s0 + $0x3e0] sm:$0xf] }
 0x759   :  { %21369 = vst [vmem:[#allocation31_spill] sm:$0xff] %v18896_v51  ;;  %12802 = vmatmul.msk.bf16.gmra.mxu3 %vm323_vm0, %v18893_v62 }
 0x75a   :  { %v18902_v10 = vadd.f32 %v5868_v33, %v18302_v9  ;;  %v18925_v33 = vor.u32 %v14552_v52, %v12647_v6 }
 0x75c   :  { %21370 = vst [vmem:[#allocation11_spill] sm:$0xff] %v18902_v10  ;;  %v5699_v35 = vpop.f32.mrf.mxu3  ;;  %v14562_v10 = vld [vmem:[%s21093_s0 + $0x434] sm:$0xf0] }
 0x75d   :  { %v5700_v46 = vadd.f32 %v5699_v35, %v5610_v13  ;;  %v5612_v22 = vpop.f32.mrf.mxu1  ;;  %v14551_v13 = vld [vmem:[%s21093_s0 + $0x3e4] sm:$0xf] }
 0x75f   :  { %v18905_v59 = vadd.f32 %v5700_v46, %v18305_v32  ;;  %v5869_v53 = vpop.f32.mrf.mxu2  ;;  %v12649_v32 = vld [vmem:[%s21093_s0 + $0x3e8] sm:$0xf0] }
 0x760   :  { %v5870_v41 = vadd.f32 %v5869_v53, %v5780_v30  ;;  %v5783_v2 = vpop.f32.mrf.mxu0  ;;  %v18927_v46 = vor.u32 %v14551_v13, %v12649_v32  ;;  %v21374_v53 = vld [vmem:[#allocation9_spill] sm:$0xff] }
 0x761   :  { %21371 = vst [vmem:[#allocation8_spill] sm:$0xff] %v18905_v59  ;;  %v12975_v59 = vld [vmem:[%s21094_s3 + $0xc0] sm:$0xf]  ;;  %v12977_v13 = vld [vmem:[%s21094_s3 + $0xc8] sm:$0xf0] }
 0x762   :  { %v18914_v9 = vadd.f32 %v5870_v41, %v21372_v26 }
 0x763   :  { %6624 = vmatmul.bf16.gmra.mxu0 %v18833_v7  ;;  %v14626_v7 = vld [vmem:[%s21094_s3 + $0xc4] sm:$0xf0] }
 0x764   :  { %21373 = vst [vmem:[#allocation13_spill] sm:$0xff] %v18914_v9  ;;  %v5701_v28 = vpop.f32.mrf.mxu3  ;;  %12817 = vmatmul.msk.bf16.gmra.mxu2 %vm323_vm0, %v18835_v11  ;;  %v14625_v11 = vld [vmem:[%s21094_s3 + $0xc4] sm:$0xf]  ;;  %v12976_v52 = vor.u32 %v14626_v7, %v12975_v59  ;;  %v14610_v59 = vld [vmem:[%s21094_s3 + $0x44] sm:$0xf0] }
 0x765   :  { %v5702_v30 = vadd.f32 %v5701_v28, %v5612_v22  ;;  %v5615_v35 = vpop.f32.mrf.mxu1  ;;  %v12980_v32 = vor.u32 %v14625_v11, %v12977_v13  ;;  %v21376_v28 = vld [vmem:[#allocation15_spill] sm:$0xff]  ;;  %v12913_v7 = vld [vmem:[%s21094_s3 + $0x48] sm:$0xf0] }
 0x766   :  { %7590 = vmatpush.bf16.msra.mxu3 %v12976_v52 }
 0x767   :  { %v18930_v41 = vadd.f32 %v5702_v30, %v21374_v53  ;;  %v5872_v26 = vpop.f32.mrf.mxu2  ;;  %v14609_v53 = vld [vmem:[%s21094_s3 + $0x44] sm:$0xf]  ;;  %7668 = vmatpush.bf16.msra.mxu2 %v12980_v32  ;;  %v12655_v32 = vld [vmem:[%s21093_s0 + $0x3f0] sm:$0xf] }
 0x768   :  { %v5873_v22 = vadd.f32 %v5872_v26, %v5783_v2  ;;  %6456 = vmatmul.bf16.gmra.mxu1 %v18925_v33  ;;  %v5785_v6 = vpop.f32.mrf.mxu0  ;;  %v12911_v2 = vld [vmem:[%s21094_s3 + $0x40] sm:$0xf] }
 0x769   :  { %21375 = vst [vmem:[#allocation9_spill] sm:$0xff] %v18930_v41  ;;  %12803 = vmatmul.msk.bf16.gmra.mxu3 %vm323_vm0, %v18927_v46  ;;  %v12912_v26 = vor.u32 %v14610_v59, %v12911_v2  ;;  %v14554_v2 = vld [vmem:[%s21093_s0 + $0x3f4] sm:$0xf0]  ;;  %v21380_v59 = vld [vmem:[#allocation17_spill] sm:$0xff] }
 0x76a   :  { %v18948_v30 = vadd.f32 %v5873_v22, %v21376_v28  ;;  %v12916_v22 = vor.u32 %v14609_v53, %v12913_v7  ;;  %v21378_v28 = vld [vmem:[#allocation10_spill] sm:$0xff] }
 0x76b   :  { %7551 = vmatpush.bf16.msra.mxu1 %v12912_v26  ;;  %v12656_v26 = vor.u32 %v14554_v2, %v12655_v32 }
 0x76c   :  { %21377 = vst [vmem:[#allocation15_spill] sm:$0xff] %v18948_v30  ;;  %v5704_v11 = vpop.f32.mrf.mxu3  ;;  %7629 = vmatpush.bf16.msra.mxu0 %v12916_v22 }
 0x76d   :  { %v5705_v52 = vadd.f32 %v5704_v11, %v5615_v35  ;;  %v5617_v13 = vpop.f32.mrf.mxu1  ;;  %v14553_v35 = vld [vmem:[%s21093_s0 + $0x3f4] sm:$0xf] }
 0x76f   :  { %v18963_v41 = vadd.f32 %v5705_v52, %v21378_v28  ;;  %v5874_v51 = vpop.f32.mrf.mxu2 }
 0x770   :  { %v5875_v30 = vadd.f32 %v5874_v51, %v5785_v6  ;;  %v5788_v27 = vpop.f32.mrf.mxu0  ;;  %v12657_v51 = vld [vmem:[%s21093_s0 + $0x3f8] sm:$0xf0] }
 0x771   :  { %21379 = vst [vmem:[#allocation10_spill] sm:$0xff] %v18963_v41  ;;  %v12660_v22 = vor.u32 %v14553_v35, %v12657_v51  ;;  %v14555_v35 = vld [vmem:[%s21093_s0 + $0x404] sm:$0xf] }
 0x772   :  { %v18972_v53 = vadd.f32 %v5875_v30, %v21380_v59 }
 0x773   :  { %6629 = vmatmul.bf16.gmra.mxu0 %v18891_v42 }
 0x774   :  { %21381 = vst [vmem:[#allocation17_spill] sm:$0xff] %v18972_v53  ;;  %v5706_v6 = vpop.f32.mrf.mxu3  ;;  %12818 = vmatmul.msk.bf16.gmra.mxu2 %vm323_vm0, %v18893_v62 }
 0x775   :  { %v5707_v7 = vadd.f32 %v5706_v6, %v5617_v13  ;;  %v5620_v11 = vpop.f32.mrf.mxu1 }
 0x777   :  { %v18984_v30 = vadd.f32 %v5707_v7, %v18362_v14  ;;  %v5877_v52 = vpop.f32.mrf.mxu2  ;;  %v12663_v14 = vld [vmem:[%s21093_s0 + $0x400] sm:$0xf] }
 0x778   :  { %v5878_v28 = vadd.f32 %v5877_v52, %v5788_v27  ;;  %6461 = vmatmul.bf16.gmra.mxu1 %v12656_v26  ;;  %v5790_v59 = vpop.f32.mrf.mxu0  ;;  %v14556_v27 = vld [vmem:[%s21093_s0 + $0x404] sm:$0xf0] }
 0x779   :  { %21382 = vst [vmem:[#allocation32_spill] sm:$0xff] %v18984_v30  ;;  %12804 = vmatmul.msk.bf16.gmra.mxu3 %vm323_vm0, %v12660_v22  ;;  %v12664_v51 = vor.u32 %v14556_v27, %v12663_v14  ;;  %v12969_v27 = vld [vmem:[%s21094_s3 + $0xb8] sm:$0xf0] }
 0x77a   :  { %v18988_v41 = vadd.f32 %v5878_v28, %v18366_v45 }
 0x77c   :  { %21383 = vst [vmem:[#allocation33_spill] sm:$0xff] %v18988_v41  ;;  %v5709_v42 = vpop.f32.mrf.mxu3  ;;  %v12687_v41 = vld [vmem:[%s21093_s0 + $0x430] sm:$0xf] }
 0x77d   :  { %v5710_v53 = vadd.f32 %v5709_v42, %v5620_v11  ;;  %v5622_v9 = vpop.f32.mrf.mxu1 }
 0x77f   :  { %v18991_v62 = vadd.f32 %v5710_v53, %v18369_v58  ;;  %v5879_v13 = vpop.f32.mrf.mxu2  ;;  %v12665_v58 = vld [vmem:[%s21093_s0 + $0x408] sm:$0xf0] }
 0x780   :  { %v5880_v32 = vadd.f32 %v5879_v13, %v5790_v59  ;;  %v5793_v2 = vpop.f32.mrf.mxu0  ;;  %v12668_v11 = vor.u32 %v14555_v35, %v12665_v58  ;;  %v21388_v13 = vld [vmem:[#allocation19_spill] sm:$0xff] }
 0x781   :  { %21384 = vst [vmem:[#allocation34_spill] sm:$0xff] %v18991_v62 }
 0x782   :  { %v19000_v45 = vadd.f32 %v5880_v32, %v18378_v63  ;;  %v21386_v63 = vld [vmem:[#allocation12_spill] sm:$0xff] }
 0x783   :  { %6634 = vmatmul.bf16.gmra.mxu0 %v18925_v33  ;;  %v12967_v33 = vld [vmem:[%s21094_s3 + $0xb0] sm:$0xf] }
 0x784   :  { %21385 = vst [vmem:[#allocation35_spill] sm:$0xff] %v19000_v45  ;;  %v5711_v53 = vpop.f32.mrf.mxu3  ;;  %12819 = vmatmul.msk.bf16.gmra.mxu2 %vm323_vm0, %v18927_v46  ;;  %v14623_v46 = vld [vmem:[%s21094_s3 + $0xb4] sm:$0xf] }
 0x785   :  { %v5712_v6 = vadd.f32 %v5711_v53, %v5622_v9  ;;  %v6427_v7 = vpop.f32.mrf.mxu1  ;;  %v14624_v9 = vld [vmem:[%s21094_s3 + $0xb4] sm:$0xf0]  ;;  %v12972_v58 = vor.u32 %v14623_v46, %v12969_v27  ;;  %v14607_v27 = vld [vmem:[%s21094_s3 + $0x34] sm:$0xf] }
 0x786   :  { %v12968_v14 = vor.u32 %v14624_v9, %v12967_v33  ;;  %v12673_v33 = vld [vmem:[%s21093_s0 + $0x418] sm:$0xf0]  ;;  %v21390_v9 = vld [vmem:[#allocation21_spill] sm:$0xff] }
 0x787   :  { %v19012_v52 = vadd.f32 %v5712_v6, %v21386_v63  ;;  %v5882_v28 = vpop.f32.mrf.mxu2  ;;  %7669 = vmatpush.bf16.msra.mxu2 %v12972_v58 }
 0x788   :  { %v5883_v59 = vadd.f32 %v5882_v28, %v5793_v2  ;;  %6466 = vmatmul.bf16.gmra.mxu1 %v12664_v51  ;;  %v5795_v42 = vpop.f32.mrf.mxu0  ;;  %7591 = vmatpush.bf16.msra.mxu3 %v12968_v14  ;;  %v12671_v28 = vld [vmem:[%s21093_s0 + $0x410] sm:$0xf]  ;;  %v14608_v14 = vld [vmem:[%s21094_s3 + $0x34] sm:$0xf0] }
 0x789   :  { %21387 = vst [vmem:[#allocation12_spill] sm:$0xff] %v19012_v52  ;;  %12805 = vmatmul.msk.bf16.gmra.mxu3 %vm323_vm0, %v12668_v11 }
 0x78a   :  { %v19016_v32 = vadd.f32 %v5883_v59, %v21388_v13  ;;  %v14558_v59 = vld [vmem:[%s21093_s0 + $0x414] sm:$0xf0]  ;;  %v14557_v13 = vld [vmem:[%s21093_s0 + $0x414] sm:$0xf] }
 0x78c   :  { %21389 = vst [vmem:[#allocation19_spill] sm:$0xff] %v19016_v32  ;;  %v6516_v2 = vpop.f32.mrf.mxu3 }
 0x78d   :  { %v6429_v35 = vpop.f32.mrf.mxu1 }
 0x78f   :  { %v5884_v53 = vpop.f32.mrf.mxu2 }
 0x790   :  { %v5885_v6 = vadd.f32 %v5884_v53, %v5795_v42  ;;  %v5798_v63 = vpop.f32.mrf.mxu0  ;;  %v12903_v42 = vld [vmem:[%s21094_s3 + $0x30] sm:$0xf]  ;;  %v12905_v53 = vld [vmem:[%s21094_s3 + $0x38] sm:$0xf0] }
 0x791   :  { %v12904_v58 = vor.u32 %v14608_v14, %v12903_v42  ;;  %v12908_v52 = vor.u32 %v14607_v27, %v12905_v53  ;;  %v6974_v27 = vld [vmem:[%s21095_s2] sm:$0x3]  ;;  %v21394_v53 = vld [vmem:[#allocation14_spill] sm:$0xff] }
 0x792   :  { %v19043_v46 = vadd.f32 %v5885_v6, %v21390_v9  ;;  %v19058_v9 = vor.u32 %v14558_v59, %v12671_v28 }
 0x793   :  { %6639 = vmatmul.bf16.gmra.mxu0 %v12656_v26  ;;  %7552 = vmatpush.bf16.msra.mxu1 %v12904_v58 }
 0x794   :  { %21391 = vst [vmem:[#allocation21_spill] sm:$0xff] %v19043_v46  ;;  %v6518_v6 = vpop.f32.mrf.mxu3  ;;  %12820 = vmatmul.msk.bf16.gmra.mxu2 %vm323_vm0, %v12660_v22  ;;  %v19062_v46 = vor.u32 %v14557_v13, %v12673_v33  ;;  %7630 = vmatpush.bf16.msra.mxu0 %v12908_v52  ;;  %v12679_v52 = vld [vmem:[%s21093_s0 + $0x420] sm:$0xf] }
 0x795   :  { %v19060_v62 = vpop.f32.mrf.mxu1 }
 0x797   :  { %v5887_v30 = vpop.f32.mrf.mxu2 }
 0x798   :  { %v5888_v32 = vadd.f32 %v5887_v30, %v5798_v63  ;;  %6471 = vmatmul.bf16.gmra.mxu1 %v19058_v9  ;;  %v5800_v26 = vpop.f32.mrf.mxu0  ;;  %v14560_v30 = vld [vmem:[%s21093_s0 + $0x424] sm:$0xf0]  ;;  %v6517_v63 = vadd.f32 %v6516_v2, %v6427_v7 }
 0x799   :  { %12806 = vmatmul.msk.bf16.gmra.mxu3 %vm323_vm0, %v19062_v46  ;;  %v19093_v7 = vor.u32 %v14560_v30, %v12679_v52  ;;  %v6519_v52 = vadd.f32 %v6518_v6, %v6429_v35 }
 0x79a   :  { %v19068_v42 = vadd.f32 %v5888_v32, %v18430_v56  ;;  %v14559_v56 = vld [vmem:[%s21093_s0 + $0x424] sm:$0xf]  ;;  %v12681_v32 = vld [vmem:[%s21093_s0 + $0x428] sm:$0xf0] }
 0x79b   :  { %v19097_v2 = vor.u32 %v14559_v56, %v12681_v32 }
 0x79c   :  { %21392 = vst [vmem:[#allocation36_spill] sm:$0xff] %v19068_v42  ;;  %v6521_v22 = vpop.f32.mrf.mxu3  ;;  %v19102_v42 = vperm.slane %v6974_v27, 1 }
 0x79d   :  { %v19070_v28 = vpop.f32.mrf.mxu1 }
 0x79f   :  { %v5889_v59 = vpop.f32.mrf.mxu2 }
 0x7a0   :  { %v5890_v14 = vadd.f32 %v5889_v59, %v5800_v26  ;;  %v6605_v13 = vpop.f32.mrf.mxu0  ;;  %v6838_v26 = vadd.f32 %v6517_v63, %v21394_v53  ;;  %v19100_v59 = vperm.slane %v6974_v27, 0  ;;  %v12959_v63 = vld [vmem:[%s21094_s3 + $0xa0] sm:$0xf]  ;;  %v14621_v53 = vld [vmem:[%s21094_s3 + $0xa4] sm:$0xf] }
 0x7a2   :  { %v19079_v33 = vadd.f32 %v5890_v14, %v18442_v37 }
 0x7a3   :  { %6644 = vmatmul.bf16.gmra.mxu0 %v12664_v51 }
 0x7a4   :  { %21393 = vst [vmem:[#allocation37_spill] sm:$0xff] %v19079_v33  ;;  %v19090_v58 = vpop.f32.mrf.mxu3  ;;  %12821 = vmatmul.msk.bf16.gmra.mxu2 %vm323_vm0, %v12668_v11  ;;  %v6980_v11 = vadd.f32 %v19100_v59, %v6838_v26  ;;  %v6840_v26 = vadd.f32 %v6519_v52, %v18426_v21  ;;  %v12689_v21 = vld [vmem:[%s21093_s0 + $0x438] sm:$0xf0] }
 0x7a5   :  { %v19095_v37 = vpop.f32.mrf.mxu1 }
 0x7a6   :  { %v6982_v52 = vadd.f32 %v19100_v59, %v6840_v26 }
 0x7a7   :  { %v6694_v14 = vpop.f32.mrf.mxu2 }
 0x7a8   :  { %v6695_v33 = vadd.f32 %v6694_v14, %v6605_v13  ;;  %6476 = vmatmul.bf16.gmra.mxu1 %v19093_v7  ;;  %v6607_v51 = vpop.f32.mrf.mxu0  ;;  %v14622_v13 = vld [vmem:[%s21094_s3 + $0xa4] sm:$0xf0] }
 0x7a9   :  { %12807 = vmatmul.msk.bf16.gmra.mxu3 %vm323_vm0, %v19097_v2  ;;  %v12960_v27 = vor.u32 %v14622_v13, %v12959_v63 }
 0x7aa   :  { %v6839_v30 = vadd.f32 %v6695_v33, %v18456_v16  ;;  %v12961_v16 = vld [vmem:[%s21094_s3 + $0xa8] sm:$0xf0]  ;;  %v6988_v33 = vmax.f32 %v6980_v11, 0.0  ;;  %v14561_v11 = vld [vmem:[%s21093_s0 + $0x434] sm:$0xf] }
 0x7ab   :  { %v12964_v6 = vor.u32 %v14621_v53, %v12961_v16  ;;  %7592 = vmatpush.bf16.msra.mxu3 %v12960_v27  ;;  %v12895_v27 = vld [vmem:[%s21094_s3 + $0x20] sm:$0xf]  ;;  %v14606_v53 = vld [vmem:[%s21094_s3 + $0x24] sm:$0xf0] }
 0x7ac   :  { %v6981_v56 = vadd.f32 %v19102_v42, %v6839_v30  ;;  %v19116_v32 = vpop.f32.mrf.mxu3  ;;  %v12896_v16 = vor.u32 %v14606_v53, %v12895_v27 }
 0x7ad   :  { %v19124_v35 = vpop.f32.mrf.mxu1  ;;  %7670 = vmatpush.bf16.msra.mxu2 %v12964_v6  ;;  %v14605_v6 = vld [vmem:[%s21094_s3 + $0x24] sm:$0xf] }
 0x7ae   :  { %v6989_v14 = vmax.f32 %v6981_v56, 0.0  ;;  %7553 = vmatpush.bf16.msra.mxu1 %v12896_v16 }
 0x7af   :  { %v6696_v30 = vpop.f32.mrf.mxu2 }
 0x7b0   :  { %v6996_v45 = vpack.c.bf16 %v6989_v14, %v6988_v33  ;;  %v6697_v63 = vadd.f32 %v6696_v30, %v6607_v51  ;;  %v6610_v13 = vpop.f32.mrf.mxu0  ;;  %v6522_v51 = vadd.f32 %v6521_v22, %v19060_v62  ;;  %v12897_v62 = vld [vmem:[%s21094_s3 + $0x28] sm:$0xf0]  ;;  %v19158_v22 = vor.u32 %v14562_v10, %v12687_v41 }
 0x7b1   :  { %v12900_v33 = vor.u32 %v14605_v6, %v12897_v62  ;;  %v6990_v14 = vmax.f32 %v6982_v52, 0.0  ;;  %v6524_v41 = vadd.f32 %v19090_v58, %v19070_v28  ;;  %v12695_v28 = vld [vmem:[%s21093_s0 + $0x440] sm:$0xf] }
 0x7b2   :  { %7000 = vst [vmem:[#allocation2] sm:$0xff] %v6996_v45  ;;  %v6841_v56 = vadd.f32 %v6697_v63, %v18480_v34  ;;  %v6842_v30 = vadd.f32 %v6522_v51, %v18433_v60 }
 0x7b3   :  { %6649 = vmatmul.bf16.gmra.mxu0 %v19058_v9  ;;  %v19162_v9 = vor.u32 %v14561_v11, %v12689_v21  ;;  %v6844_v52 = vadd.f32 %v6524_v41, %v18452_v24 }
 0x7b4   :  { %v6983_v34 = vadd.f32 %v19102_v42, %v6841_v56  ;;  %v6528_v45 = vpop.f32.mrf.mxu3  ;;  %12822 = vmatmul.msk.bf16.gmra.mxu2 %vm323_vm0, %v19062_v46  ;;  %7631 = vmatpush.bf16.msra.mxu0 %v12900_v33  ;;  %v6984_v10 = vadd.f32 %v19100_v59, %v6842_v30  ;;  %v6527_v33 = vadd.f32 %v19116_v32, %v19095_v37  ;;  %v7013_v30 = vld [vmem:[%s21095_s2] sm:$0x3] }
 0x7b5   :  { %v19160_v26 = vpop.f32.mrf.mxu1  ;;  %v6986_v58 = vadd.f32 %v19100_v59, %v6844_v52  ;;  %v6529_v52 = vadd.f32 %v6528_v45, %v19124_v35  ;;  %v14619_v35 = vld [vmem:[%s21094_s3 + $0x94] sm:$0xf] }
 0x7b6   :  { %v6991_v63 = vmax.f32 %v6983_v34, 0.0 }
 0x7b7   :  { %v6699_v27 = vpop.f32.mrf.mxu2 }
 0x7b8   :  { %v6997_v53 = vpack.c.bf16 %v6991_v63, %v6990_v14  ;;  %v6700_v56 = vadd.f32 %v6699_v27, %v6610_v13  ;;  %6481 = vmatmul.bf16.gmra.mxu1 %v19158_v22  ;;  %v6612_v8 = vpop.f32.mrf.mxu0  ;;  %v6992_v13 = vmax.f32 %v6984_v10, 0.0  ;;  %v12697_v14 = vld [vmem:[%s21093_s0 + $0x448] sm:$0xf0]  ;;  %v6994_v27 = vmax.f32 %v6986_v58, 0.0 }
 0x7b9   :  { %12808 = vmatmul.msk.bf16.gmra.mxu3 %vm323_vm0, %v19162_v9  ;;  %v19210_v10 = vperm.slane %v7013_v30, 0 }
 0x7ba   :  { %7001 = vst [vmem:[#allocation2 + $0x8] sm:$0xff] %v6997_v53  ;;  %v6843_v46 = vadd.f32 %v6700_v56, %v18494_v31  ;;  %v14564_v31 = vld [vmem:[%s21093_s0 + $0x444] sm:$0xf0]  ;;  %v21395_v53 = vld [vmem:[#allocation16_spill] sm:$0xff] }
 0x7bb   :  { %v6846_v56 = vadd.f32 %v6527_v33, %v21395_v53  ;;  %v6848_v33 = vadd.f32 %v6529_v52, %v18490_v19  ;;  %v14566_v53 = vld [vmem:[%s21093_s0 + $0x454] sm:$0xf0]  ;;  %v12705_v19 = vld [vmem:[%s21093_s0 + $0x458] sm:$0xf0]  ;;  %v14603_v52 = vld [vmem:[%s21094_s3 + $0x14] sm:$0xf] }
 0x7bc   :  { %v6985_v60 = vadd.f32 %v19102_v42, %v6843_v46  ;;  %v19173_v11 = vpop.f32.mrf.mxu3 }
 0x7bd   :  { %v19175_v21 = vpop.f32.mrf.mxu1 }
 0x7be   :  { %v6993_v51 = vmax.f32 %v6985_v60, 0.0  ;;  %v19212_v60 = vperm.slane %v7013_v30, 1 }
 0x7bf   :  { %v6701_v16 = vpop.f32.mrf.mxu2 }
 0x7c0   :  { %v6998_v6 = vpack.c.bf16 %v6993_v51, %v6992_v13  ;;  %v6702_v62 = vadd.f32 %v6701_v16, %v6612_v8  ;;  %v6615_v34 = vpop.f32.mrf.mxu0  ;;  %v14563_v8 = vld [vmem:[%s21093_s0 + $0x444] sm:$0xf]  ;;  %v7019_v13 = vadd.f32 %v19210_v10, %v6846_v56  ;;  %v12951_v16 = vld [vmem:[%s21094_s3 + $0x90] sm:$0xf]  ;;  %v14565_v56 = vld [vmem:[%s21093_s0 + $0x454] sm:$0xf] }
 0x7c1   :  { %v19207_v63 = vor.u32 %v14563_v8, %v12697_v14 }
 0x7c2   :  { %7002 = vst [vmem:[#allocation2 + $0x10] sm:$0xff] %v6998_v6  ;;  %v6845_v24 = vadd.f32 %v6702_v62, %v18506_v49  ;;  %v19203_v49 = vor.u32 %v14564_v31, %v12695_v28  ;;  %v14620_v6 = vld [vmem:[%s21094_s3 + $0x94] sm:$0xf0]  ;;  %v7027_v58 = vmax.f32 %v7019_v13, 0.0 }
 0x7c3   :  { %6654 = vmatmul.bf16.gmra.mxu0 %v19093_v7  ;;  %v12952_v28 = vor.u32 %v14620_v6, %v12951_v16  ;;  %v19276_v6 = vor.u32 %v14565_v56, %v12705_v19 }
 0x7c4   :  { %v6987_v59 = vadd.f32 %v19102_v42, %v6845_v24  ;;  %v19199_v37 = vpop.f32.mrf.mxu3  ;;  %12823 = vmatmul.msk.bf16.gmra.mxu2 %vm323_vm0, %v19097_v2 }
 0x7c5   :  { %v19205_v32 = vpop.f32.mrf.mxu1  ;;  %7593 = vmatpush.bf16.msra.mxu3 %v12952_v28 }
 0x7c6   :  { %v6995_v41 = vmax.f32 %v6987_v59, 0.0 }
 0x7c7   :  { %v6704_v7 = vpop.f32.mrf.mxu2 }
 0x7c8   :  { %v6999_v46 = vpack.c.bf16 %v6995_v41, %v6994_v27  ;;  %v6705_v42 = vadd.f32 %v6704_v7, %v6615_v34  ;;  %6486 = vmatmul.bf16.gmra.mxu1 %v19203_v49  ;;  %v6617_v2 = vpop.f32.mrf.mxu0  ;;  %v12703_v27 = vld [vmem:[%s21093_s0 + $0x450] sm:$0xf]  ;;  %v7021_v41 = vadd.f32 %v19210_v10, %v6848_v33  ;;  %v6532_v7 = vadd.f32 %v19173_v11, %v19160_v26  ;;  %v12889_v26 = vld [vmem:[%s21094_s3 + $0x18] sm:$0xf0] }
 0x7c9   :  { %12809 = vmatmul.msk.bf16.gmra.mxu3 %vm323_vm0, %v19207_v63  ;;  %v12892_v16 = vor.u32 %v14603_v52, %v12889_v26 }
 0x7ca   :  { %7003 = vst [vmem:[#allocation2 + $0x18] sm:$0xff] %v6999_v46  ;;  %v6847_v51 = vadd.f32 %v6705_v42, %v18520_v43  ;;  %v12953_v43 = vld [vmem:[%s21094_s3 + $0x98] sm:$0xf0]  ;;  %v12887_v42 = vld [vmem:[%s21094_s3 + $0x10] sm:$0xf]  ;;  %v6850_v28 = vadd.f32 %v6532_v7, %v18497_v48 }
 0x7cb   :  { %v12956_v31 = vor.u32 %v14619_v35, %v12953_v43  ;;  %7632 = vmatpush.bf16.msra.mxu0 %v12892_v16 }
 0x7cc   :  { %v7020_v62 = vadd.f32 %v19212_v60, %v6847_v51  ;;  %v19227_v34 = vpop.f32.mrf.mxu3  ;;  %v19272_v51 = vor.u32 %v14566_v53, %v12703_v27 }
 0x7cd   :  { %v19235_v45 = vpop.f32.mrf.mxu1  ;;  %7671 = vmatpush.bf16.msra.mxu2 %v12956_v31 }
 0x7ce   :  { %v7028_v24 = vmax.f32 %v7020_v62, 0.0  ;;  %v7029_v62 = vmax.f32 %v7021_v41, 0.0 }
 0x7cf   :  { %v6706_v8 = vpop.f32.mrf.mxu2 }
 0x7d0   :  { %v7035_v14 = vpack.c.bf16 %v7028_v24, %v7027_v58  ;;  %v6707_v30 = vadd.f32 %v6706_v8, %v6617_v2  ;;  %v6620_v59 = vpop.f32.mrf.mxu0  ;;  %v14604_v2 = vld [vmem:[%s21094_s3 + $0x14] sm:$0xf0]  ;;  %v6534_v24 = vadd.f32 %v19199_v37, %v19175_v21  ;;  %v12711_v21 = vld [vmem:[%s21093_s0 + $0x460] sm:$0xf] }
 0x7d1   :  { %v12888_v13 = vor.u32 %v14604_v2, %v12887_v42  ;;  %v14567_v42 = vld [vmem:[%s21093_s0 + $0x464] sm:$0xf]  ;;  %v12713_v2 = vld [vmem:[%s21093_s0 + $0x468] sm:$0xf0] }
 0x7d2   :  { %7040 = vst [vmem:[#allocation2 + $0x80] sm:$0xff] %v7035_v14  ;;  %v6849_v46 = vadd.f32 %v6707_v30, %v18544_v4  ;;  %v6852_v27 = vadd.f32 %v6534_v24, %v18516_v1 }
 0x7d3   :  { %6659 = vmatmul.bf16.gmra.mxu0 %v19158_v22  ;;  %7554 = vmatpush.bf16.msra.mxu1 %v12888_v13  ;;  %v7053_v13 = vld [vmem:[%s21095_s2] sm:$0x3] }
 0x7d4   :  { %v7022_v4 = vadd.f32 %v19212_v60, %v6849_v46  ;;  %v19268_v11 = vpop.f32.mrf.mxu3  ;;  %12824 = vmatmul.msk.bf16.gmra.mxu2 %vm323_vm0, %v19162_v9  ;;  %v7023_v9 = vadd.f32 %v19210_v10, %v6850_v28  ;;  %v7025_v37 = vadd.f32 %v19210_v10, %v6852_v27  ;;  %v6537_v46 = vadd.f32 %v19227_v34, %v19205_v32  ;;  %v12943_v32 = vld [vmem:[%s21094_s3 + $0x80] sm:$0xf]  ;;  %v12945_v27 = vld [vmem:[%s21094_s3 + $0x88] sm:$0xf0] }
 0x7d5   :  { %v19274_v22 = vpop.f32.mrf.mxu1 }
 0x7d6   :  { %v7030_v35 = vmax.f32 %v7022_v4, 0.0  ;;  %v14602_v4 = vld [vmem:[%s21094_s3 + $0x4] sm:$0xf0]  ;;  %v7033_v28 = vmax.f32 %v7025_v37, 0.0 }
 0x7d7   :  { %v6709_v43 = vpop.f32.mrf.mxu2 }
 0x7d8   :  { %v7036_v31 = vpack.c.bf16 %v7030_v35, %v7029_v62  ;;  %v6710_v58 = vadd.f32 %v6709_v43, %v6620_v59  ;;  %6491 = vmatmul.bf16.gmra.mxu1 %v19272_v51  ;;  %v6622_v33 = vpop.f32.mrf.mxu0  ;;  %v7031_v59 = vmax.f32 %v7023_v9, 0.0  ;;  %v19333_v62 = vor.u32 %v14567_v42, %v12713_v2  ;;  %v14569_v42 = vld [vmem:[%s21093_s0 + $0x474] sm:$0xf] }
 0x7d9   :  { %12810 = vmatmul.msk.bf16.gmra.mxu3 %vm323_vm0, %v19276_v6  ;;  %v6854_v35 = vadd.f32 %v6537_v46, %v18535_v36  ;;  %v19338_v9 = vperm.slane %v7053_v13, 1  ;;  %v6539_v36 = vadd.f32 %v19268_v11, %v19235_v45  ;;  %v12719_v46 = vld [vmem:[%s21093_s0 + $0x470] sm:$0xf] }
 0x7da   :  { %7041 = vst [vmem:[#allocation2 + $0x88] sm:$0xff] %v7036_v31  ;;  %v6851_v8 = vadd.f32 %v6710_v58, %v18558_v44  ;;  %v14568_v44 = vld [vmem:[%s21093_s0 + $0x464] sm:$0xf0] }
 0x7db   :  { %v19323_v52 = vor.u32 %v14568_v44, %v12711_v21  ;;  %v6856_v45 = vadd.f32 %v6539_v36, %v18554_v47  ;;  %v12721_v47 = vld [vmem:[%s21093_s0 + $0x478] sm:$0xf0] }
 0x7dc   :  { %v7024_v48 = vadd.f32 %v19212_v60, %v6851_v8  ;;  %v19287_v14 = vpop.f32.mrf.mxu3 }
 0x7dd   :  { %v19289_v30 = vpop.f32.mrf.mxu1 }
 0x7de   :  { %v7032_v53 = vmax.f32 %v7024_v48, 0.0 }
 0x7df   :  { %v6711_v56 = vpop.f32.mrf.mxu2 }
 0x7e0   :  { %v7037_v19 = vpack.c.bf16 %v7032_v53, %v7031_v59  ;;  %v6712_v41 = vadd.f32 %v6711_v56, %v6622_v33  ;;  %v6625_v7 = vpop.f32.mrf.mxu0  ;;  %v14617_v59 = vld [vmem:[%s21094_s3 + $0x84] sm:$0xf] }
 0x7e2   :  { %7042 = vst [vmem:[#allocation2 + $0x90] sm:$0xff] %v7037_v19  ;;  %v6853_v1 = vadd.f32 %v6712_v41, %v18570_v29  ;;  %v14618_v29 = vld [vmem:[%s21094_s3 + $0x84] sm:$0xf0]  ;;  %v12948_v19 = vor.u32 %v14617_v59, %v12945_v27 }
 0x7e3   :  { %6664 = vmatmul.bf16.gmra.mxu0 %v19203_v49  ;;  %v12944_v26 = vor.u32 %v14618_v29, %v12943_v32  ;;  %v12879_v49 = vld [vmem:[%s21094_s3] sm:$0xf]  ;;  %v14601_v29 = vld [vmem:[%s21094_s3 + $0x4] sm:$0xf] }
 0x7e4   :  { %v7026_v10 = vadd.f32 %v19212_v60, %v6853_v1  ;;  %v19319_v34 = vpop.f32.mrf.mxu3  ;;  %12825 = vmatmul.msk.bf16.gmra.mxu2 %vm323_vm0, %v19207_v63  ;;  %v12880_v60 = vor.u32 %v14602_v4, %v12879_v49  ;;  %v19336_v63 = vperm.slane %v7053_v13, 0  ;;  %v14570_v1 = vld [vmem:[%s21093_s0 + $0x474] sm:$0xf0]  ;;  %v6542_v13 = vadd.f32 %v19287_v14, %v19274_v22 }
 0x7e5   :  { %v19331_v16 = vpop.f32.mrf.mxu1  ;;  %7594 = vmatpush.bf16.msra.mxu3 %v12944_v26  ;;  %7672 = vmatpush.bf16.msra.mxu2 %v12948_v19  ;;  %v19383_v22 = vor.u32 %v14570_v1, %v12719_v46  ;;  %v19387_v14 = vor.u32 %v14569_v42, %v12721_v47 }
 0x7e6   :  { %v7034_v43 = vmax.f32 %v7026_v10, 0.0  ;;  %7555 = vmatpush.bf16.msra.mxu1 %v12880_v60  ;;  %v7059_v8 = vadd.f32 %v19336_v63, %v6854_v35  ;;  %v7061_v2 = vadd.f32 %v19336_v63, %v6856_v45  ;;  %v12881_v10 = vld [vmem:[%s21094_s3 + $0x8] sm:$0xf0] }
 0x7e7   :  { %v6714_v31 = vpop.f32.mrf.mxu2  ;;  %v12884_v26 = vor.u32 %v14601_v29, %v12881_v10  ;;  %v13207_v10 = vld [vmem:[%s21094_s3 + $0x1f0] sm:$0xf] }
 0x7e8   :  { %v7038_v58 = vpack.c.bf16 %v7034_v43, %v7033_v28  ;;  %v6715_v33 = vadd.f32 %v6714_v31, %v6625_v7  ;;  %6496 = vmatmul.bf16.gmra.mxu1 %v19323_v52  ;;  %v6627_v24 = vpop.f32.mrf.mxu0  ;;  %v7067_v7 = vmax.f32 %v7059_v8, 0.0  ;;  %v7069_v60 = vmax.f32 %v7061_v2, 0.0 }
 0x7e9   :  { %12811 = vmatmul.msk.bf16.gmra.mxu3 %vm323_vm0, %v19333_v62  ;;  %7633 = vmatpush.bf16.msra.mxu0 %v12884_v26  ;;  %v6858_v28 = vadd.f32 %v6542_v13, %v18561_v25  ;;  %v14676_v26 = vld [vmem:[%s21094_s3 + $0x1f4] sm:$0xf0] }
 0x7ea   :  { %7043 = vst [vmem:[#allocation2 + $0x98] sm:$0xff] %v7038_v58  ;;  %v6855_v48 = vadd.f32 %v6715_v33, %v18590_v20  ;;  %v6544_v33 = vadd.f32 %v19319_v34, %v19289_v30  ;;  %v14590_v34 = vld [vmem:[#allocation2 + $0x4] sm:$0xf0] }
 0x7ec   :  { %v7060_v53 = vadd.f32 %v19338_v9, %v6855_v48  ;;  %v6546_v56 = vpop.f32.mrf.mxu3  ;;  %v6860_v59 = vadd.f32 %v6544_v33, %v18586_v40 }
 0x7ed   :  { %v19354_v41 = vpop.f32.mrf.mxu1  ;;  %v6547_v30 = vadd.f32 %v6546_v56, %v19331_v16 }
 0x7ee   :  { %v7068_v11 = vmax.f32 %v7060_v53, 0.0 }
 0x7ef   :  { %v6716_v20 = vpop.f32.mrf.mxu2 }
 0x7f0   :  { %v7075_v21 = vpack.c.bf16 %v7068_v11, %v7067_v7  ;;  %v6717_v44 = vadd.f32 %v6716_v20, %v6627_v24  ;;  %v6630_v37 = vpop.f32.mrf.mxu0  ;;  %v7065_v11 = vadd.f32 %v19336_v63, %v6860_v59  ;;  %v7093_v20 = vld [vmem:[%s21095_s2] sm:$0x3] }
 0x7f1   :  { %v19418_v46 = vperm.slane %v7093_v20, 0  ;;  %v19422_v13 = vperm.slane %v7093_v20, 1 }
 0x7f2   :  { %7080 = vst [vmem:[#allocation2 + $0x20] sm:$0xff] %v7075_v21  ;;  %v6857_v32 = vadd.f32 %v6717_v44, %v18608_v54  ;;  %v12833_v44 = vld [vmem:[#allocation2 + $0x8] sm:$0xf0] }
 0x7f3   :  { %6669 = vmatmul.bf16.gmra.mxu0 %v19272_v51 }
 0x7f4   :  { %v7062_v49 = vadd.f32 %v19338_v9, %v6857_v32  ;;  %v6548_v4 = vpop.f32.mrf.mxu3  ;;  %12826 = vmatmul.msk.bf16.gmra.mxu2 %vm323_vm0, %v19276_v6  ;;  %v7063_v6 = vadd.f32 %v19336_v63, %v6858_v28  ;;  %v12831_v63 = vld [vmem:[#allocation2] sm:$0xf]  ;;  %v13208_v28 = vor.u32 %v14676_v26, %v13207_v10  ;;  %v14658_v10 = vld [vmem:[%s21094_s3 + $0x164] sm:$0xf0]  ;;  %v14657_v26 = vld [vmem:[%s21094_s3 + $0x164] sm:$0xf] }
 0x7f5   :  { %v19385_v54 = vpop.f32.mrf.mxu1  ;;  %v19415_v56 = vor.u32 %v14590_v34, %v12831_v63  ;;  %v14591_v63 = vld [vmem:[#allocation2 + $0x14] sm:$0xf] }
 0x7f6   :  { %v7070_v35 = vmax.f32 %v7062_v49, 0.0  ;;  %v7071_v48 = vmax.f32 %v7063_v6, 0.0  ;;  %8032 = vmatpush.bf16.msrb.mxu3 %v13208_v28 }
 0x7f7   :  { %v6719_v43 = vpop.f32.mrf.mxu2 }
 0x7f8   :  { %v7076_v51 = vpack.c.bf16 %v7070_v35, %v7069_v60  ;;  %v6720_v31 = vadd.f32 %v6719_v43, %v6630_v37  ;;  %6501 = vmatmul.bf16.gmra.mxu1 %v19383_v22  ;;  %v6632_v58 = vpop.f32.mrf.mxu0  ;;  %v6862_v37 = vadd.f32 %v6547_v30, %v18599_v5  ;;  %v6549_v5 = vadd.f32 %v6548_v4, %v19354_v41  ;;  %v14675_v41 = vld [vmem:[%s21094_s3 + $0x1f4] sm:$0xf]  ;;  %v12839_v30 = vld [vmem:[#allocation2 + $0x10] sm:$0xf] }
 0x7f9   :  { %12812 = vmatmul.msk.bf16.gmra.mxu3 %vm323_vm0, %v19387_v14 }
 0x7fa   :  { %7081 = vst [vmem:[#allocation2 + $0x28] sm:$0xff] %v7076_v51  ;;  %v6859_v24 = vadd.f32 %v6720_v31, %v18628_v18  ;;  %v7099_v32 = vadd.f32 %v19418_v46, %v6862_v37  ;;  %v6864_v51 = vadd.f32 %v6549_v5, %v18622_v0  ;;  %v14660_v0 = vld [vmem:[%s21094_s3 + $0x174] sm:$0xf0] }
 0x7fc   :  { %v7064_v25 = vadd.f32 %v19338_v9, %v6859_v24  ;;  %v6551_v8 = vpop.f32.mrf.mxu3  ;;  %v7107_v43 = vmax.f32 %v7099_v32, 0.0  ;;  %v14673_v32 = vld [vmem:[%s21094_s3 + $0x1e4] sm:$0xf] }
 0x7fd   :  { %v19398_v36 = vpop.f32.mrf.mxu1 }
 0x7fe   :  { %v7072_v27 = vmax.f32 %v7064_v25, 0.0  ;;  %v7101_v25 = vadd.f32 %v19418_v46, %v6864_v51 }
 0x7ff   :  { %v6721_v53 = vpop.f32.mrf.mxu2 }
 0x800   :  { %v7077_v19 = vpack.c.bf16 %v7072_v27, %v7071_v48  ;;  %v6722_v7 = vadd.f32 %v6721_v53, %v6632_v58  ;;  %v6635_v45 = vpop.f32.mrf.mxu0  ;;  %v6552_v48 = vadd.f32 %v6551_v8, %v19385_v54  ;;  %v13143_v27 = vld [vmem:[%s21094_s3 + $0x170] sm:$0xf]  ;;  %v14592_v53 = vld [vmem:[#allocation2 + $0x14] sm:$0xf0] }
 0x802   :  { %7082 = vst [vmem:[#allocation2 + $0x30] sm:$0xff] %v7077_v19  ;;  %v6861_v18 = vadd.f32 %v6722_v7, %v18640_v55  ;;  %v7073_v55 = vmax.f32 %v7065_v11, 0.0  ;;  %v13144_v19 = vor.u32 %v14660_v0, %v13143_v27  ;;  %v14659_v7 = vld [vmem:[%s21094_s3 + $0x174] sm:$0xf]  ;;  %v6866_v34 = vadd.f32 %v6552_v48, %v18631_v39  ;;  %v7133_v48 = vld [vmem:[%s21095_s2] sm:$0x3] }
 0x803   :  { %6674 = vmatmul.bf16.gmra.mxu0 %v19323_v52  ;;  %v14589_v52 = vld [vmem:[#allocation2 + $0x4] sm:$0xf]  ;;  %v13191_v27 = vld [vmem:[%s21094_s3 + $0x1d0] sm:$0xf]  ;;  %v12849_v0 = vld [vmem:[#allocation2 + $0x28] sm:$0xf0] }
 0x804   :  { %v7066_v40 = vadd.f32 %v19338_v9, %v6861_v18  ;;  %v19409_v21 = vpop.f32.mrf.mxu3  ;;  %12827 = vmatmul.msk.bf16.gmra.mxu2 %vm323_vm0, %v19333_v62  ;;  %v19420_v9 = vor.u32 %v14589_v52, %v12833_v44  ;;  %7993 = vmatpush.bf16.msrb.mxu1 %v13144_v19  ;;  %v7109_v18 = vmax.f32 %v7101_v25, 0.0  ;;  %v7103_v52 = vadd.f32 %v19418_v46, %v6866_v34 }
 0x805   :  { %v19413_v16 = vpop.f32.mrf.mxu1  ;;  %v6554_v39 = vadd.f32 %v19409_v21, %v19398_v36  ;;  %v13201_v36 = vld [vmem:[%s21094_s3 + $0x1e8] sm:$0xf0]  ;;  %v19535_v19 = vperm.slane %v7133_v48, 0 }
 0x806   :  { %v7074_v1 = vmax.f32 %v7066_v40, 0.0  ;;  %v19471_v40 = vor.u32 %v14592_v53, %v12839_v30  ;;  %v13204_v5 = vor.u32 %v14673_v32, %v13201_v36  ;;  %v14593_v30 = vld [vmem:[#allocation2 + $0x24] sm:$0xf]  ;;  %v21396_v36 = vld [vmem:[#allocation23_spill] sm:$0xff] }
 0x807   :  { %v6724_v42 = vpop.f32.mrf.mxu2  ;;  %v19542_v34 = vor.u32 %v14593_v30, %v12849_v0  ;;  %v21397_v0 = vld [vmem:[#allocation18_spill] sm:$0xff] }
 0x808   :  { %v7078_v47 = vpack.c.bf16 %v7074_v1, %v7073_v55  ;;  %v6725_v2 = vadd.f32 %v6724_v42, %v6635_v45  ;;  %7556 = vmatmul.bf16.vlgmr.msra.gmra.mxu1 %v19415_v56  ;;  %v6637_v62 = vpop.f32.mrf.mxu0  ;;  %v12841_v45 = vld [vmem:[#allocation2 + $0x18] sm:$0xf0]  ;;  %v13111_v30 = vld [vmem:[%s21094_s3 + $0x130] sm:$0xf] }
 0x809   :  { %7595 = vmatmul.bf16.vlgmr.msra.gmra.mxu3 %v19420_v9  ;;  %v19473_v55 = vor.u32 %v14591_v63, %v12841_v45 }
 0x80a   :  { %7083 = vst [vmem:[#allocation2 + $0x38] sm:$0xff] %v7078_v47  ;;  %v6863_v29 = vadd.f32 %v6725_v2, %v18672_v12  ;;  %v13209_v12 = vld [vmem:[%s21094_s3 + $0x1f8] sm:$0xf0]  ;;  %v13199_v47 = vld [vmem:[%s21094_s3 + $0x1e0] sm:$0xf] }
 0x80b   :  { %v13212_v35 = vor.u32 %v14675_v41, %v13209_v12  ;;  %v14674_v2 = vld [vmem:[%s21094_s3 + $0x1e4] sm:$0xf0]  ;;  %v13137_v41 = vld [vmem:[%s21094_s3 + $0x168] sm:$0xf0]  ;;  %v7111_v12 = vmax.f32 %v7103_v52, 0.0 }
 0x80c   :  { %v7100_v49 = vadd.f32 %v19422_v13, %v6863_v29  ;;  %v19436_v60 = vpop.f32.mrf.mxu3  ;;  %v13135_v29 = vld [vmem:[%s21094_s3 + $0x160] sm:$0xf]  ;;  %v13140_v51 = vor.u32 %v14657_v26, %v13137_v41  ;;  %v13127_v52 = vld [vmem:[%s21094_s3 + $0x150] sm:$0xf] }
 0x80d   :  { %v19444_v4 = vpop.f32.mrf.mxu1  ;;  %8110 = vmatpush.bf16.msrb.mxu2 %v13212_v35  ;;  %v13136_v28 = vor.u32 %v14658_v10, %v13135_v29  ;;  %v6868_v35 = vadd.f32 %v6554_v39, %v18654_v3  ;;  %v6557_v25 = vadd.f32 %v19436_v60, %v19413_v16  ;;  %v14656_v39 = vld [vmem:[%s21094_s3 + $0x154] sm:$0xf0] }
 0x80e   :  { %v7108_v31 = vmax.f32 %v7100_v49, 0.0 }
 0x80f   :  { %v6726_v58 = vpop.f32.mrf.mxu2  ;;  %7994 = vmatpush.bf16.msrb.mxu1 %v13136_v28  ;;  %v6870_v45 = vadd.f32 %v6557_v25, %v18687_v15 }
 0x810   :  { %v7115_v6 = vpack.c.bf16 %v7108_v31, %v7107_v43  ;;  %v6727_v33 = vadd.f32 %v6726_v58, %v6637_v62  ;;  %v6640_v24 = vpop.f32.mrf.mxu0  ;;  %v13200_v62 = vor.u32 %v14674_v2, %v13199_v47  ;;  %v14655_v47 = vld [vmem:[%s21094_s3 + $0x154] sm:$0xf] }
 0x811   :  { %8111 = vmatpush.bf16.msrb.mxu2 %v13204_v5  ;;  %v7139_v15 = vadd.f32 %v19535_v19, %v6870_v45  ;;  %v14596_v41 = vld [vmem:[#allocation2 + $0x34] sm:$0xf0]  ;;  %v13175_v45 = vld [vmem:[%s21094_s3 + $0x1b0] sm:$0xf] }
 0x812   :  { %7120 = vst [vmem:[#allocation2 + $0xa0] sm:$0xff] %v7115_v6  ;;  %v6865_v59 = vadd.f32 %v6727_v33, %v18696_v23  ;;  %v13145_v23 = vld [vmem:[%s21094_s3 + $0x178] sm:$0xf0]  ;;  %8033 = vmatpush.bf16.msrb.mxu3 %v13200_v62 }
 0x813   :  { %6679 = vmatmul.bf16.gmra.mxu0 %v19383_v22  ;;  %v13148_v11 = vor.u32 %v14659_v7, %v13145_v23  ;;  %v12847_v23 = vld [vmem:[#allocation2 + $0x20] sm:$0xf]  ;;  %v7147_v32 = vmax.f32 %v7139_v15, 0.0  ;;  %v14652_v15 = vld [vmem:[%s21094_s3 + $0x134] sm:$0xf0] }
 0x814   :  { %v7102_v54 = vadd.f32 %v19422_v13, %v6865_v59  ;;  %v19464_v8 = vpop.f32.mrf.mxu3  ;;  %12828 = vmatmul.msk.bf16.gmra.mxu2 %vm323_vm0, %v19387_v14  ;;  %v14594_v59 = vld [vmem:[#allocation2 + $0x24] sm:$0xf0] }
 0x815   :  { %v19468_v22 = vpop.f32.mrf.mxu1  ;;  %8071 = vmatpush.bf16.msrb.mxu0 %v13148_v11  ;;  %v19540_v11 = vor.u32 %v14594_v59, %v12847_v23 }
 0x816   :  { %v7110_v20 = vmax.f32 %v7102_v54, 0.0 }
 0x817   :  { %v6729_v44 = vpop.f32.mrf.mxu2 }
 0x818   :  { %v7116_v37 = vpack.c.bf16 %v7110_v20, %v7109_v18  ;;  %v6730_v1 = vadd.f32 %v6729_v44, %v6640_v24  ;;  %7561 = vmatmul.bf16.gmra.mxu1 %v19471_v40  ;;  %v6642_v14 = vpop.f32.mrf.mxu0  ;;  %v7105_v24 = vadd.f32 %v19418_v46, %v6868_v35  ;;  %v14672_v46 = vld [vmem:[%s21094_s3 + $0x1d4] sm:$0xf0]  ;;  %v19544_v44 = vperm.slane %v7133_v48, 1  ;;  %v14654_v48 = vld [vmem:[%s21094_s3 + $0x144] sm:$0xf0] }
 0x819   :  { %7600 = vmatmul.bf16.gmra.mxu3 %v19473_v55  ;;  %8072 = vmatpush.bf16.msrb.mxu0 %v13140_v51  ;;  %v13192_v53 = vor.u32 %v14672_v46, %v13191_v27  ;;  %v12855_v51 = vld [vmem:[#allocation2 + $0x30] sm:$0xf] }
 0x81a   :  { %7121 = vst [vmem:[#allocation2 + $0xa8] sm:$0xff] %v7116_v37  ;;  %v6867_v42 = vadd.f32 %v6730_v1, %v18718_v61  ;;  %v7113_v54 = vmax.f32 %v7105_v24, 0.0  ;;  %v6559_v1 = vadd.f32 %v19464_v8, %v19444_v4  ;;  %v13129_v4 = vld [vmem:[%s21094_s3 + $0x158] sm:$0xf0]  ;;  %v19602_v27 = vor.u32 %v14596_v41, %v12855_v51 }
 0x81b   :  { %8034 = vmatpush.bf16.msrb.mxu3 %v13192_v53  ;;  %v13132_v2 = vor.u32 %v14655_v47, %v13129_v4  ;;  %v13177_v47 = vld [vmem:[%s21094_s3 + $0x1b8] sm:$0xf0] }
 0x81c   :  { %v7104_v21 = vadd.f32 %v19422_v13, %v6867_v42  ;;  %v19494_v61 = vpop.f32.mrf.mxu3  ;;  %v13128_v42 = vor.u32 %v14656_v39, %v13127_v52 }
 0x81d   :  { %v19505_v49 = vpop.f32.mrf.mxu1  ;;  %8073 = vmatpush.bf16.msrb.mxu0 %v13132_v2  ;;  %v6562_v35 = vadd.f32 %v19494_v61, %v19468_v22  ;;  %v14669_v22 = vld [vmem:[%s21094_s3 + $0x1c4] sm:$0xf] }
 0x81e   :  { %v7112_v43 = vmax.f32 %v7104_v21, 0.0  ;;  %7995 = vmatpush.bf16.msrb.mxu1 %v13128_v42  ;;  %v6872_v21 = vadd.f32 %v6559_v1, %v21396_v36  ;;  %v13112_v1 = vor.u32 %v14652_v15, %v13111_v30  ;;  %v14667_v42 = vld [vmem:[%s21094_s3 + $0x1b4] sm:$0xf] }
 0x81f   :  { %v6731_v31 = vpop.f32.mrf.mxu2  ;;  %v6874_v53 = vadd.f32 %v6562_v35, %v21397_v0  ;;  %v13180_v2 = vor.u32 %v14667_v42, %v13177_v47  ;;  %v14648_v35 = vld [vmem:[%s21094_s3 + $0x114] sm:$0xf0] }
 0x820   :  { %v7117_v58 = vpack.c.bf16 %v7112_v43, %v7111_v12  ;;  %v6732_v6 = vadd.f32 %v6731_v31, %v6642_v14  ;;  %v6645_v33 = vpop.f32.mrf.mxu0  ;;  %v7141_v12 = vadd.f32 %v19535_v19, %v6872_v21  ;;  %v13183_v31 = vld [vmem:[%s21094_s3 + $0x1c0] sm:$0xf]  ;;  %v14666_v21 = vld [vmem:[%s21094_s3 + $0x1a4] sm:$0xf0] }
 0x822   :  { %7122 = vst [vmem:[#allocation2 + $0xb0] sm:$0xff] %v7117_v58  ;;  %v6869_v3 = vadd.f32 %v6732_v6, %v18730_v50  ;;  %v14671_v50 = vld [vmem:[%s21094_s3 + $0x1d4] sm:$0xf]  ;;  %v14670_v58 = vld [vmem:[%s21094_s3 + $0x1c4] sm:$0xf0] }
 0x823   :  { %7634 = vmatmul.bf16.vlgmr.msra.gmra.mxu0 %v19415_v56  ;;  %v13193_v56 = vld [vmem:[%s21094_s3 + $0x1d8] sm:$0xf0] }
 0x824   :  { %v7106_v16 = vadd.f32 %v19422_v13, %v6869_v3  ;;  %v19526_v60 = vpop.f32.mrf.mxu3  ;;  %7673 = vmatmul.bf16.vlgmr.msra.gmra.mxu2 %v19420_v9  ;;  %v13196_v13 = vor.u32 %v14671_v50, %v13193_v56  ;;  %v12857_v6 = vld [vmem:[#allocation2 + $0x38] sm:$0xf0]  ;;  %v14653_v3 = vld [vmem:[%s21094_s3 + $0x144] sm:$0xf]  ;;  %v14595_v56 = vld [vmem:[#allocation2 + $0x34] sm:$0xf] }
 0x825   :  { %v19537_v7 = vpop.f32.mrf.mxu1  ;;  %v6564_v52 = vadd.f32 %v19526_v60, %v19505_v49  ;;  %v13103_v49 = vld [vmem:[%s21094_s3 + $0x120] sm:$0xf] }
 0x826   :  { %v7114_v9 = vmax.f32 %v7106_v16, 0.0  ;;  %8112 = vmatpush.bf16.msrb.mxu2 %v13196_v13  ;;  %v7149_v16 = vmax.f32 %v7141_v12, 0.0  ;;  %v13167_v60 = vld [vmem:[%s21094_s3 + $0x1a0] sm:$0xf]  ;;  %v13095_v12 = vld [vmem:[%s21094_s3 + $0x110] sm:$0xf] }
 0x827   :  { %v6734_v18 = vpop.f32.mrf.mxu2 }
 0x828   :  { %v7118_v20 = vpack.c.bf16 %v7114_v9, %v7113_v54  ;;  %v6735_v63 = vadd.f32 %v6734_v18, %v6645_v33  ;;  %7566 = vmatmul.bf16.gmra.mxu1 %v19540_v11  ;;  %v6647_v37 = vpop.f32.mrf.mxu0  ;;  %v13184_v33 = vor.u32 %v14670_v58, %v13183_v31  ;;  %v19608_v54 = vor.u32 %v14595_v56, %v12857_v6  ;;  %v14668_v9 = vld [vmem:[%s21094_s3 + $0x1b4] sm:$0xf0]  ;;  %v14662_v56 = vld [vmem:[%s21094_s3 + $0x184] sm:$0xf0] }
 0x829   :  { %7605 = vmatmul.bf16.gmra.mxu3 %v19542_v34  ;;  %v13096_v6 = vor.u32 %v14648_v35, %v13095_v12 }
 0x82a   :  { %7123 = vst [vmem:[#allocation2 + $0xb8] sm:$0xff] %v7118_v20  ;;  %v6871_v14 = vadd.f32 %v6735_v63, %v18764_v57  ;;  %8035 = vmatpush.bf16.msrb.mxu3 %v13184_v33  ;;  %v14664_v33 = vld [vmem:[%s21094_s3 + $0x194] sm:$0xf0] }
 0x82c   :  { %v7140_v8 = vadd.f32 %v19544_v44, %v6871_v14  ;;  %v19565_v57 = vpop.f32.mrf.mxu3  ;;  %v7143_v14 = vadd.f32 %v19535_v19, %v6874_v53 }
 0x82d   :  { %v19567_v62 = vpop.f32.mrf.mxu1 }
 0x82e   :  { %v7148_v5 = vmax.f32 %v7140_v8, 0.0 }
 0x82f   :  { %v6736_v29 = vpop.f32.mrf.mxu2 }
 0x830   :  { %v7155_v10 = vpack.c.bf16 %v7148_v5, %v7147_v32  ;;  %v6737_v26 = vadd.f32 %v6736_v29, %v6647_v37  ;;  %v6650_v28 = vpop.f32.mrf.mxu0  ;;  %v13176_v37 = vor.u32 %v14668_v9, %v13175_v45  ;;  %v7151_v5 = vmax.f32 %v7143_v14, 0.0  ;;  %v21398_v29 = vld [vmem:[#allocation20_spill] sm:$0xff] }
 0x832   :  { %7160 = vst [vmem:[#allocation2 + $0x40] sm:$0xff] %v7155_v10  ;;  %v6873_v43 = vadd.f32 %v6737_v26, %v18788_v38  ;;  %v13185_v38 = vld [vmem:[%s21094_s3 + $0x1c8] sm:$0xf0]  ;;  %8036 = vmatpush.bf16.msrb.mxu3 %v13176_v37  ;;  %v6876_v10 = vadd.f32 %v6564_v52, %v21398_v29 }
 0x833   :  { %7639 = vmatmul.bf16.gmra.mxu0 %v19471_v40  ;;  %v13188_v25 = vor.u32 %v14669_v22, %v13185_v38  ;;  %v13119_v40 = vld [vmem:[%s21094_s3 + $0x140] sm:$0xf] }
 0x834   :  { %v7142_v61 = vadd.f32 %v19544_v44, %v6873_v43  ;;  %v19588_v24 = vpop.f32.mrf.mxu3  ;;  %7678 = vmatmul.bf16.gmra.mxu2 %v19473_v55  ;;  %v13120_v46 = vor.u32 %v14654_v48, %v13119_v40  ;;  %v13121_v55 = vld [vmem:[%s21094_s3 + $0x148] sm:$0xf0]  ;;  %v13159_v43 = vld [vmem:[%s21094_s3 + $0x190] sm:$0xf]  ;;  %v7173_v22 = vld [vmem:[%s21095_s2] sm:$0x3] }
 0x835   :  { %v19600_v59 = vpop.f32.mrf.mxu1  ;;  %8113 = vmatpush.bf16.msrb.mxu2 %v13188_v25  ;;  %v13124_v23 = vor.u32 %v14653_v3, %v13121_v55  ;;  %v13160_v38 = vor.u32 %v14664_v33, %v13159_v43  ;;  %v6567_v25 = vadd.f32 %v19565_v57, %v19537_v7  ;;  %v21399_v40 = vld [vmem:[#allocation26_spill] sm:$0xff]  ;;  %v14646_v7 = vld [vmem:[%s21094_s3 + $0x104] sm:$0xf0]  ;;  %v19703_v52 = vperm.slane %v7173_v22, 1 }
 0x836   :  { %v7150_v50 = vmax.f32 %v7142_v61, 0.0  ;;  %7996 = vmatpush.bf16.msrb.mxu1 %v13120_v46  ;;  %v7145_v61 = vadd.f32 %v19535_v19, %v6876_v10  ;;  %v14651_v3 = vld [vmem:[%s21094_s3 + $0x134] sm:$0xf]  ;;  %v13113_v46 = vld [vmem:[%s21094_s3 + $0x138] sm:$0xf0]  ;;  %v6569_v47 = vadd.f32 %v19588_v24, %v19567_v62 }
 0x837   :  { %v6739_v13 = vpop.f32.mrf.mxu2  ;;  %8074 = vmatpush.bf16.msrb.mxu0 %v13124_v23  ;;  %v13087_v19 = vld [vmem:[%s21094_s3 + $0x100] sm:$0xf]  ;;  %v19694_v23 = vperm.slane %v7173_v22, 0  ;;  %v13105_v62 = vld [vmem:[%s21094_s3 + $0x128] sm:$0xf0] }
 0x838   :  { %v7156_v18 = vpack.c.bf16 %v7150_v50, %v7149_v16  ;;  %v6740_v20 = vadd.f32 %v6739_v13, %v6650_v28  ;;  %7571 = vmatmul.bf16.gmra.mxu1 %v19602_v27  ;;  %v6652_v63 = vpop.f32.mrf.mxu0  ;;  %v13168_v28 = vor.u32 %v14666_v21, %v13167_v60  ;;  %v13116_v16 = vor.u32 %v14651_v3, %v13113_v46  ;;  %v13151_v50 = vld [vmem:[%s21094_s3 + $0x180] sm:$0xf]  ;;  %v21404_v46 = vld [vmem:[#allocation25_spill] sm:$0xff] }
 0x839   :  { %7610 = vmatmul.bf16.gmra.mxu3 %v19608_v54  ;;  %8114 = vmatpush.bf16.msrb.mxu2 %v13180_v2  ;;  %v13152_v45 = vor.u32 %v14662_v56, %v13151_v50  ;;  %v7153_v9 = vmax.f32 %v7145_v61, 0.0  ;;  %v13161_v61 = vld [vmem:[%s21094_s3 + $0x198] sm:$0xf0] }
 0x83a   :  { %7161 = vst [vmem:[#allocation2 + $0x48] sm:$0xff] %v7156_v18  ;;  %v6875_v39 = vadd.f32 %v6740_v20, %v18810_v17  ;;  %7997 = vmatpush.bf16.msrb.mxu1 %v13112_v1  ;;  %v14650_v17 = vld [vmem:[%s21094_s3 + $0x124] sm:$0xf0]  ;;  %8037 = vmatpush.bf16.msrb.mxu3 %v13168_v28 }
 0x83b   :  { %v13104_v36 = vor.u32 %v14650_v17, %v13103_v49  ;;  %8075 = vmatpush.bf16.msrb.mxu0 %v13116_v16  ;;  %v14665_v49 = vld [vmem:[%s21094_s3 + $0x1a4] sm:$0xf]  ;;  %v13169_v17 = vld [vmem:[%s21094_s3 + $0x1a8] sm:$0xf0] }
 0x83c   :  { %v7144_v4 = vadd.f32 %v19544_v44, %v6875_v39  ;;  %v19635_v8 = vpop.f32.mrf.mxu3  ;;  %v13172_v60 = vor.u32 %v14665_v49, %v13169_v17 }
 0x83d   :  { %v19646_v32 = vpop.f32.mrf.mxu1 }
 0x83e   :  { %v7152_v26 = vmax.f32 %v7144_v4, 0.0  ;;  %7998 = vmatpush.bf16.msrb.mxu1 %v13104_v36  ;;  %8038 = vmatpush.bf16.msrb.mxu3 %v13160_v38  ;;  %v21401_v4 = vld [vmem:[#allocation28_spill] sm:$0xff]  ;;  %v14663_v38 = vld [vmem:[%s21094_s3 + $0x194] sm:$0xf] }
 0x83f   :  { %v6741_v41 = vpop.f32.mrf.mxu2  ;;  %v14649_v36 = vld [vmem:[%s21094_s3 + $0x124] sm:$0xf]  ;;  %8115 = vmatpush.bf16.msrb.mxu2 %v13172_v60 }
 0x840   :  { %v7157_v51 = vpack.c.bf16 %v7152_v26, %v7151_v5  ;;  %v6742_v31 = vadd.f32 %v6741_v41, %v6652_v63  ;;  %v6655_v58 = vpop.f32.mrf.mxu0  ;;  %v14597_v63 = vld [vmem:[#allocation2 + $0x44] sm:$0xf]  ;;  %v13108_v5 = vor.u32 %v14649_v36, %v13105_v62  ;;  %v13089_v62 = vld [vmem:[%s21094_s3 + $0x108] sm:$0xf0] }
 0x841   :  { %v14598_v55 = vld [vmem:[#allocation2 + $0x44] sm:$0xf0]  ;;  %v12865_v53 = vld [vmem:[#allocation2 + $0x48] sm:$0xf0]  ;;  %v21402_v26 = vld [vmem:[#allocation24_spill] sm:$0xff] }
 0x842   :  { %7162 = vst [vmem:[#allocation2 + $0x50] sm:$0xff] %v7157_v51  ;;  %v6877_v48 = vadd.f32 %v6742_v31, %v21399_v40  ;;  %7999 = vmatpush.bf16.msrb.mxu1 %v13096_v6  ;;  %v19701_v15 = vor.u32 %v14597_v63, %v12865_v53  ;;  %8039 = vmatpush.bf16.msrb.mxu3 %v13152_v45  ;;  %v21403_v6 = vld [vmem:[#allocation30_spill] sm:$0xff]  ;;  %v21405_v45 = vld [vmem:[#allocation11_spill] sm:$0xff] }
 0x843   :  { %7644 = vmatmul.bf16.gmra.mxu0 %v19540_v11  ;;  %v13088_v11 = vor.u32 %v14646_v7, %v13087_v19  ;;  %v6880_v28 = vadd.f32 %v6569_v47, %v21402_v26  ;;  %v14661_v47 = vld [vmem:[%s21094_s3 + $0x184] sm:$0xf]  ;;  %v21407_v26 = vld [vmem:[#allocation13_spill] sm:$0xff] }
 0x844   :  { %v7146_v57 = vadd.f32 %v19544_v44, %v6877_v48  ;;  %v19685_v0 = vpop.f32.mrf.mxu3  ;;  %7683 = vmatmul.bf16.gmra.mxu2 %v19542_v34  ;;  %v12863_v44 = vld [vmem:[#allocation2 + $0x40] sm:$0xf]  ;;  %v21400_v34 = vld [vmem:[#allocation22_spill] sm:$0xff]  ;;  %8076 = vmatpush.bf16.msrb.mxu0 %v13108_v5 }
 0x845   :  { %v19696_v13 = vpop.f32.mrf.mxu1  ;;  %v6878_v30 = vadd.f32 %v6567_v25, %v21400_v34  ;;  %v19699_v20 = vor.u32 %v14598_v55, %v12863_v44  ;;  %v7181_v31 = vadd.f32 %v19694_v23, %v6880_v28  ;;  %v6574_v44 = vadd.f32 %v19685_v0, %v19646_v32  ;;  %v14647_v34 = vld [vmem:[%s21094_s3 + $0x114] sm:$0xf]  ;;  %v21406_v0 = vld [vmem:[#allocation27_spill] sm:$0xff] }
 0x846   :  { %v7154_v18 = vmax.f32 %v7146_v57, 0.0  ;;  %8000 = vmatpush.bf16.msrb.mxu1 %v13088_v11 }
 0x847   :  { %v6744_v37 = vpop.f32.mrf.mxu2  ;;  %v7179_v42 = vadd.f32 %v19694_v23, %v6878_v30  ;;  %v7189_v3 = vmax.f32 %v7181_v31, 0.0  ;;  %v13097_v30 = vld [vmem:[%s21094_s3 + $0x118] sm:$0xf0] }
 0x848   :  { %v7158_v1 = vpack.c.bf16 %v7154_v18, %v7153_v9  ;;  %v6745_v14 = vadd.f32 %v6744_v37, %v6655_v58  ;;  %7576 = vmatmul.bf16.gmra.mxu1 %v19699_v20  ;;  %v6657_v39 = vpop.f32.mrf.mxu0  ;;  %v6572_v58 = vadd.f32 %v19635_v8, %v19600_v59  ;;  %v13164_v8 = vor.u32 %v14663_v38, %v13161_v61 }
 0x849   :  { %7615 = vmatmul.bf16.gmra.mxu3 %v19701_v15  ;;  %v7187_v10 = vmax.f32 %v7179_v42, 0.0  ;;  %v14599_v7 = vld [vmem:[#allocation2 + $0x54] sm:$0xf]  ;;  %v13100_v18 = vor.u32 %v14647_v34, %v13097_v30 }
 0x84a   :  { %7163 = vst [vmem:[#allocation2 + $0x58] sm:$0xff] %v7158_v1  ;;  %v6879_v2 = vadd.f32 %v6745_v14, %v21401_v4  ;;  %v6882_v55 = vadd.f32 %v6572_v58, %v21404_v46  ;;  %8116 = vmatpush.bf16.msrb.mxu2 %v13164_v8  ;;  %v6884_v14 = vadd.f32 %v6574_v44, %v21406_v0  ;;  %v13153_v4 = vld [vmem:[%s21094_s3 + $0x188] sm:$0xf0]  ;;  %v21410_v44 = vld [vmem:[#allocation31_spill] sm:$0xff] }
 0x84b   :  { %8077 = vmatpush.bf16.msrb.mxu0 %v13100_v18  ;;  %v13156_v36 = vor.u32 %v14661_v47, %v13153_v4  ;;  %v21408_v58 = vld [vmem:[#allocation29_spill] sm:$0xff]  ;;  %v14704_v47 = vld [vmem:[%s21094_s3 + $0x274] sm:$0xf0] }
 0x84c   :  { %v7180_v24 = vadd.f32 %v19703_v52, %v6879_v2  ;;  %v19724_v21 = vpop.f32.mrf.mxu3  ;;  %v7183_v56 = vadd.f32 %v19694_v23, %v6882_v55  ;;  %v14645_v2 = vld [vmem:[%s21094_s3 + $0x104] sm:$0xf]  ;;  %v7185_v5 = vadd.f32 %v19694_v23, %v6884_v14  ;;  %v13039_v23 = vld [vmem:[#allocation2 + $0x80] sm:$0xf]  ;;  %v13415_v55 = vld [vmem:[%s21094_s3 + $0x2f0] sm:$0xf] }
 0x84d   :  { %v19726_v29 = vpop.f32.mrf.mxu1  ;;  %v21411_v14 = vld [vmem:[#allocation17_spill] sm:$0xff]  ;;  %v14636_v4 = vld [vmem:[#allocation2 + $0x94] sm:$0xf0] }
 0x84e   :  { %v7188_v41 = vmax.f32 %v7180_v24, 0.0  ;;  %v7191_v32 = vmax.f32 %v7183_v56, 0.0  ;;  %v13092_v24 = vor.u32 %v14645_v2, %v13089_v62  ;;  %8117 = vmatpush.bf16.msrb.mxu2 %v13156_v36  ;;  %v7193_v31 = vmax.f32 %v7185_v5, 0.0  ;;  %v21412_v5 = vld [vmem:[#allocation8_spill] sm:$0xff] }
 0x84f   :  { %v6746_v12 = vpop.f32.mrf.mxu2 }
 0x850   :  { %v7195_v35 = vpack.c.bf16 %v7188_v41, %v7187_v10  ;;  %v6747_v43 = vadd.f32 %v6746_v12, %v6657_v39  ;;  %v6660_v51 = vpop.f32.mrf.mxu0  ;;  %v6577_v10 = vadd.f32 %v19724_v21, %v19696_v13  ;;  %v14634_v41 = vld [vmem:[#allocation2 + $0x84] sm:$0xf0]  ;;  %v7213_v12 = vld [vmem:[%s21095_s2] sm:$0x3]  ;;  %8078 = vmatpush.bf16.msrb.mxu0 %v13092_v24 }
 0x851   :  { %v14600_v22 = vld [vmem:[#allocation2 + $0x54] sm:$0xf0]  ;;  %v12873_v59 = vld [vmem:[#allocation2 + $0x58] sm:$0xf0]  ;;  %v19795_v21 = vor.u32 %v14634_v41, %v13039_v23  ;;  %v14635_v41 = vld [vmem:[#allocation2 + $0x94] sm:$0xf] }
 0x852   :  { %7200 = vst [vmem:[#allocation2 + $0xc0] sm:$0xff] %v7195_v35  ;;  %v6881_v33 = vadd.f32 %v6747_v43, %v21403_v6  ;;  %v19749_v53 = vor.u32 %v14599_v7, %v12873_v59  ;;  %v6886_v6 = vadd.f32 %v6577_v10, %v21408_v58 }
 0x853   :  { %7649 = vmatmul.bf16.gmra.mxu0 %v19602_v27  ;;  %v12871_v27 = vld [vmem:[#allocation2 + $0x50] sm:$0xf] }
 0x854   :  { %v7182_v25 = vadd.f32 %v19703_v52, %v6881_v33  ;;  %v19741_v40 = vpop.f32.mrf.mxu3  ;;  %7688 = vmatmul.bf16.gmra.mxu2 %v19608_v54  ;;  %v19747_v19 = vor.u32 %v14600_v22, %v12871_v27  ;;  %v19798_v33 = vperm.slane %v7213_v12, 0 }
 0x855   :  { %v19744_v48 = vpop.f32.mrf.mxu1  ;;  %v6579_v27 = vadd.f32 %v19741_v40, %v19726_v29  ;;  %v14719_v29 = vld [vmem:[%s21094_s3 + $0x2f4] sm:$0xf]  ;;  %v13417_v40 = vld [vmem:[%s21094_s3 + $0x2f8] sm:$0xf0] }
 0x856   :  { %v7190_v16 = vmax.f32 %v7182_v25, 0.0  ;;  %v7219_v8 = vadd.f32 %v19798_v33, %v6886_v6  ;;  %v21413_v6 = vld [vmem:[#allocation33_spill] sm:$0xff] }
 0x857   :  { %v6749_v57 = vpop.f32.mrf.mxu2 }
 0x858   :  { %v7196_v11 = vpack.c.bf16 %v7190_v16, %v7189_v3  ;;  %v6750_v50 = vadd.f32 %v6749_v57, %v6660_v51  ;;  %7581 = vmatmul.bf16.gmra.mxu1 %v19747_v19  ;;  %v6662_v54 = vpop.f32.mrf.mxu0  ;;  %v13041_v51 = vld [vmem:[#allocation2 + $0x88] sm:$0xf0]  ;;  %v21409_v3 = vld [vmem:[#allocation15_spill] sm:$0xff]  ;;  %v7227_v56 = vmax.f32 %v7219_v8, 0.0 }
 0x859   :  { %7620 = vmatmul.bf16.gmra.mxu3 %v19749_v53  ;;  %v14720_v16 = vld [vmem:[%s21094_s3 + $0x2f4] sm:$0xf0] }
 0x85a   :  { %7201 = vst [vmem:[#allocation2 + $0xc8] sm:$0xff] %v7196_v11  ;;  %v6883_v9 = vadd.f32 %v6750_v50, %v21405_v45  ;;  %v13416_v11 = vor.u32 %v14720_v16, %v13415_v55  ;;  %v6888_v45 = vadd.f32 %v6579_v27, %v21410_v44  ;;  %v13343_v27 = vld [vmem:[%s21094_s3 + $0x260] sm:$0xf] }
 0x85c   :  { %v7184_v63 = vadd.f32 %v19703_v52, %v6883_v9  ;;  %v19764_v37 = vpop.f32.mrf.mxu3  ;;  %8525 = vmatpush.bf16.msra.mxu3 %v13416_v11 }
 0x85d   :  { %v19766_v1 = vpop.f32.mrf.mxu1  ;;  %v6582_v0 = vadd.f32 %v19764_v37, %v19744_v48  ;;  %v13353_v48 = vld [vmem:[%s21094_s3 + $0x278] sm:$0xf0] }
 0x85e   :  { %v7192_v39 = vmax.f32 %v7184_v63, 0.0 }
 0x85f   :  { %v6751_v42 = vpop.f32.mrf.mxu2  ;;  %v6890_v10 = vadd.f32 %v6582_v0, %v21412_v5  ;;  %v21415_v0 = vld [vmem:[#allocation35_spill] sm:$0xff] }
 0x860   :  { %v7197_v49 = vpack.c.bf16 %v7192_v39, %v7191_v32  ;;  %v6752_v17 = vadd.f32 %v6751_v42, %v6662_v54  ;;  %v6665_v60 = vpop.f32.mrf.mxu0  ;;  %v13420_v54 = vor.u32 %v14719_v29, %v13417_v40  ;;  %v7221_v32 = vadd.f32 %v19798_v33, %v6888_v45  ;;  %v13351_v42 = vld [vmem:[%s21094_s3 + $0x270] sm:$0xf]  ;;  %v21414_v29 = vld [vmem:[#allocation9_spill] sm:$0xff] }
 0x861   :  { %v13352_v2 = vor.u32 %v14704_v47, %v13351_v42 }
 0x862   :  { %7202 = vst [vmem:[#allocation2 + $0xd0] sm:$0xff] %v7197_v49  ;;  %v6885_v28 = vadd.f32 %v6752_v17, %v21407_v26  ;;  %8603 = vmatpush.bf16.msra.mxu2 %v13420_v54  ;;  %v14703_v49 = vld [vmem:[%s21094_s3 + $0x274] sm:$0xf]  ;;  %v7229_v24 = vmax.f32 %v7221_v32, 0.0 }
 0x863   :  { %7654 = vmatmul.bf16.gmra.mxu0 %v19699_v20  ;;  %v14633_v20 = vld [vmem:[#allocation2 + $0x84] sm:$0xf]  ;;  %v13356_v36 = vor.u32 %v14703_v49, %v13353_v48  ;;  %8486 = vmatpush.bf16.msra.mxu1 %v13352_v2  ;;  %v13401_v2 = vld [vmem:[%s21094_s3 + $0x2d8] sm:$0xf0] }
 0x864   :  { %v7186_v35 = vadd.f32 %v19703_v52, %v6885_v28  ;;  %v19790_v43 = vpop.f32.mrf.mxu3  ;;  %7693 = vmatmul.bf16.gmra.mxu2 %v19701_v15  ;;  %v19800_v52 = vor.u32 %v14633_v20, %v13041_v51  ;;  %v19802_v15 = vperm.slane %v7213_v12, 1  ;;  %v13407_v20 = vld [vmem:[%s21094_s3 + $0x2e0] sm:$0xf] }
 0x865   :  { %v19793_v13 = vpop.f32.mrf.mxu1  ;;  %8564 = vmatpush.bf16.msra.mxu0 %v13356_v36  ;;  %v6584_v58 = vadd.f32 %v19790_v43, %v19766_v1  ;;  %v13409_v1 = vld [vmem:[%s21094_s3 + $0x2e8] sm:$0xf0] }
 0x866   :  { %v7194_v22 = vmax.f32 %v7186_v35, 0.0 }
 0x867   :  { %v6754_v38 = vpop.f32.mrf.mxu2  ;;  %v6892_v40 = vadd.f32 %v6584_v58, %v21414_v29  ;;  %v14698_v29 = vld [vmem:[%s21094_s3 + $0x244] sm:$0xf0] }
 0x868   :  { %v7198_v61 = vpack.c.bf16 %v7194_v22, %v7193_v31  ;;  %v6755_v25 = vadd.f32 %v6754_v38, %v6665_v60  ;;  %8001 = vmatmul.bf16.vlgmr.msrb.gmra.mxu1 %v19795_v21  ;;  %v6667_v59 = vpop.f32.mrf.mxu0  ;;  %v13049_v60 = vld [vmem:[#allocation2 + $0x98] sm:$0xf0]  ;;  %v7223_v31 = vadd.f32 %v19798_v33, %v6890_v10  ;;  %v14718_v38 = vld [vmem:[%s21094_s3 + $0x2e4] sm:$0xf0]  ;;  %v14637_v10 = vld [vmem:[#allocation2 + $0xa4] sm:$0xf] }
 0x869   :  { %8040 = vmatmul.bf16.vlgmr.msrb.gmra.mxu3 %v19800_v52  ;;  %v19854_v35 = vor.u32 %v14635_v41, %v13049_v60  ;;  %v7225_v32 = vadd.f32 %v19798_v33, %v6892_v40  ;;  %v14715_v33 = vld [vmem:[%s21094_s3 + $0x2d4] sm:$0xf]  ;;  %v21418_v40 = vld [vmem:[#allocation32_spill] sm:$0xff] }
 0x86a   :  { %7203 = vst [vmem:[#allocation2 + $0xd8] sm:$0xff] %v7198_v61  ;;  %v6887_v46 = vadd.f32 %v6755_v25, %v21409_v3  ;;  %v13408_v61 = vor.u32 %v14718_v38, %v13407_v20  ;;  %v14717_v25 = vld [vmem:[%s21094_s3 + $0x2e4] sm:$0xf]  ;;  %v14702_v3 = vld [vmem:[%s21094_s3 + $0x264] sm:$0xf0]  ;;  %v7231_v11 = vmax.f32 %v7223_v31, 0.0  ;;  %v13404_v60 = vor.u32 %v14715_v33, %v13401_v2 }
 0x86b   :  { %v13412_v8 = vor.u32 %v14717_v25, %v13409_v1  ;;  %v13344_v16 = vor.u32 %v14702_v3, %v13343_v27  ;;  %v21417_v31 = vld [vmem:[#allocation19_spill] sm:$0xff]  ;;  %v14713_v27 = vld [vmem:[%s21094_s3 + $0x2c4] sm:$0xf]  ;;  %v13063_v2 = vld [vmem:[#allocation2 + $0xb0] sm:$0xf] }
 0x86c   :  { %v7220_v7 = vadd.f32 %v19802_v15, %v6887_v46  ;;  %v19817_v57 = vpop.f32.mrf.mxu3  ;;  %v14701_v46 = vld [vmem:[%s21094_s3 + $0x264] sm:$0xf]  ;;  %8526 = vmatpush.bf16.msra.mxu3 %v13408_v61  ;;  %v14699_v61 = vld [vmem:[%s21094_s3 + $0x254] sm:$0xf] }
 0x86d   :  { %v19825_v50 = vpop.f32.mrf.mxu1  ;;  %8604 = vmatpush.bf16.msra.mxu2 %v13412_v8  ;;  %v6587_v44 = vadd.f32 %v19817_v57, %v19793_v13  ;;  %8487 = vmatpush.bf16.msra.mxu1 %v13344_v16  ;;  %v13399_v13 = vld [vmem:[%s21094_s3 + $0x2d0] sm:$0xf]  ;;  %v14716_v57 = vld [vmem:[%s21094_s3 + $0x2d4] sm:$0xf0]  ;;  %v14714_v8 = vld [vmem:[%s21094_s3 + $0x2c4] sm:$0xf0] }
 0x86e   :  { %v7228_v9 = vmax.f32 %v7220_v7, 0.0  ;;  %v13345_v7 = vld [vmem:[%s21094_s3 + $0x268] sm:$0xf0] }
 0x86f   :  { %v6756_v34 = vpop.f32.mrf.mxu2 }
 0x870   :  { %v7235_v30 = vpack.c.bf16 %v7228_v9, %v7227_v56  ;;  %v6757_v18 = vadd.f32 %v6756_v34, %v6667_v59  ;;  %v6670_v63 = vpop.f32.mrf.mxu0  ;;  %v13348_v56 = vor.u32 %v14701_v46, %v13345_v7  ;;  %v7253_v9 = vld [vmem:[%s21095_s2] sm:$0x3]  ;;  %v13393_v7 = vld [vmem:[%s21094_s3 + $0x2c8] sm:$0xf0] }
 0x871   :  { %v19906_v47 = vperm.slane %v7253_v9, 0  ;;  %8605 = vmatpush.bf16.msra.mxu2 %v13404_v60 }
 0x872   :  { %7240 = vst [vmem:[#allocation2 + $0x60] sm:$0xff] %v7235_v30  ;;  %v6889_v39 = vadd.f32 %v6757_v18, %v21411_v14  ;;  %8565 = vmatpush.bf16.msra.mxu0 %v13348_v56 }
 0x873   :  { %7659 = vmatmul.bf16.gmra.mxu0 %v19747_v19  ;;  %v13047_v19 = vld [vmem:[#allocation2 + $0x90] sm:$0xf] }
 0x874   :  { %v7222_v37 = vadd.f32 %v19802_v15, %v6889_v39  ;;  %v19846_v17 = vpop.f32.mrf.mxu3  ;;  %7698 = vmatmul.bf16.gmra.mxu2 %v19749_v53  ;;  %v19852_v28 = vor.u32 %v14636_v4, %v13047_v19  ;;  %v21416_v39 = vld [vmem:[#allocation10_spill] sm:$0xff]  ;;  %v13400_v4 = vor.u32 %v14716_v57, %v13399_v13  ;;  %v13055_v19 = vld [vmem:[#allocation2 + $0xa0] sm:$0xf]  ;;  %v21419_v57 = vld [vmem:[#allocation21_spill] sm:$0xff] }
 0x875   :  { %v19849_v62 = vpop.f32.mrf.mxu1  ;;  %v6894_v42 = vadd.f32 %v6587_v44, %v21416_v39  ;;  %v13396_v44 = vor.u32 %v14713_v27, %v13393_v7  ;;  %v14694_v27 = vld [vmem:[%s21094_s3 + $0x224] sm:$0xf0] }
 0x876   :  { %v7230_v26 = vmax.f32 %v7222_v37, 0.0  ;;  %v13057_v37 = vld [vmem:[#allocation2 + $0xa8] sm:$0xf0]  ;;  %8527 = vmatpush.bf16.msra.mxu3 %v13400_v4  ;;  %v14710_v7 = vld [vmem:[%s21094_s3 + $0x2a4] sm:$0xf0] }
 0x877   :  { %v6759_v12 = vpop.f32.mrf.mxu2  ;;  %8606 = vmatpush.bf16.msra.mxu2 %v13396_v44 }
 0x878   :  { %v7236_v23 = vpack.c.bf16 %v7230_v26, %v7229_v24  ;;  %v6760_v51 = vadd.f32 %v6759_v12, %v6670_v63  ;;  %8006 = vmatmul.bf16.gmra.mxu1 %v19852_v28  ;;  %v6672_v53 = vpop.f32.mrf.mxu0  ;;  %v14638_v63 = vld [vmem:[#allocation2 + $0xa4] sm:$0xf0]  ;;  %v7259_v26 = vadd.f32 %v19906_v47, %v6894_v42  ;;  %v19922_v12 = vor.u32 %v14637_v10, %v13057_v37  ;;  %v14640_v42 = vld [vmem:[#allocation2 + $0xb4] sm:$0xf0]  ;;  %v21420_v37 = vld [vmem:[#allocation34_spill] sm:$0xff] }
 0x879   :  { %8045 = vmatmul.bf16.gmra.mxu3 %v19854_v35  ;;  %v19919_v5 = vor.u32 %v14638_v63, %v13055_v19  ;;  %v14711_v19 = vld [vmem:[%s21094_s3 + $0x2b4] sm:$0xf] }
 0x87a   :  { %7241 = vst [vmem:[#allocation2 + $0x68] sm:$0xff] %v7236_v23  ;;  %v6891_v22 = vadd.f32 %v6760_v51, %v21413_v6  ;;  %v19924_v51 = vperm.slane %v7253_v9, 1  ;;  %v13335_v6 = vld [vmem:[%s21094_s3 + $0x250] sm:$0xf]  ;;  %v7267_v20 = vmax.f32 %v7259_v26, 0.0 }
 0x87b   :  { %v14697_v9 = vld [vmem:[%s21094_s3 + $0x244] sm:$0xf]  ;;  %v14639_v10 = vld [vmem:[#allocation2 + $0xb4] sm:$0xf] }
 0x87c   :  { %v7224_v43 = vadd.f32 %v19802_v15, %v6891_v22  ;;  %v19875_v59 = vpop.f32.mrf.mxu3  ;;  %v14700_v22 = vld [vmem:[%s21094_s3 + $0x254] sm:$0xf0] }
 0x87d   :  { %v19886_v55 = vpop.f32.mrf.mxu1  ;;  %v13336_v38 = vor.u32 %v14700_v22, %v13335_v6 }
 0x87e   :  { %v7232_v54 = vmax.f32 %v7224_v43, 0.0  ;;  %v13391_v43 = vld [vmem:[%s21094_s3 + $0x2c0] sm:$0xf] }
 0x87f   :  { %v6761_v45 = vpop.f32.mrf.mxu2  ;;  %8488 = vmatpush.bf16.msra.mxu1 %v13336_v38  ;;  %v13392_v16 = vor.u32 %v14714_v8, %v13391_v43  ;;  %v13311_v8 = vld [vmem:[%s21094_s3 + $0x220] sm:$0xf] }
 0x880   :  { %v7237_v34 = vpack.c.bf16 %v7232_v54, %v7231_v11  ;;  %v6762_v30 = vadd.f32 %v6761_v45, %v6672_v53  ;;  %v6675_v18 = vpop.f32.mrf.mxu0  ;;  %v6589_v53 = vadd.f32 %v19846_v17, %v19825_v50  ;;  %v13337_v50 = vld [vmem:[%s21094_s3 + $0x258] sm:$0xf0]  ;;  %v13327_v11 = vld [vmem:[%s21094_s3 + $0x240] sm:$0xf] }
 0x881   :  { %v13340_v1 = vor.u32 %v14699_v61, %v13337_v50  ;;  %v13328_v45 = vor.u32 %v14698_v29, %v13327_v11  ;;  %8528 = vmatpush.bf16.msra.mxu3 %v13392_v16  ;;  %v14695_v61 = vld [vmem:[%s21094_s3 + $0x234] sm:$0xf]  ;;  %v13321_v50 = vld [vmem:[%s21094_s3 + $0x238] sm:$0xf0] }
 0x882   :  { %7242 = vst [vmem:[#allocation2 + $0x70] sm:$0xff] %v7237_v34  ;;  %v6893_v14 = vadd.f32 %v6762_v30, %v21415_v0  ;;  %v6896_v54 = vadd.f32 %v6589_v53, %v21418_v40  ;;  %v13329_v34 = vld [vmem:[%s21094_s3 + $0x248] sm:$0xf0]  ;;  %v13319_v53 = vld [vmem:[%s21094_s3 + $0x230] sm:$0xf]  ;;  %v13324_v43 = vor.u32 %v14695_v61, %v13321_v50 }
 0x883   :  { %8079 = vmatmul.bf16.vlgmr.msrb.gmra.mxu0 %v19795_v21  ;;  %v7233_v21 = vmax.f32 %v7225_v32, 0.0  ;;  %8489 = vmatpush.bf16.msra.mxu1 %v13328_v45 }
 0x884   :  { %v7226_v49 = vadd.f32 %v19802_v15, %v6893_v14  ;;  %v19916_v48 = vpop.f32.mrf.mxu3  ;;  %8118 = vmatmul.bf16.vlgmr.msrb.gmra.mxu2 %v19800_v52  ;;  %8566 = vmatpush.bf16.msra.mxu0 %v13340_v1  ;;  %v6592_v14 = vadd.f32 %v19875_v59, %v19849_v62  ;;  %v7261_v13 = vadd.f32 %v19906_v47, %v6896_v54 }
 0x885   :  { %v7557_v36 = vpop.f32.mrf.mxu1 }
 0x886   :  { %v7234_v24 = vmax.f32 %v7226_v49, 0.0  ;;  %v13065_v49 = vld [vmem:[#allocation2 + $0xb8] sm:$0xf0]  ;;  %v6898_v60 = vadd.f32 %v6592_v14, %v21420_v37  ;;  %v14709_v14 = vld [vmem:[%s21094_s3 + $0x2a4] sm:$0xf] }
 0x887   :  { %v6764_v41 = vpop.f32.mrf.mxu2  ;;  %v14642_v37 = vld [vmem:[#allocation2 + $0xc4] sm:$0xf0] }
 0x888   :  { %v7238_v15 = vpack.c.bf16 %v7234_v24, %v7233_v21  ;;  %v6765_v23 = vadd.f32 %v6764_v41, %v6675_v18  ;;  %8011 = vmatmul.bf16.gmra.mxu1 %v19919_v5  ;;  %v6677_v52 = vpop.f32.mrf.mxu0  ;;  %v13332_v18 = vor.u32 %v14697_v9, %v13329_v34  ;;  %v19990_v24 = vor.u32 %v14640_v42, %v13063_v2  ;;  %v13385_v41 = vld [vmem:[%s21094_s3 + $0x2b8] sm:$0xf0]  ;;  %v13303_v34 = vld [vmem:[%s21094_s3 + $0x210] sm:$0xf]  ;;  %v21423_v2 = vld [vmem:[#allocation37_spill] sm:$0xff] }
 0x889   :  { %8050 = vmatmul.bf16.gmra.mxu3 %v19922_v12  ;;  %v7263_v38 = vadd.f32 %v19906_v47, %v6898_v60  ;;  %v13295_v60 = vld [vmem:[%s21094_s3 + $0x200] sm:$0xf] }
 0x88a   :  { %7243 = vst [vmem:[#allocation2 + $0x78] sm:$0xff] %v7238_v15  ;;  %v6895_v58 = vadd.f32 %v6765_v23, %v21417_v31  ;;  %8567 = vmatpush.bf16.msra.mxu0 %v13332_v18  ;;  %v19995_v23 = vor.u32 %v14639_v10, %v13065_v49  ;;  %v14696_v31 = vld [vmem:[%s21094_s3 + $0x234] sm:$0xf0]  ;;  %v13367_v18 = vld [vmem:[%s21094_s3 + $0x290] sm:$0xf] }
 0x88b   :  { %v7271_v54 = vmax.f32 %v7263_v38, 0.0 }
 0x88c   :  { %v7260_v17 = vadd.f32 %v19924_v51, %v6895_v58  ;;  %v7596_v25 = vpop.f32.mrf.mxu3 }
 0x88d   :  { %v19953_v3 = vadd.f32 %v7596_v25, %v7557_v36  ;;  %v7559_v46 = vpop.f32.mrf.mxu1  ;;  %v13383_v36 = vld [vmem:[%s21094_s3 + $0x2b0] sm:$0xf]  ;;  %v21421_v25 = vld [vmem:[#allocation36_spill] sm:$0xff] }
 0x88e   :  { %v7268_v56 = vmax.f32 %v7260_v17, 0.0  ;;  %v6594_v17 = vadd.f32 %v19916_v48, %v19886_v55  ;;  %8568 = vmatpush.bf16.msra.mxu0 %v13324_v43  ;;  %v13312_v48 = vor.u32 %v14694_v27, %v13311_v8  ;;  %v13369_v43 = vld [vmem:[%s21094_s3 + $0x298] sm:$0xf0] }
 0x88f   :  { %v6766_v30 = vpop.f32.mrf.mxu2 }
 0x890   :  { %v7275_v63 = vpack.c.bf16 %v7268_v56, %v7267_v20  ;;  %v6767_v32 = vadd.f32 %v6766_v30, %v6677_v52  ;;  %v6680_v0 = vpop.f32.mrf.mxu0  ;;  %v13388_v52 = vor.u32 %v14711_v19, %v13385_v41  ;;  %v13320_v20 = vor.u32 %v14696_v31, %v13319_v53  ;;  %v21422_v56 = vld [vmem:[#allocation12_spill] sm:$0xff]  ;;  %v14692_v30 = vld [vmem:[%s21094_s3 + $0x214] sm:$0xf0]  ;;  %v13073_v19 = vld [vmem:[#allocation2 + $0xc8] sm:$0xf0] }
 0x891   :  { %v6900_v44 = vadd.f32 %v6594_v17, %v21422_v56  ;;  %v14641_v31 = vld [vmem:[#allocation2 + $0xc4] sm:$0xf] }
 0x892   :  { %7280 = vst [vmem:[#allocation2 + $0xe0] sm:$0xff] %v7275_v63  ;;  %v6897_v39 = vadd.f32 %v6767_v32, %v21419_v57  ;;  %8607 = vmatpush.bf16.msra.mxu2 %v13388_v52  ;;  %8490 = vmatpush.bf16.msra.mxu1 %v13320_v20  ;;  %v13304_v57 = vor.u32 %v14692_v30, %v13303_v34  ;;  %v14643_v34 = vld [vmem:[#allocation2 + $0xd4] sm:$0xf] }
 0x893   :  { %8084 = vmatmul.bf16.gmra.mxu0 %v19852_v28  ;;  %v14712_v28 = vld [vmem:[%s21094_s3 + $0x2b4] sm:$0xf0] }
 0x894   :  { %v7262_v4 = vadd.f32 %v19924_v51, %v6897_v39  ;;  %v7598_v33 = vpop.f32.mrf.mxu3  ;;  %8123 = vmatmul.bf16.gmra.mxu2 %v19854_v35  ;;  %v7269_v35 = vmax.f32 %v7261_v13, 0.0  ;;  %v13384_v26 = vor.u32 %v14712_v28, %v13383_v36  ;;  %v13377_v13 = vld [vmem:[%s21094_s3 + $0x2a8] sm:$0xf0]  ;;  %v14708_v39 = vld [vmem:[%s21094_s3 + $0x294] sm:$0xf0] }
 0x895   :  { %v19979_v62 = vadd.f32 %v7598_v33, %v7559_v46  ;;  %v7562_v59 = vpop.f32.mrf.mxu1  ;;  %v13375_v46 = vld [vmem:[%s21094_s3 + $0x2a0] sm:$0xf]  ;;  %v13380_v42 = vor.u32 %v14709_v14, %v13377_v13  ;;  %v7265_v33 = vadd.f32 %v19906_v47, %v6900_v44 }
 0x896   :  { %v7270_v21 = vmax.f32 %v7262_v4, 0.0  ;;  %8529 = vmatpush.bf16.msra.mxu3 %v13384_v26  ;;  %v13376_v40 = vor.u32 %v14710_v7, %v13375_v46  ;;  %8491 = vmatpush.bf16.msra.mxu1 %v13312_v48  ;;  %v13368_v4 = vor.u32 %v14708_v39, %v13367_v18  ;;  %v13359_v47 = vld [vmem:[%s21094_s3 + $0x280] sm:$0xf]  ;;  %v13305_v48 = vld [vmem:[%s21094_s3 + $0x218] sm:$0xf0] }
 0x897   :  { %v6769_v15 = vpop.f32.mrf.mxu2  ;;  %8608 = vmatpush.bf16.msra.mxu2 %v13380_v42  ;;  %v13071_v26 = vld [vmem:[#allocation2 + $0xc0] sm:$0xf]  ;;  %v14689_v39 = vld [vmem:[%s21094_s3 + $0x204] sm:$0xf]  ;;  %v13297_v42 = vld [vmem:[%s21094_s3 + $0x208] sm:$0xf0] }
 0x898   :  { %v7276_v58 = vpack.c.bf16 %v7270_v21, %v7269_v35  ;;  %v6770_v6 = vadd.f32 %v6769_v15, %v6680_v0  ;;  %8016 = vmatmul.bf16.gmra.mxu1 %v19990_v24  ;;  %v6682_v22 = vpop.f32.mrf.mxu0  ;;  %v14706_v35 = vld [vmem:[%s21094_s3 + $0x284] sm:$0xf0]  ;;  %v14693_v15 = vld [vmem:[%s21094_s3 + $0x224] sm:$0xf]  ;;  %v13072_v53 = vor.u32 %v14642_v37, %v13071_v26 }
 0x899   :  { %8055 = vmatmul.bf16.gmra.mxu3 %v19995_v23  ;;  %v13360_v41 = vor.u32 %v14706_v35, %v13359_v47  ;;  %v14678_v37 = vld [vmem:[#allocation2 + $0x24] sm:$0xf0]  ;;  %v13249_v47 = vld [vmem:[#allocation2 + $0x28] sm:$0xf0]  ;;  %v14763_v35 = vld [vmem:[%s21094_s3 + $0x3f4] sm:$0xf] }
 0x89a   :  { %7281 = vst [vmem:[#allocation2 + $0xe8] sm:$0xff] %v7276_v58  ;;  %v6899_v1 = vadd.f32 %v6770_v6, %v21421_v25  ;;  %8530 = vmatpush.bf16.msra.mxu3 %v13376_v40  ;;  %8492 = vmatpush.bf16.msra.mxu1 %v13304_v57  ;;  %v14677_v26 = vld [vmem:[#allocation2 + $0x24] sm:$0xf] }
 0x89c   :  { %v7264_v16 = vadd.f32 %v19924_v51, %v6899_v1  ;;  %v7601_v55 = vpop.f32.mrf.mxu3  ;;  %v14707_v1 = vld [vmem:[%s21094_s3 + $0x294] sm:$0xf] }
 0x89d   :  { %v20028_v11 = vadd.f32 %v7601_v55, %v7562_v59  ;;  %v7564_v29 = vpop.f32.mrf.mxu1  ;;  %v14690_v59 = vld [vmem:[%s21094_s3 + $0x204] sm:$0xf0]  ;;  %v13372_v8 = vor.u32 %v14707_v1, %v13369_v43  ;;  %v14691_v55 = vld [vmem:[%s21094_s3 + $0x214] sm:$0xf] }
 0x89e   :  { %v7272_v45 = vmax.f32 %v7264_v16, 0.0  ;;  %8531 = vmatpush.bf16.msra.mxu3 %v13368_v4  ;;  %v13308_v7 = vor.u32 %v14691_v55, %v13305_v48  ;;  %v13300_v4 = vor.u32 %v14689_v39, %v13297_v42  ;;  %v13615_v55 = vld [vmem:[%s21094_s3 + $0x3e0] sm:$0xf]  ;;  %v14762_v48 = vld [vmem:[%s21094_s3 + $0x3e4] sm:$0xf0] }
 0x89f   :  { %v6771_v9 = vpop.f32.mrf.mxu2  ;;  %8609 = vmatpush.bf16.msra.mxu2 %v13372_v8  ;;  %v14745_v39 = vld [vmem:[%s21094_s3 + $0x364] sm:$0xf] }
 0x8a0   :  { %v7277_v63 = vpack.c.bf16 %v7272_v45, %v7271_v54  ;;  %v6772_v32 = vadd.f32 %v6771_v9, %v6682_v22  ;;  %v7635_v0 = vpop.f32.mrf.mxu0  ;;  %v13076_v22 = vor.u32 %v14641_v31, %v13073_v19  ;;  %v13081_v54 = vld [vmem:[#allocation2 + $0xd8] sm:$0xf0]  ;;  %v13079_v45 = vld [vmem:[#allocation2 + $0xd0] sm:$0xf] }
 0x8a1   :  { %v20098_v18 = vor.u32 %v14643_v34, %v13081_v54  ;;  %v13623_v19 = vld [vmem:[%s21094_s3 + $0x3f0] sm:$0xf]  ;;  %v13257_v34 = vld [vmem:[#allocation2 + $0x38] sm:$0xf0] }
 0x8a2   :  { %7282 = vst [vmem:[#allocation2 + $0xf0] sm:$0xff] %v7277_v63  ;;  %v6901_v49 = vadd.f32 %v6772_v32, %v21423_v2  ;;  %8532 = vmatpush.bf16.msra.mxu3 %v13360_v41  ;;  %v13361_v32 = vld [vmem:[%s21094_s3 + $0x288] sm:$0xf0] }
 0x8a3   :  { %8089 = vmatmul.bf16.gmra.mxu0 %v19919_v5  ;;  %v13296_v5 = vor.u32 %v14690_v59, %v13295_v60  ;;  %v13247_v59 = vld [vmem:[#allocation2 + $0x20] sm:$0xf] }
 0x8a4   :  { %v7266_v36 = vadd.f32 %v19924_v51, %v6901_v49  ;;  %v7603_v28 = vpop.f32.mrf.mxu3  ;;  %8128 = vmatmul.bf16.gmra.mxu2 %v19922_v12  ;;  %v13313_v12 = vld [vmem:[%s21094_s3 + $0x228] sm:$0xf0]  ;;  %v7273_v51 = vmax.f32 %v7265_v33, 0.0 }
 0x8a5   :  { %v20066_v21 = vadd.f32 %v7603_v28, %v7564_v29  ;;  %v7567_v10 = vpop.f32.mrf.mxu1  ;;  %8493 = vmatpush.bf16.msra.mxu1 %v13296_v5  ;;  %v13316_v58 = vor.u32 %v14693_v15, %v13313_v12  ;;  %v14644_v29 = vld [vmem:[#allocation2 + $0xd4] sm:$0xf0]  ;;  %v13625_v15 = vld [vmem:[%s21094_s3 + $0x3f8] sm:$0xf0] }
 0x8a6   :  { %v7274_v52 = vmax.f32 %v7266_v36, 0.0  ;;  %v20096_v9 = vor.u32 %v14644_v29, %v13079_v45  ;;  %v14764_v5 = vld [vmem:[%s21094_s3 + $0x3f4] sm:$0xf0]  ;;  %v13616_v29 = vor.u32 %v14762_v48, %v13615_v55  ;;  %v13263_v55 = vld [vmem:[#allocation2 + $0x40] sm:$0xf] }
 0x8a7   :  { %v7674_v6 = vpop.f32.mrf.mxu2  ;;  %8569 = vmatpush.bf16.msra.mxu0 %v13316_v58  ;;  %v13624_v41 = vor.u32 %v14764_v5, %v13623_v19  ;;  %v13559_v58 = vld [vmem:[%s21094_s3 + $0x370] sm:$0xf]  ;;  %v14760_v5 = vld [vmem:[%s21094_s3 + $0x3d4] sm:$0xf0] }
 0x8a8   :  { %v7278_v20 = vpack.c.bf16 %v7274_v52, %v7273_v51  ;;  %v20074_v38 = vadd.f32 %v7674_v6, %v7635_v0  ;;  %8021 = vmatmul.bf16.gmra.mxu1 %v13072_v53  ;;  %v7637_v61 = vpop.f32.mrf.mxu0  ;;  %v20136_v51 = vor.u32 %v14677_v26, %v13249_v47  ;;  %v13628_v52 = vor.u32 %v14763_v35, %v13625_v15  ;;  %v14748_v6 = vld [vmem:[%s21094_s3 + $0x374] sm:$0xf0]  ;;  %v13607_v19 = vld [vmem:[%s21094_s3 + $0x3d0] sm:$0xf]  ;;  %v14759_v35 = vld [vmem:[%s21094_s3 + $0x3d4] sm:$0xf] }
 0x8a9   :  { %8060 = vmatmul.bf16.gmra.mxu3 %v13076_v22  ;;  %v13608_v15 = vor.u32 %v14760_v5, %v13607_v19  ;;  %v14684_v19 = vld [vmem:[#allocation2 + $0x54] sm:$0xf0] }
 0x8aa   :  { %7283 = vst [vmem:[#allocation2 + $0xf8] sm:$0xff] %v7278_v20  ;;  %9018 = vmatpush.bf16.msrb.mxu3 %v13624_v41  ;;  %v13560_v20 = vor.u32 %v14748_v6, %v13559_v58 }
 0x8ab   :  { %8570 = vmatpush.bf16.msra.mxu0 %v13308_v7  ;;  %v14761_v7 = vld [vmem:[%s21094_s3 + $0x3e4] sm:$0xf] }
 0x8ac   :  { %v7606_v50 = vpop.f32.mrf.mxu3  ;;  %8979 = vmatpush.bf16.msrb.mxu1 %v13560_v20  ;;  %v13545_v20 = vld [vmem:[%s21094_s3 + $0x358] sm:$0xf0] }
 0x8ad   :  { %v20076_v17 = vadd.f32 %v7606_v50, %v7567_v10  ;;  %v7569_v25 = vpop.f32.mrf.mxu1  ;;  %v20131_v10 = vor.u32 %v14678_v37, %v13247_v59 }
 0x8ae   :  { %9019 = vmatpush.bf16.msrb.mxu3 %v13616_v29 }
 0x8af   :  { %v7676_v27 = vpop.f32.mrf.mxu2  ;;  %8571 = vmatpush.bf16.msra.mxu0 %v13300_v4 }
 0x8b0   :  { %v20084_v46 = vadd.f32 %v7676_v27, %v7637_v61  ;;  %v7640_v16 = vpop.f32.mrf.mxu0  ;;  %v13561_v61 = vld [vmem:[%s21094_s3 + $0x378] sm:$0xf0] }
 0x8b2   :  { %9020 = vmatpush.bf16.msrb.mxu3 %v13608_v15 }
 0x8b3   :  { %8094 = vmatmul.bf16.gmra.mxu0 %v19990_v24 }
 0x8b4   :  { %v7608_v40 = vpop.f32.mrf.mxu3  ;;  %8133 = vmatmul.bf16.gmra.mxu2 %v19995_v23  ;;  %v14705_v23 = vld [vmem:[%s21094_s3 + $0x284] sm:$0xf] }
 0x8b5   :  { %v20094_v56 = vadd.f32 %v7608_v40, %v7569_v25  ;;  %v7572_v44 = vpop.f32.mrf.mxu1  ;;  %v13364_v0 = vor.u32 %v14705_v23, %v13361_v32  ;;  %v13617_v40 = vld [vmem:[%s21094_s3 + $0x3e8] sm:$0xf0]  ;;  %v13255_v23 = vld [vmem:[#allocation2 + $0x30] sm:$0xf] }
 0x8b6   :  { %v13620_v54 = vor.u32 %v14761_v7, %v13617_v40  ;;  %v14681_v7 = vld [vmem:[#allocation2 + $0x44] sm:$0xf] }
 0x8b7   :  { %v7679_v30 = vpop.f32.mrf.mxu2  ;;  %8610 = vmatpush.bf16.msra.mxu2 %v13364_v0  ;;  %v14679_v0 = vld [vmem:[#allocation2 + $0x34] sm:$0xf] }
 0x8b8   :  { %v20100_v63 = vadd.f32 %v7679_v30, %v7640_v16  ;;  %8026 = vmatmul.bf16.gmra.mxu1 %v20096_v9  ;;  %v7642_v24 = vpop.f32.mrf.mxu0 }
 0x8b9   :  { %8065 = vmatmul.bf16.gmra.mxu3 %v20098_v18 }
 0x8bb   :  { %9096 = vmatpush.bf16.msrb.mxu2 %v13628_v52  ;;  %v13543_v52 = vld [vmem:[%s21094_s3 + $0x350] sm:$0xf] }
 0x8bc   :  { %v7611_v14 = vpop.f32.mrf.mxu3 }
 0x8bd   :  { %v20110_v13 = vadd.f32 %v7611_v14, %v7572_v44  ;;  %v7574_v57 = vpop.f32.mrf.mxu1  ;;  %v14680_v44 = vld [vmem:[#allocation2 + $0x34] sm:$0xf0] }
 0x8be   :  { %v20174_v32 = vor.u32 %v14680_v44, %v13255_v23  ;;  %v14758_v44 = vld [vmem:[%s21094_s3 + $0x3c4] sm:$0xf0] }
 0x8bf   :  { %v7681_v33 = vpop.f32.mrf.mxu2  ;;  %9097 = vmatpush.bf16.msrb.mxu2 %v13620_v54 }
 0x8c0   :  { %v20118_v2 = vadd.f32 %v7681_v33, %v7642_v24  ;;  %v7645_v49 = vpop.f32.mrf.mxu0 }
 0x8c3   :  { %8099 = vmatmul.bf16.gmra.mxu0 %v13072_v53 }
 0x8c4   :  { %v7613_v60 = vpop.f32.mrf.mxu3  ;;  %8138 = vmatmul.bf16.gmra.mxu2 %v13076_v22  ;;  %v14747_v22 = vld [vmem:[%s21094_s3 + $0x374] sm:$0xf] }
 0x8c5   :  { %v20120_v36 = vadd.f32 %v7613_v60, %v7574_v57  ;;  %v7577_v28 = vpop.f32.mrf.mxu1  ;;  %v13564_v50 = vor.u32 %v14747_v22, %v13561_v61  ;;  %v20176_v57 = vor.u32 %v14679_v0, %v13257_v34  ;;  %v14743_v22 = vld [vmem:[%s21094_s3 + $0x354] sm:$0xf] }
 0x8c6   :  { %v13548_v61 = vor.u32 %v14743_v22, %v13545_v20  ;;  %v14755_v20 = vld [vmem:[%s21094_s3 + $0x3b4] sm:$0xf] }
 0x8c7   :  { %v7684_v12 = vpop.f32.mrf.mxu2  ;;  %9057 = vmatpush.bf16.msrb.mxu0 %v13564_v50  ;;  %v14682_v50 = vld [vmem:[#allocation2 + $0x44] sm:$0xf0] }
 0x8c8   :  { %v20138_v53 = vadd.f32 %v7684_v12, %v7645_v49  ;;  %8494 = vmatmul.bf16.vlgmr.msra.gmra.mxu1 %v20131_v10  ;;  %v7647_v31 = vpop.f32.mrf.mxu0  ;;  %v13553_v49 = vld [vmem:[%s21094_s3 + $0x368] sm:$0xf0]  ;;  %v13609_v12 = vld [vmem:[%s21094_s3 + $0x3d8] sm:$0xf0]  ;;  %v20226_v48 = vor.u32 %v14682_v50, %v13263_v55  ;;  %v14740_v55 = vld [vmem:[%s21094_s3 + $0x334] sm:$0xf0] }
 0x8c9   :  { %8533 = vmatmul.bf16.vlgmr.msra.gmra.mxu3 %v20136_v51  ;;  %v13556_v37 = vor.u32 %v14745_v39, %v13553_v49  ;;  %v13612_v58 = vor.u32 %v14759_v35, %v13609_v12  ;;  %v14741_v49 = vld [vmem:[%s21094_s3 + $0x344] sm:$0xf]  ;;  %v13273_v35 = vld [vmem:[#allocation2 + $0x58] sm:$0xf0]  ;;  %v13271_v12 = vld [vmem:[#allocation2 + $0x50] sm:$0xf] }
 0x8cb   :  { %9058 = vmatpush.bf16.msrb.mxu0 %v13556_v37  ;;  %9098 = vmatpush.bf16.msrb.mxu2 %v13612_v58 }
 0x8cc   :  { %v7616_v25 = vpop.f32.mrf.mxu3 }
 0x8cd   :  { %v20154_v1 = vadd.f32 %v7616_v25, %v7577_v28  ;;  %v7579_v43 = vpop.f32.mrf.mxu1 }
 0x8cf   :  { %v7686_v8 = vpop.f32.mrf.mxu2  ;;  %9059 = vmatpush.bf16.msrb.mxu0 %v13548_v61 }
 0x8d0   :  { %v20156_v27 = vadd.f32 %v7686_v8, %v7647_v31  ;;  %v7650_v16 = vpop.f32.mrf.mxu0  ;;  %v14744_v31 = vld [vmem:[%s21094_s3 + $0x354] sm:$0xf0] }
 0x8d1   :  { %v13544_v6 = vor.u32 %v14744_v31, %v13543_v52  ;;  %v20265_v52 = vor.u32 %v14684_v19, %v13271_v12  ;;  %v14683_v31 = vld [vmem:[#allocation2 + $0x54] sm:$0xf]  ;;  %v13585_v19 = vld [vmem:[%s21094_s3 + $0x3a8] sm:$0xf0] }
 0x8d2   :  { %v20270_v22 = vor.u32 %v14683_v31, %v13273_v35  ;;  %v14752_v35 = vld [vmem:[%s21094_s3 + $0x394] sm:$0xf0] }
 0x8d3   :  { %8104 = vmatmul.bf16.gmra.mxu0 %v20096_v9  ;;  %v13551_v9 = vld [vmem:[%s21094_s3 + $0x360] sm:$0xf] }
 0x8d4   :  { %v7618_v45 = vpop.f32.mrf.mxu3  ;;  %8143 = vmatmul.bf16.gmra.mxu2 %v20098_v18  ;;  %v14746_v18 = vld [vmem:[%s21094_s3 + $0x364] sm:$0xf0] }
 0x8d5   :  { %v20172_v30 = vadd.f32 %v7618_v45, %v7579_v43  ;;  %v7582_v24 = vpop.f32.mrf.mxu1  ;;  %v13552_v33 = vor.u32 %v14746_v18, %v13551_v9  ;;  %v13265_v43 = vld [vmem:[#allocation2 + $0x48] sm:$0xf0]  ;;  %v14757_v45 = vld [vmem:[%s21094_s3 + $0x3c4] sm:$0xf] }
 0x8d6   :  { %v20228_v40 = vor.u32 %v14681_v7, %v13265_v43 }
 0x8d7   :  { %v7689_v14 = vpop.f32.mrf.mxu2  ;;  %8980 = vmatpush.bf16.msrb.mxu1 %v13552_v33  ;;  %v14742_v33 = vld [vmem:[%s21094_s3 + $0x344] sm:$0xf0] }
 0x8d8   :  { %v20187_v42 = vadd.f32 %v7689_v14, %v7650_v16  ;;  %8499 = vmatmul.bf16.gmra.mxu1 %v20174_v32  ;;  %v7652_v4 = vpop.f32.mrf.mxu0 }
 0x8d9   :  { %8538 = vmatmul.bf16.gmra.mxu3 %v20176_v57 }
 0x8db   :  { %8981 = vmatpush.bf16.msrb.mxu1 %v13544_v6 }
 0x8dc   :  { %v7621_v60 = vpop.f32.mrf.mxu3 }
 0x8dd   :  { %v20194_v59 = vadd.f32 %v7621_v60, %v7582_v24  ;;  %v7584_v47 = vpop.f32.mrf.mxu1  ;;  %v13601_v24 = vld [vmem:[%s21094_s3 + $0x3c8] sm:$0xf0] }
 0x8de   :  { %v13604_v0 = vor.u32 %v14757_v45, %v13601_v24  ;;  %v13519_v24 = vld [vmem:[%s21094_s3 + $0x320] sm:$0xf] }
 0x8df   :  { %v7691_v28 = vpop.f32.mrf.mxu2 }
 0x8e0   :  { %v20205_v26 = vadd.f32 %v7691_v28, %v7652_v4  ;;  %v7655_v41 = vpop.f32.mrf.mxu0  ;;  %9099 = vmatpush.bf16.msrb.mxu2 %v13604_v0  ;;  %v13535_v4 = vld [vmem:[%s21094_s3 + $0x340] sm:$0xf] }
 0x8e1   :  { %v13583_v0 = vld [vmem:[%s21094_s3 + $0x3a0] sm:$0xf] }
 0x8e3   :  { %8572 = vmatmul.bf16.vlgmr.msra.gmra.mxu0 %v20131_v10 }
 0x8e4   :  { %v7623_v25 = vpop.f32.mrf.mxu3  ;;  %8611 = vmatmul.bf16.vlgmr.msra.gmra.mxu2 %v20136_v51  ;;  %v13599_v51 = vld [vmem:[%s21094_s3 + $0x3c0] sm:$0xf] }
 0x8e5   :  { %v20224_v8 = vadd.f32 %v7623_v25, %v7584_v47  ;;  %v8002_v16 = vpop.f32.mrf.mxu1  ;;  %v13600_v34 = vor.u32 %v14758_v44, %v13599_v51  ;;  %v13536_v47 = vor.u32 %v14742_v33, %v13535_v4  ;;  %v13593_v25 = vld [vmem:[%s21094_s3 + $0x3b8] sm:$0xf0] }
 0x8e6   :  { %v13596_v43 = vor.u32 %v14755_v20, %v13593_v25  ;;  %v14685_v25 = vld [vmem:[#allocation2 + $0x64] sm:$0xf] }
 0x8e7   :  { %v7694_v29 = vpop.f32.mrf.mxu2  ;;  %9021 = vmatpush.bf16.msrb.mxu3 %v13600_v34  ;;  %8982 = vmatpush.bf16.msrb.mxu1 %v13536_v47  ;;  %v13511_v47 = vld [vmem:[%s21094_s3 + $0x310] sm:$0xf] }
 0x8e8   :  { %v20230_v54 = vadd.f32 %v7694_v29, %v7655_v41  ;;  %8504 = vmatmul.bf16.gmra.mxu1 %v20226_v48  ;;  %v7657_v10 = vpop.f32.mrf.mxu0  ;;  %v14739_v29 = vld [vmem:[%s21094_s3 + $0x334] sm:$0xf]  ;;  %9100 = vmatpush.bf16.msrb.mxu2 %v13596_v43 }
 0x8e9   :  { %8543 = vmatmul.bf16.gmra.mxu3 %v20228_v40 }
 0x8ec   :  { %v8041_v23 = vpop.f32.mrf.mxu3 }
 0x8ed   :  { %v8042_v14 = vadd.f32 %v8041_v23, %v8002_v16  ;;  %v8004_v9 = vpop.f32.mrf.mxu1  ;;  %v13527_v16 = vld [vmem:[%s21094_s3 + $0x330] sm:$0xf]  ;;  %v14738_v23 = vld [vmem:[%s21094_s3 + $0x324] sm:$0xf0] }
 0x8ee   :  { %v13528_v7 = vor.u32 %v14740_v55, %v13527_v16  ;;  %v14750_v16 = vld [vmem:[%s21094_s3 + $0x384] sm:$0xf0] }
 0x8ef   :  { %v20247_v18 = vadd.f32 %v8042_v14, %v19953_v3  ;;  %v7696_v39 = vpop.f32.mrf.mxu2  ;;  %v13537_v3 = vld [vmem:[%s21094_s3 + $0x348] sm:$0xf0]  ;;  %v13520_v14 = vor.u32 %v14738_v23, %v13519_v24 }
 0x8f0   :  { %v20258_v37 = vadd.f32 %v7696_v39, %v7657_v10  ;;  %v7660_v60 = vpop.f32.mrf.mxu0  ;;  %v13540_v28 = vor.u32 %v14741_v49, %v13537_v3  ;;  %v13529_v10 = vld [vmem:[%s21094_s3 + $0x338] sm:$0xf0]  ;;  %8983 = vmatpush.bf16.msrb.mxu1 %v13528_v7  ;;  %v14736_v3 = vld [vmem:[%s21094_s3 + $0x314] sm:$0xf0] }
 0x8f1   :  { %v13532_v51 = vor.u32 %v14739_v29, %v13529_v10 }
 0x8f2   :  { %9060 = vmatpush.bf16.msrb.mxu0 %v13540_v28  ;;  %v14753_v28 = vld [vmem:[%s21094_s3 + $0x3a4] sm:$0xf] }
 0x8f3   :  { %8577 = vmatmul.bf16.gmra.mxu0 %v20174_v32  ;;  %v13591_v32 = vld [vmem:[%s21094_s3 + $0x3b0] sm:$0xf] }
 0x8f4   :  { %v8043_v5 = vpop.f32.mrf.mxu3  ;;  %8616 = vmatmul.bf16.gmra.mxu2 %v20176_v57  ;;  %v14756_v57 = vld [vmem:[%s21094_s3 + $0x3b4] sm:$0xf0]  ;;  %8984 = vmatpush.bf16.msrb.mxu1 %v13520_v14 }
 0x8f5   :  { %v8044_v41 = vadd.f32 %v8043_v5, %v8004_v9  ;;  %v8007_v15 = vpop.f32.mrf.mxu1  ;;  %v13592_v50 = vor.u32 %v14756_v57, %v13591_v32  ;;  %v14754_v9 = vld [vmem:[%s21094_s3 + $0x3a4] sm:$0xf0]  ;;  %v13512_v5 = vor.u32 %v14736_v3, %v13511_v47  ;;  %v13281_v32 = vld [vmem:[#allocation2 + $0x68] sm:$0xf0] }
 0x8f6   :  { %9061 = vmatpush.bf16.msrb.mxu0 %v13532_v51  ;;  %v13584_v33 = vor.u32 %v14754_v9, %v13583_v0  ;;  %v20354_v29 = vor.u32 %v14685_v25, %v13281_v32  ;;  %v14737_v51 = vld [vmem:[%s21094_s3 + $0x324] sm:$0xf] }
 0x8f7   :  { %v20268_v58 = vadd.f32 %v8044_v41, %v19979_v62  ;;  %v7699_v6 = vpop.f32.mrf.mxu2  ;;  %9022 = vmatpush.bf16.msrb.mxu3 %v13592_v50  ;;  %v14686_v41 = vld [vmem:[#allocation2 + $0x64] sm:$0xf0]  ;;  %v13567_v50 = vld [vmem:[%s21094_s3 + $0x380] sm:$0xf] }
 0x8f8   :  { %v20281_v61 = vadd.f32 %v7699_v6, %v7660_v60  ;;  %8509 = vmatmul.bf16.gmra.mxu1 %v20265_v52  ;;  %v7662_v62 = vpop.f32.mrf.mxu0  ;;  %v13279_v6 = vld [vmem:[#allocation2 + $0x60] sm:$0xf]  ;;  %v13568_v10 = vor.u32 %v14750_v16, %v13567_v50  ;;  %v13569_v50 = vld [vmem:[%s21094_s3 + $0x388] sm:$0xf0] }
 0x8f9   :  { %8548 = vmatmul.bf16.gmra.mxu3 %v20270_v22  ;;  %8985 = vmatpush.bf16.msrb.mxu1 %v13512_v5 }
 0x8fb   :  { %9023 = vmatpush.bf16.msrb.mxu3 %v13584_v33  ;;  %v14751_v33 = vld [vmem:[%s21094_s3 + $0x394] sm:$0xf] }
 0x8fc   :  { %v8046_v44 = vpop.f32.mrf.mxu3 }
 0x8fd   :  { %v8047_v45 = vadd.f32 %v8046_v44, %v8007_v15  ;;  %v8009_v34 = vpop.f32.mrf.mxu1  ;;  %v13588_v15 = vor.u32 %v14753_v28, %v13585_v19  ;;  %v13521_v44 = vld [vmem:[%s21094_s3 + $0x328] sm:$0xf0]  ;;  %v13513_v28 = vld [vmem:[%s21094_s3 + $0x318] sm:$0xf0]  ;;  %v14688_v19 = vld [vmem:[#allocation2 + $0x74] sm:$0xf0] }
 0x8fe   :  { %v13524_v24 = vor.u32 %v14737_v51, %v13521_v44  ;;  %v13505_v51 = vld [vmem:[%s21094_s3 + $0x308] sm:$0xf0] }
 0x8ff   :  { %v20313_v39 = vadd.f32 %v8047_v45, %v20028_v11  ;;  %v7701_v4 = vpop.f32.mrf.mxu2  ;;  %v13575_v11 = vld [vmem:[%s21094_s3 + $0x390] sm:$0xf]  ;;  %9101 = vmatpush.bf16.msrb.mxu2 %v13588_v15 }
 0x900   :  { %v20315_v49 = vadd.f32 %v7701_v4, %v7662_v62  ;;  %v8080_v60 = vpop.f32.mrf.mxu0  ;;  %v13576_v12 = vor.u32 %v14752_v35, %v13575_v11  ;;  %v13503_v62 = vld [vmem:[%s21094_s3 + $0x300] sm:$0xf]  ;;  %9062 = vmatpush.bf16.msrb.mxu0 %v13524_v24 }
 0x902   :  { %9024 = vmatpush.bf16.msrb.mxu3 %v13576_v12  ;;  %v13287_v12 = vld [vmem:[#allocation2 + $0x70] sm:$0xf] }
 0x903   :  { %8582 = vmatmul.bf16.gmra.mxu0 %v20226_v48  ;;  %v14734_v48 = vld [vmem:[%s21094_s3 + $0x304] sm:$0xf0] }
 0x904   :  { %v8048_v31 = vpop.f32.mrf.mxu3  ;;  %8621 = vmatmul.bf16.gmra.mxu2 %v20228_v40  ;;  %v20346_v40 = vor.u32 %v14686_v41, %v13279_v6  ;;  %v13504_v43 = vor.u32 %v14734_v48, %v13503_v62  ;;  %v13289_v41 = vld [vmem:[#allocation2 + $0x78] sm:$0xf0]  ;;  %v14687_v6 = vld [vmem:[#allocation2 + $0x74] sm:$0xf] }
 0x905   :  { %v8049_v57 = vadd.f32 %v8048_v31, %v8009_v34  ;;  %v8012_v20 = vpop.f32.mrf.mxu1  ;;  %v13288_v31 = vor.u32 %v14688_v19, %v13287_v12  ;;  %v14724_v12 = vld [vmem:[#allocation2 + $0xb4] sm:$0xf0] }
 0x906   :  { %8986 = vmatpush.bf16.msrb.mxu1 %v13504_v43  ;;  %9025 = vmatpush.bf16.msrb.mxu3 %v13568_v10 }
 0x907   :  { %v20352_v55 = vadd.f32 %v8049_v57, %v20066_v21  ;;  %v8119_v7 = vpop.f32.mrf.mxu2 }
 0x908   :  { %v8120_v45 = vadd.f32 %v8119_v7, %v8080_v60  ;;  %8514 = vmatmul.bf16.gmra.mxu1 %v20346_v40  ;;  %v8082_v34 = vpop.f32.mrf.mxu0  ;;  %v13577_v60 = vld [vmem:[%s21094_s3 + $0x398] sm:$0xf0] }
 0x909   :  { %8553 = vmatmul.bf16.gmra.mxu3 %v20354_v29  ;;  %v13580_v3 = vor.u32 %v14751_v33, %v13577_v60  ;;  %v13455_v33 = vld [vmem:[#allocation2 + $0xa0] sm:$0xf] }
 0x90a   :  { %v20365_v21 = vadd.f32 %v8120_v45, %v20074_v38 }
 0x90b   :  { %9102 = vmatpush.bf16.msrb.mxu2 %v13580_v3 }
 0x90c   :  { %v8051_v23 = vpop.f32.mrf.mxu3 }
 0x90d   :  { %v8052_v0 = vadd.f32 %v8051_v23, %v8012_v20  ;;  %v8014_v14 = vpop.f32.mrf.mxu1  ;;  %v13292_v20 = vor.u32 %v14687_v6, %v13289_v41 }
 0x90f   :  { %v20368_v9 = vadd.f32 %v8052_v0, %v20076_v17  ;;  %v8121_v4 = vpop.f32.mrf.mxu2  ;;  %v14735_v17 = vld [vmem:[%s21094_s3 + $0x314] sm:$0xf]  ;;  %v13457_v0 = vld [vmem:[#allocation2 + $0xa8] sm:$0xf0] }
 0x910   :  { %v8122_v47 = vadd.f32 %v8121_v4, %v8082_v34  ;;  %v8085_v38 = vpop.f32.mrf.mxu0  ;;  %v13516_v5 = vor.u32 %v14735_v17, %v13513_v28 }
 0x912   :  { %v20377_v11 = vadd.f32 %v8122_v47, %v20084_v46  ;;  %9063 = vmatpush.bf16.msrb.mxu0 %v13516_v5  ;;  %v14721_v47 = vld [vmem:[#allocation2 + $0xa4] sm:$0xf] }
 0x913   :  { %8587 = vmatmul.bf16.gmra.mxu0 %v20265_v52  ;;  %v13460_v17 = vor.u32 %v14721_v47, %v13457_v0 }
 0x914   :  { %v8053_v35 = vpop.f32.mrf.mxu3  ;;  %8626 = vmatmul.bf16.gmra.mxu2 %v20270_v22  ;;  %v14749_v22 = vld [vmem:[%s21094_s3 + $0x384] sm:$0xf] }
 0x915   :  { %v8054_v15 = vadd.f32 %v8053_v35, %v8014_v14  ;;  %v8017_v46 = vpop.f32.mrf.mxu1  ;;  %v13572_v25 = vor.u32 %v14749_v22, %v13569_v50  ;;  %v14723_v50 = vld [vmem:[#allocation2 + $0xb4] sm:$0xf] }
 0x917   :  { %v20388_v32 = vadd.f32 %v8054_v15, %v20094_v56  ;;  %v8124_v57 = vpop.f32.mrf.mxu2  ;;  %9103 = vmatpush.bf16.msrb.mxu2 %v13572_v25 }
 0x918   :  { %v8125_v62 = vadd.f32 %v8124_v57, %v8085_v38  ;;  %8519 = vmatmul.bf16.gmra.mxu1 %v13288_v31  ;;  %v8087_v52 = vpop.f32.mrf.mxu0  ;;  %v13465_v57 = vld [vmem:[#allocation2 + $0xb8] sm:$0xf0] }
 0x919   :  { %8558 = vmatmul.bf16.gmra.mxu3 %v13292_v20 }
 0x91a   :  { %v20391_v48 = vadd.f32 %v8125_v62, %v20100_v63  ;;  %v14733_v63 = vld [vmem:[%s21094_s3 + $0x304] sm:$0xf] }
 0x91b   :  { %v13508_v34 = vor.u32 %v14733_v63, %v13505_v51 }
 0x91c   :  { %v8056_v56 = vpop.f32.mrf.mxu3 }
 0x91d   :  { %v8057_v43 = vadd.f32 %v8056_v56, %v8017_v46  ;;  %v8019_v16 = vpop.f32.mrf.mxu1  ;;  %9064 = vmatpush.bf16.msrb.mxu0 %v13508_v34  ;;  %v13468_v56 = vor.u32 %v14723_v50, %v13465_v57  ;;  %v14726_v34 = vld [vmem:[#allocation2 + $0xc4] sm:$0xf0]  ;;  %v13479_v57 = vld [vmem:[#allocation2 + $0xd0] sm:$0xf] }
 0x91f   :  { %v20400_v7 = vadd.f32 %v8057_v43, %v20110_v13  ;;  %v8126_v10 = vpop.f32.mrf.mxu2  ;;  %v14722_v13 = vld [vmem:[#allocation2 + $0xa4] sm:$0xf0] }
 0x920   :  { %v8127_v44 = vadd.f32 %v8126_v10, %v8087_v52  ;;  %v8090_v45 = vpop.f32.mrf.mxu0  ;;  %v13456_v60 = vor.u32 %v14722_v13, %v13455_v33  ;;  %v13463_v52 = vld [vmem:[#allocation2 + $0xb0] sm:$0xf]  ;;  %v14725_v33 = vld [vmem:[#allocation2 + $0xc4] sm:$0xf] }
 0x921   :  { %v13464_v22 = vor.u32 %v14724_v12, %v13463_v52 }
 0x922   :  { %v20409_v24 = vadd.f32 %v8127_v44, %v20118_v2 }
 0x923   :  { %8592 = vmatmul.bf16.gmra.mxu0 %v20346_v40 }
 0x924   :  { %v8058_v23 = vpop.f32.mrf.mxu3  ;;  %8631 = vmatmul.bf16.gmra.mxu2 %v20354_v29 }
 0x925   :  { %v8059_v14 = vadd.f32 %v8058_v23, %v8019_v16  ;;  %v8022_v4 = vpop.f32.mrf.mxu1  ;;  %v13473_v23 = vld [vmem:[#allocation2 + $0xc8] sm:$0xf0] }
 0x927   :  { %v20414_v38 = vadd.f32 %v8059_v14, %v20120_v36  ;;  %v8129_v3 = vpop.f32.mrf.mxu2  ;;  %v13471_v14 = vld [vmem:[#allocation2 + $0xc0] sm:$0xf] }
 0x928   :  { %v8130_v2 = vadd.f32 %v8129_v3, %v8090_v45  ;;  %8987 = vmatmul.bf16.vlgmr.msrb.gmra.mxu1 %v13456_v60  ;;  %v8092_v28 = vpop.f32.mrf.mxu0  ;;  %v13476_v3 = vor.u32 %v14725_v33, %v13473_v23 }
 0x929   :  { %9026 = vmatmul.bf16.vlgmr.msrb.gmra.mxu3 %v13460_v17 }
 0x92a   :  { %v20417_v40 = vadd.f32 %v8130_v2, %v20138_v53 }
 0x92c   :  { %v8061_v19 = vpop.f32.mrf.mxu3 }
 0x92d   :  { %v8062_v29 = vadd.f32 %v8061_v19, %v8022_v4  ;;  %v8024_v5 = vpop.f32.mrf.mxu1  ;;  %v13472_v4 = vor.u32 %v14726_v34, %v13471_v14 }
 0x92f   :  { %v20420_v35 = vadd.f32 %v8062_v29, %v20154_v1  ;;  %v8131_v41 = vpop.f32.mrf.mxu2 }
 0x930   :  { %v8132_v15 = vadd.f32 %v8131_v41, %v8092_v28  ;;  %v8095_v46 = vpop.f32.mrf.mxu0 }
 0x932   :  { %v20423_v36 = vadd.f32 %v8132_v15, %v20156_v27 }
 0x933   :  { %8597 = vmatmul.bf16.gmra.mxu0 %v13288_v31 }
 0x934   :  { %v8063_v6 = vpop.f32.mrf.mxu3  ;;  %8636 = vmatmul.bf16.gmra.mxu2 %v13292_v20 }
 0x935   :  { %v8064_v62 = vadd.f32 %v8063_v6, %v8024_v5  ;;  %v8027_v53 = vpop.f32.mrf.mxu1 }
 0x937   :  { %v20426_v25 = vadd.f32 %v8064_v62, %v20172_v30  ;;  %v8134_v1 = vpop.f32.mrf.mxu2 }
 0x938   :  { %v8135_v43 = vadd.f32 %v8134_v1, %v8095_v46  ;;  %8992 = vmatmul.bf16.gmra.mxu1 %v13464_v22  ;;  %v8097_v16 = vpop.f32.mrf.mxu0  ;;  %v14728_v46 = vld [vmem:[#allocation2 + $0xd4] sm:$0xf0] }
 0x939   :  { %9031 = vmatmul.bf16.gmra.mxu3 %v13468_v56  ;;  %v13480_v62 = vor.u32 %v14728_v46, %v13479_v57  ;;  %v13495_v46 = vld [vmem:[#allocation2 + $0xf0] sm:$0xf] }
 0x93a   :  { %v20429_v27 = vadd.f32 %v8135_v43, %v20187_v42 }
 0x93c   :  { %v8066_v31 = vpop.f32.mrf.mxu3 }
 0x93d   :  { %v8067_v20 = vadd.f32 %v8066_v31, %v8027_v53  ;;  %v8029_v10 = vpop.f32.mrf.mxu1  ;;  %v14727_v53 = vld [vmem:[#allocation2 + $0xd4] sm:$0xf] }
 0x93f   :  { %v20432_v63 = vadd.f32 %v8067_v20, %v20194_v59  ;;  %v8136_v51 = vpop.f32.mrf.mxu2 }
 0x940   :  { %v8137_v44 = vadd.f32 %v8136_v51, %v8097_v16  ;;  %v8100_v45 = vpop.f32.mrf.mxu0 }
 0x942   :  { %v20435_v30 = vadd.f32 %v8137_v44, %v20205_v26  ;;  %v14730_v44 = vld [vmem:[#allocation2 + $0xe4] sm:$0xf0] }
 0x943   :  { %9065 = vmatmul.bf16.vlgmr.msrb.gmra.mxu0 %v13456_v60 }
 0x944   :  { %v8068_v13 = vpop.f32.mrf.mxu3  ;;  %9104 = vmatmul.bf16.vlgmr.msrb.gmra.mxu2 %v13460_v17 }
 0x945   :  { %v8069_v0 = vadd.f32 %v8068_v13, %v8029_v10  ;;  %v8495_v42 = vpop.f32.mrf.mxu1  ;;  %v13487_v13 = vld [vmem:[#allocation2 + $0xe0] sm:$0xf] }
 0x946   :  { %v13488_v23 = vor.u32 %v14730_v44, %v13487_v13 }
 0x947   :  { %v20438_v47 = vadd.f32 %v8069_v0, %v20224_v8  ;;  %v8139_v59 = vpop.f32.mrf.mxu2  ;;  %v14729_v0 = vld [vmem:[#allocation2 + $0xe4] sm:$0xf] }
 0x948   :  { %v8140_v2 = vadd.f32 %v8139_v59, %v8100_v45  ;;  %8997 = vmatmul.bf16.gmra.mxu1 %v13472_v4  ;;  %v8102_v28 = vpop.f32.mrf.mxu0 }
 0x949   :  { %21424 = vst [vmem:[#allocation14_spill] sm:$0xff] %v20438_v47  ;;  %9036 = vmatmul.bf16.gmra.mxu3 %v13476_v3 }
 0x94a   :  { %v20441_v26 = vadd.f32 %v8140_v2, %v20230_v54  ;;  %v13481_v54 = vld [vmem:[#allocation2 + $0xd8] sm:$0xf0] }
 0x94b   :  { %v13484_v50 = vor.u32 %v14727_v53, %v13481_v54  ;;  %v14731_v54 = vld [vmem:[#allocation2 + $0xf4] sm:$0xf] }
 0x94c   :  { %v8534_v60 = vpop.f32.mrf.mxu3 }
 0x94d   :  { %v8535_v17 = vadd.f32 %v8534_v60, %v8495_v42  ;;  %v20443_v19 = vpop.f32.mrf.mxu1 }
 0x94f   :  { %v20446_v29 = vadd.f32 %v8535_v17, %v20247_v18  ;;  %v8141_v5 = vpop.f32.mrf.mxu2  ;;  %v14732_v17 = vld [vmem:[#allocation2 + $0xf4] sm:$0xf0] }
 0x950   :  { %v8142_v41 = vadd.f32 %v8141_v5, %v8102_v28  ;;  %v8105_v8 = vpop.f32.mrf.mxu0 }
 0x952   :  { %v20449_v15 = vadd.f32 %v8142_v41, %v20258_v37  ;;  %v13497_v41 = vld [vmem:[#allocation2 + $0xf8] sm:$0xf0] }
 0x953   :  { %9070 = vmatmul.bf16.gmra.mxu0 %v13464_v22  ;;  %v13500_v57 = vor.u32 %v14731_v54, %v13497_v41 }
 0x954   :  { %v20451_v12 = vpop.f32.mrf.mxu3  ;;  %9109 = vmatmul.bf16.gmra.mxu2 %v13468_v56 }
 0x955   :  { %v8500_v6 = vpop.f32.mrf.mxu1 }
 0x957   :  { %v8144_v52 = vpop.f32.mrf.mxu2 }
 0x958   :  { %v8145_v18 = vadd.f32 %v8144_v52, %v8105_v8  ;;  %9002 = vmatmul.bf16.gmra.mxu1 %v13480_v62  ;;  %v8107_v1 = vpop.f32.mrf.mxu0 }
 0x959   :  { %9041 = vmatmul.bf16.gmra.mxu3 %v13484_v50 }
 0x95a   :  { %v20454_v43 = vadd.f32 %v8145_v18, %v20281_v61  ;;  %v13489_v61 = vld [vmem:[#allocation2 + $0xe8] sm:$0xf0] }
 0x95b   :  { %v13492_v14 = vor.u32 %v14729_v0, %v13489_v61 }
 0x95c   :  { %v8539_v37 = vpop.f32.mrf.mxu3 }
 0x95d   :  { %v8540_v22 = vadd.f32 %v8539_v37, %v8500_v6  ;;  %v20456_v16 = vpop.f32.mrf.mxu1 }
 0x95f   :  { %v20459_v56 = vadd.f32 %v8540_v22, %v20313_v39  ;;  %v8146_v31 = vpop.f32.mrf.mxu2 }
 0x960   :  { %v8147_v20 = vadd.f32 %v8146_v31, %v8107_v1  ;;  %v8573_v10 = vpop.f32.mrf.mxu0 }
 0x962   :  { %v20462_v51 = vadd.f32 %v8147_v20, %v20315_v49 }
 0x963   :  { %9075 = vmatmul.bf16.gmra.mxu0 %v13472_v4 }
 0x964   :  { %21425 = vst [vmem:[#allocation16_spill] sm:$0xff] %v20462_v51  ;;  %v20464_v45 = vpop.f32.mrf.mxu3  ;;  %9114 = vmatmul.bf16.gmra.mxu2 %v13476_v3 }
 0x965   :  { %v8505_v34 = vpop.f32.mrf.mxu1 }
 0x967   :  { %v8612_v42 = vpop.f32.mrf.mxu2 }
 0x968   :  { %v8613_v39 = vadd.f32 %v8612_v42, %v8573_v10  ;;  %9007 = vmatmul.bf16.gmra.mxu1 %v13488_v23  ;;  %v20466_v33 = vpop.f32.mrf.mxu0 }
 0x969   :  { %9046 = vmatmul.bf16.gmra.mxu3 %v13492_v14 }
 0x96a   :  { %v20469_v49 = vadd.f32 %v8613_v39, %v20365_v21  ;;  %v13496_v21 = vor.u32 %v14732_v17, %v13495_v46 }
 0x96c   :  { %v8544_v4 = vpop.f32.mrf.mxu3 }
 0x96d   :  { %v8545_v59 = vadd.f32 %v8544_v4, %v8505_v34  ;;  %v20471_v2 = vpop.f32.mrf.mxu1  ;;  %v14776_v34 = vld [vmem:[%s21096_s5 + $0x38] sm:$0xff] }
 0x96e   :  { %9461 = vmatpush.bf16.msra.mxu1 %v14776_v34 }
 0x96f   :  { %v20474_v3 = vadd.f32 %v8545_v59, %v20368_v9  ;;  %v20476_v28 = vpop.f32.mrf.mxu2 }
 0x970   :  { %v8578_v60 = vpop.f32.mrf.mxu0 }
 0x973   :  { %9080 = vmatmul.bf16.gmra.mxu0 %v13480_v62 }
 0x974   :  { %v20478_v5 = vpop.f32.mrf.mxu3  ;;  %9119 = vmatmul.bf16.gmra.mxu2 %v13484_v50 }
 0x975   :  { %v8510_v8 = vpop.f32.mrf.mxu1 }
 0x977   :  { %v8617_v6 = vpop.f32.mrf.mxu2 }
 0x978   :  { %v8618_v53 = vadd.f32 %v8617_v6, %v8578_v60  ;;  %9012 = vmatmul.bf16.gmra.mxu1 %v13496_v21  ;;  %v20480_v52 = vpop.f32.mrf.mxu0 }
 0x979   :  { %9051 = vmatmul.bf16.gmra.mxu3 %v13500_v57 }
 0x97a   :  { %v20483_v9 = vadd.f32 %v8618_v53, %v20391_v48  ;;  %v14784_v48 = vld [vmem:[%s21096_s5 + $0x78] sm:$0xff] }
 0x97b   :  { %9480 = vmatpush.bf16.msra.mxu3 %v14784_v48 }
 0x97c   :  { %v8549_v62 = vpop.f32.mrf.mxu3 }
 0x97d   :  { %v8550_v18 = vadd.f32 %v8549_v62, %v8510_v8  ;;  %v20485_v1 = vpop.f32.mrf.mxu1  ;;  %v14775_v8 = vld [vmem:[%s21096_s5 + $0x30] sm:$0xff]  ;;  %v14774_v62 = vld [vmem:[%s21096_s5 + $0x28] sm:$0xff] }
 0x97e   :  { %9462 = vmatpush.bf16.msra.mxu1 %v14775_v8 }
 0x97f   :  { %v20488_v50 = vadd.f32 %v8550_v18, %v20400_v7  ;;  %v20490_v37 = vpop.f32.mrf.mxu2  ;;  %v14804_v18 = vld [vmem:[%s21096_s5 + $0xf8] sm:$0xff] }
 0x980   :  { %v8583_v22 = vpop.f32.mrf.mxu0  ;;  %9676 = vmatpush.bf16.msra.mxu2 %v14804_v18  ;;  %v14795_v18 = vld [vmem:[%s21096_s5 + $0xb0] sm:$0xff] }
 0x982   :  { %9463 = vmatpush.bf16.msra.mxu1 %v14774_v62 }
 0x983   :  { %9085 = vmatmul.bf16.gmra.mxu0 %v13488_v23 }
 0x984   :  { %v20492_v31 = vpop.f32.mrf.mxu3  ;;  %9124 = vmatmul.bf16.gmra.mxu2 %v13492_v14 }
 0x985   :  { %v8515_v20 = vpop.f32.mrf.mxu1 }
 0x987   :  { %v8622_v10 = vpop.f32.mrf.mxu2 }
 0x988   :  { %v8623_v44 = vadd.f32 %v8622_v10, %v8583_v22  ;;  %v20497_v61 = vpop.f32.mrf.mxu0 }
 0x98a   :  { %v20500_v7 = vadd.f32 %v8623_v44, %v20417_v40  ;;  %v14783_v40 = vld [vmem:[%s21096_s5 + $0x70] sm:$0xff] }
 0x98b   :  { %9481 = vmatpush.bf16.msra.mxu3 %v14783_v40  ;;  %v14796_v40 = vld [vmem:[%s21096_s5 + $0xb8] sm:$0xff] }
 0x98c   :  { %v8554_v13 = vpop.f32.mrf.mxu3  ;;  %9657 = vmatpush.bf16.msra.mxu0 %v14796_v40 }
 0x98d   :  { %v8555_v23 = vadd.f32 %v8554_v13, %v8515_v20  ;;  %v20505_v0 = vpop.f32.mrf.mxu1 }
 0x98f   :  { %v20508_v42 = vadd.f32 %v8555_v23, %v20420_v35  ;;  %v20510_v14 = vpop.f32.mrf.mxu2 }
 0x990   :  { %v8588_v39 = vpop.f32.mrf.mxu0  ;;  %9658 = vmatpush.bf16.msra.mxu0 %v14795_v18  ;;  %v14777_v18 = vld [vmem:[%s21096_s5 + $0x40] sm:$0xff] }
 0x993   :  { %9090 = vmatmul.bf16.gmra.mxu0 %v13496_v21 }
 0x994   :  { %v20515_v4 = vpop.f32.mrf.mxu3  ;;  %9129 = vmatmul.bf16.gmra.mxu2 %v13500_v57 }
 0x995   :  { %v8520_v59 = vpop.f32.mrf.mxu1 }
 0x997   :  { %v8627_v60 = vpop.f32.mrf.mxu2 }
 0x998   :  { %v8628_v17 = vadd.f32 %v8627_v60, %v8588_v39  ;;  %v20517_v41 = vpop.f32.mrf.mxu0  ;;  %v14781_v39 = vld [vmem:[%s21096_s5 + $0x60] sm:$0xff] }
 0x99a   :  { %v20520_v35 = vadd.f32 %v8628_v17, %v20429_v27  ;;  %v14782_v27 = vld [vmem:[%s21096_s5 + $0x68] sm:$0xff] }
 0x99b   :  { %9482 = vmatpush.bf16.msra.mxu3 %v14782_v27 }
 0x99c   :  { %v8559_v46 = vpop.f32.mrf.mxu3 }
 0x99d   :  { %v8560_v21 = vadd.f32 %v8559_v46, %v8520_v59  ;;  %v20530_v53 = vpop.f32.mrf.mxu1  ;;  %v14773_v59 = vld [vmem:[%s21096_s5 + $0x20] sm:$0xff]  ;;  %v14780_v46 = vld [vmem:[%s21096_s5 + $0x58] sm:$0xff] }
 0x99e   :  { %9464 = vmatpush.bf16.msra.mxu1 %v14773_v59  ;;  %v14778_v59 = vld [vmem:[%s21096_s5 + $0x48] sm:$0xff] }
 0x99f   :  { %v20526_v54 = vadd.f32 %v8560_v21, %v20432_v63  ;;  %v20528_v6 = vpop.f32.mrf.mxu2  ;;  %9483 = vmatpush.bf16.msra.mxu3 %v14781_v39  ;;  %v14772_v21 = vld [vmem:[%s21096_s5 + $0x18] sm:$0xff] }
 0x9a0   :  { %v8593_v57 = vpop.f32.mrf.mxu0 }
 0x9a2   :  { %9465 = vmatpush.bf16.msra.mxu1 %v14772_v21  ;;  %v9231_v21 = vld [vmem:[%s21097_s4] sm:$0x3] }
 0x9a3   :  { %9484 = vmatpush.bf16.msra.mxu3 %v14780_v46  ;;  %v14802_v46 = vld [vmem:[%s21096_s5 + $0xe8] sm:$0xff]  ;;  %v20607_v51 = vperm.slane %v9231_v21, 1 }
 0x9a4   :  { %v20541_v22 = vpop.f32.mrf.mxu3 }
 0x9a5   :  { %21426 = vst [vmem:[#allocation23_spill] sm:$0xff] %v20541_v22  ;;  %v8988_v44 = vpop.f32.mrf.mxu1 }
 0x9a7   :  { %v8632_v63 = vpop.f32.mrf.mxu2 }
 0x9a8   :  { %v8633_v20 = vadd.f32 %v8632_v63, %v8593_v57  ;;  %v20543_v10 = vpop.f32.mrf.mxu0  ;;  %v14771_v63 = vld [vmem:[%s21096_s5 + $0x10] sm:$0xff] }
 0x9a9   :  { %9466 = vmatpush.bf16.msra.mxu1 %v14771_v63 }
 0x9aa   :  { %v20546_v48 = vadd.f32 %v8633_v20, %v20441_v26  ;;  %v14803_v26 = vld [vmem:[%s21096_s5 + $0xf0] sm:$0xff] }
 0x9ab   :  { %9677 = vmatpush.bf16.msra.mxu2 %v14803_v26  ;;  %v14779_v20 = vld [vmem:[%s21096_s5 + $0x50] sm:$0xff] }
 0x9ac   :  { %v9027_v34 = vpop.f32.mrf.mxu3  ;;  %9485 = vmatpush.bf16.msra.mxu3 %v14779_v20 }
 0x9ad   :  { %v8990_v17 = vpop.f32.mrf.mxu1 }
 0x9af   :  { %v20548_v13 = vpop.f32.mrf.mxu2  ;;  %9678 = vmatpush.bf16.msra.mxu2 %v14802_v46 }
 0x9b0   :  { %v8598_v23 = vpop.f32.mrf.mxu0  ;;  %9486 = vmatpush.bf16.msra.mxu3 %v14778_v59 }
 0x9b4   :  { %v9029_v60 = vpop.f32.mrf.mxu3  ;;  %9487 = vmatpush.bf16.msra.mxu3 %v14777_v18 }
 0x9b5   :  { %v8993_v39 = vpop.f32.mrf.mxu1 }
 0x9b7   :  { %v8637_v8 = vpop.f32.mrf.mxu2 }
 0x9b8   :  { %v8638_v57 = vadd.f32 %v8637_v8, %v8598_v23  ;;  %v20568_v27 = vpop.f32.mrf.mxu0  ;;  %v9028_v8 = vadd.f32 %v9027_v34, %v8988_v44  ;;  %v20603_v34 = vperm.slane %v9231_v21, 0 }
 0x9b9   :  { %21427 = vst [vmem:[#allocation18_spill] sm:$0xff] %v20568_v27 }
 0x9ba   :  { %v20571_v62 = vadd.f32 %v8638_v57, %v20454_v43  ;;  %v14770_v43 = vld [vmem:[%s21096_s5 + $0x8] sm:$0xff]  ;;  %v14769_v57 = vld [vmem:[%s21096_s5] sm:$0xff]  ;;  %v9159_v44 = vadd.f32 %v9028_v8, %v20446_v29 }
 0x9bb   :  { %9467 = vmatpush.bf16.msra.mxu1 %v14770_v43  ;;  %v8537_v43 = vadd.f32 %v20451_v12, %v20443_v19  ;;  %v14794_v29 = vld [vmem:[%s21096_s5 + $0xa8] sm:$0xff]  ;;  %v14801_v8 = vld [vmem:[%s21096_s5 + $0xe0] sm:$0xff]  ;;  %v8615_v12 = vadd.f32 %v20476_v28, %v20466_v33 }
 0x9bc   :  { %21428 = vst [vmem:[#allocation20_spill] sm:$0xff] %v20571_v62  ;;  %v9032_v23 = vpop.f32.mrf.mxu3  ;;  %v9237_v47 = vadd.f32 %v20603_v34, %v9159_v44  ;;  %v9030_v62 = vadd.f32 %v9029_v60, %v8990_v17  ;;  %9659 = vmatpush.bf16.msra.mxu0 %v14794_v29  ;;  %9679 = vmatpush.bf16.msra.mxu2 %v14801_v8  ;;  %v14793_v28 = vld [vmem:[%s21096_s5 + $0xa0] sm:$0xff] }
 0x9bd   :  { %v8995_v27 = vpop.f32.mrf.mxu1  ;;  %v8668_v19 = vadd.f32 %v8537_v43, %v20268_v58  ;;  %v9033_v58 = vadd.f32 %v9032_v23, %v8993_v39  ;;  %v14800_v23 = vld [vmem:[%s21096_s5 + $0xd8] sm:$0xff] }
 0x9be   :  { %v9261_v60 = vmax.f32 %v9237_v47, 0.0  ;;  %v14792_v39 = vld [vmem:[%s21096_s5 + $0x98] sm:$0xff] }
 0x9bf   :  { %v20582_v40 = vpop.f32.mrf.mxu2  ;;  %9468 = vmatpush.bf16.msra.mxu1 %v14769_v57  ;;  %v9161_v17 = vadd.f32 %v9030_v62, %v8668_v19  ;;  %v8669_v57 = vadd.f32 %v8615_v12, %v20377_v11  ;;  %v9163_v11 = vadd.f32 %v9033_v58, %v20459_v56 }
 0x9c0   :  { %21429 = vst [vmem:[#allocation26_spill] sm:$0xff] %v20582_v40  ;;  %v9066_v26 = vpop.f32.mrf.mxu0  ;;  %9660 = vmatpush.bf16.msra.mxu0 %v14793_v28  ;;  %9680 = vmatpush.bf16.msra.mxu2 %v14800_v23 }
 0x9c1   :  { %v9239_v22 = vadd.f32 %v20603_v34, %v9161_v17  ;;  %v9241_v56 = vadd.f32 %v20603_v34, %v9163_v11  ;;  %v14799_v17 = vld [vmem:[%s21096_s5 + $0xd0] sm:$0xff] }
 0x9c3   :  { %v9263_v62 = vmax.f32 %v9239_v22, 0.0 }
 0x9c4   :  { %v9034_v63 = vpop.f32.mrf.mxu3  ;;  %9661 = vmatpush.bf16.msra.mxu0 %v14792_v39  ;;  %9681 = vmatpush.bf16.msra.mxu2 %v14799_v17  ;;  %v14797_v39 = vld [vmem:[%s21096_s5 + $0xc0] sm:$0xff] }
 0x9c5   :  { %v8998_v33 = vpop.f32.mrf.mxu1 }
 0x9c7   :  { %v9105_v20 = vpop.f32.mrf.mxu2 }
 0x9c8   :  { %v9106_v59 = vadd.f32 %v9105_v20, %v9066_v26  ;;  %v9068_v40 = vpop.f32.mrf.mxu0 }
 0x9ca   :  { %v9160_v46 = vadd.f32 %v9106_v59, %v20469_v49 }
 0x9cc   :  { %v9238_v26 = vadd.f32 %v20607_v51, %v9160_v46  ;;  %v9037_v59 = vpop.f32.mrf.mxu3 }
 0x9ce   :  { %v9262_v49 = vmax.f32 %v9238_v26, 0.0  ;;  %v9035_v26 = vadd.f32 %v9034_v63, %v8995_v27  ;;  %v8620_v27 = vadd.f32 %v20490_v37, %v20480_v52 }
 0x9cf   :  { %v9107_v21 = vpop.f32.mrf.mxu2 }
 0x9d0   :  { %v9285_v18 = vpack.c.bf16 %v9262_v49, %v9261_v60  ;;  %v9108_v44 = vadd.f32 %v9107_v21, %v9068_v40  ;;  %v9071_v20 = vpop.f32.mrf.mxu0  ;;  %v8542_v40 = vadd.f32 %v20464_v45, %v20456_v16  ;;  %v14791_v60 = vld [vmem:[%s21096_s5 + $0x90] sm:$0xff]  ;;  %v9000_v21 = vpop.f32.mrf.mxu1 }
 0x9d1   :  { %9662 = vmatpush.bf16.msra.mxu0 %v14791_v60  ;;  %v14816_v60 = vld [vmem:[%s21096_s5 + $0x138] sm:$0xff] }
 0x9d2   :  { %9297 = vst [vmem:[#allocation3] sm:$0xff] %v9285_v18  ;;  %v9162_v43 = vadd.f32 %v9108_v44, %v8669_v57  ;;  %v8672_v45 = vadd.f32 %v8542_v40, %v20352_v55  ;;  %v14790_v18 = vld [vmem:[%s21096_s5 + $0x88] sm:$0xff]  ;;  %9861 = vmatpush.bf16.msrb.mxu1 %v14816_v60 }
 0x9d3   :  { %v14798_v44 = vld [vmem:[%s21096_s5 + $0xc8] sm:$0xff] }
 0x9d4   :  { %v9240_v47 = vadd.f32 %v20607_v51, %v9162_v43  ;;  %v9039_v22 = vpop.f32.mrf.mxu3  ;;  %v9165_v49 = vadd.f32 %v9035_v26, %v8672_v45  ;;  %9682 = vmatpush.bf16.msra.mxu2 %v14798_v44  ;;  %v8547_v26 = vadd.f32 %v20478_v5, %v20471_v2  ;;  %v14824_v45 = vld [vmem:[%s21096_s5 + $0x178] sm:$0xff] }
 0x9d5   :  { %9663 = vmatpush.bf16.msra.mxu0 %v14790_v18  ;;  %9880 = vmatpush.bf16.msrb.mxu3 %v14824_v45 }
 0x9d6   :  { %v9264_v46 = vmax.f32 %v9240_v47, 0.0  ;;  %v9243_v28 = vadd.f32 %v20603_v34, %v9165_v49  ;;  %v9040_v49 = vadd.f32 %v9039_v22, %v9000_v21  ;;  %v8676_v5 = vadd.f32 %v8547_v26, %v20388_v32 }
 0x9d7   :  { %v9110_v29 = vpop.f32.mrf.mxu2  ;;  %v8625_v22 = vadd.f32 %v20510_v14, %v20497_v61 }
 0x9d8   :  { %v9286_v8 = vpack.c.bf16 %v9264_v46, %v9263_v62  ;;  %v9111_v19 = vadd.f32 %v9110_v29, %v9071_v20  ;;  %v9073_v12 = vpop.f32.mrf.mxu0  ;;  %v8673_v20 = vadd.f32 %v8620_v27, %v20409_v24  ;;  %v9038_v46 = vadd.f32 %v9037_v59, %v8998_v33  ;;  %v14789_v24 = vld [vmem:[%s21096_s5 + $0x80] sm:$0xff]  ;;  %9683 = vmatpush.bf16.msra.mxu2 %v14797_v39 }
 0x9d9   :  { %v13631_v43 = vld [vmem:[#allocation3] sm:$0xf]  ;;  %v14765_v62 = vld [vmem:[#allocation3 + $0x4] sm:$0xf]  ;;  %9664 = vmatpush.bf16.msra.mxu0 %v14789_v24  ;;  %v9267_v59 = vmax.f32 %v9243_v28, 0.0 }
 0x9da   :  { %9298 = vst [vmem:[#allocation3 + $0x8] sm:$0xff] %v9286_v8  ;;  %v9164_v16 = vadd.f32 %v9111_v19, %v20483_v9  ;;  %v9265_v9 = vmax.f32 %v9241_v56, 0.0  ;;  %v9167_v33 = vadd.f32 %v9038_v46, %v20474_v3  ;;  %v9003_v56 = vpop.f32.mrf.mxu1  ;;  %v14813_v39 = vld [vmem:[%s21096_s5 + $0x120] sm:$0xff] }
 0x9dc   :  { %v9242_v63 = vadd.f32 %v20607_v51, %v9164_v16  ;;  %v9042_v19 = vpop.f32.mrf.mxu3  ;;  %v9245_v3 = vadd.f32 %v20603_v34, %v9167_v33 }
 0x9de   :  { %v9266_v55 = vmax.f32 %v9242_v63, 0.0  ;;  %v9269_v18 = vmax.f32 %v9245_v3, 0.0  ;;  %v14819_v3 = vld [vmem:[%s21096_s5 + $0x150] sm:$0xff] }
 0x9df   :  { %v9112_v57 = vpop.f32.mrf.mxu2 }
 0x9e0   :  { %v9287_v52 = vpack.c.bf16 %v9266_v55, %v9265_v9  ;;  %v9113_v37 = vadd.f32 %v9112_v57, %v9073_v12  ;;  %v9076_v58 = vpop.f32.mrf.mxu0  ;;  %v14823_v9 = vld [vmem:[%s21096_s5 + $0x170] sm:$0xff]  ;;  %v9169_v57 = vadd.f32 %v9040_v49, %v8676_v5  ;;  %v8630_v5 = vadd.f32 %v20528_v6, %v20517_v41 }
 0x9e1   :  { %v14766_v47 = vld [vmem:[#allocation3 + $0x4] sm:$0xf0]  ;;  %v13633_v11 = vld [vmem:[#allocation3 + $0x8] sm:$0xf0]  ;;  %v14815_v55 = vld [vmem:[%s21096_s5 + $0x130] sm:$0xff]  ;;  %9881 = vmatpush.bf16.msrb.mxu3 %v14823_v9 }
 0x9e2   :  { %9299 = vst [vmem:[#allocation3 + $0x10] sm:$0xff] %v9287_v52  ;;  %v9166_v40 = vadd.f32 %v9113_v37, %v8673_v20  ;;  %v13632_v29 = vor.u32 %v14766_v47, %v13631_v43  ;;  %v13636_v23 = vor.u32 %v14765_v62, %v13633_v11  ;;  %9862 = vmatpush.bf16.msrb.mxu1 %v14815_v55  ;;  %v14822_v20 = vld [vmem:[%s21096_s5 + $0x168] sm:$0xff]  ;;  %v9005_v47 = vpop.f32.mrf.mxu1 }
 0x9e3   :  { %v14814_v52 = vld [vmem:[%s21096_s5 + $0x128] sm:$0xff]  ;;  %v8677_v37 = vadd.f32 %v8625_v22, %v20423_v36  ;;  %v9247_v28 = vadd.f32 %v20603_v34, %v9169_v57  ;;  %v14821_v36 = vld [vmem:[%s21096_s5 + $0x160] sm:$0xff] }
 0x9e4   :  { %v9244_v8 = vadd.f32 %v20607_v51, %v9166_v40  ;;  %9469 = vmatmul.bf16.vlgmr.msra.gmra.mxu1 %v13632_v29  ;;  %9488 = vmatmul.bf16.vlgmr.msra.gmra.mxu3 %v13636_v23  ;;  %v9044_v44 = vpop.f32.mrf.mxu3  ;;  %v9043_v40 = vadd.f32 %v9042_v19, %v9003_v56  ;;  %v14820_v56 = vld [vmem:[%s21096_s5 + $0x158] sm:$0xff]  ;;  %v14810_v57 = vld [vmem:[%s21096_s5 + $0x108] sm:$0xff] }
 0x9e5   :  { %9882 = vmatpush.bf16.msrb.mxu3 %v14822_v20 }
 0x9e6   :  { %v9268_v12 = vmax.f32 %v9244_v8, 0.0  ;;  %9863 = vmatpush.bf16.msrb.mxu1 %v14814_v52  ;;  %v9171_v19 = vadd.f32 %v9043_v40, %v20488_v50 }
 0x9e7   :  { %v9115_v16 = vpop.f32.mrf.mxu2 }
 0x9e8   :  { %v9288_v17 = vpack.c.bf16 %v9268_v12, %v9267_v59  ;;  %v9116_v27 = vadd.f32 %v9115_v16, %v9076_v58  ;;  %v9078_v63 = vpop.f32.mrf.mxu0  ;;  %v9271_v59 = vmax.f32 %v9247_v28, 0.0  ;;  %v8552_v12 = vadd.f32 %v20492_v31, %v20485_v1  ;;  %v14812_v16 = vld [vmem:[%s21096_s5 + $0x118] sm:$0xff] }
 0x9e9   :  { %v13639_v43 = vld [vmem:[#allocation3 + $0x10] sm:$0xf]  ;;  %v14767_v11 = vld [vmem:[#allocation3 + $0x14] sm:$0xf]  ;;  %9883 = vmatpush.bf16.msrb.mxu3 %v14821_v36  ;;  %v9249_v50 = vadd.f32 %v20603_v34, %v9171_v19 }
 0x9ea   :  { %9300 = vst [vmem:[#allocation3 + $0x18] sm:$0xff] %v9288_v17  ;;  %v9168_v2 = vadd.f32 %v9116_v27, %v20500_v7  ;;  %9864 = vmatpush.bf16.msrb.mxu1 %v14813_v39  ;;  %v9045_v27 = vadd.f32 %v9044_v44, %v9005_v47  ;;  %v8680_v31 = vadd.f32 %v8552_v12, %v20414_v38  ;;  %v9008_v49 = vpop.f32.mrf.mxu1  ;;  %v14809_v47 = vld [vmem:[%s21096_s5 + $0x100] sm:$0xff] }
 0x9ec   :  { %v9246_v21 = vadd.f32 %v20607_v51, %v9168_v2  ;;  %v14811_v2 = vld [vmem:[%s21096_s5 + $0x110] sm:$0xff]  ;;  %v9173_v55 = vadd.f32 %v9045_v27, %v8680_v31 }
 0x9ed   :  { %9884 = vmatpush.bf16.msrb.mxu3 %v14820_v56 }
 0x9ee   :  { %v9270_v7 = vmax.f32 %v9246_v21, 0.0  ;;  %9865 = vmatpush.bf16.msrb.mxu1 %v14812_v16  ;;  %v14818_v21 = vld [vmem:[%s21096_s5 + $0x148] sm:$0xff]  ;;  %v9251_v44 = vadd.f32 %v20603_v34, %v9173_v55 }
 0x9ef   :  { %v9117_v32 = vpop.f32.mrf.mxu2 }
 0x9f0   :  { %v9289_v61 = vpack.c.bf16 %v9270_v7, %v9269_v18  ;;  %v9118_v14 = vadd.f32 %v9117_v32, %v9078_v63  ;;  %v9081_v58 = vpop.f32.mrf.mxu0  ;;  %v9047_v63 = vpop.f32.mrf.mxu3  ;;  %v8681_v18 = vadd.f32 %v8630_v5, %v20435_v30  ;;  %v14817_v30 = vld [vmem:[%s21096_s5 + $0x140] sm:$0xff] }
 0x9f1   :  { %v14768_v62 = vld [vmem:[#allocation3 + $0x14] sm:$0xf0]  ;;  %v13641_v46 = vld [vmem:[#allocation3 + $0x18] sm:$0xf0]  ;;  %9885 = vmatpush.bf16.msrb.mxu3 %v14819_v3 }
 0x9f2   :  { %9301 = vst [vmem:[#allocation3 + $0x20] sm:$0xff] %v9289_v61  ;;  %v9170_v29 = vadd.f32 %v9118_v14, %v8677_v37  ;;  %v13640_v23 = vor.u32 %v14768_v62, %v13639_v43  ;;  %v13644_v24 = vor.u32 %v14767_v11, %v13641_v46  ;;  %9866 = vmatpush.bf16.msrb.mxu1 %v14811_v2  ;;  %v9010_v11 = vpop.f32.mrf.mxu1  ;;  %v9275_v46 = vmax.f32 %v9251_v44, 0.0  ;;  %v21431_v44 = vld [vmem:[#allocation20_spill] sm:$0xff] }
 0x9f3   :  { %v9048_v61 = vadd.f32 %v9047_v63, %v9008_v49 }
 0x9f4   :  { %v9248_v8 = vadd.f32 %v20607_v51, %v9170_v29  ;;  %9474 = vmatmul.bf16.gmra.mxu1 %v13640_v23  ;;  %9493 = vmatmul.bf16.gmra.mxu3 %v13644_v24  ;;  %v8557_v23 = vadd.f32 %v20515_v4, %v20505_v0 }
 0x9f5   :  { %9886 = vmatpush.bf16.msrb.mxu3 %v14818_v21  ;;  %v9175_v40 = vadd.f32 %v9048_v61, %v20508_v42  ;;  %v21434_v61 = vld [vmem:[#allocation26_spill] sm:$0xff] }
 0x9f6   :  { %v9272_v33 = vmax.f32 %v9248_v8, 0.0  ;;  %9867 = vmatpush.bf16.msrb.mxu1 %v14810_v57 }
 0x9f7   :  { %v9120_v26 = vpop.f32.mrf.mxu2 }
 0x9f8   :  { %v9290_v45 = vpack.c.bf16 %v9272_v33, %v9271_v59  ;;  %v9121_v60 = vadd.f32 %v9120_v26, %v9081_v58  ;;  %v9083_v17 = vpop.f32.mrf.mxu0  ;;  %v9049_v28 = vpop.f32.mrf.mxu3  ;;  %v9253_v59 = vadd.f32 %v20603_v34, %v9175_v40  ;;  %v8684_v33 = vadd.f32 %v8557_v23, %v20426_v25 }
 0x9f9   :  { %v13743_v6 = vld [vmem:[#allocation3 + $0x20] sm:$0xf]  ;;  %v14785_v52 = vld [vmem:[#allocation3 + $0x24] sm:$0xf]  ;;  %9887 = vmatpush.bf16.msrb.mxu3 %v14817_v30  ;;  %v9050_v8 = vadd.f32 %v9049_v28, %v9010_v11  ;;  %v8635_v26 = vadd.f32 %v20548_v13, %v20543_v10 }
 0x9fa   :  { %9302 = vst [vmem:[#allocation3 + $0x28] sm:$0xff] %v9290_v45  ;;  %v9172_v1 = vadd.f32 %v9121_v60, %v20520_v35  ;;  %v9273_v35 = vmax.f32 %v9249_v50, 0.0  ;;  %9868 = vmatpush.bf16.msrb.mxu1 %v14809_v47  ;;  %v9277_v0 = vmax.f32 %v9253_v59, 0.0  ;;  %v9013_v45 = vpop.f32.mrf.mxu1  ;;  %v21435_v47 = vld [vmem:[#allocation16_spill] sm:$0xff] }
 0x9fb   :  { %v9177_v56 = vadd.f32 %v9050_v8, %v8684_v33 }
 0x9fc   :  { %v9250_v9 = vadd.f32 %v20607_v51, %v9172_v1 }
 0x9fe   :  { %v9274_v22 = vmax.f32 %v9250_v9, 0.0 }
 0x9ff   :  { %v9122_v38 = vpop.f32.mrf.mxu2 }
 0xa00   :  { %v9291_v7 = vpack.c.bf16 %v9274_v22, %v9273_v35  ;;  %v9123_v41 = vadd.f32 %v9122_v38, %v9083_v17  ;;  %v9086_v32 = vpop.f32.mrf.mxu0  ;;  %v9052_v16 = vpop.f32.mrf.mxu3  ;;  %v8685_v17 = vadd.f32 %v8635_v26, %v20449_v15  ;;  %v21430_v38 = vld [vmem:[#allocation23_spill] sm:$0xff] }
 0xa01   :  { %v14786_v20 = vld [vmem:[#allocation3 + $0x24] sm:$0xf0]  ;;  %v13745_v37 = vld [vmem:[#allocation3 + $0x28] sm:$0xf0]  ;;  %v9053_v49 = vadd.f32 %v9052_v16, %v9013_v45  ;;  %v8562_v21 = vadd.f32 %v21430_v38, %v20530_v53 }
 0xa02   :  { %9303 = vst [vmem:[#allocation3 + $0x30] sm:$0xff] %v9291_v7  ;;  %v9174_v14 = vadd.f32 %v9123_v41, %v8681_v18  ;;  %v13744_v58 = vor.u32 %v14786_v20, %v13743_v6  ;;  %v13748_v43 = vor.u32 %v14785_v52, %v13745_v37  ;;  %v9015_v7 = vpop.f32.mrf.mxu1  ;;  %v21432_v20 = vld [vmem:[#allocation14_spill] sm:$0xff]  ;;  %v14850_v38 = vld [vmem:[%s21099_s7 + $0xcc] sm:$0xf] }
 0xa03   :  { %v9179_v15 = vadd.f32 %v9053_v49, %v20526_v54  ;;  %v8688_v52 = vadd.f32 %v8562_v21, %v21432_v20  ;;  %v21433_v37 = vld [vmem:[#allocation18_spill] sm:$0xff]  ;;  %v14057_v49 = vld [vmem:[%s21099_s7 + $0xf8] sm:$0xf0]  ;;  %v14023_v20 = vld [vmem:[%s21099_s7 + $0xa8] sm:$0xf] }
 0xa04   :  { %v9252_v62 = vadd.f32 %v20607_v51, %v9174_v14  ;;  %9665 = vmatmul.bf16.vlgmr.msra.gmra.mxu0 %v13744_v58  ;;  %9684 = vmatmul.bf16.vlgmr.msra.gmra.mxu2 %v13748_v43  ;;  %v8640_v54 = vadd.f32 %v21434_v61, %v21433_v37  ;;  %v14041_v21 = vld [vmem:[%s21099_s7 + $0xd8] sm:$0xf0] }
 0xa05   :  { %v9257_v41 = vadd.f32 %v20603_v34, %v9179_v15  ;;  %v14039_v15 = vld [vmem:[%s21099_s7 + $0xc8] sm:$0xf] }
 0xa06   :  { %v9276_v29 = vmax.f32 %v9252_v62, 0.0  ;;  %v8689_v62 = vadd.f32 %v8640_v54, %v21435_v47  ;;  %v14846_v54 = vld [vmem:[%s21099_s7 + $0xac] sm:$0xf]  ;;  %v13999_v47 = vld [vmem:[%s21099_s7 + $0x80] sm:$0xf] }
 0xa07   :  { %v9125_v24 = vpop.f32.mrf.mxu2  ;;  %v9281_v58 = vmax.f32 %v9257_v41, 0.0  ;;  %v14017_v41 = vld [vmem:[%s21099_s7 + $0xb0] sm:$0xf0] }
 0xa08   :  { %v9292_v36 = vpack.c.bf16 %v9276_v29, %v9275_v46  ;;  %v9126_v39 = vadd.f32 %v9125_v24, %v9086_v32  ;;  %v9088_v12 = vpop.f32.mrf.mxu0  ;;  %v9054_v35 = vpop.f32.mrf.mxu3 }
 0xa09   :  { %v13751_v50 = vld [vmem:[#allocation3 + $0x30] sm:$0xf]  ;;  %v14787_v1 = vld [vmem:[#allocation3 + $0x34] sm:$0xf]  ;;  %v9055_v6 = vadd.f32 %v9054_v35, %v9015_v7  ;;  %v14845_v7 = vld [vmem:[%s21099_s7 + $0xa4] sm:$0xf] }
 0xa0a   :  { %9304 = vst [vmem:[#allocation3 + $0x38] sm:$0xff] %v9292_v36  ;;  %v9176_v19 = vadd.f32 %v9126_v39, %v20546_v48  ;;  %v9255_v48 = vadd.f32 %v20603_v34, %v9177_v56 }
 0xa0b   :  { %v9181_v43 = vadd.f32 %v9055_v6, %v8688_v52  ;;  %v14015_v6 = vld [vmem:[%s21099_s7 + $0xa0] sm:$0xf]  ;;  %v14848_v52 = vld [vmem:[%s21099_s7 + $0xb4] sm:$0xf0] }
 0xa0c   :  { %v9254_v42 = vadd.f32 %v20607_v51, %v9176_v19  ;;  %v9279_v9 = vmax.f32 %v9255_v48, 0.0  ;;  %v14856_v48 = vld [vmem:[%s21099_s7 + $0xf4] sm:$0xf0]  ;;  %v14024_v61 = vor.u32 %v14848_v52, %v14023_v20 }
 0xa0d   :  { %v9259_v36 = vadd.f32 %v20603_v34, %v9181_v43  ;;  %v14853_v34 = vld [vmem:[%s21099_s7 + $0xe4] sm:$0xf] }
 0xa0e   :  { %v9278_v4 = vmax.f32 %v9254_v42, 0.0 }
 0xa0f   :  { %v9127_v60 = vpop.f32.mrf.mxu2  ;;  %v9283_v33 = vmax.f32 %v9259_v36, 0.0 }
 0xa10   :  { %v9293_v27 = vpack.c.bf16 %v9278_v4, %v9277_v0  ;;  %v9128_v63 = vadd.f32 %v9127_v60, %v9088_v12  ;;  %v9091_v5 = vpop.f32.mrf.mxu0  ;;  %v14047_v60 = vld [vmem:[%s21099_s7 + $0xe0] sm:$0xf] }
 0xa11   :  { %v14788_v25 = vld [vmem:[#allocation3 + $0x34] sm:$0xf0]  ;;  %v13753_v31 = vld [vmem:[#allocation3 + $0x38] sm:$0xf0] }
 0xa12   :  { %9305 = vst [vmem:[#allocation3 + $0x40] sm:$0xff] %v9293_v27  ;;  %v9178_v10 = vadd.f32 %v9128_v63, %v8685_v17  ;;  %v13752_v13 = vor.u32 %v14788_v25, %v13751_v50  ;;  %v13756_v3 = vor.u32 %v14787_v1, %v13753_v31  ;;  %v14855_v63 = vld [vmem:[%s21099_s7 + $0xec] sm:$0xf0]  ;;  %v14055_v50 = vld [vmem:[%s21099_s7 + $0xe8] sm:$0xf] }
 0xa13   :  { %v14048_v25 = vor.u32 %v14855_v63, %v14047_v60  ;;  %v14056_v1 = vor.u32 %v14856_v48, %v14055_v50  ;;  %v14854_v31 = vld [vmem:[%s21099_s7 + $0xec] sm:$0xf]  ;;  %v13969_v60 = vld [vmem:[%s21099_s7 + $0x50] sm:$0xf0]  ;;  %v13967_v63 = vld [vmem:[%s21099_s7 + $0x40] sm:$0xf] }
 0xa14   :  { %v9256_v2 = vadd.f32 %v20607_v51, %v9178_v10  ;;  %9670 = vmatmul.bf16.gmra.mxu0 %v13752_v13  ;;  %9689 = vmatmul.bf16.gmra.mxu2 %v13756_v3  ;;  %v14849_v10 = vld [vmem:[%s21099_s7 + $0xc4] sm:$0xf]  ;;  %v14060_v13 = vor.u32 %v14854_v31, %v14057_v49  ;;  %v14033_v3 = vld [vmem:[%s21099_s7 + $0xd0] sm:$0xf0]  ;;  %v14835_v50 = vld [vmem:[%s21099_s7 + $0x4c] sm:$0xf0] }
 0xa15   :  { %10121 = vmatpush.bf16.msrb.mxu0 %v14048_v25  ;;  %10159 = vmatpush.bf16.msra.mxu1 %v14056_v1  ;;  %v13975_v48 = vld [vmem:[%s21099_s7 + $0x48] sm:$0xf]  ;;  %v13968_v25 = vor.u32 %v14835_v50, %v13967_v63  ;;  %v14836_v1 = vld [vmem:[%s21099_s7 + $0x54] sm:$0xf0]  ;;  %v14834_v31 = vld [vmem:[%s21099_s7 + $0x4c] sm:$0xf] }
 0xa16   :  { %v9280_v55 = vmax.f32 %v9256_v2, 0.0  ;;  %v14036_v2 = vor.u32 %v14849_v10, %v14033_v3  ;;  %10178 = vmatpush.bf16.msra.mxu3 %v14060_v13  ;;  %v13977_v49 = vld [vmem:[%s21099_s7 + $0x58] sm:$0xf0]  ;;  %v13976_v10 = vor.u32 %v14836_v1, %v13975_v48  ;;  %v14829_v3 = vld [vmem:[%s21099_s7 + $0x24] sm:$0xf]  ;;  %v14878_v48 = vld [vmem:[%s21100_s9 + $0xa8] sm:$0xff] }
 0xa17   :  { %v9130_v22 = vpop.f32.mrf.mxu2  ;;  %v13980_v13 = vor.u32 %v14834_v31, %v13977_v49  ;;  %v14870_v31 = vld [vmem:[%s21100_s9 + $0x68] sm:$0xff] }
 0xa18   :  { %v9294_v57 = vpack.c.bf16 %v9280_v55, %v9279_v9  ;;  %v9131_v18 = vadd.f32 %v9130_v22, %v9091_v5  ;;  %v9093_v53 = vpop.f32.mrf.mxu0  ;;  %v14031_v5 = vld [vmem:[%s21099_s7 + $0xc0] sm:$0xf]  ;;  %v14851_v9 = vld [vmem:[%s21099_s7 + $0xcc] sm:$0xf0]  ;;  %v14852_v22 = vld [vmem:[%s21099_s7 + $0xd4] sm:$0xf0] }
 0xa19   :  { %v13855_v40 = vld [vmem:[#allocation3 + $0x40] sm:$0xf]  ;;  %v14805_v23 = vld [vmem:[#allocation3 + $0x44] sm:$0xf]  ;;  %v14032_v35 = vor.u32 %v14851_v9, %v14031_v5  ;;  %v14886_v49 = vld [vmem:[%s21100_s9 + $0xe8] sm:$0xff] }
 0xa1a   :  { %9306 = vst [vmem:[#allocation3 + $0x48] sm:$0xff] %v9294_v57  ;;  %v9180_v32 = vadd.f32 %v9131_v18, %v21431_v44  ;;  %v14040_v57 = vor.u32 %v14852_v22, %v14039_v15  ;;  %v14044_v18 = vor.u32 %v14850_v38, %v14041_v21  ;;  %v14020_v44 = vor.u32 %v14845_v7, %v14017_v41  ;;  %v13951_v5 = vld [vmem:[%s21099_s7 + $0x20] sm:$0xf]  ;;  %v13959_v22 = vld [vmem:[%s21099_s7 + $0x28] sm:$0xf] }
 0xa1b   :  { %10122 = vmatpush.bf16.msrb.mxu0 %v14032_v35  ;;  %v14831_v35 = vld [vmem:[%s21099_s7 + $0x2c] sm:$0xf0]  ;;  %v14832_v38 = vld [vmem:[%s21099_s7 + $0x34] sm:$0xf0]  ;;  %v13961_v7 = vld [vmem:[%s21099_s7 + $0x38] sm:$0xf0] }
 0xa1c   :  { %v9258_v14 = vadd.f32 %v20607_v51, %v9180_v32  ;;  %v14847_v32 = vld [vmem:[%s21099_s7 + $0xac] sm:$0xf0]  ;;  %10160 = vmatpush.bf16.msra.mxu1 %v14040_v57  ;;  %10179 = vmatpush.bf16.msra.mxu3 %v14044_v18  ;;  %v13952_v21 = vor.u32 %v14831_v35, %v13951_v5  ;;  %v13960_v57 = vor.u32 %v14832_v38, %v13959_v22  ;;  %v14830_v18 = vld [vmem:[%s21099_s7 + $0x2c] sm:$0xf] }
 0xa1d   :  { %v14016_v37 = vor.u32 %v14847_v32, %v14015_v6  ;;  %v13964_v41 = vor.u32 %v14830_v18, %v13961_v7  ;;  %v14825_v6 = vld [vmem:[%s21099_s7 + $0x4] sm:$0xf]  ;;  %v13935_v32 = vld [vmem:[%s21099_s7] sm:$0xf] }
 0xa1e   :  { %v9282_v28 = vmax.f32 %v9258_v14, 0.0  ;;  %v14025_v14 = vld [vmem:[%s21099_s7 + $0xb8] sm:$0xf0] }
 0xa1f   :  { %v9132_v30 = vpop.f32.mrf.mxu2  ;;  %10123 = vmatpush.bf16.msrb.mxu0 %v14016_v37  ;;  %v14827_v37 = vld [vmem:[%s21099_s7 + $0xc] sm:$0xf0] }
 0xa20   :  { %v9295_v11 = vpack.c.bf16 %v9282_v28, %v9281_v58  ;;  %v9133_v46 = vadd.f32 %v9132_v30, %v9093_v53  ;;  %v14841_v58 = vld [vmem:[%s21099_s7 + $0x84] sm:$0xf]  ;;  %v14028_v28 = vor.u32 %v14846_v54, %v14025_v14  ;;  %v14001_v53 = vld [vmem:[%s21099_s7 + $0x90] sm:$0xf0]  ;;  %10161 = vmatpush.bf16.msra.mxu1 %v14024_v61  ;;  %v13943_v61 = vld [vmem:[%s21099_s7 + $0x8] sm:$0xf]  ;;  %v13936_v14 = vor.u32 %v14827_v37, %v13935_v32 }
 0xa21   :  { %v14806_v29 = vld [vmem:[#allocation3 + $0x44] sm:$0xf0]  ;;  %v13857_v24 = vld [vmem:[#allocation3 + $0x48] sm:$0xf0]  ;;  %v14004_v30 = vor.u32 %v14841_v58, %v14001_v53  ;;  %v14828_v54 = vld [vmem:[%s21099_s7 + $0x14] sm:$0xf0] }
 0xa22   :  { %9307 = vst [vmem:[#allocation3 + $0x50] sm:$0xff] %v9295_v11  ;;  %v9182_v39 = vadd.f32 %v9133_v46, %v8689_v62  ;;  %v13856_v8 = vor.u32 %v14806_v29, %v13855_v40  ;;  %v13860_v59 = vor.u32 %v14805_v23, %v13857_v24  ;;  %10180 = vmatpush.bf16.msra.mxu3 %v14028_v28  ;;  %v14843_v62 = vld [vmem:[%s21099_s7 + $0x8c] sm:$0xf0]  ;;  %v14007_v11 = vld [vmem:[%s21099_s7 + $0x88] sm:$0xf] }
 0xa23   :  { %v14000_v46 = vor.u32 %v14843_v62, %v13999_v47  ;;  %v14844_v40 = vld [vmem:[%s21099_s7 + $0x94] sm:$0xf0]  ;;  %v14842_v29 = vld [vmem:[%s21099_s7 + $0x8c] sm:$0xf]  ;;  %v14009_v23 = vld [vmem:[%s21099_s7 + $0x98] sm:$0xf0]  ;;  %v13944_v58 = vor.u32 %v14828_v54, %v13943_v61 }
 0xa24   :  { %v9260_v19 = vadd.f32 %v20607_v51, %v9182_v39  ;;  %9869 = vmatmul.bf16.vlgmr.msrb.gmra.mxu1 %v13856_v8  ;;  %9888 = vmatmul.bf16.vlgmr.msrb.gmra.mxu3 %v13860_v59  ;;  %v14049_v51 = vld [vmem:[%s21099_s7 + $0xf0] sm:$0xf0]  ;;  %v14008_v24 = vor.u32 %v14844_v40, %v14007_v11  ;;  %v14012_v36 = vor.u32 %v14842_v29, %v14009_v23  ;;  %v14837_v8 = vld [vmem:[%s21099_s7 + $0x64] sm:$0xf]  ;;  %v14826_v28 = vld [vmem:[%s21099_s7 + $0xc] sm:$0xf] }
 0xa25   :  { %v14052_v27 = vor.u32 %v14853_v34, %v14049_v51  ;;  %10124 = vmatpush.bf16.msrb.mxu0 %v14000_v46  ;;  %v13985_v59 = vld [vmem:[%s21099_s7 + $0x70] sm:$0xf0]  ;;  %v13945_v53 = vld [vmem:[%s21099_s7 + $0x18] sm:$0xf0] }
 0xa26   :  { %v9284_v12 = vmax.f32 %v9260_v19, 0.0  ;;  %10162 = vmatpush.bf16.msra.mxu1 %v14008_v24  ;;  %10181 = vmatpush.bf16.msra.mxu3 %v14012_v36  ;;  %v13983_v19 = vld [vmem:[%s21099_s7 + $0x60] sm:$0xf]  ;;  %v13948_v47 = vor.u32 %v14826_v28, %v13945_v53 }
 0xa27   :  { %10140 = vmatpush.bf16.msrb.mxu2 %v14052_v27 }
 0xa28   :  { %v9296_v26 = vpack.c.bf16 %v9284_v12, %v9283_v33  ;;  %v13988_v33 = vor.u32 %v14837_v8, %v13985_v59  ;;  %v14839_v12 = vld [vmem:[%s21099_s7 + $0x6c] sm:$0xf0] }
 0xa29   :  { %v13863_v42 = vld [vmem:[#allocation3 + $0x50] sm:$0xf]  ;;  %v14807_v16 = vld [vmem:[#allocation3 + $0x54] sm:$0xf] }
 0xa2a   :  { %9308 = vst [vmem:[#allocation3 + $0x58] sm:$0xff] %v9296_v26  ;;  %v13991_v26 = vld [vmem:[%s21099_s7 + $0x68] sm:$0xf] }
 0xa2b   :  { %10141 = vmatpush.bf16.msrb.mxu2 %v14036_v2  ;;  %v13953_v2 = vld [vmem:[%s21099_s7 + $0x30] sm:$0xf0] }
 0xa2c   :  { %v13956_v15 = vor.u32 %v14829_v3, %v13953_v2  ;;  %v14861_v3 = vld [vmem:[%s21100_s9 + $0x20] sm:$0xff] }
 0xa2d   :  { %v14877_v2 = vld [vmem:[%s21100_s9 + $0xa0] sm:$0xff] }
 0xa2f   :  { %10142 = vmatpush.bf16.msrb.mxu2 %v14020_v44  ;;  %v13937_v44 = vld [vmem:[%s21099_s7 + $0x10] sm:$0xf0] }
 0xa30   :  { %v13940_v52 = vor.u32 %v14825_v6, %v13937_v44 }
 0xa31   :  { %v14808_v56 = vld [vmem:[#allocation3 + $0x54] sm:$0xf0]  ;;  %v13865_v0 = vld [vmem:[#allocation3 + $0x58] sm:$0xf0] }
 0xa32   :  { %v13864_v4 = vor.u32 %v14808_v56, %v13863_v42  ;;  %v13868_v45 = vor.u32 %v14807_v16, %v13865_v0  ;;  %v14840_v42 = vld [vmem:[%s21099_s7 + $0x74] sm:$0xf0]  ;;  %v13984_v56 = vor.u32 %v14839_v12, %v13983_v19  ;;  %v14838_v0 = vld [vmem:[%s21099_s7 + $0x6c] sm:$0xf] }
 0xa33   :  { %10143 = vmatpush.bf16.msrb.mxu2 %v14004_v30  ;;  %v13992_v16 = vor.u32 %v14840_v42, %v13991_v26  ;;  %v14864_v19 = vld [vmem:[%s21100_s9 + $0x38] sm:$0xff] }
 0xa34   :  { %9874 = vmatmul.bf16.gmra.mxu1 %v13864_v4  ;;  %9893 = vmatmul.bf16.gmra.mxu3 %v13868_v45  ;;  %v13993_v4 = vld [vmem:[%s21099_s7 + $0x78] sm:$0xf0]  ;;  %v14833_v45 = vld [vmem:[%s21099_s7 + $0x44] sm:$0xf] }
 0xa35   :  { %v13996_v51 = vor.u32 %v14838_v0, %v13993_v4  ;;  %10125 = vmatpush.bf16.msrb.mxu0 %v13984_v56  ;;  %10163 = vmatpush.bf16.msra.mxu1 %v13992_v16  ;;  %v13972_v27 = vor.u32 %v14833_v45, %v13969_v60  ;;  %v14872_v42 = vld [vmem:[%s21100_s9 + $0x78] sm:$0xff]  ;;  %v14879_v56 = vld [vmem:[%s21100_s9 + $0xb0] sm:$0xff]  ;;  %v14889_v4 = vld [vmem:[%s21098_s6] ss:$0 sm:$0xff] }
 0xa36   :  { %v14871_v45 = vld [vmem:[%s21100_s9 + $0x70] sm:$0xff] }
 0xa37   :  { %10144 = vmatpush.bf16.msrb.mxu2 %v13988_v33  ;;  %10182 = vmatpush.bf16.msra.mxu3 %v13996_v51  ;;  %v14880_v33 = vld [vmem:[%s21100_s9 + $0xb8] sm:$0xff]  ;;  %v14887_v51 = vld [vmem:[%s21100_s9 + $0xf0] sm:$0xff] }
 0xa39   :  { %10126 = vmatpush.bf16.msrb.mxu0 %v13968_v25  ;;  %10164 = vmatpush.bf16.msra.mxu1 %v13976_v10 }
 0xa3b   :  { %10145 = vmatpush.bf16.msrb.mxu2 %v13972_v27  ;;  %10183 = vmatpush.bf16.msra.mxu3 %v13980_v13 }
 0xa3d   :  { %10127 = vmatpush.bf16.msrb.mxu0 %v13952_v21  ;;  %10165 = vmatpush.bf16.msra.mxu1 %v13960_v57 }
 0xa3f   :  { %10146 = vmatpush.bf16.msrb.mxu2 %v13956_v15  ;;  %10184 = vmatpush.bf16.msra.mxu3 %v13964_v41 }
 0xa41   :  { %10128 = vmatpush.bf16.msrb.mxu0 %v13936_v14  ;;  %10166 = vmatpush.bf16.msra.mxu1 %v13944_v58 }
 0xa43   :  { %10147 = vmatpush.bf16.msrb.mxu2 %v13940_v52  ;;  %10185 = vmatpush.bf16.msra.mxu3 %v13948_v47  ;;  %v14869_v47 = vld [vmem:[%s21100_s9 + $0x60] sm:$0xff] }
 0xa45   :  { %10539 = vmatpush.bf16.msra.mxu0 %v14864_v19  ;;  %10577 = vmatpush.bf16.msrb.mxu1 %v14880_v33  ;;  %v14873_v19 = vld [vmem:[%s21100_s9 + $0x80] sm:$0xff]  ;;  %v14866_v33 = vld [vmem:[%s21100_s9 + $0x48] sm:$0xff] }
 0xa47   :  { %10558 = vmatpush.bf16.msra.mxu2 %v14872_v42  ;;  %v14881_v42 = vld [vmem:[%s21100_s9 + $0xc0] sm:$0xff] }
 0xa49   :  { %10578 = vmatpush.bf16.msrb.mxu1 %v14879_v56 }
 0xa4b   :  { %10559 = vmatpush.bf16.msra.mxu2 %v14871_v45 }
 0xa4d   :  { %10579 = vmatpush.bf16.msrb.mxu1 %v14878_v48 }
 0xa4f   :  { %10560 = vmatpush.bf16.msra.mxu2 %v14870_v31 }
 0xa51   :  { %10580 = vmatpush.bf16.msrb.mxu1 %v14877_v2 }
 0xa53   :  { %10561 = vmatpush.bf16.msra.mxu2 %v14869_v47 }
 0xa61   :  { %v20768_v17 = vpop.f32.mrf.mxu1 }
 0xa67   :  { %v20800_v55 = vpop.f32.mrf.mxu3 }
 0xa68   :  { %v9490_v36 = vadd.f32 %v20800_v55, %v20768_v17  ;;  %v14888_v17 = vld [vmem:[%s21100_s9 + $0xf8] sm:$0xff]  ;;  %v14863_v55 = vld [vmem:[%s21100_s9 + $0x30] sm:$0xff] }
 0xa69   :  { %v20838_v43 = vpop.f32.mrf.mxu1  ;;  %10596 = vmatpush.bf16.msrb.mxu3 %v14888_v17  ;;  %10540 = vmatpush.bf16.msra.mxu0 %v14863_v55  ;;  %v10229_v55 = vld [vmem:[%s21102_s8] sm:$0xf] }
 0xa6d   :  { %10597 = vmatpush.bf16.msrb.mxu3 %v14887_v51 }
 0xa6f   :  { %v20861_v39 = vpop.f32.mrf.mxu3 }
 0xa70   :  { %v9492_v16 = vadd.f32 %v20861_v39, %v20838_v43  ;;  %v14862_v39 = vld [vmem:[%s21100_s9 + $0x28] sm:$0xff] }
 0xa71   :  { %v20890_v34 = vpop.f32.mrf.mxu1  ;;  %10541 = vmatpush.bf16.msra.mxu0 %v14862_v39  ;;  %10598 = vmatpush.bf16.msrb.mxu3 %v14886_v49  ;;  %v10234_v39 = vperm.slane %v10229_v55, 3 }
 0xa75   :  { %10542 = vmatpush.bf16.msra.mxu0 %v14861_v3 }
 0xa77   :  { %v20922_v9 = vpop.f32.mrf.mxu3 }
 0xa78   :  { %v9495_v57 = vadd.f32 %v20922_v9, %v20890_v34 }
 0xa79   :  { %v20948_v20 = vpop.f32.mrf.mxu1 }
 0xa7f   :  { %v20965_v11 = vpop.f32.mrf.mxu3 }
 0xa80   :  { %v9497_v44 = vadd.f32 %v20965_v11, %v20948_v20  ;;  %v14876_v20 = vld [vmem:[%s21100_s9 + $0x98] sm:$0xff]  ;;  %v14859_v11 = vld [vmem:[%s21100_s9 + $0x10] sm:$0xff] }
 0xa81   :  { %v9666_v62 = vpop.f32.mrf.mxu0  ;;  %10581 = vmatpush.bf16.msrb.mxu1 %v14876_v20 }
 0xa87   :  { %v9685_v30 = vpop.f32.mrf.mxu2 }
 0xa88   :  { %v9686_v24 = vadd.f32 %v9685_v30, %v9666_v62  ;;  %v14860_v30 = vld [vmem:[%s21100_s9 + $0x18] sm:$0xff]  ;;  %v14885_v62 = vld [vmem:[%s21100_s9 + $0xe0] sm:$0xff] }
 0xa89   :  { %v9668_v29 = vpop.f32.mrf.mxu0  ;;  %10543 = vmatpush.bf16.msra.mxu0 %v14860_v30  ;;  %10599 = vmatpush.bf16.msrb.mxu3 %v14885_v62 }
 0xa8a   :  { %v9699_v12 = vadd.f32 %v9686_v24, %v9490_v36  ;;  %v14874_v24 = vld [vmem:[%s21100_s9 + $0x88] sm:$0xff]  ;;  %v14867_v36 = vld [vmem:[%s21100_s9 + $0x50] sm:$0xff] }
 0xa8d   :  { %10544 = vmatpush.bf16.msra.mxu0 %v14859_v11 }
 0xa8f   :  { %v9687_v40 = vpop.f32.mrf.mxu2 }
 0xa90   :  { %v9688_v26 = vadd.f32 %v9687_v40, %v9668_v29  ;;  %v14868_v40 = vld [vmem:[%s21100_s9 + $0x58] sm:$0xff] }
 0xa91   :  { %v9671_v43 = vpop.f32.mrf.mxu0  ;;  %v14884_v29 = vld [vmem:[%s21100_s9 + $0xd8] sm:$0xff]  ;;  %10562 = vmatpush.bf16.msra.mxu2 %v14868_v40 }
 0xa92   :  { %v9700_v63 = vadd.f32 %v9688_v26, %v9492_v16  ;;  %10600 = vmatpush.bf16.msrb.mxu3 %v14884_v29  ;;  %v14865_v26 = vld [vmem:[%s21100_s9 + $0x40] sm:$0xff]  ;;  %v10231_v16 = vperm.slane %v10229_v55, 0 }
 0xa95   :  { %10563 = vmatpush.bf16.msra.mxu2 %v14867_v36 }
 0xa97   :  { %v9690_v60 = vpop.f32.mrf.mxu2 }
 0xa98   :  { %v9691_v22 = vadd.f32 %v9690_v60, %v9671_v43 }
 0xa99   :  { %v9673_v7 = vpop.f32.mrf.mxu0  ;;  %10564 = vmatpush.bf16.msra.mxu2 %v14866_v33 }
 0xa9a   :  { %v9701_v41 = vadd.f32 %v9691_v22, %v9495_v57 }
 0xa9d   :  { %10565 = vmatpush.bf16.msra.mxu2 %v14865_v26  ;;  %v14890_v26 = vld [vmem:[%s21101_s10] ss:$0 sm:$0xff] }
 0xa9f   :  { %v9692_v21 = vpop.f32.mrf.mxu2 }
 0xaa0   :  { %v9693_v6 = vadd.f32 %v9692_v21, %v9673_v7 }
 0xaa1   :  { %v9870_v46 = vpop.f32.mrf.mxu1 }
 0xaa2   :  { %v9702_v61 = vadd.f32 %v9693_v6, %v9497_v44 }
 0xaa7   :  { %v9889_v23 = vpop.f32.mrf.mxu3 }
 0xaa8   :  { %v9890_v8 = vadd.f32 %v9889_v23, %v9870_v46  ;;  %v14875_v46 = vld [vmem:[%s21100_s9 + $0x90] sm:$0xff]  ;;  %v14858_v23 = vld [vmem:[%s21100_s9 + $0x8] sm:$0xff] }
 0xaa9   :  { %v9872_v59 = vpop.f32.mrf.mxu1  ;;  %10582 = vmatpush.bf16.msrb.mxu1 %v14875_v46  ;;  %10545 = vmatpush.bf16.msra.mxu0 %v14858_v23 }
 0xaaa   :  { %v9903_v0 = vadd.f32 %v9890_v8, %v9699_v12  ;;  %v14883_v8 = vld [vmem:[%s21100_s9 + $0xd0] sm:$0xff]  ;;  %v14882_v12 = vld [vmem:[%s21100_s9 + $0xc8] sm:$0xff] }
 0xaab   :  { %10601 = vmatpush.bf16.msrb.mxu3 %v14883_v8 }
 0xaac   :  { %v9919_v25 = vadd.f32 %v14889_v4, %v9903_v0  ;;  %v10233_v0 = vperm.slane %v10229_v55, 2 }
 0xaad   :  { %10583 = vmatpush.bf16.msrb.mxu1 %v14874_v24 }
 0xaae   :  { %v9923_v5 = vmax.f32 %v9919_v25, 0.0 }
 0xaaf   :  { %v9891_v27 = vpop.f32.mrf.mxu3  ;;  %10602 = vmatpush.bf16.msrb.mxu3 %v14882_v12 }
 0xab0   :  { %v9892_v50 = vadd.f32 %v9891_v27, %v9872_v59  ;;  %v14857_v59 = vld [vmem:[%s21100_s9] sm:$0xff] }
 0xab1   :  { %v9875_v13 = vpop.f32.mrf.mxu1  ;;  %10546 = vmatpush.bf16.msra.mxu0 %v14857_v59  ;;  %10584 = vmatpush.bf16.msrb.mxu1 %v14873_v19 }
 0xab2   :  { %v9904_v1 = vadd.f32 %v9892_v50, %v9700_v63  ;;  %v10232_v63 = vperm.slane %v10229_v55, 1 }
 0xab3   :  { %10603 = vmatpush.bf16.msrb.mxu3 %v14881_v42 }
 0xab4   :  { %v9920_v10 = vadd.f32 %v14889_v4, %v9904_v1 }
 0xab6   :  { %v9924_v15 = vmax.f32 %v9920_v10, 0.0 }
 0xab7   :  { %v9894_v35 = vpop.f32.mrf.mxu3 }
 0xab8   :  { %v9927_v38 = vpack.c.bf16 %v9924_v15, %v9923_v5  ;;  %v9895_v18 = vadd.f32 %v9894_v35, %v9875_v13 }
 0xab9   :  { %v9877_v52 = vpop.f32.mrf.mxu1 }
 0xaba   :  { %10129 = vmatmul.bf16.vlgmr.msrb.gmra.mxu0 %v9927_v38  ;;  %10148 = vmatmul.bf16.vlgmr.msrb.gmra.mxu2 %v9927_v38  ;;  %v9905_v32 = vadd.f32 %v9895_v18, %v9701_v41 }
 0xabb   :  { %10167 = vmatmul.bf16.vlgmr.msra.gmra.mxu1 %v9927_v38  ;;  %10186 = vmatmul.bf16.vlgmr.msra.gmra.mxu3 %v9927_v38 }
 0xabc   :  { %v9921_v14 = vadd.f32 %v14889_v4, %v9905_v32 }
 0xabe   :  { %v9925_v34 = vmax.f32 %v9921_v14, 0.0 }
 0xabf   :  { %v9896_v37 = vpop.f32.mrf.mxu3 }
 0xac0   :  { %v9897_v54 = vadd.f32 %v9896_v37, %v9877_v52 }
 0xac2   :  { %v9906_v58 = vadd.f32 %v9897_v54, %v9702_v61 }
 0xac4   :  { %v9922_v28 = vadd.f32 %v14889_v4, %v9906_v58 }
 0xac6   :  { %v9926_v9 = vmax.f32 %v9922_v28, 0.0 }
 0xac8   :  { %v9928_v53 = vpack.c.bf16 %v9926_v9, %v9925_v34 }
 0xaca   :  { %10134 = vmatmul.bf16.gmra.mxu0 %v9928_v53  ;;  %10153 = vmatmul.bf16.gmra.mxu2 %v9928_v53 }
 0xacb   :  { %10172 = vmatmul.bf16.gmra.mxu1 %v9928_v53  ;;  %10191 = vmatmul.bf16.gmra.mxu3 %v9928_v53 }
 0xb37   :  { %v10130_v17 = vpop.f32.mrf.mxu0 }
 0xb38   :  { %v10168_v56 = vpop.f32.mrf.mxu1  ;;  %v10239_v45 = vadd.f32 %v10231_v16, %v10130_v17 }
 0xb39   :  { %v10241_v60 = vadd.f32 %v10233_v0, %v10168_v56 }
 0xb3a   :  { %v10255_v25 = vmax.f32 %v10239_v45, 0.0 }
 0xb3b   :  { %v10257_v31 = vmax.f32 %v10241_v60, 0.0 }
 0xb3d   :  { %v10149_v4 = vpop.f32.mrf.mxu2 }
 0xb3e   :  { %v10187_v51 = vpop.f32.mrf.mxu3  ;;  %v10240_v10 = vadd.f32 %v10232_v63, %v10149_v4 }
 0xb3f   :  { %v10132_v27 = vpop.f32.mrf.mxu0  ;;  %v10242_v3 = vadd.f32 %v10234_v39, %v10187_v51 }
 0xb40   :  { %v10243_v50 = vadd.f32 %v10231_v16, %v10132_v27  ;;  %v10170_v43 = vpop.f32.mrf.mxu1  ;;  %v10256_v21 = vmax.f32 %v10240_v10, 0.0 }
 0xb41   :  { %v10245_v48 = vadd.f32 %v10233_v0, %v10170_v43  ;;  %v10258_v7 = vmax.f32 %v10242_v3, 0.0 }
 0xb42   :  { %v10259_v1 = vmax.f32 %v10243_v50, 0.0 }
 0xb43   :  { %v10261_v49 = vmax.f32 %v10245_v48, 0.0 }
 0xb44   :  { %v10271_v13 = vpack.c.bf16 %v10259_v1, %v10255_v25 }
 0xb45   :  { %v10273_v2 = vpack.c.bf16 %v10261_v49, %v10257_v31  ;;  %v10151_v5 = vpop.f32.mrf.mxu2 }
 0xb46   :  { %v10244_v15 = vadd.f32 %v10232_v63, %v10151_v5  ;;  %v10189_v35 = vpop.f32.mrf.mxu3  ;;  %10547 = vmatmul.bf16.vlgmr.msra.gmra.mxu0 %v10271_v13 }
 0xb47   :  { %v10246_v22 = vadd.f32 %v10234_v39, %v10189_v35  ;;  %10585 = vmatmul.bf16.vlgmr.msrb.gmra.mxu1 %v10273_v2  ;;  %v10135_v38 = vpop.f32.mrf.mxu0 }
 0xb48   :  { %v10260_v57 = vmax.f32 %v10244_v15, 0.0  ;;  %v10173_v18 = vpop.f32.mrf.mxu1  ;;  %v10247_v52 = vadd.f32 %v10231_v16, %v10135_v38 }
 0xb49   :  { %v10262_v41 = vmax.f32 %v10246_v22, 0.0  ;;  %v10249_v61 = vadd.f32 %v10233_v0, %v10173_v18 }
 0xb4a   :  { %v10272_v6 = vpack.c.bf16 %v10260_v57, %v10256_v21  ;;  %v10263_v34 = vmax.f32 %v10247_v52, 0.0 }
 0xb4b   :  { %v10274_v44 = vpack.c.bf16 %v10262_v41, %v10258_v7  ;;  %v10265_v53 = vmax.f32 %v10249_v61, 0.0 }
 0xb4c   :  { %10566 = vmatmul.bf16.vlgmr.msra.gmra.mxu2 %v10272_v6 }
 0xb4d   :  { %10604 = vmatmul.bf16.vlgmr.msrb.gmra.mxu3 %v10274_v44  ;;  %v10154_v32 = vpop.f32.mrf.mxu2 }
 0xb4e   :  { %v10192_v37 = vpop.f32.mrf.mxu3  ;;  %v10248_v20 = vadd.f32 %v10232_v63, %v10154_v32 }
 0xb4f   :  { %v10137_v54 = vpop.f32.mrf.mxu0  ;;  %v10250_v62 = vadd.f32 %v10234_v39, %v10192_v37 }
 0xb50   :  { %v10251_v14 = vadd.f32 %v10231_v16, %v10137_v54  ;;  %v10175_v58 = vpop.f32.mrf.mxu1  ;;  %v10264_v24 = vmax.f32 %v10248_v20, 0.0 }
 0xb51   :  { %v10253_v28 = vadd.f32 %v10233_v0, %v10175_v58  ;;  %v10266_v8 = vmax.f32 %v10250_v62, 0.0 }
 0xb52   :  { %v10267_v9 = vmax.f32 %v10251_v14, 0.0 }
 0xb53   :  { %v10269_v30 = vmax.f32 %v10253_v28, 0.0 }
 0xb54   :  { %v10275_v47 = vpack.c.bf16 %v10267_v9, %v10263_v34 }
 0xb55   :  { %v10277_v11 = vpack.c.bf16 %v10269_v30, %v10265_v53  ;;  %v10156_v46 = vpop.f32.mrf.mxu2 }
 0xb56   :  { %v10252_v40 = vadd.f32 %v10232_v63, %v10156_v46  ;;  %v10194_v29 = vpop.f32.mrf.mxu3  ;;  %10552 = vmatmul.bf16.gmra.mxu0 %v10275_v47 }
 0xb57   :  { %v10254_v23 = vadd.f32 %v10234_v39, %v10194_v29  ;;  %10590 = vmatmul.bf16.gmra.mxu1 %v10277_v11 }
 0xb58   :  { %v10268_v36 = vmax.f32 %v10252_v40, 0.0 }
 0xb59   :  { %v10270_v59 = vmax.f32 %v10254_v23, 0.0 }
 0xb5a   :  { %v10276_v19 = vpack.c.bf16 %v10268_v36, %v10264_v24 }
 0xb5b   :  { %v10278_v33 = vpack.c.bf16 %v10270_v59, %v10266_v8 }
 0xb5c   :  { %10571 = vmatmul.bf16.gmra.mxu2 %v10276_v19 }
 0xb5d   :  { %10609 = vmatmul.bf16.gmra.mxu3 %v10278_v33 }
 0xbc3   :  { %v10548_v12 = vpop.f32.mrf.mxu0 }
 0xbc4   :  { %v10586_v42 = vpop.f32.mrf.mxu1  ;;  %v10549_v17 = vadd.f32 %v14890_v26, %v10548_v12 }
 0xbcb   :  { %v10550_v55 = vpop.f32.mrf.mxu0 }
 0xbcc   :  { %v10588_v51 = vpop.f32.mrf.mxu1  ;;  %v10551_v60 = vadd.f32 %v14890_v26, %v10550_v55 }
 0xbcf   :  { %v10567_v56 = vpop.f32.mrf.mxu2 }
 0xbd0   :  { %v10568_v16 = vadd.f32 %v10567_v56, %v10549_v17  ;;  %v10605_v0 = vpop.f32.mrf.mxu3 }
 0xbd2   :  { %v10587_v4 = vadd.f32 %v10586_v42, %v10568_v16 }
 0xbd3   :  { %v10553_v43 = vpop.f32.mrf.mxu0 }
 0xbd4   :  { %v10606_v45 = vadd.f32 %v10605_v0, %v10587_v4  ;;  %v10554_v25 = vadd.f32 %v14890_v26, %v10553_v43  ;;  %v10591_v1 = vpop.f32.mrf.mxu1 }
 0xbd6   :  { %10615 = vst [vmem:[%s21103_s11] sm:$0xff] %v10606_v45 }
 0xbd7   :  { %v10569_v27 = vpop.f32.mrf.mxu2 }
 0xbd8   :  { %v10570_v63 = vadd.f32 %v10569_v27, %v10551_v60  ;;  %v10607_v50 = vpop.f32.mrf.mxu3 }
 0xbda   :  { %v10589_v39 = vadd.f32 %v10588_v51, %v10570_v63 }
 0xbdb   :  { %v10555_v3 = vpop.f32.mrf.mxu0 }
 0xbdc   :  { %v10608_v48 = vadd.f32 %v10607_v50, %v10589_v39  ;;  %v10556_v5 = vadd.f32 %v14890_v26, %v10555_v3  ;;  %v10593_v22 = vpop.f32.mrf.mxu1 }
 0xbde   :  { %10616 = vst [vmem:[%s21103_s11 + $0x8] sm:$0xff] %v10608_v48 }
 0xbdf   :  { %v10572_v31 = vpop.f32.mrf.mxu2 }
 0xbe0   :  { %v10573_v49 = vadd.f32 %v10572_v31, %v10554_v25  ;;  %v10610_v10 = vpop.f32.mrf.mxu3 }
 0xbe2   :  { %v10592_v13 = vadd.f32 %v10591_v1, %v10573_v49 }
 0xbe4   :  { %v10611_v2 = vadd.f32 %v10610_v10, %v10592_v13 }
 0xbe6   :  { %10617 = vst [vmem:[%s21103_s11 + $0x10] sm:$0xff] %v10611_v2 }
 0xbe7   :  { %v10574_v15 = vpop.f32.mrf.mxu2 }
 0xbe8   :  { %v10575_v35 = vadd.f32 %v10574_v15, %v10556_v5  ;;  %v10612_v21 = vpop.f32.mrf.mxu3 }
 0xbea   :  { %v10594_v38 = vadd.f32 %v10593_v22, %v10575_v35 }
 0xbec   :  { %v10613_v57 = vadd.f32 %v10612_v21, %v10594_v38 }
 0xbee   :  { %10618 = vst [vmem:[%s21103_s11 + $0x18] sm:$0xff] %v10613_v57 }

</bundles_post_ra>
